<compile_context>
chip_gen: v5e
topology: v5e:2x2
jax: 0.10.0
libtpu: 0.0.40
codegen_flags: <defaults>
</compile_context>

<pallas_src>
import functools
import math

import jax
import jax.numpy as jnp
from jax.experimental import pallas as pl
from jax.experimental.pallas import tpu as pltpu


# --------------------------------------------------------------------------
# Small helpers
# --------------------------------------------------------------------------
def _round_up(x, m):
    return ((x + m - 1) // m) * m


@functools.lru_cache(maxsize=None)
def _device_kind():
    try:
        return jax.devices()[0].device_kind.lower()
    except Exception:
        return ""


def _is_v5():
    return "v5" in _device_kind()


def _vmem_limit():
    kind = _device_kind()
    if "v7" in kind or "7x" in kind:
        return 48 * 1024 * 1024            # v7x: only 64 MiB physical per TC
    return 64 * 1024 * 1024                # v5e / v6e: 128 MiB physical


def _pick_tm(M):
    Mp = _round_up(M, 8)
    if Mp >= 1024:
        return 512
    if Mp >= 256:
        return _round_up(Mp // 2, 8)       # keep >=2 M tiles (v7x megacore)
    return Mp


def _pick_tn(Np):
    if Np <= 128:
        return Np                          # full-dim block, single j tile
    if Np % 256 == 0 and not _is_v5():
        return 256                         # 256-wide MXU on v6e / v7x
    return 128


def _pick_kp(K):
    Kp = _round_up(K, 128)
    if Kp <= 2048:
        return Kp, Kp                      # single k step
    Kp = _round_up(K, 2048)
    return Kp, 2048


def _pick_tw(H, W):
    """Width tile for conv3x3: divides W, ~<=1024 rows per matmul, prefers
    multiples of 8, keeps >=2 W tiles when W is large (v7x megacore)."""
    target = max(1, 1024 // max(H, 1))
    cap = W // 2 if W >= 16 else W
    limit = max(1, min(target, cap))
    cands = [t for t in range(1, W + 1) if W % t == 0 and t <= limit]
    pref = [t for t in cands if t % 8 == 0]
    return max(pref) if pref else max(cands)


def _concat(feats):
    return feats[0] if len(feats) == 1 else jnp.concatenate(feats, axis=-1)


# --------------------------------------------------------------------------
# conv3x3: tap-decomposed (no im2col)
# --------------------------------------------------------------------------
def _make_conv3x3_kernel(H, tw):
    def kernel(a_ref, w_ref, o_ref):
        # a_ref: (3, H+2, tw, Cp) bf16 -- 3 width-shifted, height-padded views
        # w_ref: (3, 3, Cp, O)    bf16 -- (dh, dw, cin, cout)
        # o_ref: (1, H, tw, O)    f32  -- accumulated in place (no scratch)
        first = True
        for dh in range(3):
            for dw in range(3):
                a = a_ref[dw, dh:dh + H, :, :]              # outer-dim slice: cheap
                a = a.reshape(H * tw, a.shape[-1])
                p = jnp.dot(a, w_ref[dh, dw],
                            preferred_element_type=jnp.float32)
                p = p.reshape(o_ref.shape)
                if first:
                    o_ref[...] = p
                    first = False
                else:
                    o_ref[...] += p
    return kernel


@functools.lru_cache(maxsize=None)
def _build_conv3x3(N, H, W, Cp, O, tw):
    kernel = _make_conv3x3_kernel(H, tw)
    return pl.pallas_call(
        kernel,
        out_shape=jax.ShapeDtypeStruct((N, H, W, O), jnp.float32),
        grid=(N, W // tw),
        in_specs=[
            pl.BlockSpec((3, H + 2, tw, Cp), lambda n, wb: (n, 0, wb, 0)),
            pl.BlockSpec((3, 3, Cp, O), lambda n, wb: (0, 0, 0, 0)),
        ],
        out_specs=pl.BlockSpec((1, H, tw, O), lambda n, wb: (n, 0, wb, 0)),
        compiler_params=pltpu.CompilerParams(
            dimension_semantics=("parallel", "parallel"),
            vmem_limit_bytes=_vmem_limit()),
    )


def conv3x3(x_nhwc, wt, scale=None, shift=None):
    """3x3 conv (padding=1, stride=1, no bias) on NHWC.  If scale/shift are given,
    relu(x*scale+shift) is applied first (BasicBlock's bn->relu->conv), fused by
    XLA into the producer of the shifted views.  wt is pre-packed (3,3,Cp,O) bf16."""
    N, H, W, C = x_nhwc.shape
    Cp, O = wt.shape[2], wt.shape[3]
    x = x_nhwc
    if scale is not None:
        x = jnp.maximum(x * scale + shift, 0.0)             # f32 VPU math
    x = x.astype(jnp.bfloat16)
    xp = jnp.pad(x, ((0, 0), (1, 1), (1, 1), (0, Cp - C)))
    # three width-shifted (dw) views; dh taps are sliced inside the kernel
    xs = jnp.stack([xp[:, :, d:d + W, :] for d in range(3)], axis=1)
    xs = xs.reshape(N * 3, H + 2, W, Cp)
    tw = _pick_tw(H, W)
    return _build_conv3x3(N, H, W, Cp, O, tw)(xs, wt)


# --------------------------------------------------------------------------
# Transition: bn -> relu -> 1x1 conv, fused in one matmul kernel (bf16 A load)
# --------------------------------------------------------------------------
def _bn_relu_matmul_kernel(a_ref, s_ref, t_ref, b_ref, o_ref):
    a = a_ref[...].astype(jnp.float32)                      # bf16 load, f32 affine
    a = jnp.maximum(a * s_ref[...] + t_ref[...], 0.0).astype(jnp.bfloat16)
    o_ref[...] = jnp.dot(a, b_ref[...], preferred_element_type=jnp.float32)


@functools.lru_cache(maxsize=None)
def _build_trans(Mp, Kp, Np, tm, tn):
    return pl.pallas_call(
        _bn_relu_matmul_kernel,
        out_shape=jax.ShapeDtypeStruct((Mp, Np), jnp.float32),
        grid=(Mp // tm, Np // tn),
        in_specs=[
            pl.BlockSpec((tm, Kp), lambda i, j: (i, 0)),
            pl.BlockSpec((1, Kp), lambda i, j: (0, 0)),
            pl.BlockSpec((1, Kp), lambda i, j: (0, 0)),
            pl.BlockSpec((Kp, tn), lambda i, j: (0, j)),
        ],
        out_specs=pl.BlockSpec((tm, tn), lambda i, j: (i, j)),
        compiler_params=pltpu.CompilerParams(
            dimension_semantics=("parallel", "parallel"),
            vmem_limit_bytes=_vmem_limit()),
    )


def bn_relu_conv1x1(x_nhwc, scale_p, shift_p, w_p, compression=2):
    # Whole K in a single block (Kp <= 2048 for every DenseNet-BC width here).
    N, H, W, C = x_nhwc.shape
    Kp, Np = w_p.shape
    O = min(Np, C // compression)          # true out-width (Np may be lane-padded)
    M = N * H * W
    tm = _pick_tm(M)
    Mp = _round_up(M, tm)
    tn = _pick_tn(Np)
    a = jnp.pad(x_nhwc.reshape(M, C).astype(jnp.bfloat16),
                ((0, Mp - M), (0, Kp - C)))
    y = _build_trans(Mp, Kp, Np, tm, tn)(a, scale_p, shift_p, w_p)
    return y[:M, :O].reshape(N, H, W, O)


# --------------------------------------------------------------------------
# Generic matmul (fc layer)
# --------------------------------------------------------------------------
def _matmul_kernel_single(a_ref, b_ref, o_ref):
    o_ref[...] = jnp.dot(a_ref[...], b_ref[...], preferred_element_type=jnp.float32)


def _matmul_kernel_multi(a_ref, b_ref, o_ref):
    @pl.when(pl.program_id(2) == 0)
    def _init():
        o_ref[...] = jnp.zeros_like(o_ref)
    o_ref[...] += jnp.dot(a_ref[...], b_ref[...], preferred_element_type=jnp.float32)


@functools.lru_cache(maxsize=None)
def _build_matmul(Mp, Kp, Np, tm, tn, tk):
    nk = Kp // tk
    if nk == 1:
        return pl.pallas_call(
            _matmul_kernel_single,
            out_shape=jax.ShapeDtypeStruct((Mp, Np), jnp.float32),
            grid=(Mp // tm, Np // tn),
            in_specs=[pl.BlockSpec((tm, tk), lambda i, j: (i, 0)),
                      pl.BlockSpec((tk, tn), lambda i, j: (0, j))],
            out_specs=pl.BlockSpec((tm, tn), lambda i, j: (i, j)),
            compiler_params=pltpu.CompilerParams(
                dimension_semantics=("parallel", "parallel"),
                vmem_limit_bytes=_vmem_limit()))
    return pl.pallas_call(
        _matmul_kernel_multi,
        out_shape=jax.ShapeDtypeStruct((Mp, Np), jnp.float32),
        grid=(Mp // tm, Np // tn, nk),
        in_specs=[pl.BlockSpec((tm, tk), lambda i, j, k: (i, k)),
                  pl.BlockSpec((tk, tn), lambda i, j, k: (k, j))],
        out_specs=pl.BlockSpec((tm, tn), lambda i, j, k: (i, j)),
        compiler_params=pltpu.CompilerParams(
            dimension_semantics=("parallel", "parallel", "arbitrary"),
            vmem_limit_bytes=_vmem_limit()))


def pallas_matmul(a_f32, b_packed):
    """(M, K) f32 @ pre-packed (Kp, Np) bf16 -> (M, Np) f32."""
    M, K = a_f32.shape
    Kp, Np = b_packed.shape
    tk = Kp if Kp <= 2048 else 2048
    tm = _pick_tm(M)
    Mp = _round_up(M, tm)
    tn = _pick_tn(Np)
    a = jnp.pad(a_f32.astype(jnp.bfloat16), ((0, Mp - M), (0, Kp - K)))
    return _build_matmul(Mp, Kp, Np, tm, tn, tk)(a, b_packed)[:M]


# --------------------------------------------------------------------------
# Average pooling (tiled; optional fused bn->relu)
# --------------------------------------------------------------------------
def _make_pool_kernel(k, fused):
    def kernel(*refs):
        if fused:
            x_ref, s_ref, t_ref, p_ref, o_ref = refs
        else:
            x_ref, p_ref, o_ref = refs
        x = x_ref[0]                                        # (k, W, C) f32
        if fused:
            x = jnp.maximum(x * s_ref[...] + t_ref[...], 0.0)
        r = x[0]
        for i in range(1, k):
            r = r + x[i]                                    # sum over pooled rows
        # column pooling as a tiny constant matmul: (Wo, W) @ (W, C)
        o_ref[0, 0] = jnp.dot(p_ref[...], r, preferred_element_type=jnp.float32)
    return kernel


@functools.lru_cache(maxsize=None)
def _build_pool(N, H, W, C, k, fused):
    Ho, Wo = H // k, W // k
    kernel = _make_pool_kernel(k, fused)
    in_specs = [pl.BlockSpec((1, k, W, C), lambda n, ho: (n, ho, 0, 0))]
    if fused:
        in_specs += [pl.BlockSpec((1, C), lambda n, ho: (0, 0)),
                     pl.BlockSpec((1, C), lambda n, ho: (0, 0))]
    in_specs += [pl.BlockSpec((Wo, W), lambda n, ho: (0, 0))]
    return pl.pallas_call(
        kernel,
        out_shape=jax.ShapeDtypeStruct((N, Ho, Wo, C), jnp.float32),
        grid=(N, Ho),
        in_specs=in_specs,
        out_specs=pl.BlockSpec((1, 1, Wo, C), lambda n, ho: (n, ho, 0, 0)),
        compiler_params=pltpu.CompilerParams(
            dimension_semantics=("parallel", "parallel"),
            vmem_limit_bytes=_vmem_limit()),
    )


def avg_pool2d(x_nhwc, k, scale=None, shift=None):
    """Non-overlapping k x k average pool; optional fused relu(x*scale+shift)."""
    N, H, W, C = x_nhwc.shape
    Ho, Wo = H // k, W // k
    x = x_nhwc[:, :Ho * k, :Wo * k, :]
    pool_mat = jnp.repeat(jnp.eye(Wo, dtype=jnp.float32), k, axis=1) / float(k * k)
    if scale is None:
        return _build_pool(N, Ho * k, Wo * k, C, k, False)(x, pool_mat)
    return _build_pool(N, Ho * k, Wo * k, C, k, True)(x, scale, shift, pool_mat)


# --------------------------------------------------------------------------
# Parameter construction (mirrors DenseNet.__init__, weights pre-packed once)
# --------------------------------------------------------------------------
def init_params(key, num_classes=21, depth=100, growthRate=12,
                compressionRate=2, in_channels=1, input_hw=(48, 64)):
    assert (depth - 4) % 3 == 0, "depth should be 3n+4"
    n = (depth - 4) // 3
    keys = iter(jax.random.split(key, 3 * n + 8))

    def conv_w(k, out_c, in_c, kh, kw):
        fan = kh * kw * out_c
        return math.sqrt(2.0 / fan) * jax.random.normal(
            k, (out_c, in_c, kh, kw), jnp.float32)

    def pack_conv3x3(w_oihw):
        O, C = w_oihw.shape[0], w_oihw.shape[1]
        Cp = _round_up(C, 128)              # channel bucket -> shared kernel shapes
        wt = jnp.transpose(w_oihw, (2, 3, 1, 0))            # (kh, kw, C, O)
        wt = jnp.pad(wt, ((0, 0), (0, 0), (0, Cp - C), (0, 0)))
        return wt.astype(jnp.bfloat16)

    def bn_affine(c):
        eps = 1e-5
        gamma = jnp.ones((c,), jnp.float32)
        beta = jnp.zeros((c,), jnp.float32)
        running_mean = jnp.zeros((c,), jnp.float32)
        running_var = jnp.ones((c,), jnp.float32)
        scale = gamma / jnp.sqrt(running_var + eps)
        shift = beta - running_mean * scale
        return scale, shift

    params = {}
    inplanes = growthRate * 2
    params["conv1"] = pack_conv3x3(conv_w(next(keys), inplanes, in_channels, 3, 3))

    def make_dense(inplanes):
        blocks = []
        for _ in range(n):
            s, t = bn_affine(inplanes)
            blocks.append({
                "scale": s, "shift": t,
                "w": pack_conv3x3(conv_w(next(keys), growthRate, inplanes, 3, 3)),
            })
            inplanes += growthRate
        return blocks, inplanes

    def make_trans(inplanes):
        out = int(math.floor(inplanes // compressionRate))
        s, t = bn_affine(inplanes)
        Kp = _round_up(inplanes, 128)
        Np = out if out <= 128 else _round_up(out, 128)
        w = conv_w(next(keys), out, inplanes, 1, 1).reshape(out, inplanes)
        wm = jnp.pad(jnp.transpose(w, (1, 0)),
                     ((0, Kp - inplanes), (0, Np - out))).astype(jnp.bfloat16)
        tr = {"scale": jnp.pad(s, (0, Kp - inplanes)).reshape(1, Kp),
              "shift": jnp.pad(t, (0, Kp - inplanes)).reshape(1, Kp),
              "w": wm}
        return tr, out

    params["dense1"], inplanes = make_dense(inplanes)
    params["trans1"], inplanes = make_trans(inplanes)
    params["dense2"], inplanes = make_dense(inplanes)
    params["trans2"], inplanes = make_trans(inplanes)
    params["dense3"], inplanes = make_dense(inplanes)
    s, t = bn_affine(inplanes)
    params["bn_scale"] = s.reshape(1, inplanes)
    params["bn_shift"] = t.reshape(1, inplanes)

    # fc fan_in = channels after dense3 * spatial after the 2x, 2x, 4x pools.
    # depth=100 with a 48x64 input gives 678*3*4 = 8136 == nn.Linear(8136, .).
    h, w = input_hw
    fan_in = inplanes * (h // 16) * (w // 16)
    bound = 1.0 / math.sqrt(fan_in)
    fc_w = jax.random.uniform(next(keys), (num_classes, fan_in),
                              jnp.float32, -bound, bound)
    Kp = _pick_kp(fan_in)[0]
    params["fc_w"] = jnp.pad(jnp.transpose(fc_w, (1, 0)),
                             ((0, Kp - fan_in), (0, 0))).astype(jnp.bfloat16)
    params["fc_b"] = jax.random.uniform(next(keys), (num_classes,),
                                        jnp.float32, -bound, bound)
    return params


# --------------------------------------------------------------------------
# Forward pass (DenseNet.forward) -- call under jax.jit
# --------------------------------------------------------------------------
def densenet_forward(params, x_nchw):
    x = jnp.transpose(x_nchw, (0, 2, 3, 1)).astype(jnp.float32)   # -> NHWC
    feats = [conv3x3(x, params["conv1"])]

    def dense_block(feats, blocks):
        # BasicBlock: bn -> relu -> conv3x3 -> cat ; dropRate==0 so no dropout.
        for blk in blocks:
            xin = _concat(feats)
            feats = feats + [conv3x3(xin, blk["w"], blk["scale"], blk["shift"])]
        return feats

    def transition(feats, tr):
        # Transition: bn -> relu -> conv1x1 -> avgpool2 (BN+ReLU fused in kernel).
        y = bn_relu_conv1x1(_concat(feats), tr["scale"], tr["shift"], tr["w"])
        return [avg_pool2d(y, 2)]

    feats = dense_block(feats, params["dense1"])
    feats = transition(feats, params["trans1"])
    feats = dense_block(feats, params["dense2"])
    feats = transition(feats, params["trans2"])
    feats = dense_block(feats, params["dense3"])

    # final bn -> relu fused into the 4x4 average pool
    y = avg_pool2d(_concat(feats), 4, params["bn_scale"], params["bn_shift"])

    # PyTorch flattens in NCHW order before the fc layer.
    N = y.shape[0]
    y = jnp.transpose(y, (0, 3, 1, 2)).reshape(N, -1)
    logits = pallas_matmul(y, params["fc_w"]) + params["fc_b"][None, :]
    return logits


if __name__ == "__main__":
    key = jax.random.PRNGKey(0)
    pkey, xkey = jax.random.split(key)

    # Small self-check configuration: same architecture / forward semantics as
    # DenseNet(num_classes=21), with fewer BasicBlocks (depth=16 -> n=4) and a
    # 16x16 input so compilation and the run stay fast.  depth=100 with a
    # (N, 1, 48, 64) input reproduces the reference model (fc fan_in = 8136)
    # through this exact code path.
    depth = 16
    params = init_params(pkey, num_classes=21, depth=depth, input_hw=(16, 16))
    x = jax.random.normal(xkey, (2, 1, 16, 16), jnp.float32)   # NCHW like PyTorch

    fwd = jax.jit(densenet_forward)
    out = jax.block_until_ready(fwd(params, x))
    assert out.shape == (2, 21), out.shape
    assert bool(jnp.all(jnp.isfinite(out)))
    print("KERNEL_OK")
</pallas_src>

<mosaic_0001>
module attributes {stable_mosaic.version = 11 : i64} {
  func.func @kernel(%arg0: i32, %arg1: i32, %arg2: memref<3x18x8x128xbf16, #tpu.memory_space<vmem>>, %arg3: memref<3x3x128x24xbf16, #tpu.memory_space<vmem>>, %arg4: memref<1x16x8x24xf32, #tpu.memory_space<vmem>>) attributes {dimension_semantics = [#tpu.dimension_semantics<parallel>, #tpu.dimension_semantics<parallel>], iteration_bounds = array<i64: 2, 2>, scalar_prefetch = 0 : i64, scratch_operands = 0 : i64, tpu.core_type = #tpu.core_type<tc>, window_params = [{transform_indices = @transform_0, window_bounds = array<i64: 3, 18, 8, 128>}, {pipeline_mode = #tpu.pipeline_mode<synchronous>, transform_indices = @transform_1, window_bounds = array<i64: 3, 3, 128, 24>}, {transform_indices = @transform_2, window_bounds = array<i64: 1, 16, 8, 24>}]} {
    %c0 = arith.constant 0 : index
    %c0_0 = arith.constant 0 : index
    %c0_1 = arith.constant 0 : index
    %c0_2 = arith.constant 0 : index
    %0 = vector.load %arg2[%c0, %c0_0, %c0_1, %c0_2] : memref<3x18x8x128xbf16, #tpu.memory_space<vmem>>, vector<1x16x8x128xbf16>
    %1 = vector.shape_cast %0 : vector<1x16x8x128xbf16> to vector<16x8x128xbf16>
    %2 = vector.shape_cast %1 : vector<16x8x128xbf16> to vector<128x128xbf16>
    %c0_3 = arith.constant 0 : index
    %c0_4 = arith.constant 0 : index
    %c0_5 = arith.constant 0 : index
    %c0_6 = arith.constant 0 : index
    %3 = vector.load %arg3[%c0_3, %c0_4, %c0_5, %c0_6] : memref<3x3x128x24xbf16, #tpu.memory_space<vmem>>, vector<1x1x128x24xbf16>
    %4 = vector.shape_cast %3 : vector<1x1x128x24xbf16> to vector<128x24xbf16>
    %cst = arith.constant dense<0.000000e+00> : vector<128x24xf32>
    %5 = tpu.matmul %2, %4, %cst {dimension_numbers = #tpu.dot_dimension_numbers<[1], [0], [0], [1], [0, 0, 1, 1], [], []>} : vector<128x128xbf16>, vector<128x24xbf16>, vector<128x24xf32> -> vector<128x24xf32>
    %6 = vector.shape_cast %5 : vector<128x24xf32> to vector<1x16x8x24xf32>
    %c0_7 = arith.constant 0 : index
    %c0_8 = arith.constant 0 : index
    %c0_9 = arith.constant 0 : index
    %c0_10 = arith.constant 0 : index
    %7 = vector.load %arg4[%c0_7, %c0_8, %c0_9, %c0_10] : memref<1x16x8x24xf32, #tpu.memory_space<vmem>>, vector<1x16x8x24xf32>
    tpu.vector_store %arg4[%c0_7, %c0_8, %c0_9, %c0_10], %6 {strides = array<i32>} : memref<1x16x8x24xf32, #tpu.memory_space<vmem>>, vector<1x16x8x24xf32>,
    %c1 = arith.constant 1 : index
    %c0_11 = arith.constant 0 : index
    %c0_12 = arith.constant 0 : index
    %c0_13 = arith.constant 0 : index
    %8 = vector.load %arg2[%c1, %c0_11, %c0_12, %c0_13] : memref<3x18x8x128xbf16, #tpu.memory_space<vmem>>, vector<1x16x8x128xbf16>
    %9 = vector.shape_cast %8 : vector<1x16x8x128xbf16> to vector<16x8x128xbf16>
    %10 = vector.shape_cast %9 : vector<16x8x128xbf16> to vector<128x128xbf16>
    %c0_14 = arith.constant 0 : index
    %c1_15 = arith.constant 1 : index
    %c0_16 = arith.constant 0 : index
    %c0_17 = arith.constant 0 : index
    %11 = vector.load %arg3[%c0_14, %c1_15, %c0_16, %c0_17] : memref<3x3x128x24xbf16, #tpu.memory_space<vmem>>, vector<1x1x128x24xbf16>
    %12 = vector.shape_cast %11 : vector<1x1x128x24xbf16> to vector<128x24xbf16>
    %cst_18 = arith.constant dense<0.000000e+00> : vector<128x24xf32>
    %13 = tpu.matmul %10, %12, %cst_18 {dimension_numbers = #tpu.dot_dimension_numbers<[1], [0], [0], [1], [0, 0, 1, 1], [], []>} : vector<128x128xbf16>, vector<128x24xbf16>, vector<128x24xf32> -> vector<128x24xf32>
    %14 = vector.shape_cast %13 : vector<128x24xf32> to vector<1x16x8x24xf32>
    %c0_19 = arith.constant 0 : index
    %c0_20 = arith.constant 0 : index
    %c0_21 = arith.constant 0 : index
    %c0_22 = arith.constant 0 : index
    %15 = vector.load %arg4[%c0_19, %c0_20, %c0_21, %c0_22] : memref<1x16x8x24xf32, #tpu.memory_space<vmem>>, vector<1x16x8x24xf32>
    %16 = arith.addf %15, %14 : vector<1x16x8x24xf32>
    %c0_23 = arith.constant 0 : index
    %c0_24 = arith.constant 0 : index
    %c0_25 = arith.constant 0 : index
    %c0_26 = arith.constant 0 : index
    %17 = vector.load %arg4[%c0_23, %c0_24, %c0_25, %c0_26] : memref<1x16x8x24xf32, #tpu.memory_space<vmem>>, vector<1x16x8x24xf32>
    tpu.vector_store %arg4[%c0_23, %c0_24, %c0_25, %c0_26], %16 {strides = array<i32>} : memref<1x16x8x24xf32, #tpu.memory_space<vmem>>, vector<1x16x8x24xf32>,
    %c2 = arith.constant 2 : index
    %c0_27 = arith.constant 0 : index
    %c0_28 = arith.constant 0 : index
    %c0_29 = arith.constant 0 : index
    %18 = vector.load %arg2[%c2, %c0_27, %c0_28, %c0_29] : memref<3x18x8x128xbf16, #tpu.memory_space<vmem>>, vector<1x16x8x128xbf16>
    %19 = vector.shape_cast %18 : vector<1x16x8x128xbf16> to vector<16x8x128xbf16>
    %20 = vector.shape_cast %19 : vector<16x8x128xbf16> to vector<128x128xbf16>
    %c0_30 = arith.constant 0 : index
    %c2_31 = arith.constant 2 : index
    %c0_32 = arith.constant 0 : index
    %c0_33 = arith.constant 0 : index
    %21 = vector.load %arg3[%c0_30, %c2_31, %c0_32, %c0_33] : memref<3x3x128x24xbf16, #tpu.memory_space<vmem>>, vector<1x1x128x24xbf16>
    %22 = vector.shape_cast %21 : vector<1x1x128x24xbf16> to vector<128x24xbf16>
    %cst_34 = arith.constant dense<0.000000e+00> : vector<128x24xf32>
    %23 = tpu.matmul %20, %22, %cst_34 {dimension_numbers = #tpu.dot_dimension_numbers<[1], [0], [0], [1], [0, 0, 1, 1], [], []>} : vector<128x128xbf16>, vector<128x24xbf16>, vector<128x24xf32> -> vector<128x24xf32>
    %24 = vector.shape_cast %23 : vector<128x24xf32> to vector<1x16x8x24xf32>
    %c0_35 = arith.constant 0 : index
    %c0_36 = arith.constant 0 : index
    %c0_37 = arith.constant 0 : index
    %c0_38 = arith.constant 0 : index
    %25 = vector.load %arg4[%c0_35, %c0_36, %c0_37, %c0_38] : memref<1x16x8x24xf32, #tpu.memory_space<vmem>>, vector<1x16x8x24xf32>
    %26 = arith.addf %25, %24 : vector<1x16x8x24xf32>
    %c0_39 = arith.constant 0 : index
    %c0_40 = arith.constant 0 : index
    %c0_41 = arith.constant 0 : index
    %c0_42 = arith.constant 0 : index
    %27 = vector.load %arg4[%c0_39, %c0_40, %c0_41, %c0_42] : memref<1x16x8x24xf32, #tpu.memory_space<vmem>>, vector<1x16x8x24xf32>
    tpu.vector_store %arg4[%c0_39, %c0_40, %c0_41, %c0_42], %26 {strides = array<i32>} : memref<1x16x8x24xf32, #tpu.memory_space<vmem>>, vector<1x16x8x24xf32>,
    %c0_43 = arith.constant 0 : index
    %c1_44 = arith.constant 1 : index
    %c0_45 = arith.constant 0 : index
    %c0_46 = arith.constant 0 : index
    %28 = vector.load %arg2[%c0_43, %c1_44, %c0_45, %c0_46] : memref<3x18x8x128xbf16, #tpu.memory_space<vmem>>, vector<1x16x8x128xbf16>
    %29 = vector.shape_cast %28 : vector<1x16x8x128xbf16> to vector<16x8x128xbf16>
    %30 = vector.shape_cast %29 : vector<16x8x128xbf16> to vector<128x128xbf16>
    %c1_47 = arith.constant 1 : index
    %c0_48 = arith.constant 0 : index
    %c0_49 = arith.constant 0 : index
    %c0_50 = arith.constant 0 : index
    %31 = vector.load %arg3[%c1_47, %c0_48, %c0_49, %c0_50] : memref<3x3x128x24xbf16, #tpu.memory_space<vmem>>, vector<1x1x128x24xbf16>
    %32 = vector.shape_cast %31 : vector<1x1x128x24xbf16> to vector<128x24xbf16>
    %cst_51 = arith.constant dense<0.000000e+00> : vector<128x24xf32>
    %33 = tpu.matmul %30, %32, %cst_51 {dimension_numbers = #tpu.dot_dimension_numbers<[1], [0], [0], [1], [0, 0, 1, 1], [], []>} : vector<128x128xbf16>, vector<128x24xbf16>, vector<128x24xf32> -> vector<128x24xf32>
    %34 = vector.shape_cast %33 : vector<128x24xf32> to vector<1x16x8x24xf32>
    %c0_52 = arith.constant 0 : index
    %c0_53 = arith.constant 0 : index
    %c0_54 = arith.constant 0 : index
    %c0_55 = arith.constant 0 : index
    %35 = vector.load %arg4[%c0_52, %c0_53, %c0_54, %c0_55] : memref<1x16x8x24xf32, #tpu.memory_space<vmem>>, vector<1x16x8x24xf32>
    %36 = arith.addf %35, %34 : vector<1x16x8x24xf32>
    %c0_56 = arith.constant 0 : index
    %c0_57 = arith.constant 0 : index
    %c0_58 = arith.constant 0 : index
    %c0_59 = arith.constant 0 : index
    %37 = vector.load %arg4[%c0_56, %c0_57, %c0_58, %c0_59] : memref<1x16x8x24xf32, #tpu.memory_space<vmem>>, vector<1x16x8x24xf32>
    tpu.vector_store %arg4[%c0_56, %c0_57, %c0_58, %c0_59], %36 {strides = array<i32>} : memref<1x16x8x24xf32, #tpu.memory_space<vmem>>, vector<1x16x8x24xf32>,
    %c1_60 = arith.constant 1 : index
    %c1_61 = arith.constant 1 : index
    %c0_62 = arith.constant 0 : index
    %c0_63 = arith.constant 0 : index
    %38 = vector.load %arg2[%c1_60, %c1_61, %c0_62, %c0_63] : memref<3x18x8x128xbf16, #tpu.memory_space<vmem>>, vector<1x16x8x128xbf16>
    %39 = vector.shape_cast %38 : vector<1x16x8x128xbf16> to vector<16x8x128xbf16>
    %40 = vector.shape_cast %39 : vector<16x8x128xbf16> to vector<128x128xbf16>
    %c1_64 = arith.constant 1 : index
    %c1_65 = arith.constant 1 : index
    %c0_66 = arith.constant 0 : index
    %c0_67 = arith.constant 0 : index
    %41 = vector.load %arg3[%c1_64, %c1_65, %c0_66, %c0_67] : memref<3x3x128x24xbf16, #tpu.memory_space<vmem>>, vector<1x1x128x24xbf16>
    %42 = vector.shape_cast %41 : vector<1x1x128x24xbf16> to vector<128x24xbf16>
    %cst_68 = arith.constant dense<0.000000e+00> : vector<128x24xf32>
    %43 = tpu.matmul %40, %42, %cst_68 {dimension_numbers = #tpu.dot_dimension_numbers<[1], [0], [0], [1], [0, 0, 1, 1], [], []>} : vector<128x128xbf16>, vector<128x24xbf16>, vector<128x24xf32> -> vector<128x24xf32>
    %44 = vector.shape_cast %43 : vector<128x24xf32> to vector<1x16x8x24xf32>
    %c0_69 = arith.constant 0 : index
    %c0_70 = arith.constant 0 : index
    %c0_71 = arith.constant 0 : index
    %c0_72 = arith.constant 0 : index
    %45 = vector.load %arg4[%c0_69, %c0_70, %c0_71, %c0_72] : memref<1x16x8x24xf32, #tpu.memory_space<vmem>>, vector<1x16x8x24xf32>
    %46 = arith.addf %45, %44 : vector<1x16x8x24xf32>
    %c0_73 = arith.constant 0 : index
    %c0_74 = arith.constant 0 : index
    %c0_75 = arith.constant 0 : index
    %c0_76 = arith.constant 0 : index
    %47 = vector.load %arg4[%c0_73, %c0_74, %c0_75, %c0_76] : memref<1x16x8x24xf32, #tpu.memory_space<vmem>>, vector<1x16x8x24xf32>
    tpu.vector_store %arg4[%c0_73, %c0_74, %c0_75, %c0_76], %46 {strides = array<i32>} : memref<1x16x8x24xf32, #tpu.memory_space<vmem>>, vector<1x16x8x24xf32>,
    %c2_77 = arith.constant 2 : index
    %c1_78 = arith.constant 1 : index
    %c0_79 = arith.constant 0 : index
    %c0_80 = arith.constant 0 : index
    %48 = vector.load %arg2[%c2_77, %c1_78, %c0_79, %c0_80] : memref<3x18x8x128xbf16, #tpu.memory_space<vmem>>, vector<1x16x8x128xbf16>
    %49 = vector.shape_cast %48 : vector<1x16x8x128xbf16> to vector<16x8x128xbf16>
    %50 = vector.shape_cast %49 : vector<16x8x128xbf16> to vector<128x128xbf16>
    %c1_81 = arith.constant 1 : index
    %c2_82 = arith.constant 2 : index
    %c0_83 = arith.constant 0 : index
    %c0_84 = arith.constant 0 : index
    %51 = vector.load %arg3[%c1_81, %c2_82, %c0_83, %c0_84] : memref<3x3x128x24xbf16, #tpu.memory_space<vmem>>, vector<1x1x128x24xbf16>
    %52 = vector.shape_cast %51 : vector<1x1x128x24xbf16> to vector<128x24xbf16>
    %cst_85 = arith.constant dense<0.000000e+00> : vector<128x24xf32>
    %53 = tpu.matmul %50, %52, %cst_85 {dimension_numbers = #tpu.dot_dimension_numbers<[1], [0], [0], [1], [0, 0, 1, 1], [], []>} : vector<128x128xbf16>, vector<128x24xbf16>, vector<128x24xf32> -> vector<128x24xf32>
    %54 = vector.shape_cast %53 : vector<128x24xf32> to vector<1x16x8x24xf32>
    %c0_86 = arith.constant 0 : index
    %c0_87 = arith.constant 0 : index
    %c0_88 = arith.constant 0 : index
    %c0_89 = arith.constant 0 : index
    %55 = vector.load %arg4[%c0_86, %c0_87, %c0_88, %c0_89] : memref<1x16x8x24xf32, #tpu.memory_space<vmem>>, vector<1x16x8x24xf32>
    %56 = arith.addf %55, %54 : vector<1x16x8x24xf32>
    %c0_90 = arith.constant 0 : index
    %c0_91 = arith.constant 0 : index
    %c0_92 = arith.constant 0 : index
    %c0_93 = arith.constant 0 : index
    %57 = vector.load %arg4[%c0_90, %c0_91, %c0_92, %c0_93] : memref<1x16x8x24xf32, #tpu.memory_space<vmem>>, vector<1x16x8x24xf32>
    tpu.vector_store %arg4[%c0_90, %c0_91, %c0_92, %c0_93], %56 {strides = array<i32>} : memref<1x16x8x24xf32, #tpu.memory_space<vmem>>, vector<1x16x8x24xf32>,
    %c0_94 = arith.constant 0 : index
    %c2_95 = arith.constant 2 : index
    %c0_96 = arith.constant 0 : index
    %c0_97 = arith.constant 0 : index
    %58 = vector.load %arg2[%c0_94, %c2_95, %c0_96, %c0_97] : memref<3x18x8x128xbf16, #tpu.memory_space<vmem>>, vector<1x16x8x128xbf16>
    %59 = vector.shape_cast %58 : vector<1x16x8x128xbf16> to vector<16x8x128xbf16>
    %60 = vector.shape_cast %59 : vector<16x8x128xbf16> to vector<128x128xbf16>
    %c2_98 = arith.constant 2 : index
    %c0_99 = arith.constant 0 : index
    %c0_100 = arith.constant 0 : index
    %c0_101 = arith.constant 0 : index
    %61 = vector.load %arg3[%c2_98, %c0_99, %c0_100, %c0_101] : memref<3x3x128x24xbf16, #tpu.memory_space<vmem>>, vector<1x1x128x24xbf16>
    %62 = vector.shape_cast %61 : vector<1x1x128x24xbf16> to vector<128x24xbf16>
    %cst_102 = arith.constant dense<0.000000e+00> : vector<128x24xf32>
    %63 = tpu.matmul %60, %62, %cst_102 {dimension_numbers = #tpu.dot_dimension_numbers<[1], [0], [0], [1], [0, 0, 1, 1], [], []>} : vector<128x128xbf16>, vector<128x24xbf16>, vector<128x24xf32> -> vector<128x24xf32>
    %64 = vector.shape_cast %63 : vector<128x24xf32> to vector<1x16x8x24xf32>
    %c0_103 = arith.constant 0 : index
    %c0_104 = arith.constant 0 : index
    %c0_105 = arith.constant 0 : index
    %c0_106 = arith.constant 0 : index
    %65 = vector.load %arg4[%c0_103, %c0_104, %c0_105, %c0_106] : memref<1x16x8x24xf32, #tpu.memory_space<vmem>>, vector<1x16x8x24xf32>
    %66 = arith.addf %65, %64 : vector<1x16x8x24xf32>
    %c0_107 = arith.constant 0 : index
    %c0_108 = arith.constant 0 : index
    %c0_109 = arith.constant 0 : index
    %c0_110 = arith.constant 0 : index
    %67 = vector.load %arg4[%c0_107, %c0_108, %c0_109, %c0_110] : memref<1x16x8x24xf32, #tpu.memory_space<vmem>>, vector<1x16x8x24xf32>
    tpu.vector_store %arg4[%c0_107, %c0_108, %c0_109, %c0_110], %66 {strides = array<i32>} : memref<1x16x8x24xf32, #tpu.memory_space<vmem>>, vector<1x16x8x24xf32>,
    %c1_111 = arith.constant 1 : index
    %c2_112 = arith.constant 2 : index
    %c0_113 = arith.constant 0 : index
    %c0_114 = arith.constant 0 : index
    %68 = vector.load %arg2[%c1_111, %c2_112, %c0_113, %c0_114] : memref<3x18x8x128xbf16, #tpu.memory_space<vmem>>, vector<1x16x8x128xbf16>
    %69 = vector.shape_cast %68 : vector<1x16x8x128xbf16> to vector<16x8x128xbf16>
    %70 = vector.shape_cast %69 : vector<16x8x128xbf16> to vector<128x128xbf16>
    %c2_115 = arith.constant 2 : index
    %c1_116 = arith.constant 1 : index
    %c0_117 = arith.constant 0 : index
    %c0_118 = arith.constant 0 : index
    %71 = vector.load %arg3[%c2_115, %c1_116, %c0_117, %c0_118] : memref<3x3x128x24xbf16, #tpu.memory_space<vmem>>, vector<1x1x128x24xbf16>
    %72 = vector.shape_cast %71 : vector<1x1x128x24xbf16> to vector<128x24xbf16>
    %cst_119 = arith.constant dense<0.000000e+00> : vector<128x24xf32>
    %73 = tpu.matmul %70, %72, %cst_119 {dimension_numbers = #tpu.dot_dimension_numbers<[1], [0], [0], [1], [0, 0, 1, 1], [], []>} : vector<128x128xbf16>, vector<128x24xbf16>, vector<128x24xf32> -> vector<128x24xf32>
    %74 = vector.shape_cast %73 : vector<128x24xf32> to vector<1x16x8x24xf32>
    %c0_120 = arith.constant 0 : index
    %c0_121 = arith.constant 0 : index
    %c0_122 = arith.constant 0 : index
    %c0_123 = arith.constant 0 : index
    %75 = vector.load %arg4[%c0_120, %c0_121, %c0_122, %c0_123] : memref<1x16x8x24xf32, #tpu.memory_space<vmem>>, vector<1x16x8x24xf32>
    %76 = arith.addf %75, %74 : vector<1x16x8x24xf32>
    %c0_124 = arith.constant 0 : index
    %c0_125 = arith.constant 0 : index
    %c0_126 = arith.constant 0 : index
    %c0_127 = arith.constant 0 : index
    %77 = vector.load %arg4[%c0_124, %c0_125, %c0_126, %c0_127] : memref<1x16x8x24xf32, #tpu.memory_space<vmem>>, vector<1x16x8x24xf32>
    tpu.vector_store %arg4[%c0_124, %c0_125, %c0_126, %c0_127], %76 {strides = array<i32>} : memref<1x16x8x24xf32, #tpu.memory_space<vmem>>, vector<1x16x8x24xf32>,
    %c2_128 = arith.constant 2 : index
    %c2_129 = arith.constant 2 : index
    %c0_130 = arith.constant 0 : index
    %c0_131 = arith.constant 0 : index
    %78 = vector.load %arg2[%c2_128, %c2_129, %c0_130, %c0_131] : memref<3x18x8x128xbf16, #tpu.memory_space<vmem>>, vector<1x16x8x128xbf16>
    %79 = vector.shape_cast %78 : vector<1x16x8x128xbf16> to vector<16x8x128xbf16>
    %80 = vector.shape_cast %79 : vector<16x8x128xbf16> to vector<128x128xbf16>
    %c2_132 = arith.constant 2 : index
    %c2_133 = arith.constant 2 : index
    %c0_134 = arith.constant 0 : index
    %c0_135 = arith.constant 0 : index
    %81 = vector.load %arg3[%c2_132, %c2_133, %c0_134, %c0_135] : memref<3x3x128x24xbf16, #tpu.memory_space<vmem>>, vector<1x1x128x24xbf16>
    %82 = vector.shape_cast %81 : vector<1x1x128x24xbf16> to vector<128x24xbf16>
    %cst_136 = arith.constant dense<0.000000e+00> : vector<128x24xf32>
    %83 = tpu.matmul %80, %82, %cst_136 {dimension_numbers = #tpu.dot_dimension_numbers<[1], [0], [0], [1], [0, 0, 1, 1], [], []>} : vector<128x128xbf16>, vector<128x24xbf16>, vector<128x24xf32> -> vector<128x24xf32>
    %84 = vector.shape_cast %83 : vector<128x24xf32> to vector<1x16x8x24xf32>
    %c0_137 = arith.constant 0 : index
    %c0_138 = arith.constant 0 : index
    %c0_139 = arith.constant 0 : index
    %c0_140 = arith.constant 0 : index
    %85 = vector.load %arg4[%c0_137, %c0_138, %c0_139, %c0_140] : memref<1x16x8x24xf32, #tpu.memory_space<vmem>>, vector<1x16x8x24xf32>
    %86 = arith.addf %85, %84 : vector<1x16x8x24xf32>
    %c0_141 = arith.constant 0 : index
    %c0_142 = arith.constant 0 : index
    %c0_143 = arith.constant 0 : index
    %c0_144 = arith.constant 0 : index
    %87 = vector.load %arg4[%c0_141, %c0_142, %c0_143, %c0_144] : memref<1x16x8x24xf32, #tpu.memory_space<vmem>>, vector<1x16x8x24xf32>
    tpu.vector_store %arg4[%c0_141, %c0_142, %c0_143, %c0_144], %86 {strides = array<i32>} : memref<1x16x8x24xf32, #tpu.memory_space<vmem>>, vector<1x16x8x24xf32>,
    return
  }
  func.func @transform_0(%arg0: i32, %arg1: i32) -> (i32, i32, i32, i32) {
    %c0_i32 = arith.constant 0 : i32
    %c0_i32_0 = arith.constant 0 : i32
    %c0_i32_1 = arith.constant 0 : i32
    return %arg0, %c0_i32, %arg1, %c0_i32_0 : i32, i32, i32, i32
  }
  func.func @transform_1(%arg0: i32, %arg1: i32) -> (i32, i32, i32, i32) {
    %c0_i32 = arith.constant 0 : i32
    %c0_i32_0 = arith.constant 0 : i32
    %c0_i32_1 = arith.constant 0 : i32
    %c0_i32_2 = arith.constant 0 : i32
    %c0_i32_3 = arith.constant 0 : i32
    return %c0_i32, %c0_i32_0, %c0_i32_1, %c0_i32_2 : i32, i32, i32, i32
  }
  func.func @transform_2(%arg0: i32, %arg1: i32) -> (i32, i32, i32, i32) {
    %c0_i32 = arith.constant 0 : i32
    %c0_i32_0 = arith.constant 0 : i32
    %c0_i32_1 = arith.constant 0 : i32
    return %arg0, %c0_i32, %arg1, %c0_i32_0 : i32, i32, i32, i32
  }
}

module attributes {stable_mosaic.version = 11 : i64} {
  func.func @kernel(%arg0: i32, %arg1: i32, %arg2: memref<3x18x8x128xbf16, #tpu.memory_space<vmem>>, %arg3: memref<3x3x128x12xbf16, #tpu.memory_space<vmem>>, %arg4: memref<1x16x8x12xf32, #tpu.memory_space<vmem>>) attributes {dimension_semantics = [#tpu.dimension_semantics<parallel>, #tpu.dimension_semantics<parallel>], iteration_bounds = array<i64: 2, 2>, scalar_prefetch = 0 : i64, scratch_operands = 0 : i64, tpu.core_type = #tpu.core_type<tc>, window_params = [{transform_indices = @transform_0, window_bounds = array<i64: 3, 18, 8, 128>}, {pipeline_mode = #tpu.pipeline_mode<synchronous>, transform_indices = @transform_1, window_bounds = array<i64: 3, 3, 128, 12>}, {transform_indices = @transform_2, window_bounds = array<i64: 1, 16, 8, 12>}]} {
    %c0 = arith.constant 0 : index
    %c0_0 = arith.constant 0 : index
    %c0_1 = arith.constant 0 : index
    %c0_2 = arith.constant 0 : index
    %0 = vector.load %arg2[%c0, %c0_0, %c0_1, %c0_2] : memref<3x18x8x128xbf16, #tpu.memory_space<vmem>>, vector<1x16x8x128xbf16>
    %1 = vector.shape_cast %0 : vector<1x16x8x128xbf16> to vector<16x8x128xbf16>
    %2 = vector.shape_cast %1 : vector<16x8x128xbf16> to vector<128x128xbf16>
    %c0_3 = arith.constant 0 : index
    %c0_4 = arith.constant 0 : index
    %c0_5 = arith.constant 0 : index
    %c0_6 = arith.constant 0 : index
    %3 = vector.load %arg3[%c0_3, %c0_4, %c0_5, %c0_6] : memref<3x3x128x12xbf16, #tpu.memory_space<vmem>>, vector<1x1x128x12xbf16>
    %4 = vector.shape_cast %3 : vector<1x1x128x12xbf16> to vector<128x12xbf16>
    %cst = arith.constant dense<0.000000e+00> : vector<128x12xf32>
    %5 = tpu.matmul %2, %4, %cst {dimension_numbers = #tpu.dot_dimension_numbers<[1], [0], [0], [1], [0, 0, 1, 1], [], []>} : vector<128x128xbf16>, vector<128x12xbf16>, vector<128x12xf32> -> vector<128x12xf32>
    %6 = vector.shape_cast %5 : vector<128x12xf32> to vector<1x16x8x12xf32>
    %c0_7 = arith.constant 0 : index
    %c0_8 = arith.constant 0 : index
    %c0_9 = arith.constant 0 : index
    %c0_10 = arith.constant 0 : index
    %7 = vector.load %arg4[%c0_7, %c0_8, %c0_9, %c0_10] : memref<1x16x8x12xf32, #tpu.memory_space<vmem>>, vector<1x16x8x12xf32>
    tpu.vector_store %arg4[%c0_7, %c0_8, %c0_9, %c0_10], %6 {strides = array<i32>} : memref<1x16x8x12xf32, #tpu.memory_space<vmem>>, vector<1x16x8x12xf32>,
    %c1 = arith.constant 1 : index
    %c0_11 = arith.constant 0 : index
    %c0_12 = arith.constant 0 : index
    %c0_13 = arith.constant 0 : index
    %8 = vector.load %arg2[%c1, %c0_11, %c0_12, %c0_13] : memref<3x18x8x128xbf16, #tpu.memory_space<vmem>>, vector<1x16x8x128xbf16>
    %9 = vector.shape_cast %8 : vector<1x16x8x128xbf16> to vector<16x8x128xbf16>
    %10 = vector.shape_cast %9 : vector<16x8x128xbf16> to vector<128x128xbf16>
    %c0_14 = arith.constant 0 : index
    %c1_15 = arith.constant 1 : index
    %c0_16 = arith.constant 0 : index
    %c0_17 = arith.constant 0 : index
    %11 = vector.load %arg3[%c0_14, %c1_15, %c0_16, %c0_17] : memref<3x3x128x12xbf16, #tpu.memory_space<vmem>>, vector<1x1x128x12xbf16>
    %12 = vector.shape_cast %11 : vector<1x1x128x12xbf16> to vector<128x12xbf16>
    %cst_18 = arith.constant dense<0.000000e+00> : vector<128x12xf32>
    %13 = tpu.matmul %10, %12, %cst_18 {dimension_numbers = #tpu.dot_dimension_numbers<[1], [0], [0], [1], [0, 0, 1, 1], [], []>} : vector<128x128xbf16>, vector<128x12xbf16>, vector<128x12xf32> -> vector<128x12xf32>
    %14 = vector.shape_cast %13 : vector<128x12xf32> to vector<1x16x8x12xf32>
    %c0_19 = arith.constant 0 : index
    %c0_20 = arith.constant 0 : index
    %c0_21 = arith.constant 0 : index
    %c0_22 = arith.constant 0 : index
    %15 = vector.load %arg4[%c0_19, %c0_20, %c0_21, %c0_22] : memref<1x16x8x12xf32, #tpu.memory_space<vmem>>, vector<1x16x8x12xf32>
    %16 = arith.addf %15, %14 : vector<1x16x8x12xf32>
    %c0_23 = arith.constant 0 : index
    %c0_24 = arith.constant 0 : index
    %c0_25 = arith.constant 0 : index
    %c0_26 = arith.constant 0 : index
    %17 = vector.load %arg4[%c0_23, %c0_24, %c0_25, %c0_26] : memref<1x16x8x12xf32, #tpu.memory_space<vmem>>, vector<1x16x8x12xf32>
    tpu.vector_store %arg4[%c0_23, %c0_24, %c0_25, %c0_26], %16 {strides = array<i32>} : memref<1x16x8x12xf32, #tpu.memory_space<vmem>>, vector<1x16x8x12xf32>,
    %c2 = arith.constant 2 : index
    %c0_27 = arith.constant 0 : index
    %c0_28 = arith.constant 0 : index
    %c0_29 = arith.constant 0 : index
    %18 = vector.load %arg2[%c2, %c0_27, %c0_28, %c0_29] : memref<3x18x8x128xbf16, #tpu.memory_space<vmem>>, vector<1x16x8x128xbf16>
    %19 = vector.shape_cast %18 : vector<1x16x8x128xbf16> to vector<16x8x128xbf16>
    %20 = vector.shape_cast %19 : vector<16x8x128xbf16> to vector<128x128xbf16>
    %c0_30 = arith.constant 0 : index
    %c2_31 = arith.constant 2 : index
    %c0_32 = arith.constant 0 : index
    %c0_33 = arith.constant 0 : index
    %21 = vector.load %arg3[%c0_30, %c2_31, %c0_32, %c0_33] : memref<3x3x128x12xbf16, #tpu.memory_space<vmem>>, vector<1x1x128x12xbf16>
    %22 = vector.shape_cast %21 : vector<1x1x128x12xbf16> to vector<128x12xbf16>
    %cst_34 = arith.constant dense<0.000000e+00> : vector<128x12xf32>
    %23 = tpu.matmul %20, %22, %cst_34 {dimension_numbers = #tpu.dot_dimension_numbers<[1], [0], [0], [1], [0, 0, 1, 1], [], []>} : vector<128x128xbf16>, vector<128x12xbf16>, vector<128x12xf32> -> vector<128x12xf32>
    %24 = vector.shape_cast %23 : vector<128x12xf32> to vector<1x16x8x12xf32>
    %c0_35 = arith.constant 0 : index
    %c0_36 = arith.constant 0 : index
    %c0_37 = arith.constant 0 : index
    %c0_38 = arith.constant 0 : index
    %25 = vector.load %arg4[%c0_35, %c0_36, %c0_37, %c0_38] : memref<1x16x8x12xf32, #tpu.memory_space<vmem>>, vector<1x16x8x12xf32>
    %26 = arith.addf %25, %24 : vector<1x16x8x12xf32>
    %c0_39 = arith.constant 0 : index
    %c0_40 = arith.constant 0 : index
    %c0_41 = arith.constant 0 : index
    %c0_42 = arith.constant 0 : index
    %27 = vector.load %arg4[%c0_39, %c0_40, %c0_41, %c0_42] : memref<1x16x8x12xf32, #tpu.memory_space<vmem>>, vector<1x16x8x12xf32>
    tpu.vector_store %arg4[%c0_39, %c0_40, %c0_41, %c0_42], %26 {strides = array<i32>} : memref<1x16x8x12xf32, #tpu.memory_space<vmem>>, vector<1x16x8x12xf32>,
    %c0_43 = arith.constant 0 : index
    %c1_44 = arith.constant 1 : index
    %c0_45 = arith.constant 0 : index
    %c0_46 = arith.constant 0 : index
    %28 = vector.load %arg2[%c0_43, %c1_44, %c0_45, %c0_46] : memref<3x18x8x128xbf16, #tpu.memory_space<vmem>>, vector<1x16x8x128xbf16>
    %29 = vector.shape_cast %28 : vector<1x16x8x128xbf16> to vector<16x8x128xbf16>
    %30 = vector.shape_cast %29 : vector<16x8x128xbf16> to vector<128x128xbf16>
    %c1_47 = arith.constant 1 : index
    %c0_48 = arith.constant 0 : index
    %c0_49 = arith.constant 0 : index
    %c0_50 = arith.constant 0 : index
    %31 = vector.load %arg3[%c1_47, %c0_48, %c0_49, %c0_50] : memref<3x3x128x12xbf16, #tpu.memory_space<vmem>>, vector<1x1x128x12xbf16>
    %32 = vector.shape_cast %31 : vector<1x1x128x12xbf16> to vector<128x12xbf16>
    %cst_51 = arith.constant dense<0.000000e+00> : vector<128x12xf32>
    %33 = tpu.matmul %30, %32, %cst_51 {dimension_numbers = #tpu.dot_dimension_numbers<[1], [0], [0], [1], [0, 0, 1, 1], [], []>} : vector<128x128xbf16>, vector<128x12xbf16>, vector<128x12xf32> -> vector<128x12xf32>
    %34 = vector.shape_cast %33 : vector<128x12xf32> to vector<1x16x8x12xf32>
    %c0_52 = arith.constant 0 : index
    %c0_53 = arith.constant 0 : index
    %c0_54 = arith.constant 0 : index
    %c0_55 = arith.constant 0 : index
    %35 = vector.load %arg4[%c0_52, %c0_53, %c0_54, %c0_55] : memref<1x16x8x12xf32, #tpu.memory_space<vmem>>, vector<1x16x8x12xf32>
    %36 = arith.addf %35, %34 : vector<1x16x8x12xf32>
    %c0_56 = arith.constant 0 : index
    %c0_57 = arith.constant 0 : index
    %c0_58 = arith.constant 0 : index
    %c0_59 = arith.constant 0 : index
    %37 = vector.load %arg4[%c0_56, %c0_57, %c0_58, %c0_59] : memref<1x16x8x12xf32, #tpu.memory_space<vmem>>, vector<1x16x8x12xf32>
    tpu.vector_store %arg4[%c0_56, %c0_57, %c0_58, %c0_59], %36 {strides = array<i32>} : memref<1x16x8x12xf32, #tpu.memory_space<vmem>>, vector<1x16x8x12xf32>,
    %c1_60 = arith.constant 1 : index
    %c1_61 = arith.constant 1 : index
    %c0_62 = arith.constant 0 : index
    %c0_63 = arith.constant 0 : index
    %38 = vector.load %arg2[%c1_60, %c1_61, %c0_62, %c0_63] : memref<3x18x8x128xbf16, #tpu.memory_space<vmem>>, vector<1x16x8x128xbf16>
    %39 = vector.shape_cast %38 : vector<1x16x8x128xbf16> to vector<16x8x128xbf16>
    %40 = vector.shape_cast %39 : vector<16x8x128xbf16> to vector<128x128xbf16>
    %c1_64 = arith.constant 1 : index
    %c1_65 = arith.constant 1 : index
    %c0_66 = arith.constant 0 : index
    %c0_67 = arith.constant 0 : index
    %41 = vector.load %arg3[%c1_64, %c1_65, %c0_66, %c0_67] : memref<3x3x128x12xbf16, #tpu.memory_space<vmem>>, vector<1x1x128x12xbf16>
    %42 = vector.shape_cast %41 : vector<1x1x128x12xbf16> to vector<128x12xbf16>
    %cst_68 = arith.constant dense<0.000000e+00> : vector<128x12xf32>
    %43 = tpu.matmul %40, %42, %cst_68 {dimension_numbers = #tpu.dot_dimension_numbers<[1], [0], [0], [1], [0, 0, 1, 1], [], []>} : vector<128x128xbf16>, vector<128x12xbf16>, vector<128x12xf32> -> vector<128x12xf32>
    %44 = vector.shape_cast %43 : vector<128x12xf32> to vector<1x16x8x12xf32>
    %c0_69 = arith.constant 0 : index
    %c0_70 = arith.constant 0 : index
    %c0_71 = arith.constant 0 : index
    %c0_72 = arith.constant 0 : index
    %45 = vector.load %arg4[%c0_69, %c0_70, %c0_71, %c0_72] : memref<1x16x8x12xf32, #tpu.memory_space<vmem>>, vector<1x16x8x12xf32>
    %46 = arith.addf %45, %44 : vector<1x16x8x12xf32>
    %c0_73 = arith.constant 0 : index
    %c0_74 = arith.constant 0 : index
    %c0_75 = arith.constant 0 : index
    %c0_76 = arith.constant 0 : index
    %47 = vector.load %arg4[%c0_73, %c0_74, %c0_75, %c0_76] : memref<1x16x8x12xf32, #tpu.memory_space<vmem>>, vector<1x16x8x12xf32>
    tpu.vector_store %arg4[%c0_73, %c0_74, %c0_75, %c0_76], %46 {strides = array<i32>} : memref<1x16x8x12xf32, #tpu.memory_space<vmem>>, vector<1x16x8x12xf32>,
    %c2_77 = arith.constant 2 : index
    %c1_78 = arith.constant 1 : index
    %c0_79 = arith.constant 0 : index
    %c0_80 = arith.constant 0 : index
    %48 = vector.load %arg2[%c2_77, %c1_78, %c0_79, %c0_80] : memref<3x18x8x128xbf16, #tpu.memory_space<vmem>>, vector<1x16x8x128xbf16>
    %49 = vector.shape_cast %48 : vector<1x16x8x128xbf16> to vector<16x8x128xbf16>
    %50 = vector.shape_cast %49 : vector<16x8x128xbf16> to vector<128x128xbf16>
    %c1_81 = arith.constant 1 : index
    %c2_82 = arith.constant 2 : index
    %c0_83 = arith.constant 0 : index
    %c0_84 = arith.constant 0 : index
    %51 = vector.load %arg3[%c1_81, %c2_82, %c0_83, %c0_84] : memref<3x3x128x12xbf16, #tpu.memory_space<vmem>>, vector<1x1x128x12xbf16>
    %52 = vector.shape_cast %51 : vector<1x1x128x12xbf16> to vector<128x12xbf16>
    %cst_85 = arith.constant dense<0.000000e+00> : vector<128x12xf32>
    %53 = tpu.matmul %50, %52, %cst_85 {dimension_numbers = #tpu.dot_dimension_numbers<[1], [0], [0], [1], [0, 0, 1, 1], [], []>} : vector<128x128xbf16>, vector<128x12xbf16>, vector<128x12xf32> -> vector<128x12xf32>
    %54 = vector.shape_cast %53 : vector<128x12xf32> to vector<1x16x8x12xf32>
    %c0_86 = arith.constant 0 : index
    %c0_87 = arith.constant 0 : index
    %c0_88 = arith.constant 0 : index
    %c0_89 = arith.constant 0 : index
    %55 = vector.load %arg4[%c0_86, %c0_87, %c0_88, %c0_89] : memref<1x16x8x12xf32, #tpu.memory_space<vmem>>, vector<1x16x8x12xf32>
    %56 = arith.addf %55, %54 : vector<1x16x8x12xf32>
    %c0_90 = arith.constant 0 : index
    %c0_91 = arith.constant 0 : index
    %c0_92 = arith.constant 0 : index
    %c0_93 = arith.constant 0 : index
    %57 = vector.load %arg4[%c0_90, %c0_91, %c0_92, %c0_93] : memref<1x16x8x12xf32, #tpu.memory_space<vmem>>, vector<1x16x8x12xf32>
    tpu.vector_store %arg4[%c0_90, %c0_91, %c0_92, %c0_93], %56 {strides = array<i32>} : memref<1x16x8x12xf32, #tpu.memory_space<vmem>>, vector<1x16x8x12xf32>,
    %c0_94 = arith.constant 0 : index
    %c2_95 = arith.constant 2 : index
    %c0_96 = arith.constant 0 : index
    %c0_97 = arith.constant 0 : index
    %58 = vector.load %arg2[%c0_94, %c2_95, %c0_96, %c0_97] : memref<3x18x8x128xbf16, #tpu.memory_space<vmem>>, vector<1x16x8x128xbf16>
    %59 = vector.shape_cast %58 : vector<1x16x8x128xbf16> to vector<16x8x128xbf16>
    %60 = vector.shape_cast %59 : vector<16x8x128xbf16> to vector<128x128xbf16>
    %c2_98 = arith.constant 2 : index
    %c0_99 = arith.constant 0 : index
    %c0_100 = arith.constant 0 : index
    %c0_101 = arith.constant 0 : index
    %61 = vector.load %arg3[%c2_98, %c0_99, %c0_100, %c0_101] : memref<3x3x128x12xbf16, #tpu.memory_space<vmem>>, vector<1x1x128x12xbf16>
    %62 = vector.shape_cast %61 : vector<1x1x128x12xbf16> to vector<128x12xbf16>
    %cst_102 = arith.constant dense<0.000000e+00> : vector<128x12xf32>
    %63 = tpu.matmul %60, %62, %cst_102 {dimension_numbers = #tpu.dot_dimension_numbers<[1], [0], [0], [1], [0, 0, 1, 1], [], []>} : vector<128x128xbf16>, vector<128x12xbf16>, vector<128x12xf32> -> vector<128x12xf32>
    %64 = vector.shape_cast %63 : vector<128x12xf32> to vector<1x16x8x12xf32>
    %c0_103 = arith.constant 0 : index
    %c0_104 = arith.constant 0 : index
    %c0_105 = arith.constant 0 : index
    %c0_106 = arith.constant 0 : index
    %65 = vector.load %arg4[%c0_103, %c0_104, %c0_105, %c0_106] : memref<1x16x8x12xf32, #tpu.memory_space<vmem>>, vector<1x16x8x12xf32>
    %66 = arith.addf %65, %64 : vector<1x16x8x12xf32>
    %c0_107 = arith.constant 0 : index
    %c0_108 = arith.constant 0 : index
    %c0_109 = arith.constant 0 : index
    %c0_110 = arith.constant 0 : index
    %67 = vector.load %arg4[%c0_107, %c0_108, %c0_109, %c0_110] : memref<1x16x8x12xf32, #tpu.memory_space<vmem>>, vector<1x16x8x12xf32>
    tpu.vector_store %arg4[%c0_107, %c0_108, %c0_109, %c0_110], %66 {strides = array<i32>} : memref<1x16x8x12xf32, #tpu.memory_space<vmem>>, vector<1x16x8x12xf32>,
    %c1_111 = arith.constant 1 : index
    %c2_112 = arith.constant 2 : index
    %c0_113 = arith.constant 0 : index
    %c0_114 = arith.constant 0 : index
    %68 = vector.load %arg2[%c1_111, %c2_112, %c0_113, %c0_114] : memref<3x18x8x128xbf16, #tpu.memory_space<vmem>>, vector<1x16x8x128xbf16>
    %69 = vector.shape_cast %68 : vector<1x16x8x128xbf16> to vector<16x8x128xbf16>
    %70 = vector.shape_cast %69 : vector<16x8x128xbf16> to vector<128x128xbf16>
    %c2_115 = arith.constant 2 : index
    %c1_116 = arith.constant 1 : index
    %c0_117 = arith.constant 0 : index
    %c0_118 = arith.constant 0 : index
    %71 = vector.load %arg3[%c2_115, %c1_116, %c0_117, %c0_118] : memref<3x3x128x12xbf16, #tpu.memory_space<vmem>>, vector<1x1x128x12xbf16>
    %72 = vector.shape_cast %71 : vector<1x1x128x12xbf16> to vector<128x12xbf16>
    %cst_119 = arith.constant dense<0.000000e+00> : vector<128x12xf32>
    %73 = tpu.matmul %70, %72, %cst_119 {dimension_numbers = #tpu.dot_dimension_numbers<[1], [0], [0], [1], [0, 0, 1, 1], [], []>} : vector<128x128xbf16>, vector<128x12xbf16>, vector<128x12xf32> -> vector<128x12xf32>
    %74 = vector.shape_cast %73 : vector<128x12xf32> to vector<1x16x8x12xf32>
    %c0_120 = arith.constant 0 : index
    %c0_121 = arith.constant 0 : index
    %c0_122 = arith.constant 0 : index
    %c0_123 = arith.constant 0 : index
    %75 = vector.load %arg4[%c0_120, %c0_121, %c0_122, %c0_123] : memref<1x16x8x12xf32, #tpu.memory_space<vmem>>, vector<1x16x8x12xf32>
    %76 = arith.addf %75, %74 : vector<1x16x8x12xf32>
    %c0_124 = arith.constant 0 : index
    %c0_125 = arith.constant 0 : index
    %c0_126 = arith.constant 0 : index
    %c0_127 = arith.constant 0 : index
    %77 = vector.load %arg4[%c0_124, %c0_125, %c0_126, %c0_127] : memref<1x16x8x12xf32, #tpu.memory_space<vmem>>, vector<1x16x8x12xf32>
    tpu.vector_store %arg4[%c0_124, %c0_125, %c0_126, %c0_127], %76 {strides = array<i32>} : memref<1x16x8x12xf32, #tpu.memory_space<vmem>>, vector<1x16x8x12xf32>,
    %c2_128 = arith.constant 2 : index
    %c2_129 = arith.constant 2 : index
    %c0_130 = arith.constant 0 : index
    %c0_131 = arith.constant 0 : index
    %78 = vector.load %arg2[%c2_128, %c2_129, %c0_130, %c0_131] : memref<3x18x8x128xbf16, #tpu.memory_space<vmem>>, vector<1x16x8x128xbf16>
    %79 = vector.shape_cast %78 : vector<1x16x8x128xbf16> to vector<16x8x128xbf16>
    %80 = vector.shape_cast %79 : vector<16x8x128xbf16> to vector<128x128xbf16>
    %c2_132 = arith.constant 2 : index
    %c2_133 = arith.constant 2 : index
    %c0_134 = arith.constant 0 : index
    %c0_135 = arith.constant 0 : index
    %81 = vector.load %arg3[%c2_132, %c2_133, %c0_134, %c0_135] : memref<3x3x128x12xbf16, #tpu.memory_space<vmem>>, vector<1x1x128x12xbf16>
    %82 = vector.shape_cast %81 : vector<1x1x128x12xbf16> to vector<128x12xbf16>
    %cst_136 = arith.constant dense<0.000000e+00> : vector<128x12xf32>
    %83 = tpu.matmul %80, %82, %cst_136 {dimension_numbers = #tpu.dot_dimension_numbers<[1], [0], [0], [1], [0, 0, 1, 1], [], []>} : vector<128x128xbf16>, vector<128x12xbf16>, vector<128x12xf32> -> vector<128x12xf32>
    %84 = vector.shape_cast %83 : vector<128x12xf32> to vector<1x16x8x12xf32>
    %c0_137 = arith.constant 0 : index
    %c0_138 = arith.constant 0 : index
    %c0_139 = arith.constant 0 : index
    %c0_140 = arith.constant 0 : index
    %85 = vector.load %arg4[%c0_137, %c0_138, %c0_139, %c0_140] : memref<1x16x8x12xf32, #tpu.memory_space<vmem>>, vector<1x16x8x12xf32>
    %86 = arith.addf %85, %84 : vector<1x16x8x12xf32>
    %c0_141 = arith.constant 0 : index
    %c0_142 = arith.constant 0 : index
    %c0_143 = arith.constant 0 : index
    %c0_144 = arith.constant 0 : index
    %87 = vector.load %arg4[%c0_141, %c0_142, %c0_143, %c0_144] : memref<1x16x8x12xf32, #tpu.memory_space<vmem>>, vector<1x16x8x12xf32>
    tpu.vector_store %arg4[%c0_141, %c0_142, %c0_143, %c0_144], %86 {strides = array<i32>} : memref<1x16x8x12xf32, #tpu.memory_space<vmem>>, vector<1x16x8x12xf32>,
    return
  }
  func.func @transform_0(%arg0: i32, %arg1: i32) -> (i32, i32, i32, i32) {
    %c0_i32 = arith.constant 0 : i32
    %c0_i32_0 = arith.constant 0 : i32
    %c0_i32_1 = arith.constant 0 : i32
    return %arg0, %c0_i32, %arg1, %c0_i32_0 : i32, i32, i32, i32
  }
  func.func @transform_1(%arg0: i32, %arg1: i32) -> (i32, i32, i32, i32) {
    %c0_i32 = arith.constant 0 : i32
    %c0_i32_0 = arith.constant 0 : i32
    %c0_i32_1 = arith.constant 0 : i32
    %c0_i32_2 = arith.constant 0 : i32
    %c0_i32_3 = arith.constant 0 : i32
    return %c0_i32, %c0_i32_0, %c0_i32_1, %c0_i32_2 : i32, i32, i32, i32
  }
  func.func @transform_2(%arg0: i32, %arg1: i32) -> (i32, i32, i32, i32) {
    %c0_i32 = arith.constant 0 : i32
    %c0_i32_0 = arith.constant 0 : i32
    %c0_i32_1 = arith.constant 0 : i32
    return %arg0, %c0_i32, %arg1, %c0_i32_0 : i32, i32, i32, i32
  }
}

module attributes {stable_mosaic.version = 11 : i64} {
  func.func @_bn_relu_matmul_kernel(%arg0: i32, %arg1: i32, %arg2: memref<256x128xbf16, #tpu.memory_space<vmem>>, %arg3: memref<1x128xf32, #tpu.memory_space<vmem>>, %arg4: memref<1x128xf32, #tpu.memory_space<vmem>>, %arg5: memref<128x36xbf16, #tpu.memory_space<vmem>>, %arg6: memref<256x36xf32, #tpu.memory_space<vmem>>) attributes {dimension_semantics = [#tpu.dimension_semantics<parallel>, #tpu.dimension_semantics<parallel>], iteration_bounds = array<i64: 2, 1>, scalar_prefetch = 0 : i64, scratch_operands = 0 : i64, tpu.core_type = #tpu.core_type<tc>, window_params = [{transform_indices = @transform_0, window_bounds = array<i64: 256, 128>}, {pipeline_mode = #tpu.pipeline_mode<synchronous>, transform_indices = @transform_1, window_bounds = array<i64: 1, 128>}, {pipeline_mode = #tpu.pipeline_mode<synchronous>, transform_indices = @transform_2, window_bounds = array<i64: 1, 128>}, {transform_indices = @transform_3, window_bounds = array<i64: 128, 36>}, {transform_indices = @transform_4, window_bounds = array<i64: 256, 36>}]} {
    %c0 = arith.constant 0 : index
    %c0_0 = arith.constant 0 : index
    %0 = vector.load %arg2[%c0, %c0_0] : memref<256x128xbf16, #tpu.memory_space<vmem>>, vector<256x128xbf16>
    %1 = arith.extf %0 : vector<256x128xbf16> to vector<256x128xf32>
    %c0_1 = arith.constant 0 : index
    %c0_2 = arith.constant 0 : index
    %2 = vector.load %arg3[%c0_1, %c0_2] : memref<1x128xf32, #tpu.memory_space<vmem>>, vector<1x128xf32>
    %3 = vector.broadcast %2 : vector<1x128xf32> to vector<256x128xf32>
    %4 = arith.mulf %1, %3 : vector<256x128xf32>
    %c0_3 = arith.constant 0 : index
    %c0_4 = arith.constant 0 : index
    %5 = vector.load %arg4[%c0_3, %c0_4] : memref<1x128xf32, #tpu.memory_space<vmem>>, vector<1x128xf32>
    %6 = vector.broadcast %5 : vector<1x128xf32> to vector<256x128xf32>
    %7 = arith.addf %4, %6 : vector<256x128xf32>
    %cst = arith.constant 0.000000e+00 : f32
    %8 = vector.broadcast %cst : f32 to vector<256x128xf32>
    %9 = arith.maximumf %7, %8 : vector<256x128xf32>
    %10 = arith.truncf %9 : vector<256x128xf32> to vector<256x128xbf16>
    %c0_5 = arith.constant 0 : index
    %c0_6 = arith.constant 0 : index
    %11 = vector.load %arg5[%c0_5, %c0_6] : memref<128x36xbf16, #tpu.memory_space<vmem>>, vector<128x36xbf16>
    %cst_7 = arith.constant dense<0.000000e+00> : vector<256x36xf32>
    %12 = tpu.matmul %10, %11, %cst_7 {dimension_numbers = #tpu.dot_dimension_numbers<[1], [0], [0], [1], [0, 0, 1, 1], [], []>} : vector<256x128xbf16>, vector<128x36xbf16>, vector<256x36xf32> -> vector<256x36xf32>
    %c0_8 = arith.constant 0 : index
    %c0_9 = arith.constant 0 : index
    %13 = vector.load %arg6[%c0_8, %c0_9] : memref<256x36xf32, #tpu.memory_space<vmem>>, vector<256x36xf32>
    tpu.vector_store %arg6[%c0_8, %c0_9], %12 {strides = array<i32>} : memref<256x36xf32, #tpu.memory_space<vmem>>, vector<256x36xf32>,
    return
  }
  func.func @transform_0(%arg0: i32, %arg1: i32) -> (i32, i32) {
    %c0_i32 = arith.constant 0 : i32
    %c0_i32_0 = arith.constant 0 : i32
    return %arg0, %c0_i32 : i32, i32
  }
  func.func @transform_1(%arg0: i32, %arg1: i32) -> (i32, i32) {
    %c0_i32 = arith.constant 0 : i32
    %c0_i32_0 = arith.constant 0 : i32
    %c0_i32_1 = arith.constant 0 : i32
    return %c0_i32, %c0_i32_0 : i32, i32
  }
  func.func @transform_2(%arg0: i32, %arg1: i32) -> (i32, i32) {
    %c0_i32 = arith.constant 0 : i32
    %c0_i32_0 = arith.constant 0 : i32
    %c0_i32_1 = arith.constant 0 : i32
    return %c0_i32, %c0_i32_0 : i32, i32
  }
  func.func @transform_3(%arg0: i32, %arg1: i32) -> (i32, i32) {
    %c0_i32 = arith.constant 0 : i32
    %c0_i32_0 = arith.constant 0 : i32
    return %c0_i32, %arg1 : i32, i32
  }
  func.func @transform_4(%arg0: i32, %arg1: i32) -> (i32, i32) {
    %c0_i32 = arith.constant 0 : i32
    return %arg0, %arg1 : i32, i32
  }
}

module attributes {stable_mosaic.version = 11 : i64} {
  func.func @kernel(%arg0: i32, %arg1: i32, %arg2: memref<1x2x16x36xf32, #tpu.memory_space<vmem>>, %arg3: memref<8x16xf32, #tpu.memory_space<vmem>>, %arg4: memref<1x1x8x36xf32, #tpu.memory_space<vmem>>) attributes {dimension_semantics = [#tpu.dimension_semantics<parallel>, #tpu.dimension_semantics<parallel>], iteration_bounds = array<i64: 2, 8>, scalar_prefetch = 0 : i64, scratch_operands = 0 : i64, tpu.core_type = #tpu.core_type<tc>, window_params = [{transform_indices = @transform_0, window_bounds = array<i64: 1, 2, 16, 36>}, {pipeline_mode = #tpu.pipeline_mode<synchronous>, transform_indices = @transform_1, window_bounds = array<i64: 8, 16>}, {transform_indices = @transform_2, window_bounds = array<i64: 1, 1, 8, 36>}]} {
    %c0 = arith.constant 0 : index
    %c0_0 = arith.constant 0 : index
    %c0_1 = arith.constant 0 : index
    %c0_2 = arith.constant 0 : index
    %0 = vector.load %arg2[%c0, %c0_0, %c0_1, %c0_2] : memref<1x2x16x36xf32, #tpu.memory_space<vmem>>, vector<1x2x16x36xf32>
    %1 = vector.shape_cast %0 : vector<1x2x16x36xf32> to vector<2x16x36xf32>
    %2 = vector.extract_strided_slice %1 {offsets = [0, 0, 0], sizes = [1, 16, 36], strides = [1, 1, 1]} : vector<2x16x36xf32> to vector<1x16x36xf32>
    %3 = vector.shape_cast %2 : vector<1x16x36xf32> to vector<16x36xf32>
    %4 = vector.extract_strided_slice %1 {offsets = [1, 0, 0], sizes = [1, 16, 36], strides = [1, 1, 1]} : vector<2x16x36xf32> to vector<1x16x36xf32>
    %5 = vector.shape_cast %4 : vector<1x16x36xf32> to vector<16x36xf32>
    %6 = arith.addf %3, %5 : vector<16x36xf32>
    %c0_3 = arith.constant 0 : index
    %c0_4 = arith.constant 0 : index
    %7 = vector.load %arg3[%c0_3, %c0_4] : memref<8x16xf32, #tpu.memory_space<vmem>>, vector<8x16xf32>
    %cst = arith.constant dense<0.000000e+00> : vector<8x36xf32>
    %8 = tpu.matmul %7, %6, %cst {dimension_numbers = #tpu.dot_dimension_numbers<[1], [0], [0], [1], [0, 0, 1, 1], [], []>} : vector<8x16xf32>, vector<16x36xf32>, vector<8x36xf32> -> vector<8x36xf32>
    %c0_5 = arith.constant 0 : index
    %c0_6 = arith.constant 0 : index
    %c0_7 = arith.constant 0 : index
    %c0_8 = arith.constant 0 : index
    %9 = vector.load %arg4[%c0_5, %c0_6, %c0_7, %c0_8] : memref<1x1x8x36xf32, #tpu.memory_space<vmem>>, vector<1x1x8x36xf32>
    %10 = vector.shape_cast %9 : vector<1x1x8x36xf32> to vector<8x36xf32>
    %11 = vector.shape_cast %8 : vector<8x36xf32> to vector<1x1x8x36xf32>
    tpu.vector_store %arg4[%c0_5, %c0_6, %c0_7, %c0_8], %11 {strides = array<i32>} : memref<1x1x8x36xf32, #tpu.memory_space<vmem>>, vector<1x1x8x36xf32>,
    return
  }
  func.func @transform_0(%arg0: i32, %arg1: i32) -> (i32, i32, i32, i32) {
    %c0_i32 = arith.constant 0 : i32
    %c0_i32_0 = arith.constant 0 : i32
    %c0_i32_1 = arith.constant 0 : i32
    return %arg0, %arg1, %c0_i32, %c0_i32_0 : i32, i32, i32, i32
  }
  func.func @transform_1(%arg0: i32, %arg1: i32) -> (i32, i32) {
    %c0_i32 = arith.constant 0 : i32
    %c0_i32_0 = arith.constant 0 : i32
    %c0_i32_1 = arith.constant 0 : i32
    return %c0_i32, %c0_i32_0 : i32, i32
  }
  func.func @transform_2(%arg0: i32, %arg1: i32) -> (i32, i32, i32, i32) {
    %c0_i32 = arith.constant 0 : i32
    %c0_i32_0 = arith.constant 0 : i32
    %c0_i32_1 = arith.constant 0 : i32
    return %arg0, %arg1, %c0_i32, %c0_i32_0 : i32, i32, i32, i32
  }
}

module attributes {stable_mosaic.version = 11 : i64} {
  func.func @kernel(%arg0: i32, %arg1: i32, %arg2: memref<3x10x8x128xbf16, #tpu.memory_space<vmem>>, %arg3: memref<3x3x128x12xbf16, #tpu.memory_space<vmem>>, %arg4: memref<1x8x8x12xf32, #tpu.memory_space<vmem>>) attributes {dimension_semantics = [#tpu.dimension_semantics<parallel>, #tpu.dimension_semantics<parallel>], iteration_bounds = array<i64: 2, 1>, scalar_prefetch = 0 : i64, scratch_operands = 0 : i64, tpu.core_type = #tpu.core_type<tc>, window_params = [{transform_indices = @transform_0, window_bounds = array<i64: 3, 10, 8, 128>}, {pipeline_mode = #tpu.pipeline_mode<synchronous>, transform_indices = @transform_1, window_bounds = array<i64: 3, 3, 128, 12>}, {transform_indices = @transform_2, window_bounds = array<i64: 1, 8, 8, 12>}]} {
    %c0 = arith.constant 0 : index
    %c0_0 = arith.constant 0 : index
    %c0_1 = arith.constant 0 : index
    %c0_2 = arith.constant 0 : index
    %0 = vector.load %arg2[%c0, %c0_0, %c0_1, %c0_2] : memref<3x10x8x128xbf16, #tpu.memory_space<vmem>>, vector<1x8x8x128xbf16>
    %1 = vector.shape_cast %0 : vector<1x8x8x128xbf16> to vector<8x8x128xbf16>
    %2 = vector.shape_cast %1 : vector<8x8x128xbf16> to vector<64x128xbf16>
    %c0_3 = arith.constant 0 : index
    %c0_4 = arith.constant 0 : index
    %c0_5 = arith.constant 0 : index
    %c0_6 = arith.constant 0 : index
    %3 = vector.load %arg3[%c0_3, %c0_4, %c0_5, %c0_6] : memref<3x3x128x12xbf16, #tpu.memory_space<vmem>>, vector<1x1x128x12xbf16>
    %4 = vector.shape_cast %3 : vector<1x1x128x12xbf16> to vector<128x12xbf16>
    %cst = arith.constant dense<0.000000e+00> : vector<64x12xf32>
    %5 = tpu.matmul %2, %4, %cst {dimension_numbers = #tpu.dot_dimension_numbers<[1], [0], [0], [1], [0, 0, 1, 1], [], []>} : vector<64x128xbf16>, vector<128x12xbf16>, vector<64x12xf32> -> vector<64x12xf32>
    %6 = vector.shape_cast %5 : vector<64x12xf32> to vector<1x8x8x12xf32>
    %c0_7 = arith.constant 0 : index
    %c0_8 = arith.constant 0 : index
    %c0_9 = arith.constant 0 : index
    %c0_10 = arith.constant 0 : index
    %7 = vector.load %arg4[%c0_7, %c0_8, %c0_9, %c0_10] : memref<1x8x8x12xf32, #tpu.memory_space<vmem>>, vector<1x8x8x12xf32>
    tpu.vector_store %arg4[%c0_7, %c0_8, %c0_9, %c0_10], %6 {strides = array<i32>} : memref<1x8x8x12xf32, #tpu.memory_space<vmem>>, vector<1x8x8x12xf32>,
    %c1 = arith.constant 1 : index
    %c0_11 = arith.constant 0 : index
    %c0_12 = arith.constant 0 : index
    %c0_13 = arith.constant 0 : index
    %8 = vector.load %arg2[%c1, %c0_11, %c0_12, %c0_13] : memref<3x10x8x128xbf16, #tpu.memory_space<vmem>>, vector<1x8x8x128xbf16>
    %9 = vector.shape_cast %8 : vector<1x8x8x128xbf16> to vector<8x8x128xbf16>
    %10 = vector.shape_cast %9 : vector<8x8x128xbf16> to vector<64x128xbf16>
    %c0_14 = arith.constant 0 : index
    %c1_15 = arith.constant 1 : index
    %c0_16 = arith.constant 0 : index
    %c0_17 = arith.constant 0 : index
    %11 = vector.load %arg3[%c0_14, %c1_15, %c0_16, %c0_17] : memref<3x3x128x12xbf16, #tpu.memory_space<vmem>>, vector<1x1x128x12xbf16>
    %12 = vector.shape_cast %11 : vector<1x1x128x12xbf16> to vector<128x12xbf16>
    %cst_18 = arith.constant dense<0.000000e+00> : vector<64x12xf32>
    %13 = tpu.matmul %10, %12, %cst_18 {dimension_numbers = #tpu.dot_dimension_numbers<[1], [0], [0], [1], [0, 0, 1, 1], [], []>} : vector<64x128xbf16>, vector<128x12xbf16>, vector<64x12xf32> -> vector<64x12xf32>
    %14 = vector.shape_cast %13 : vector<64x12xf32> to vector<1x8x8x12xf32>
    %c0_19 = arith.constant 0 : index
    %c0_20 = arith.constant 0 : index
    %c0_21 = arith.constant 0 : index
    %c0_22 = arith.constant 0 : index
    %15 = vector.load %arg4[%c0_19, %c0_20, %c0_21, %c0_22] : memref<1x8x8x12xf32, #tpu.memory_space<vmem>>, vector<1x8x8x12xf32>
    %16 = arith.addf %15, %14 : vector<1x8x8x12xf32>
    %c0_23 = arith.constant 0 : index
    %c0_24 = arith.constant 0 : index
    %c0_25 = arith.constant 0 : index
    %c0_26 = arith.constant 0 : index
    %17 = vector.load %arg4[%c0_23, %c0_24, %c0_25, %c0_26] : memref<1x8x8x12xf32, #tpu.memory_space<vmem>>, vector<1x8x8x12xf32>
    tpu.vector_store %arg4[%c0_23, %c0_24, %c0_25, %c0_26], %16 {strides = array<i32>} : memref<1x8x8x12xf32, #tpu.memory_space<vmem>>, vector<1x8x8x12xf32>,
    %c2 = arith.constant 2 : index
    %c0_27 = arith.constant 0 : index
    %c0_28 = arith.constant 0 : index
    %c0_29 = arith.constant 0 : index
    %18 = vector.load %arg2[%c2, %c0_27, %c0_28, %c0_29] : memref<3x10x8x128xbf16, #tpu.memory_space<vmem>>, vector<1x8x8x128xbf16>
    %19 = vector.shape_cast %18 : vector<1x8x8x128xbf16> to vector<8x8x128xbf16>
    %20 = vector.shape_cast %19 : vector<8x8x128xbf16> to vector<64x128xbf16>
    %c0_30 = arith.constant 0 : index
    %c2_31 = arith.constant 2 : index
    %c0_32 = arith.constant 0 : index
    %c0_33 = arith.constant 0 : index
    %21 = vector.load %arg3[%c0_30, %c2_31, %c0_32, %c0_33] : memref<3x3x128x12xbf16, #tpu.memory_space<vmem>>, vector<1x1x128x12xbf16>
    %22 = vector.shape_cast %21 : vector<1x1x128x12xbf16> to vector<128x12xbf16>
    %cst_34 = arith.constant dense<0.000000e+00> : vector<64x12xf32>
    %23 = tpu.matmul %20, %22, %cst_34 {dimension_numbers = #tpu.dot_dimension_numbers<[1], [0], [0], [1], [0, 0, 1, 1], [], []>} : vector<64x128xbf16>, vector<128x12xbf16>, vector<64x12xf32> -> vector<64x12xf32>
    %24 = vector.shape_cast %23 : vector<64x12xf32> to vector<1x8x8x12xf32>
    %c0_35 = arith.constant 0 : index
    %c0_36 = arith.constant 0 : index
    %c0_37 = arith.constant 0 : index
    %c0_38 = arith.constant 0 : index
    %25 = vector.load %arg4[%c0_35, %c0_36, %c0_37, %c0_38] : memref<1x8x8x12xf32, #tpu.memory_space<vmem>>, vector<1x8x8x12xf32>
    %26 = arith.addf %25, %24 : vector<1x8x8x12xf32>
    %c0_39 = arith.constant 0 : index
    %c0_40 = arith.constant 0 : index
    %c0_41 = arith.constant 0 : index
    %c0_42 = arith.constant 0 : index
    %27 = vector.load %arg4[%c0_39, %c0_40, %c0_41, %c0_42] : memref<1x8x8x12xf32, #tpu.memory_space<vmem>>, vector<1x8x8x12xf32>
    tpu.vector_store %arg4[%c0_39, %c0_40, %c0_41, %c0_42], %26 {strides = array<i32>} : memref<1x8x8x12xf32, #tpu.memory_space<vmem>>, vector<1x8x8x12xf32>,
    %c0_43 = arith.constant 0 : index
    %c1_44 = arith.constant 1 : index
    %c0_45 = arith.constant 0 : index
    %c0_46 = arith.constant 0 : index
    %28 = vector.load %arg2[%c0_43, %c1_44, %c0_45, %c0_46] : memref<3x10x8x128xbf16, #tpu.memory_space<vmem>>, vector<1x8x8x128xbf16>
    %29 = vector.shape_cast %28 : vector<1x8x8x128xbf16> to vector<8x8x128xbf16>
    %30 = vector.shape_cast %29 : vector<8x8x128xbf16> to vector<64x128xbf16>
    %c1_47 = arith.constant 1 : index
    %c0_48 = arith.constant 0 : index
    %c0_49 = arith.constant 0 : index
    %c0_50 = arith.constant 0 : index
    %31 = vector.load %arg3[%c1_47, %c0_48, %c0_49, %c0_50] : memref<3x3x128x12xbf16, #tpu.memory_space<vmem>>, vector<1x1x128x12xbf16>
    %32 = vector.shape_cast %31 : vector<1x1x128x12xbf16> to vector<128x12xbf16>
    %cst_51 = arith.constant dense<0.000000e+00> : vector<64x12xf32>
    %33 = tpu.matmul %30, %32, %cst_51 {dimension_numbers = #tpu.dot_dimension_numbers<[1], [0], [0], [1], [0, 0, 1, 1], [], []>} : vector<64x128xbf16>, vector<128x12xbf16>, vector<64x12xf32> -> vector<64x12xf32>
    %34 = vector.shape_cast %33 : vector<64x12xf32> to vector<1x8x8x12xf32>
    %c0_52 = arith.constant 0 : index
    %c0_53 = arith.constant 0 : index
    %c0_54 = arith.constant 0 : index
    %c0_55 = arith.constant 0 : index
    %35 = vector.load %arg4[%c0_52, %c0_53, %c0_54, %c0_55] : memref<1x8x8x12xf32, #tpu.memory_space<vmem>>, vector<1x8x8x12xf32>
    %36 = arith.addf %35, %34 : vector<1x8x8x12xf32>
    %c0_56 = arith.constant 0 : index
    %c0_57 = arith.constant 0 : index
    %c0_58 = arith.constant 0 : index
    %c0_59 = arith.constant 0 : index
    %37 = vector.load %arg4[%c0_56, %c0_57, %c0_58, %c0_59] : memref<1x8x8x12xf32, #tpu.memory_space<vmem>>, vector<1x8x8x12xf32>
    tpu.vector_store %arg4[%c0_56, %c0_57, %c0_58, %c0_59], %36 {strides = array<i32>} : memref<1x8x8x12xf32, #tpu.memory_space<vmem>>, vector<1x8x8x12xf32>,
    %c1_60 = arith.constant 1 : index
    %c1_61 = arith.constant 1 : index
    %c0_62 = arith.constant 0 : index
    %c0_63 = arith.constant 0 : index
    %38 = vector.load %arg2[%c1_60, %c1_61, %c0_62, %c0_63] : memref<3x10x8x128xbf16, #tpu.memory_space<vmem>>, vector<1x8x8x128xbf16>
    %39 = vector.shape_cast %38 : vector<1x8x8x128xbf16> to vector<8x8x128xbf16>
    %40 = vector.shape_cast %39 : vector<8x8x128xbf16> to vector<64x128xbf16>
    %c1_64 = arith.constant 1 : index
    %c1_65 = arith.constant 1 : index
    %c0_66 = arith.constant 0 : index
    %c0_67 = arith.constant 0 : index
    %41 = vector.load %arg3[%c1_64, %c1_65, %c0_66, %c0_67] : memref<3x3x128x12xbf16, #tpu.memory_space<vmem>>, vector<1x1x128x12xbf16>
    %42 = vector.shape_cast %41 : vector<1x1x128x12xbf16> to vector<128x12xbf16>
    %cst_68 = arith.constant dense<0.000000e+00> : vector<64x12xf32>
    %43 = tpu.matmul %40, %42, %cst_68 {dimension_numbers = #tpu.dot_dimension_numbers<[1], [0], [0], [1], [0, 0, 1, 1], [], []>} : vector<64x128xbf16>, vector<128x12xbf16>, vector<64x12xf32> -> vector<64x12xf32>
    %44 = vector.shape_cast %43 : vector<64x12xf32> to vector<1x8x8x12xf32>
    %c0_69 = arith.constant 0 : index
    %c0_70 = arith.constant 0 : index
    %c0_71 = arith.constant 0 : index
    %c0_72 = arith.constant 0 : index
    %45 = vector.load %arg4[%c0_69, %c0_70, %c0_71, %c0_72] : memref<1x8x8x12xf32, #tpu.memory_space<vmem>>, vector<1x8x8x12xf32>
    %46 = arith.addf %45, %44 : vector<1x8x8x12xf32>
    %c0_73 = arith.constant 0 : index
    %c0_74 = arith.constant 0 : index
    %c0_75 = arith.constant 0 : index
    %c0_76 = arith.constant 0 : index
    %47 = vector.load %arg4[%c0_73, %c0_74, %c0_75, %c0_76] : memref<1x8x8x12xf32, #tpu.memory_space<vmem>>, vector<1x8x8x12xf32>
    tpu.vector_store %arg4[%c0_73, %c0_74, %c0_75, %c0_76], %46 {strides = array<i32>} : memref<1x8x8x12xf32, #tpu.memory_space<vmem>>, vector<1x8x8x12xf32>,
    %c2_77 = arith.constant 2 : index
    %c1_78 = arith.constant 1 : index
    %c0_79 = arith.constant 0 : index
    %c0_80 = arith.constant 0 : index
    %48 = vector.load %arg2[%c2_77, %c1_78, %c0_79, %c0_80] : memref<3x10x8x128xbf16, #tpu.memory_space<vmem>>, vector<1x8x8x128xbf16>
    %49 = vector.shape_cast %48 : vector<1x8x8x128xbf16> to vector<8x8x128xbf16>
    %50 = vector.shape_cast %49 : vector<8x8x128xbf16> to vector<64x128xbf16>
    %c1_81 = arith.constant 1 : index
    %c2_82 = arith.constant 2 : index
    %c0_83 = arith.constant 0 : index
    %c0_84 = arith.constant 0 : index
    %51 = vector.load %arg3[%c1_81, %c2_82, %c0_83, %c0_84] : memref<3x3x128x12xbf16, #tpu.memory_space<vmem>>, vector<1x1x128x12xbf16>
    %52 = vector.shape_cast %51 : vector<1x1x128x12xbf16> to vector<128x12xbf16>
    %cst_85 = arith.constant dense<0.000000e+00> : vector<64x12xf32>
    %53 = tpu.matmul %50, %52, %cst_85 {dimension_numbers = #tpu.dot_dimension_numbers<[1], [0], [0], [1], [0, 0, 1, 1], [], []>} : vector<64x128xbf16>, vector<128x12xbf16>, vector<64x12xf32> -> vector<64x12xf32>
    %54 = vector.shape_cast %53 : vector<64x12xf32> to vector<1x8x8x12xf32>
    %c0_86 = arith.constant 0 : index
    %c0_87 = arith.constant 0 : index
    %c0_88 = arith.constant 0 : index
    %c0_89 = arith.constant 0 : index
    %55 = vector.load %arg4[%c0_86, %c0_87, %c0_88, %c0_89] : memref<1x8x8x12xf32, #tpu.memory_space<vmem>>, vector<1x8x8x12xf32>
    %56 = arith.addf %55, %54 : vector<1x8x8x12xf32>
    %c0_90 = arith.constant 0 : index
    %c0_91 = arith.constant 0 : index
    %c0_92 = arith.constant 0 : index
    %c0_93 = arith.constant 0 : index
    %57 = vector.load %arg4[%c0_90, %c0_91, %c0_92, %c0_93] : memref<1x8x8x12xf32, #tpu.memory_space<vmem>>, vector<1x8x8x12xf32>
    tpu.vector_store %arg4[%c0_90, %c0_91, %c0_92, %c0_93], %56 {strides = array<i32>} : memref<1x8x8x12xf32, #tpu.memory_space<vmem>>, vector<1x8x8x12xf32>,
    %c0_94 = arith.constant 0 : index
    %c2_95 = arith.constant 2 : index
    %c0_96 = arith.constant 0 : index
    %c0_97 = arith.constant 0 : index
    %58 = vector.load %arg2[%c0_94, %c2_95, %c0_96, %c0_97] : memref<3x10x8x128xbf16, #tpu.memory_space<vmem>>, vector<1x8x8x128xbf16>
    %59 = vector.shape_cast %58 : vector<1x8x8x128xbf16> to vector<8x8x128xbf16>
    %60 = vector.shape_cast %59 : vector<8x8x128xbf16> to vector<64x128xbf16>
    %c2_98 = arith.constant 2 : index
    %c0_99 = arith.constant 0 : index
    %c0_100 = arith.constant 0 : index
    %c0_101 = arith.constant 0 : index
    %61 = vector.load %arg3[%c2_98, %c0_99, %c0_100, %c0_101] : memref<3x3x128x12xbf16, #tpu.memory_space<vmem>>, vector<1x1x128x12xbf16>
    %62 = vector.shape_cast %61 : vector<1x1x128x12xbf16> to vector<128x12xbf16>
    %cst_102 = arith.constant dense<0.000000e+00> : vector<64x12xf32>
    %63 = tpu.matmul %60, %62, %cst_102 {dimension_numbers = #tpu.dot_dimension_numbers<[1], [0], [0], [1], [0, 0, 1, 1], [], []>} : vector<64x128xbf16>, vector<128x12xbf16>, vector<64x12xf32> -> vector<64x12xf32>
    %64 = vector.shape_cast %63 : vector<64x12xf32> to vector<1x8x8x12xf32>
    %c0_103 = arith.constant 0 : index
    %c0_104 = arith.constant 0 : index
    %c0_105 = arith.constant 0 : index
    %c0_106 = arith.constant 0 : index
    %65 = vector.load %arg4[%c0_103, %c0_104, %c0_105, %c0_106] : memref<1x8x8x12xf32, #tpu.memory_space<vmem>>, vector<1x8x8x12xf32>
    %66 = arith.addf %65, %64 : vector<1x8x8x12xf32>
    %c0_107 = arith.constant 0 : index
    %c0_108 = arith.constant 0 : index
    %c0_109 = arith.constant 0 : index
    %c0_110 = arith.constant 0 : index
    %67 = vector.load %arg4[%c0_107, %c0_108, %c0_109, %c0_110] : memref<1x8x8x12xf32, #tpu.memory_space<vmem>>, vector<1x8x8x12xf32>
    tpu.vector_store %arg4[%c0_107, %c0_108, %c0_109, %c0_110], %66 {strides = array<i32>} : memref<1x8x8x12xf32, #tpu.memory_space<vmem>>, vector<1x8x8x12xf32>,
    %c1_111 = arith.constant 1 : index
    %c2_112 = arith.constant 2 : index
    %c0_113 = arith.constant 0 : index
    %c0_114 = arith.constant 0 : index
    %68 = vector.load %arg2[%c1_111, %c2_112, %c0_113, %c0_114] : memref<3x10x8x128xbf16, #tpu.memory_space<vmem>>, vector<1x8x8x128xbf16>
    %69 = vector.shape_cast %68 : vector<1x8x8x128xbf16> to vector<8x8x128xbf16>
    %70 = vector.shape_cast %69 : vector<8x8x128xbf16> to vector<64x128xbf16>
    %c2_115 = arith.constant 2 : index
    %c1_116 = arith.constant 1 : index
    %c0_117 = arith.constant 0 : index
    %c0_118 = arith.constant 0 : index
    %71 = vector.load %arg3[%c2_115, %c1_116, %c0_117, %c0_118] : memref<3x3x128x12xbf16, #tpu.memory_space<vmem>>, vector<1x1x128x12xbf16>
    %72 = vector.shape_cast %71 : vector<1x1x128x12xbf16> to vector<128x12xbf16>
    %cst_119 = arith.constant dense<0.000000e+00> : vector<64x12xf32>
    %73 = tpu.matmul %70, %72, %cst_119 {dimension_numbers = #tpu.dot_dimension_numbers<[1], [0], [0], [1], [0, 0, 1, 1], [], []>} : vector<64x128xbf16>, vector<128x12xbf16>, vector<64x12xf32> -> vector<64x12xf32>
    %74 = vector.shape_cast %73 : vector<64x12xf32> to vector<1x8x8x12xf32>
    %c0_120 = arith.constant 0 : index
    %c0_121 = arith.constant 0 : index
    %c0_122 = arith.constant 0 : index
    %c0_123 = arith.constant 0 : index
    %75 = vector.load %arg4[%c0_120, %c0_121, %c0_122, %c0_123] : memref<1x8x8x12xf32, #tpu.memory_space<vmem>>, vector<1x8x8x12xf32>
    %76 = arith.addf %75, %74 : vector<1x8x8x12xf32>
    %c0_124 = arith.constant 0 : index
    %c0_125 = arith.constant 0 : index
    %c0_126 = arith.constant 0 : index
    %c0_127 = arith.constant 0 : index
    %77 = vector.load %arg4[%c0_124, %c0_125, %c0_126, %c0_127] : memref<1x8x8x12xf32, #tpu.memory_space<vmem>>, vector<1x8x8x12xf32>
    tpu.vector_store %arg4[%c0_124, %c0_125, %c0_126, %c0_127], %76 {strides = array<i32>} : memref<1x8x8x12xf32, #tpu.memory_space<vmem>>, vector<1x8x8x12xf32>,
    %c2_128 = arith.constant 2 : index
    %c2_129 = arith.constant 2 : index
    %c0_130 = arith.constant 0 : index
    %c0_131 = arith.constant 0 : index
    %78 = vector.load %arg2[%c2_128, %c2_129, %c0_130, %c0_131] : memref<3x10x8x128xbf16, #tpu.memory_space<vmem>>, vector<1x8x8x128xbf16>
    %79 = vector.shape_cast %78 : vector<1x8x8x128xbf16> to vector<8x8x128xbf16>
    %80 = vector.shape_cast %79 : vector<8x8x128xbf16> to vector<64x128xbf16>
    %c2_132 = arith.constant 2 : index
    %c2_133 = arith.constant 2 : index
    %c0_134 = arith.constant 0 : index
    %c0_135 = arith.constant 0 : index
    %81 = vector.load %arg3[%c2_132, %c2_133, %c0_134, %c0_135] : memref<3x3x128x12xbf16, #tpu.memory_space<vmem>>, vector<1x1x128x12xbf16>
    %82 = vector.shape_cast %81 : vector<1x1x128x12xbf16> to vector<128x12xbf16>
    %cst_136 = arith.constant dense<0.000000e+00> : vector<64x12xf32>
    %83 = tpu.matmul %80, %82, %cst_136 {dimension_numbers = #tpu.dot_dimension_numbers<[1], [0], [0], [1], [0, 0, 1, 1], [], []>} : vector<64x128xbf16>, vector<128x12xbf16>, vector<64x12xf32> -> vector<64x12xf32>
    %84 = vector.shape_cast %83 : vector<64x12xf32> to vector<1x8x8x12xf32>
    %c0_137 = arith.constant 0 : index
    %c0_138 = arith.constant 0 : index
    %c0_139 = arith.constant 0 : index
    %c0_140 = arith.constant 0 : index
    %85 = vector.load %arg4[%c0_137, %c0_138, %c0_139, %c0_140] : memref<1x8x8x12xf32, #tpu.memory_space<vmem>>, vector<1x8x8x12xf32>
    %86 = arith.addf %85, %84 : vector<1x8x8x12xf32>
    %c0_141 = arith.constant 0 : index
    %c0_142 = arith.constant 0 : index
    %c0_143 = arith.constant 0 : index
    %c0_144 = arith.constant 0 : index
    %87 = vector.load %arg4[%c0_141, %c0_142, %c0_143, %c0_144] : memref<1x8x8x12xf32, #tpu.memory_space<vmem>>, vector<1x8x8x12xf32>
    tpu.vector_store %arg4[%c0_141, %c0_142, %c0_143, %c0_144], %86 {strides = array<i32>} : memref<1x8x8x12xf32, #tpu.memory_space<vmem>>, vector<1x8x8x12xf32>,
    return
  }
  func.func @transform_0(%arg0: i32, %arg1: i32) -> (i32, i32, i32, i32) {
    %c0_i32 = arith.constant 0 : i32
    %c0_i32_0 = arith.constant 0 : i32
    %c0_i32_1 = arith.constant 0 : i32
    return %arg0, %c0_i32, %arg1, %c0_i32_0 : i32, i32, i32, i32
  }
  func.func @transform_1(%arg0: i32, %arg1: i32) -> (i32, i32, i32, i32) {
    %c0_i32 = arith.constant 0 : i32
    %c0_i32_0 = arith.constant 0 : i32
    %c0_i32_1 = arith.constant 0 : i32
    %c0_i32_2 = arith.constant 0 : i32
    %c0_i32_3 = arith.constant 0 : i32
    return %c0_i32, %c0_i32_0, %c0_i32_1, %c0_i32_2 : i32, i32, i32, i32
  }
  func.func @transform_2(%arg0: i32, %arg1: i32) -> (i32, i32, i32, i32) {
    %c0_i32 = arith.constant 0 : i32
    %c0_i32_0 = arith.constant 0 : i32
    %c0_i32_1 = arith.constant 0 : i32
    return %arg0, %c0_i32, %arg1, %c0_i32_0 : i32, i32, i32, i32
  }
}

module attributes {stable_mosaic.version = 11 : i64} {
  func.func @kernel(%arg0: i32, %arg1: i32, %arg2: memref<1x2x8x42xf32, #tpu.memory_space<vmem>>, %arg3: memref<4x8xf32, #tpu.memory_space<vmem>>, %arg4: memref<1x1x4x42xf32, #tpu.memory_space<vmem>>) attributes {dimension_semantics = [#tpu.dimension_semantics<parallel>, #tpu.dimension_semantics<parallel>], iteration_bounds = array<i64: 2, 4>, scalar_prefetch = 0 : i64, scratch_operands = 0 : i64, tpu.core_type = #tpu.core_type<tc>, window_params = [{transform_indices = @transform_0, window_bounds = array<i64: 1, 2, 8, 42>}, {pipeline_mode = #tpu.pipeline_mode<synchronous>, transform_indices = @transform_1, window_bounds = array<i64: 4, 8>}, {transform_indices = @transform_2, window_bounds = array<i64: 1, 1, 4, 42>}]} {
    %c0 = arith.constant 0 : index
    %c0_0 = arith.constant 0 : index
    %c0_1 = arith.constant 0 : index
    %c0_2 = arith.constant 0 : index
    %0 = vector.load %arg2[%c0, %c0_0, %c0_1, %c0_2] : memref<1x2x8x42xf32, #tpu.memory_space<vmem>>, vector<1x2x8x42xf32>
    %1 = vector.shape_cast %0 : vector<1x2x8x42xf32> to vector<2x8x42xf32>
    %2 = vector.extract_strided_slice %1 {offsets = [0, 0, 0], sizes = [1, 8, 42], strides = [1, 1, 1]} : vector<2x8x42xf32> to vector<1x8x42xf32>
    %3 = vector.shape_cast %2 : vector<1x8x42xf32> to vector<8x42xf32>
    %4 = vector.extract_strided_slice %1 {offsets = [1, 0, 0], sizes = [1, 8, 42], strides = [1, 1, 1]} : vector<2x8x42xf32> to vector<1x8x42xf32>
    %5 = vector.shape_cast %4 : vector<1x8x42xf32> to vector<8x42xf32>
    %6 = arith.addf %3, %5 : vector<8x42xf32>
    %c0_3 = arith.constant 0 : index
    %c0_4 = arith.constant 0 : index
    %7 = vector.load %arg3[%c0_3, %c0_4] : memref<4x8xf32, #tpu.memory_space<vmem>>, vector<4x8xf32>
    %cst = arith.constant dense<0.000000e+00> : vector<4x42xf32>
    %8 = tpu.matmul %7, %6, %cst {dimension_numbers = #tpu.dot_dimension_numbers<[1], [0], [0], [1], [0, 0, 1, 1], [], []>} : vector<4x8xf32>, vector<8x42xf32>, vector<4x42xf32> -> vector<4x42xf32>
    %c0_5 = arith.constant 0 : index
    %c0_6 = arith.constant 0 : index
    %c0_7 = arith.constant 0 : index
    %c0_8 = arith.constant 0 : index
    %9 = vector.load %arg4[%c0_5, %c0_6, %c0_7, %c0_8] : memref<1x1x4x42xf32, #tpu.memory_space<vmem>>, vector<1x1x4x42xf32>
    %10 = vector.shape_cast %9 : vector<1x1x4x42xf32> to vector<4x42xf32>
    %11 = vector.shape_cast %8 : vector<4x42xf32> to vector<1x1x4x42xf32>
    tpu.vector_store %arg4[%c0_5, %c0_6, %c0_7, %c0_8], %11 {strides = array<i32>} : memref<1x1x4x42xf32, #tpu.memory_space<vmem>>, vector<1x1x4x42xf32>,
    return
  }
  func.func @transform_0(%arg0: i32, %arg1: i32) -> (i32, i32, i32, i32) {
    %c0_i32 = arith.constant 0 : i32
    %c0_i32_0 = arith.constant 0 : i32
    %c0_i32_1 = arith.constant 0 : i32
    return %arg0, %arg1, %c0_i32, %c0_i32_0 : i32, i32, i32, i32
  }
  func.func @transform_1(%arg0: i32, %arg1: i32) -> (i32, i32) {
    %c0_i32 = arith.constant 0 : i32
    %c0_i32_0 = arith.constant 0 : i32
    %c0_i32_1 = arith.constant 0 : i32
    return %c0_i32, %c0_i32_0 : i32, i32
  }
  func.func @transform_2(%arg0: i32, %arg1: i32) -> (i32, i32, i32, i32) {
    %c0_i32 = arith.constant 0 : i32
    %c0_i32_0 = arith.constant 0 : i32
    %c0_i32_1 = arith.constant 0 : i32
    return %arg0, %arg1, %c0_i32, %c0_i32_0 : i32, i32, i32, i32
  }
}

module attributes {stable_mosaic.version = 11 : i64} {
  func.func @_bn_relu_matmul_kernel(%arg0: i32, %arg1: i32, %arg2: memref<128x128xbf16, #tpu.memory_space<vmem>>, %arg3: memref<1x128xf32, #tpu.memory_space<vmem>>, %arg4: memref<1x128xf32, #tpu.memory_space<vmem>>, %arg5: memref<128x42xbf16, #tpu.memory_space<vmem>>, %arg6: memref<128x42xf32, #tpu.memory_space<vmem>>) attributes {dimension_semantics = [#tpu.dimension_semantics<parallel>, #tpu.dimension_semantics<parallel>], iteration_bounds = array<i64: 1, 1>, scalar_prefetch = 0 : i64, scratch_operands = 0 : i64, tpu.core_type = #tpu.core_type<tc>, window_params = [{transform_indices = @transform_0, window_bounds = array<i64: 128, 128>}, {pipeline_mode = #tpu.pipeline_mode<synchronous>, transform_indices = @transform_1, window_bounds = array<i64: 1, 128>}, {pipeline_mode = #tpu.pipeline_mode<synchronous>, transform_indices = @transform_2, window_bounds = array<i64: 1, 128>}, {transform_indices = @transform_3, window_bounds = array<i64: 128, 42>}, {transform_indices = @transform_4, window_bounds = array<i64: 128, 42>}]} {
    %c0 = arith.constant 0 : index
    %c0_0 = arith.constant 0 : index
    %0 = vector.load %arg2[%c0, %c0_0] : memref<128x128xbf16, #tpu.memory_space<vmem>>, vector<128x128xbf16>
    %1 = arith.extf %0 : vector<128x128xbf16> to vector<128x128xf32>
    %c0_1 = arith.constant 0 : index
    %c0_2 = arith.constant 0 : index
    %2 = vector.load %arg3[%c0_1, %c0_2] : memref<1x128xf32, #tpu.memory_space<vmem>>, vector<1x128xf32>
    %3 = vector.broadcast %2 : vector<1x128xf32> to vector<128x128xf32>
    %4 = arith.mulf %1, %3 : vector<128x128xf32>
    %c0_3 = arith.constant 0 : index
    %c0_4 = arith.constant 0 : index
    %5 = vector.load %arg4[%c0_3, %c0_4] : memref<1x128xf32, #tpu.memory_space<vmem>>, vector<1x128xf32>
    %6 = vector.broadcast %5 : vector<1x128xf32> to vector<128x128xf32>
    %7 = arith.addf %4, %6 : vector<128x128xf32>
    %cst = arith.constant 0.000000e+00 : f32
    %8 = vector.broadcast %cst : f32 to vector<128x128xf32>
    %9 = arith.maximumf %7, %8 : vector<128x128xf32>
    %10 = arith.truncf %9 : vector<128x128xf32> to vector<128x128xbf16>
    %c0_5 = arith.constant 0 : index
    %c0_6 = arith.constant 0 : index
    %11 = vector.load %arg5[%c0_5, %c0_6] : memref<128x42xbf16, #tpu.memory_space<vmem>>, vector<128x42xbf16>
    %cst_7 = arith.constant dense<0.000000e+00> : vector<128x42xf32>
    %12 = tpu.matmul %10, %11, %cst_7 {dimension_numbers = #tpu.dot_dimension_numbers<[1], [0], [0], [1], [0, 0, 1, 1], [], []>} : vector<128x128xbf16>, vector<128x42xbf16>, vector<128x42xf32> -> vector<128x42xf32>
    %c0_8 = arith.constant 0 : index
    %c0_9 = arith.constant 0 : index
    %13 = vector.load %arg6[%c0_8, %c0_9] : memref<128x42xf32, #tpu.memory_space<vmem>>, vector<128x42xf32>
    tpu.vector_store %arg6[%c0_8, %c0_9], %12 {strides = array<i32>} : memref<128x42xf32, #tpu.memory_space<vmem>>, vector<128x42xf32>,
    return
  }
  func.func @transform_0(%arg0: i32, %arg1: i32) -> (i32, i32) {
    %c0_i32 = arith.constant 0 : i32
    %c0_i32_0 = arith.constant 0 : i32
    return %arg0, %c0_i32 : i32, i32
  }
  func.func @transform_1(%arg0: i32, %arg1: i32) -> (i32, i32) {
    %c0_i32 = arith.constant 0 : i32
    %c0_i32_0 = arith.constant 0 : i32
    %c0_i32_1 = arith.constant 0 : i32
    return %c0_i32, %c0_i32_0 : i32, i32
  }
  func.func @transform_2(%arg0: i32, %arg1: i32) -> (i32, i32) {
    %c0_i32 = arith.constant 0 : i32
    %c0_i32_0 = arith.constant 0 : i32
    %c0_i32_1 = arith.constant 0 : i32
    return %c0_i32, %c0_i32_0 : i32, i32
  }
  func.func @transform_3(%arg0: i32, %arg1: i32) -> (i32, i32) {
    %c0_i32 = arith.constant 0 : i32
    %c0_i32_0 = arith.constant 0 : i32
    return %c0_i32, %arg1 : i32, i32
  }
  func.func @transform_4(%arg0: i32, %arg1: i32) -> (i32, i32) {
    %c0_i32 = arith.constant 0 : i32
    return %arg0, %arg1 : i32, i32
  }
}

module attributes {stable_mosaic.version = 11 : i64} {
  func.func @kernel(%arg0: i32, %arg1: i32, %arg2: memref<3x6x4x128xbf16, #tpu.memory_space<vmem>>, %arg3: memref<3x3x128x12xbf16, #tpu.memory_space<vmem>>, %arg4: memref<1x4x4x12xf32, #tpu.memory_space<vmem>>) attributes {dimension_semantics = [#tpu.dimension_semantics<parallel>, #tpu.dimension_semantics<parallel>], iteration_bounds = array<i64: 2, 1>, scalar_prefetch = 0 : i64, scratch_operands = 0 : i64, tpu.core_type = #tpu.core_type<tc>, window_params = [{transform_indices = @transform_0, window_bounds = array<i64: 3, 6, 4, 128>}, {pipeline_mode = #tpu.pipeline_mode<synchronous>, transform_indices = @transform_1, window_bounds = array<i64: 3, 3, 128, 12>}, {transform_indices = @transform_2, window_bounds = array<i64: 1, 4, 4, 12>}]} {
    %c0 = arith.constant 0 : index
    %c0_0 = arith.constant 0 : index
    %c0_1 = arith.constant 0 : index
    %c0_2 = arith.constant 0 : index
    %0 = vector.load %arg2[%c0, %c0_0, %c0_1, %c0_2] : memref<3x6x4x128xbf16, #tpu.memory_space<vmem>>, vector<1x4x4x128xbf16>
    %1 = vector.shape_cast %0 : vector<1x4x4x128xbf16> to vector<4x4x128xbf16>
    %2 = vector.shape_cast %1 : vector<4x4x128xbf16> to vector<16x128xbf16>
    %c0_3 = arith.constant 0 : index
    %c0_4 = arith.constant 0 : index
    %c0_5 = arith.constant 0 : index
    %c0_6 = arith.constant 0 : index
    %3 = vector.load %arg3[%c0_3, %c0_4, %c0_5, %c0_6] : memref<3x3x128x12xbf16, #tpu.memory_space<vmem>>, vector<1x1x128x12xbf16>
    %4 = vector.shape_cast %3 : vector<1x1x128x12xbf16> to vector<128x12xbf16>
    %cst = arith.constant dense<0.000000e+00> : vector<16x12xf32>
    %5 = tpu.matmul %2, %4, %cst {dimension_numbers = #tpu.dot_dimension_numbers<[1], [0], [0], [1], [0, 0, 1, 1], [], []>} : vector<16x128xbf16>, vector<128x12xbf16>, vector<16x12xf32> -> vector<16x12xf32>
    %6 = vector.shape_cast %5 : vector<16x12xf32> to vector<1x4x4x12xf32>
    %c0_7 = arith.constant 0 : index
    %c0_8 = arith.constant 0 : index
    %c0_9 = arith.constant 0 : index
    %c0_10 = arith.constant 0 : index
    %7 = vector.load %arg4[%c0_7, %c0_8, %c0_9, %c0_10] : memref<1x4x4x12xf32, #tpu.memory_space<vmem>>, vector<1x4x4x12xf32>
    tpu.vector_store %arg4[%c0_7, %c0_8, %c0_9, %c0_10], %6 {strides = array<i32>} : memref<1x4x4x12xf32, #tpu.memory_space<vmem>>, vector<1x4x4x12xf32>,
    %c1 = arith.constant 1 : index
    %c0_11 = arith.constant 0 : index
    %c0_12 = arith.constant 0 : index
    %c0_13 = arith.constant 0 : index
    %8 = vector.load %arg2[%c1, %c0_11, %c0_12, %c0_13] : memref<3x6x4x128xbf16, #tpu.memory_space<vmem>>, vector<1x4x4x128xbf16>
    %9 = vector.shape_cast %8 : vector<1x4x4x128xbf16> to vector<4x4x128xbf16>
    %10 = vector.shape_cast %9 : vector<4x4x128xbf16> to vector<16x128xbf16>
    %c0_14 = arith.constant 0 : index
    %c1_15 = arith.constant 1 : index
    %c0_16 = arith.constant 0 : index
    %c0_17 = arith.constant 0 : index
    %11 = vector.load %arg3[%c0_14, %c1_15, %c0_16, %c0_17] : memref<3x3x128x12xbf16, #tpu.memory_space<vmem>>, vector<1x1x128x12xbf16>
    %12 = vector.shape_cast %11 : vector<1x1x128x12xbf16> to vector<128x12xbf16>
    %cst_18 = arith.constant dense<0.000000e+00> : vector<16x12xf32>
    %13 = tpu.matmul %10, %12, %cst_18 {dimension_numbers = #tpu.dot_dimension_numbers<[1], [0], [0], [1], [0, 0, 1, 1], [], []>} : vector<16x128xbf16>, vector<128x12xbf16>, vector<16x12xf32> -> vector<16x12xf32>
    %14 = vector.shape_cast %13 : vector<16x12xf32> to vector<1x4x4x12xf32>
    %c0_19 = arith.constant 0 : index
    %c0_20 = arith.constant 0 : index
    %c0_21 = arith.constant 0 : index
    %c0_22 = arith.constant 0 : index
    %15 = vector.load %arg4[%c0_19, %c0_20, %c0_21, %c0_22] : memref<1x4x4x12xf32, #tpu.memory_space<vmem>>, vector<1x4x4x12xf32>
    %16 = arith.addf %15, %14 : vector<1x4x4x12xf32>
    %c0_23 = arith.constant 0 : index
    %c0_24 = arith.constant 0 : index
    %c0_25 = arith.constant 0 : index
    %c0_26 = arith.constant 0 : index
    %17 = vector.load %arg4[%c0_23, %c0_24, %c0_25, %c0_26] : memref<1x4x4x12xf32, #tpu.memory_space<vmem>>, vector<1x4x4x12xf32>
    tpu.vector_store %arg4[%c0_23, %c0_24, %c0_25, %c0_26], %16 {strides = array<i32>} : memref<1x4x4x12xf32, #tpu.memory_space<vmem>>, vector<1x4x4x12xf32>,
    %c2 = arith.constant 2 : index
    %c0_27 = arith.constant 0 : index
    %c0_28 = arith.constant 0 : index
    %c0_29 = arith.constant 0 : index
    %18 = vector.load %arg2[%c2, %c0_27, %c0_28, %c0_29] : memref<3x6x4x128xbf16, #tpu.memory_space<vmem>>, vector<1x4x4x128xbf16>
    %19 = vector.shape_cast %18 : vector<1x4x4x128xbf16> to vector<4x4x128xbf16>
    %20 = vector.shape_cast %19 : vector<4x4x128xbf16> to vector<16x128xbf16>
    %c0_30 = arith.constant 0 : index
    %c2_31 = arith.constant 2 : index
    %c0_32 = arith.constant 0 : index
    %c0_33 = arith.constant 0 : index
    %21 = vector.load %arg3[%c0_30, %c2_31, %c0_32, %c0_33] : memref<3x3x128x12xbf16, #tpu.memory_space<vmem>>, vector<1x1x128x12xbf16>
    %22 = vector.shape_cast %21 : vector<1x1x128x12xbf16> to vector<128x12xbf16>
    %cst_34 = arith.constant dense<0.000000e+00> : vector<16x12xf32>
    %23 = tpu.matmul %20, %22, %cst_34 {dimension_numbers = #tpu.dot_dimension_numbers<[1], [0], [0], [1], [0, 0, 1, 1], [], []>} : vector<16x128xbf16>, vector<128x12xbf16>, vector<16x12xf32> -> vector<16x12xf32>
    %24 = vector.shape_cast %23 : vector<16x12xf32> to vector<1x4x4x12xf32>
    %c0_35 = arith.constant 0 : index
    %c0_36 = arith.constant 0 : index
    %c0_37 = arith.constant 0 : index
    %c0_38 = arith.constant 0 : index
    %25 = vector.load %arg4[%c0_35, %c0_36, %c0_37, %c0_38] : memref<1x4x4x12xf32, #tpu.memory_space<vmem>>, vector<1x4x4x12xf32>
    %26 = arith.addf %25, %24 : vector<1x4x4x12xf32>
    %c0_39 = arith.constant 0 : index
    %c0_40 = arith.constant 0 : index
    %c0_41 = arith.constant 0 : index
    %c0_42 = arith.constant 0 : index
    %27 = vector.load %arg4[%c0_39, %c0_40, %c0_41, %c0_42] : memref<1x4x4x12xf32, #tpu.memory_space<vmem>>, vector<1x4x4x12xf32>
    tpu.vector_store %arg4[%c0_39, %c0_40, %c0_41, %c0_42], %26 {strides = array<i32>} : memref<1x4x4x12xf32, #tpu.memory_space<vmem>>, vector<1x4x4x12xf32>,
    %c0_43 = arith.constant 0 : index
    %c1_44 = arith.constant 1 : index
    %c0_45 = arith.constant 0 : index
    %c0_46 = arith.constant 0 : index
    %28 = vector.load %arg2[%c0_43, %c1_44, %c0_45, %c0_46] : memref<3x6x4x128xbf16, #tpu.memory_space<vmem>>, vector<1x4x4x128xbf16>
    %29 = vector.shape_cast %28 : vector<1x4x4x128xbf16> to vector<4x4x128xbf16>
    %30 = vector.shape_cast %29 : vector<4x4x128xbf16> to vector<16x128xbf16>
    %c1_47 = arith.constant 1 : index
    %c0_48 = arith.constant 0 : index
    %c0_49 = arith.constant 0 : index
    %c0_50 = arith.constant 0 : index
    %31 = vector.load %arg3[%c1_47, %c0_48, %c0_49, %c0_50] : memref<3x3x128x12xbf16, #tpu.memory_space<vmem>>, vector<1x1x128x12xbf16>
    %32 = vector.shape_cast %31 : vector<1x1x128x12xbf16> to vector<128x12xbf16>
    %cst_51 = arith.constant dense<0.000000e+00> : vector<16x12xf32>
    %33 = tpu.matmul %30, %32, %cst_51 {dimension_numbers = #tpu.dot_dimension_numbers<[1], [0], [0], [1], [0, 0, 1, 1], [], []>} : vector<16x128xbf16>, vector<128x12xbf16>, vector<16x12xf32> -> vector<16x12xf32>
    %34 = vector.shape_cast %33 : vector<16x12xf32> to vector<1x4x4x12xf32>
    %c0_52 = arith.constant 0 : index
    %c0_53 = arith.constant 0 : index
    %c0_54 = arith.constant 0 : index
    %c0_55 = arith.constant 0 : index
    %35 = vector.load %arg4[%c0_52, %c0_53, %c0_54, %c0_55] : memref<1x4x4x12xf32, #tpu.memory_space<vmem>>, vector<1x4x4x12xf32>
    %36 = arith.addf %35, %34 : vector<1x4x4x12xf32>
    %c0_56 = arith.constant 0 : index
    %c0_57 = arith.constant 0 : index
    %c0_58 = arith.constant 0 : index
    %c0_59 = arith.constant 0 : index
    %37 = vector.load %arg4[%c0_56, %c0_57, %c0_58, %c0_59] : memref<1x4x4x12xf32, #tpu.memory_space<vmem>>, vector<1x4x4x12xf32>
    tpu.vector_store %arg4[%c0_56, %c0_57, %c0_58, %c0_59], %36 {strides = array<i32>} : memref<1x4x4x12xf32, #tpu.memory_space<vmem>>, vector<1x4x4x12xf32>,
    %c1_60 = arith.constant 1 : index
    %c1_61 = arith.constant 1 : index
    %c0_62 = arith.constant 0 : index
    %c0_63 = arith.constant 0 : index
    %38 = vector.load %arg2[%c1_60, %c1_61, %c0_62, %c0_63] : memref<3x6x4x128xbf16, #tpu.memory_space<vmem>>, vector<1x4x4x128xbf16>
    %39 = vector.shape_cast %38 : vector<1x4x4x128xbf16> to vector<4x4x128xbf16>
    %40 = vector.shape_cast %39 : vector<4x4x128xbf16> to vector<16x128xbf16>
    %c1_64 = arith.constant 1 : index
    %c1_65 = arith.constant 1 : index
    %c0_66 = arith.constant 0 : index
    %c0_67 = arith.constant 0 : index
    %41 = vector.load %arg3[%c1_64, %c1_65, %c0_66, %c0_67] : memref<3x3x128x12xbf16, #tpu.memory_space<vmem>>, vector<1x1x128x12xbf16>
    %42 = vector.shape_cast %41 : vector<1x1x128x12xbf16> to vector<128x12xbf16>
    %cst_68 = arith.constant dense<0.000000e+00> : vector<16x12xf32>
    %43 = tpu.matmul %40, %42, %cst_68 {dimension_numbers = #tpu.dot_dimension_numbers<[1], [0], [0], [1], [0, 0, 1, 1], [], []>} : vector<16x128xbf16>, vector<128x12xbf16>, vector<16x12xf32> -> vector<16x12xf32>
    %44 = vector.shape_cast %43 : vector<16x12xf32> to vector<1x4x4x12xf32>
    %c0_69 = arith.constant 0 : index
    %c0_70 = arith.constant 0 : index
    %c0_71 = arith.constant 0 : index
    %c0_72 = arith.constant 0 : index
    %45 = vector.load %arg4[%c0_69, %c0_70, %c0_71, %c0_72] : memref<1x4x4x12xf32, #tpu.memory_space<vmem>>, vector<1x4x4x12xf32>
    %46 = arith.addf %45, %44 : vector<1x4x4x12xf32>
    %c0_73 = arith.constant 0 : index
    %c0_74 = arith.constant 0 : index
    %c0_75 = arith.constant 0 : index
    %c0_76 = arith.constant 0 : index
    %47 = vector.load %arg4[%c0_73, %c0_74, %c0_75, %c0_76] : memref<1x4x4x12xf32, #tpu.memory_space<vmem>>, vector<1x4x4x12xf32>
    tpu.vector_store %arg4[%c0_73, %c0_74, %c0_75, %c0_76], %46 {strides = array<i32>} : memref<1x4x4x12xf32, #tpu.memory_space<vmem>>, vector<1x4x4x12xf32>,
    %c2_77 = arith.constant 2 : index
    %c1_78 = arith.constant 1 : index
    %c0_79 = arith.constant 0 : index
    %c0_80 = arith.constant 0 : index
    %48 = vector.load %arg2[%c2_77, %c1_78, %c0_79, %c0_80] : memref<3x6x4x128xbf16, #tpu.memory_space<vmem>>, vector<1x4x4x128xbf16>
    %49 = vector.shape_cast %48 : vector<1x4x4x128xbf16> to vector<4x4x128xbf16>
    %50 = vector.shape_cast %49 : vector<4x4x128xbf16> to vector<16x128xbf16>
    %c1_81 = arith.constant 1 : index
    %c2_82 = arith.constant 2 : index
    %c0_83 = arith.constant 0 : index
    %c0_84 = arith.constant 0 : index
    %51 = vector.load %arg3[%c1_81, %c2_82, %c0_83, %c0_84] : memref<3x3x128x12xbf16, #tpu.memory_space<vmem>>, vector<1x1x128x12xbf16>
    %52 = vector.shape_cast %51 : vector<1x1x128x12xbf16> to vector<128x12xbf16>
    %cst_85 = arith.constant dense<0.000000e+00> : vector<16x12xf32>
    %53 = tpu.matmul %50, %52, %cst_85 {dimension_numbers = #tpu.dot_dimension_numbers<[1], [0], [0], [1], [0, 0, 1, 1], [], []>} : vector<16x128xbf16>, vector<128x12xbf16>, vector<16x12xf32> -> vector<16x12xf32>
    %54 = vector.shape_cast %53 : vector<16x12xf32> to vector<1x4x4x12xf32>
    %c0_86 = arith.constant 0 : index
    %c0_87 = arith.constant 0 : index
    %c0_88 = arith.constant 0 : index
    %c0_89 = arith.constant 0 : index
    %55 = vector.load %arg4[%c0_86, %c0_87, %c0_88, %c0_89] : memref<1x4x4x12xf32, #tpu.memory_space<vmem>>, vector<1x4x4x12xf32>
    %56 = arith.addf %55, %54 : vector<1x4x4x12xf32>
    %c0_90 = arith.constant 0 : index
    %c0_91 = arith.constant 0 : index
    %c0_92 = arith.constant 0 : index
    %c0_93 = arith.constant 0 : index
    %57 = vector.load %arg4[%c0_90, %c0_91, %c0_92, %c0_93] : memref<1x4x4x12xf32, #tpu.memory_space<vmem>>, vector<1x4x4x12xf32>
    tpu.vector_store %arg4[%c0_90, %c0_91, %c0_92, %c0_93], %56 {strides = array<i32>} : memref<1x4x4x12xf32, #tpu.memory_space<vmem>>, vector<1x4x4x12xf32>,
    %c0_94 = arith.constant 0 : index
    %c2_95 = arith.constant 2 : index
    %c0_96 = arith.constant 0 : index
    %c0_97 = arith.constant 0 : index
    %58 = vector.load %arg2[%c0_94, %c2_95, %c0_96, %c0_97] : memref<3x6x4x128xbf16, #tpu.memory_space<vmem>>, vector<1x4x4x128xbf16>
    %59 = vector.shape_cast %58 : vector<1x4x4x128xbf16> to vector<4x4x128xbf16>
    %60 = vector.shape_cast %59 : vector<4x4x128xbf16> to vector<16x128xbf16>
    %c2_98 = arith.constant 2 : index
    %c0_99 = arith.constant 0 : index
    %c0_100 = arith.constant 0 : index
    %c0_101 = arith.constant 0 : index
    %61 = vector.load %arg3[%c2_98, %c0_99, %c0_100, %c0_101] : memref<3x3x128x12xbf16, #tpu.memory_space<vmem>>, vector<1x1x128x12xbf16>
    %62 = vector.shape_cast %61 : vector<1x1x128x12xbf16> to vector<128x12xbf16>
    %cst_102 = arith.constant dense<0.000000e+00> : vector<16x12xf32>
    %63 = tpu.matmul %60, %62, %cst_102 {dimension_numbers = #tpu.dot_dimension_numbers<[1], [0], [0], [1], [0, 0, 1, 1], [], []>} : vector<16x128xbf16>, vector<128x12xbf16>, vector<16x12xf32> -> vector<16x12xf32>
    %64 = vector.shape_cast %63 : vector<16x12xf32> to vector<1x4x4x12xf32>
    %c0_103 = arith.constant 0 : index
    %c0_104 = arith.constant 0 : index
    %c0_105 = arith.constant 0 : index
    %c0_106 = arith.constant 0 : index
    %65 = vector.load %arg4[%c0_103, %c0_104, %c0_105, %c0_106] : memref<1x4x4x12xf32, #tpu.memory_space<vmem>>, vector<1x4x4x12xf32>
    %66 = arith.addf %65, %64 : vector<1x4x4x12xf32>
    %c0_107 = arith.constant 0 : index
    %c0_108 = arith.constant 0 : index
    %c0_109 = arith.constant 0 : index
    %c0_110 = arith.constant 0 : index
    %67 = vector.load %arg4[%c0_107, %c0_108, %c0_109, %c0_110] : memref<1x4x4x12xf32, #tpu.memory_space<vmem>>, vector<1x4x4x12xf32>
    tpu.vector_store %arg4[%c0_107, %c0_108, %c0_109, %c0_110], %66 {strides = array<i32>} : memref<1x4x4x12xf32, #tpu.memory_space<vmem>>, vector<1x4x4x12xf32>,
    %c1_111 = arith.constant 1 : index
    %c2_112 = arith.constant 2 : index
    %c0_113 = arith.constant 0 : index
    %c0_114 = arith.constant 0 : index
    %68 = vector.load %arg2[%c1_111, %c2_112, %c0_113, %c0_114] : memref<3x6x4x128xbf16, #tpu.memory_space<vmem>>, vector<1x4x4x128xbf16>
    %69 = vector.shape_cast %68 : vector<1x4x4x128xbf16> to vector<4x4x128xbf16>
    %70 = vector.shape_cast %69 : vector<4x4x128xbf16> to vector<16x128xbf16>
    %c2_115 = arith.constant 2 : index
    %c1_116 = arith.constant 1 : index
    %c0_117 = arith.constant 0 : index
    %c0_118 = arith.constant 0 : index
    %71 = vector.load %arg3[%c2_115, %c1_116, %c0_117, %c0_118] : memref<3x3x128x12xbf16, #tpu.memory_space<vmem>>, vector<1x1x128x12xbf16>
    %72 = vector.shape_cast %71 : vector<1x1x128x12xbf16> to vector<128x12xbf16>
    %cst_119 = arith.constant dense<0.000000e+00> : vector<16x12xf32>
    %73 = tpu.matmul %70, %72, %cst_119 {dimension_numbers = #tpu.dot_dimension_numbers<[1], [0], [0], [1], [0, 0, 1, 1], [], []>} : vector<16x128xbf16>, vector<128x12xbf16>, vector<16x12xf32> -> vector<16x12xf32>
    %74 = vector.shape_cast %73 : vector<16x12xf32> to vector<1x4x4x12xf32>
    %c0_120 = arith.constant 0 : index
    %c0_121 = arith.constant 0 : index
    %c0_122 = arith.constant 0 : index
    %c0_123 = arith.constant 0 : index
    %75 = vector.load %arg4[%c0_120, %c0_121, %c0_122, %c0_123] : memref<1x4x4x12xf32, #tpu.memory_space<vmem>>, vector<1x4x4x12xf32>
    %76 = arith.addf %75, %74 : vector<1x4x4x12xf32>
    %c0_124 = arith.constant 0 : index
    %c0_125 = arith.constant 0 : index
    %c0_126 = arith.constant 0 : index
    %c0_127 = arith.constant 0 : index
    %77 = vector.load %arg4[%c0_124, %c0_125, %c0_126, %c0_127] : memref<1x4x4x12xf32, #tpu.memory_space<vmem>>, vector<1x4x4x12xf32>
    tpu.vector_store %arg4[%c0_124, %c0_125, %c0_126, %c0_127], %76 {strides = array<i32>} : memref<1x4x4x12xf32, #tpu.memory_space<vmem>>, vector<1x4x4x12xf32>,
    %c2_128 = arith.constant 2 : index
    %c2_129 = arith.constant 2 : index
    %c0_130 = arith.constant 0 : index
    %c0_131 = arith.constant 0 : index
    %78 = vector.load %arg2[%c2_128, %c2_129, %c0_130, %c0_131] : memref<3x6x4x128xbf16, #tpu.memory_space<vmem>>, vector<1x4x4x128xbf16>
    %79 = vector.shape_cast %78 : vector<1x4x4x128xbf16> to vector<4x4x128xbf16>
    %80 = vector.shape_cast %79 : vector<4x4x128xbf16> to vector<16x128xbf16>
    %c2_132 = arith.constant 2 : index
    %c2_133 = arith.constant 2 : index
    %c0_134 = arith.constant 0 : index
    %c0_135 = arith.constant 0 : index
    %81 = vector.load %arg3[%c2_132, %c2_133, %c0_134, %c0_135] : memref<3x3x128x12xbf16, #tpu.memory_space<vmem>>, vector<1x1x128x12xbf16>
    %82 = vector.shape_cast %81 : vector<1x1x128x12xbf16> to vector<128x12xbf16>
    %cst_136 = arith.constant dense<0.000000e+00> : vector<16x12xf32>
    %83 = tpu.matmul %80, %82, %cst_136 {dimension_numbers = #tpu.dot_dimension_numbers<[1], [0], [0], [1], [0, 0, 1, 1], [], []>} : vector<16x128xbf16>, vector<128x12xbf16>, vector<16x12xf32> -> vector<16x12xf32>
    %84 = vector.shape_cast %83 : vector<16x12xf32> to vector<1x4x4x12xf32>
    %c0_137 = arith.constant 0 : index
    %c0_138 = arith.constant 0 : index
    %c0_139 = arith.constant 0 : index
    %c0_140 = arith.constant 0 : index
    %85 = vector.load %arg4[%c0_137, %c0_138, %c0_139, %c0_140] : memref<1x4x4x12xf32, #tpu.memory_space<vmem>>, vector<1x4x4x12xf32>
    %86 = arith.addf %85, %84 : vector<1x4x4x12xf32>
    %c0_141 = arith.constant 0 : index
    %c0_142 = arith.constant 0 : index
    %c0_143 = arith.constant 0 : index
    %c0_144 = arith.constant 0 : index
    %87 = vector.load %arg4[%c0_141, %c0_142, %c0_143, %c0_144] : memref<1x4x4x12xf32, #tpu.memory_space<vmem>>, vector<1x4x4x12xf32>
    tpu.vector_store %arg4[%c0_141, %c0_142, %c0_143, %c0_144], %86 {strides = array<i32>} : memref<1x4x4x12xf32, #tpu.memory_space<vmem>>, vector<1x4x4x12xf32>,
    return
  }
  func.func @transform_0(%arg0: i32, %arg1: i32) -> (i32, i32, i32, i32) {
    %c0_i32 = arith.constant 0 : i32
    %c0_i32_0 = arith.constant 0 : i32
    %c0_i32_1 = arith.constant 0 : i32
    return %arg0, %c0_i32, %arg1, %c0_i32_0 : i32, i32, i32, i32
  }
  func.func @transform_1(%arg0: i32, %arg1: i32) -> (i32, i32, i32, i32) {
    %c0_i32 = arith.constant 0 : i32
    %c0_i32_0 = arith.constant 0 : i32
    %c0_i32_1 = arith.constant 0 : i32
    %c0_i32_2 = arith.constant 0 : i32
    %c0_i32_3 = arith.constant 0 : i32
    return %c0_i32, %c0_i32_0, %c0_i32_1, %c0_i32_2 : i32, i32, i32, i32
  }
  func.func @transform_2(%arg0: i32, %arg1: i32) -> (i32, i32, i32, i32) {
    %c0_i32 = arith.constant 0 : i32
    %c0_i32_0 = arith.constant 0 : i32
    %c0_i32_1 = arith.constant 0 : i32
    return %arg0, %c0_i32, %arg1, %c0_i32_0 : i32, i32, i32, i32
  }
}

module attributes {stable_mosaic.version = 11 : i64} {
  func.func @kernel(%arg0: i32, %arg1: i32, %arg2: memref<1x4x4x90xf32, #tpu.memory_space<vmem>>, %arg3: memref<1x90xf32, #tpu.memory_space<vmem>>, %arg4: memref<1x90xf32, #tpu.memory_space<vmem>>, %arg5: memref<1x4xf32, #tpu.memory_space<vmem>>, %arg6: memref<1x1x1x90xf32, #tpu.memory_space<vmem>>) attributes {dimension_semantics = [#tpu.dimension_semantics<parallel>, #tpu.dimension_semantics<parallel>], iteration_bounds = array<i64: 2, 1>, scalar_prefetch = 0 : i64, scratch_operands = 0 : i64, tpu.core_type = #tpu.core_type<tc>, window_params = [{transform_indices = @transform_0, window_bounds = array<i64: 1, 4, 4, 90>}, {pipeline_mode = #tpu.pipeline_mode<synchronous>, transform_indices = @transform_1, window_bounds = array<i64: 1, 90>}, {pipeline_mode = #tpu.pipeline_mode<synchronous>, transform_indices = @transform_2, window_bounds = array<i64: 1, 90>}, {pipeline_mode = #tpu.pipeline_mode<synchronous>, transform_indices = @transform_3, window_bounds = array<i64: 1, 4>}, {transform_indices = @transform_4, window_bounds = array<i64: 1, 1, 1, 90>}]} {
    %c0 = arith.constant 0 : index
    %c0_0 = arith.constant 0 : index
    %c0_1 = arith.constant 0 : index
    %c0_2 = arith.constant 0 : index
    %0 = vector.load %arg2[%c0, %c0_0, %c0_1, %c0_2] : memref<1x4x4x90xf32, #tpu.memory_space<vmem>>, vector<1x4x4x90xf32>
    %1 = vector.shape_cast %0 : vector<1x4x4x90xf32> to vector<4x4x90xf32>
    %c0_3 = arith.constant 0 : index
    %c0_4 = arith.constant 0 : index
    %2 = vector.load %arg3[%c0_3, %c0_4] : memref<1x90xf32, #tpu.memory_space<vmem>>, vector<1x90xf32>
    %3 = vector.shape_cast %2 : vector<1x90xf32> to vector<1x1x90xf32>
    %4 = vector.broadcast %3 : vector<1x1x90xf32> to vector<4x4x90xf32>
    %5 = arith.mulf %1, %4 : vector<4x4x90xf32>
    %c0_5 = arith.constant 0 : index
    %c0_6 = arith.constant 0 : index
    %6 = vector.load %arg4[%c0_5, %c0_6] : memref<1x90xf32, #tpu.memory_space<vmem>>, vector<1x90xf32>
    %7 = vector.shape_cast %6 : vector<1x90xf32> to vector<1x1x90xf32>
    %8 = vector.broadcast %7 : vector<1x1x90xf32> to vector<4x4x90xf32>
    %9 = arith.addf %5, %8 : vector<4x4x90xf32>
    %cst = arith.constant 0.000000e+00 : f32
    %10 = vector.broadcast %cst : f32 to vector<4x4x90xf32>
    %11 = arith.maximumf %9, %10 : vector<4x4x90xf32>
    %12 = vector.extract_strided_slice %11 {offsets = [0, 0, 0], sizes = [1, 4, 90], strides = [1, 1, 1]} : vector<4x4x90xf32> to vector<1x4x90xf32>
    %13 = vector.shape_cast %12 : vector<1x4x90xf32> to vector<4x90xf32>
    %14 = vector.extract_strided_slice %11 {offsets = [1, 0, 0], sizes = [1, 4, 90], strides = [1, 1, 1]} : vector<4x4x90xf32> to vector<1x4x90xf32>
    %15 = vector.shape_cast %14 : vector<1x4x90xf32> to vector<4x90xf32>
    %16 = arith.addf %13, %15 : vector<4x90xf32>
    %17 = vector.extract_strided_slice %11 {offsets = [2, 0, 0], sizes = [1, 4, 90], strides = [1, 1, 1]} : vector<4x4x90xf32> to vector<1x4x90xf32>
    %18 = vector.shape_cast %17 : vector<1x4x90xf32> to vector<4x90xf32>
    %19 = arith.addf %16, %18 : vector<4x90xf32>
    %20 = vector.extract_strided_slice %11 {offsets = [3, 0, 0], sizes = [1, 4, 90], strides = [1, 1, 1]} : vector<4x4x90xf32> to vector<1x4x90xf32>
    %21 = vector.shape_cast %20 : vector<1x4x90xf32> to vector<4x90xf32>
    %22 = arith.addf %19, %21 : vector<4x90xf32>
    %c0_7 = arith.constant 0 : index
    %c0_8 = arith.constant 0 : index
    %23 = vector.load %arg5[%c0_7, %c0_8] : memref<1x4xf32, #tpu.memory_space<vmem>>, vector<1x4xf32>
    %cst_9 = arith.constant dense<0.000000e+00> : vector<1x90xf32>
    %24 = tpu.matmul %23, %22, %cst_9 {dimension_numbers = #tpu.dot_dimension_numbers<[1], [0], [0], [1], [0, 0, 1, 1], [], []>} : vector<1x4xf32>, vector<4x90xf32>, vector<1x90xf32> -> vector<1x90xf32>
    %c0_10 = arith.constant 0 : index
    %c0_11 = arith.constant 0 : index
    %c0_12 = arith.constant 0 : index
    %c0_13 = arith.constant 0 : index
    %25 = vector.load %arg6[%c0_10, %c0_11, %c0_12, %c0_13] : memref<1x1x1x90xf32, #tpu.memory_space<vmem>>, vector<1x1x1x90xf32>
    %26 = vector.shape_cast %25 : vector<1x1x1x90xf32> to vector<1x90xf32>
    %27 = vector.shape_cast %24 : vector<1x90xf32> to vector<1x1x1x90xf32>
    tpu.vector_store %arg6[%c0_10, %c0_11, %c0_12, %c0_13], %27 {strides = array<i32>} : memref<1x1x1x90xf32, #tpu.memory_space<vmem>>, vector<1x1x1x90xf32>,
    return
  }
  func.func @transform_0(%arg0: i32, %arg1: i32) -> (i32, i32, i32, i32) {
    %c0_i32 = arith.constant 0 : i32
    %c0_i32_0 = arith.constant 0 : i32
    %c0_i32_1 = arith.constant 0 : i32
    return %arg0, %arg1, %c0_i32, %c0_i32_0 : i32, i32, i32, i32
  }
  func.func @transform_1(%arg0: i32, %arg1: i32) -> (i32, i32) {
    %c0_i32 = arith.constant 0 : i32
    %c0_i32_0 = arith.constant 0 : i32
    %c0_i32_1 = arith.constant 0 : i32
    return %c0_i32, %c0_i32_0 : i32, i32
  }
  func.func @transform_2(%arg0: i32, %arg1: i32) -> (i32, i32) {
    %c0_i32 = arith.constant 0 : i32
    %c0_i32_0 = arith.constant 0 : i32
    %c0_i32_1 = arith.constant 0 : i32
    return %c0_i32, %c0_i32_0 : i32, i32
  }
  func.func @transform_3(%arg0: i32, %arg1: i32) -> (i32, i32) {
    %c0_i32 = arith.constant 0 : i32
    %c0_i32_0 = arith.constant 0 : i32
    %c0_i32_1 = arith.constant 0 : i32
    return %c0_i32, %c0_i32_0 : i32, i32
  }
  func.func @transform_4(%arg0: i32, %arg1: i32) -> (i32, i32, i32, i32) {
    %c0_i32 = arith.constant 0 : i32
    %c0_i32_0 = arith.constant 0 : i32
    %c0_i32_1 = arith.constant 0 : i32
    return %arg0, %arg1, %c0_i32, %c0_i32_0 : i32, i32, i32, i32
  }
}

module attributes {stable_mosaic.version = 11 : i64} {
  func.func @_matmul_kernel_single(%arg0: i32, %arg1: i32, %arg2: memref<8x128xbf16, #tpu.memory_space<vmem>>, %arg3: memref<128x21xbf16, #tpu.memory_space<vmem>>, %arg4: memref<8x21xf32, #tpu.memory_space<vmem>>) attributes {dimension_semantics = [#tpu.dimension_semantics<parallel>, #tpu.dimension_semantics<parallel>], iteration_bounds = array<i64: 1, 1>, scalar_prefetch = 0 : i64, scratch_operands = 0 : i64, tpu.core_type = #tpu.core_type<tc>, window_params = [{transform_indices = @transform_0, window_bounds = array<i64: 8, 128>}, {transform_indices = @transform_1, window_bounds = array<i64: 128, 21>}, {transform_indices = @transform_2, window_bounds = array<i64: 8, 21>}]} {
    %c0 = arith.constant 0 : index
    %c0_0 = arith.constant 0 : index
    %0 = vector.load %arg2[%c0, %c0_0] : memref<8x128xbf16, #tpu.memory_space<vmem>>, vector<8x128xbf16>
    %c0_1 = arith.constant 0 : index
    %c0_2 = arith.constant 0 : index
    %1 = vector.load %arg3[%c0_1, %c0_2] : memref<128x21xbf16, #tpu.memory_space<vmem>>, vector<128x21xbf16>
    %cst = arith.constant dense<0.000000e+00> : vector<8x21xf32>
    %2 = tpu.matmul %0, %1, %cst {dimension_numbers = #tpu.dot_dimension_numbers<[1], [0], [0], [1], [0, 0, 1, 1], [], []>} : vector<8x128xbf16>, vector<128x21xbf16>, vector<8x21xf32> -> vector<8x21xf32>
    %c0_3 = arith.constant 0 : index
    %c0_4 = arith.constant 0 : index
    %3 = vector.load %arg4[%c0_3, %c0_4] : memref<8x21xf32, #tpu.memory_space<vmem>>, vector<8x21xf32>
    tpu.vector_store %arg4[%c0_3, %c0_4], %2 {strides = array<i32>} : memref<8x21xf32, #tpu.memory_space<vmem>>, vector<8x21xf32>,
    return
  }
  func.func @transform_0(%arg0: i32, %arg1: i32) -> (i32, i32) {
    %c0_i32 = arith.constant 0 : i32
    %c0_i32_0 = arith.constant 0 : i32
    return %arg0, %c0_i32 : i32, i32
  }
  func.func @transform_1(%arg0: i32, %arg1: i32) -> (i32, i32) {
    %c0_i32 = arith.constant 0 : i32
    %c0_i32_0 = arith.constant 0 : i32
    return %c0_i32, %arg1 : i32, i32
  }
  func.func @transform_2(%arg0: i32, %arg1: i32) -> (i32, i32) {
    %c0_i32 = arith.constant 0 : i32
    return %arg0, %arg1 : i32, i32
  }
}

</mosaic_0001>

<bundles_post_ra>
// kernel: densenet_forward.19
= control target key start
LH: loop header
LB: loop body
LE: loop exit
PB: predicated region body
PF: predicated region fallthrough
CT: control target
= control target key end

     0   :  { %s3742_s9 = smov 0   ;;  %s3744_s10 = smov 0   ;;  %s4711_s0 = inlined_call_operand.vmem [shape: bf16[6,18,16,128], index: 0, kind: input, shape index: {}]   ;;  %s4712_s1 = inlined_call_operand.vmem [shape: bf16[3,3,128,24], index: 1, kind: input, shape index: {}]   ;;  %s4713_s2 = inlined_call_operand.vmem [shape: f32[2,16,16,24], index: 2, kind: output, shape index: {}]  }
   0x1   :  { %s3746_s11 = smov 0   ;;  %s3748_s12 = smov 0  }
   0x2   :  { %s3750_s13 = smov 0   ;;  %s3752_s14 = smov 0  }
   0x3   :  { %s3754_s15 = smov 0  }
   0x4 LB: > { %s21_s16 = sadd.s32 1, %s3717_s13  ;;  %s24_s17 = sadd.s32 1, %s3721_s14  ;;  %s3725_s15 = sphi %s3754_s15, %s12_s15   ;;  %s3721_s14 = sphi %s3752_s14, %s4720_s14   ;;  %s3717_s13 = sphi %s3750_s13, %s4719_s13   ;;  %s3713_s12 = sphi %s3748_s12, %s4718_s12   ;;  %s3709_s11 = sphi %s3746_s11, %s4717_s11   ;;  %s3705_s10 = sphi %s3744_s10, %s4716_s10   ;;  %s3701_s9 = sphi %s3742_s9, %s4715_s9  }
   0x5   : > { %p22_p0 = scmp.ge.s32.totalorder %s21_s16, 2  ;;  %s2599_s18 = sadd.s32 4294967295, %s3725_s15  }
   0x6   : > { %p40_p1 = scmp.ne.s32.totalorder %s3705_s10, %s3701_s9  ;;  %p41_p2 = scmp.eq.s32.totalorder %s3725_s15, 0 }
   0x7   : > { %s4722_s16 = smov (%p22_p0, %s21_s16), 0  ;;  %s4724_s17 = smov (!%p22_p0, %s24_s17), %s3721_s14 }
   0x8   : > { %p26_p3 = scmp.ge.s32.totalorder %s4724_s17, 2  ;;  %p93_p4 = scmp.eq.s32.totalorder %s2599_s18, 3 }
   0x9   : > { %s29_s19 = ssub.s32 %s3717_s13, %s4722_s16  ;;  %p42_p5 = por %p41_p2, %p40_p1 }
   0xa   : > { %s4726_s17 = smov (%p26_p3, %s4724_s17), 0  ;;  %p3790_p6 = por %p93_p4, %p40_p1 }
   0xb   : > { %s28_s21 = ssub.s32 %s3721_s14, %s4726_s17  ;;  %s33_s23 = sadd.s32 1, %s3705_s10 }
   0xc   : > { %s30_s22 = sor.u32 %s29_s19, %s28_s21  ;;  %p2602_p8 = scmp.ge.s32.totalorder %s3725_s15, 4 }
   0xd   : > { %p31_p7 = scmp.eq.s32.totalorder %s30_s22, 0 }
   0xe   : > { %118 = sbr.rel (%p2602_p8) target bundleno = 81 (0x51), region = 20 }
   0xf   : > { %s3798_s24 = scalar_select %p31_p7, %s3705_s10, %s33_s23  }
  0x13   : > { %121 = sbr.rel (!%p42_p5) target bundleno = 81 (0x51), region = 24  ;;  %s123_s25 = sand.u32 (%p42_p5), 1, %s3705_s10  }
  0x14   : > { %s3611_s26 = smul.u32 (%p42_p5), 216, %s123_s25 }
  0x15   : > { %s3614_s27 = smul.u32 (%p42_p5), 108, %s3721_s14 }
  0x16   : > { %s3812_s5 = scalar_lea.vmem (%p42_p5), [#allocation2], %s3611_s26 }
  0x17   : > { %s128_s28 = sadd.s32 (%p42_p5), %s3717_s13, %s3614_s27 }
  0x18   : > { %s2603_s29 = sshll.u32 %s128_s28, 2 }
  0x19   : > { %s3807_s4 = scalar_lea.vmem %s4711_s0, %s2603_s29 }
  0x1a   : > { %v147_v0 = vld [vmem:[%s3807_s4] sm:$0xf]  ;;  %v149_v1 = vld [vmem:[%s3807_s4 + $0x8] sm:$0xf]  ;;  %v151_v2 = vld [vmem:[%s3807_s4 + $0x10] sm:$0xf] }
  0x1b   : > { %148 = vst [vmem:[%s3812_s5] sm:$0xf] %v147_v0  ;;  %v153_v3 = vld [vmem:[%s3807_s4 + $0x18] sm:$0xf]  ;;  %v155_v4 = vld [vmem:[%s3807_s4 + $0x20] sm:$0xf] }
  0x1c   : > { %150 = vst [vmem:[%s3812_s5 + $0x4] sm:$0xf] %v149_v1  ;;  %v157_v5 = vld [vmem:[%s3807_s4 + $0x28] sm:$0xf]  ;;  %v159_v6 = vld [vmem:[%s3807_s4 + $0x30] sm:$0xf] }
  0x1d   : > { %152 = vst [vmem:[%s3812_s5 + $0x8] sm:$0xf] %v151_v2  ;;  %v161_v7 = vld [vmem:[%s3807_s4 + $0x38] sm:$0xf]  ;;  %v163_v8 = vld [vmem:[%s3807_s4 + $0x40] sm:$0xf] }
  0x1e   : > { %154 = vst [vmem:[%s3812_s5 + $0xc] sm:$0xf] %v153_v3  ;;  %v165_v9 = vld [vmem:[%s3807_s4 + $0x48] sm:$0xf]  ;;  %v167_v10 = vld [vmem:[%s3807_s4 + $0x50] sm:$0xf] }
  0x1f   : > { %156 = vst [vmem:[%s3812_s5 + $0x10] sm:$0xf] %v155_v4  ;;  %v169_v11 = vld [vmem:[%s3807_s4 + $0x58] sm:$0xf]  ;;  %v171_v12 = vld [vmem:[%s3807_s4 + $0x60] sm:$0xf] }
  0x20   : > { %158 = vst [vmem:[%s3812_s5 + $0x14] sm:$0xf] %v157_v5  ;;  %v173_v13 = vld [vmem:[%s3807_s4 + $0x68] sm:$0xf]  ;;  %v175_v14 = vld [vmem:[%s3807_s4 + $0x70] sm:$0xf] }
  0x21   : > { %160 = vst [vmem:[%s3812_s5 + $0x18] sm:$0xf] %v159_v6  ;;  %v177_v15 = vld [vmem:[%s3807_s4 + $0x78] sm:$0xf]  ;;  %v179_v16 = vld [vmem:[%s3807_s4 + $0x80] sm:$0xf] }
  0x22   : > { %162 = vst [vmem:[%s3812_s5 + $0x1c] sm:$0xf] %v161_v7  ;;  %v181_v17 = vld [vmem:[%s3807_s4 + $0x88] sm:$0xf]  ;;  %v183_v18 = vld [vmem:[%s3807_s4 + $0x90] sm:$0xf] }
  0x23   : > { %164 = vst [vmem:[%s3812_s5 + $0x20] sm:$0xf] %v163_v8  ;;  %v185_v19 = vld [vmem:[%s3807_s4 + $0x98] sm:$0xf]  ;;  %v187_v20 = vld [vmem:[%s3807_s4 + $0xa0] sm:$0xf] }
  0x24   : > { %166 = vst [vmem:[%s3812_s5 + $0x24] sm:$0xf] %v165_v9  ;;  %v189_v21 = vld [vmem:[%s3807_s4 + $0xa8] sm:$0xf]  ;;  %v191_v22 = vld [vmem:[%s3807_s4 + $0xb0] sm:$0xf] }
  0x25   : > { %168 = vst [vmem:[%s3812_s5 + $0x28] sm:$0xf] %v167_v10  ;;  %v193_v23 = vld [vmem:[%s3807_s4 + $0xb8] sm:$0xf]  ;;  %v195_v24 = vld [vmem:[%s3807_s4 + $0xc0] sm:$0xf] }
  0x26   : > { %170 = vst [vmem:[%s3812_s5 + $0x2c] sm:$0xf] %v169_v11  ;;  %v197_v25 = vld [vmem:[%s3807_s4 + $0xc8] sm:$0xf]  ;;  %v199_v26 = vld [vmem:[%s3807_s4 + $0xd0] sm:$0xf] }
  0x27   : > { %172 = vst [vmem:[%s3812_s5 + $0x30] sm:$0xf] %v171_v12  ;;  %v201_v27 = vld [vmem:[%s3807_s4 + $0xd8] sm:$0xf]  ;;  %v203_v28 = vld [vmem:[%s3807_s4 + $0xe0] sm:$0xf] }
  0x28   : > { %174 = vst [vmem:[%s3812_s5 + $0x34] sm:$0xf] %v173_v13  ;;  %v205_v29 = vld [vmem:[%s3807_s4 + $0xe8] sm:$0xf]  ;;  %v207_v30 = vld [vmem:[%s3807_s4 + $0xf0] sm:$0xf] }
  0x29   : > { %176 = vst [vmem:[%s3812_s5 + $0x38] sm:$0xf] %v175_v14  ;;  %v209_v31 = vld [vmem:[%s3807_s4 + $0xf8] sm:$0xf]  ;;  %v211_v32 = vld [vmem:[%s3807_s4 + $0x100] sm:$0xf] }
  0x2a   : > { %178 = vst [vmem:[%s3812_s5 + $0x3c] sm:$0xf] %v177_v15  ;;  %v213_v33 = vld [vmem:[%s3807_s4 + $0x108] sm:$0xf]  ;;  %v215_v34 = vld [vmem:[%s3807_s4 + $0x110] sm:$0xf] }
  0x2b   : > { %180 = vst [vmem:[%s3812_s5 + $0x40] sm:$0xf] %v179_v16  ;;  %v217_v35 = vld [vmem:[%s3807_s4 + $0x118] sm:$0xf]  ;;  %v219_v36 = vld [vmem:[%s3807_s4 + $0x120] sm:$0xf] }
  0x2c   : > { %182 = vst [vmem:[%s3812_s5 + $0x44] sm:$0xf] %v181_v17  ;;  %v221_v37 = vld [vmem:[%s3807_s4 + $0x128] sm:$0xf]  ;;  %v223_v38 = vld [vmem:[%s3807_s4 + $0x130] sm:$0xf] }
  0x2d   : > { %184 = vst [vmem:[%s3812_s5 + $0x48] sm:$0xf] %v183_v18  ;;  %v225_v39 = vld [vmem:[%s3807_s4 + $0x138] sm:$0xf]  ;;  %v227_v40 = vld [vmem:[%s3807_s4 + $0x140] sm:$0xf] }
  0x2e   : > { %186 = vst [vmem:[%s3812_s5 + $0x4c] sm:$0xf] %v185_v19  ;;  %v229_v41 = vld [vmem:[%s3807_s4 + $0x148] sm:$0xf]  ;;  %v231_v42 = vld [vmem:[%s3807_s4 + $0x150] sm:$0xf] }
  0x2f   : > { %188 = vst [vmem:[%s3812_s5 + $0x50] sm:$0xf] %v187_v20  ;;  %v233_v43 = vld [vmem:[%s3807_s4 + $0x158] sm:$0xf]  ;;  %v235_v44 = vld [vmem:[%s3807_s4 + $0x160] sm:$0xf] }
  0x30   : > { %190 = vst [vmem:[%s3812_s5 + $0x54] sm:$0xf] %v189_v21  ;;  %v237_v45 = vld [vmem:[%s3807_s4 + $0x168] sm:$0xf]  ;;  %v239_v46 = vld [vmem:[%s3807_s4 + $0x170] sm:$0xf] }
  0x31   : > { %192 = vst [vmem:[%s3812_s5 + $0x58] sm:$0xf] %v191_v22  ;;  %v241_v47 = vld [vmem:[%s3807_s4 + $0x178] sm:$0xf]  ;;  %v243_v48 = vld [vmem:[%s3807_s4 + $0x180] sm:$0xf] }
  0x32   : > { %194 = vst [vmem:[%s3812_s5 + $0x5c] sm:$0xf] %v193_v23  ;;  %v245_v49 = vld [vmem:[%s3807_s4 + $0x188] sm:$0xf]  ;;  %v247_v50 = vld [vmem:[%s3807_s4 + $0x190] sm:$0xf] }
  0x33   : > { %196 = vst [vmem:[%s3812_s5 + $0x60] sm:$0xf] %v195_v24  ;;  %v249_v51 = vld [vmem:[%s3807_s4 + $0x198] sm:$0xf]  ;;  %v251_v52 = vld [vmem:[%s3807_s4 + $0x1a0] sm:$0xf] }
  0x34   : > { %198 = vst [vmem:[%s3812_s5 + $0x64] sm:$0xf] %v197_v25  ;;  %v253_v53 = vld [vmem:[%s3807_s4 + $0x1a8] sm:$0xf] }
  0x35   : > { %200 = vst [vmem:[%s3812_s5 + $0x68] sm:$0xf] %v199_v26 }
  0x36   : > { %202 = vst [vmem:[%s3812_s5 + $0x6c] sm:$0xf] %v201_v27 }
  0x37   : > { %204 = vst [vmem:[%s3812_s5 + $0x70] sm:$0xf] %v203_v28 }
  0x38   : > { %206 = vst [vmem:[%s3812_s5 + $0x74] sm:$0xf] %v205_v29 }
  0x39   : > { %208 = vst [vmem:[%s3812_s5 + $0x78] sm:$0xf] %v207_v30 }
  0x3a   : > { %210 = vst [vmem:[%s3812_s5 + $0x7c] sm:$0xf] %v209_v31 }
  0x3b   : > { %212 = vst [vmem:[%s3812_s5 + $0x80] sm:$0xf] %v211_v32 }
  0x3c   : > { %214 = vst [vmem:[%s3812_s5 + $0x84] sm:$0xf] %v213_v33 }
  0x3d   : > { %216 = vst [vmem:[%s3812_s5 + $0x88] sm:$0xf] %v215_v34 }
  0x3e   : > { %218 = vst [vmem:[%s3812_s5 + $0x8c] sm:$0xf] %v217_v35 }
  0x3f   : > { %220 = vst [vmem:[%s3812_s5 + $0x90] sm:$0xf] %v219_v36 }
  0x40   : > { %222 = vst [vmem:[%s3812_s5 + $0x94] sm:$0xf] %v221_v37 }
  0x41   : > { %224 = vst [vmem:[%s3812_s5 + $0x98] sm:$0xf] %v223_v38 }
  0x42   : > { %226 = vst [vmem:[%s3812_s5 + $0x9c] sm:$0xf] %v225_v39 }
  0x43   : > { %228 = vst [vmem:[%s3812_s5 + $0xa0] sm:$0xf] %v227_v40 }
  0x44   : > { %230 = vst [vmem:[%s3812_s5 + $0xa4] sm:$0xf] %v229_v41 }
  0x45   : > { %232 = vst [vmem:[%s3812_s5 + $0xa8] sm:$0xf] %v231_v42 }
  0x46   : > { %234 = vst [vmem:[%s3812_s5 + $0xac] sm:$0xf] %v233_v43 }
  0x47   : > { %236 = vst [vmem:[%s3812_s5 + $0xb0] sm:$0xf] %v235_v44 }
  0x48   : > { %238 = vst [vmem:[%s3812_s5 + $0xb4] sm:$0xf] %v237_v45 }
  0x49   : > { %240 = vst [vmem:[%s3812_s5 + $0xb8] sm:$0xf] %v239_v46 }
  0x4a   : > { %242 = vst [vmem:[%s3812_s5 + $0xbc] sm:$0xf] %v241_v47 }
  0x4b   : > { %244 = vst [vmem:[%s3812_s5 + $0xc0] sm:$0xf] %v243_v48 }
  0x4c   : > { %246 = vst [vmem:[%s3812_s5 + $0xc4] sm:$0xf] %v245_v49 }
  0x4d   : > { %248 = vst [vmem:[%s3812_s5 + $0xc8] sm:$0xf] %v247_v50 }
  0x4e   : > { %250 = vst [vmem:[%s3812_s5 + $0xcc] sm:$0xf] %v249_v51 }
  0x4f   : > { %252 = vst [vmem:[%s3812_s5 + $0xd0] sm:$0xf] %v251_v52 }
  0x50   : > { %254 = vst [vmem:[%s3812_s5 + $0xd4] sm:$0xf] %v253_v53 }
  0x51 PF: > { %p2604_p9 = scmp.ge.s32.totalorder %s3725_s15, 1  ;;  %p385_p10 = scmp.lt.s32.totalorder %s3725_s15, 5 }
  0x53   : > { %p386_p11 = pnand %p2604_p9, %p385_p10 }
  0x54   : > { %s392_s29 = sand.u32 (!%p386_p11), 1, %s3701_s9  }
  0x55   : > { %389 = sbr.rel (%p386_p11) target bundleno = 569 (0x239), region = 65  ;;  %s2605_s18 = sshll.u32 (!%p386_p11), %s392_s29, 7 }
  0x56   : > { %s3613_s4 = smul.u32 (!%p386_p11), 216, %s392_s29  ;;  %s4169_s19 = scalar_lea.vmem (!%p386_p11), [#allocation3], %s2605_s18 }
  0x58   : > { %s3954_s21 = scalar_lea.vmem (!%p386_p11), [#allocation2], %s3613_s4 }
  0x5a   : > { %v3458_v54 = vld [vmem:[%s4712_s1 + $0x38] sm:$0xff]  ;;  %v3457_v55 = vld [vmem:[%s4712_s1 + $0x30] sm:$0xff]  ;;  %v3456_v56 = vld [vmem:[%s4712_s1 + $0x28] sm:$0xff]  ;;  %vm590_vm0 = vcmask 195584  }
  0x5b   : > { %3587 = vmatpush.bf16.msra.mxu1 %v3458_v54  ;;  %3588 = vmatpush.bf16.msra.mxu2 %v3458_v54  ;;  %v3455_v57 = vld [vmem:[%s4712_s1 + $0x20] sm:$0xff]  ;;  %v3454_v58 = vld [vmem:[%s4712_s1 + $0x18] sm:$0xff]  ;;  %v3453_v59 = vld [vmem:[%s4712_s1 + $0x10] sm:$0xff] }
  0x5c   : > { %3589 = vmatpush.bf16.msra.mxu3 %v3458_v54  ;;  %541 = vmatpush.bf16.msra.mxu0 %v3458_v54  ;;  %v3452_v60 = vld [vmem:[%s4712_s1 + $0x8] sm:$0xff]  ;;  %v3451_v61 = vld [vmem:[%s4712_s1] sm:$0xff]  ;;  %v3474_v62 = vld [vmem:[%s4712_s1 + $0x78] sm:$0xff] }
  0x5d   : > { %v3490_v63 = vld [vmem:[%s4712_s1 + $0xb8] sm:$0xff]  ;;  %v3445_v0 = vld [vmem:[%s3954_s21 + $0x10] sm:$0xff]  ;;  %v3471_v14 = vld [vmem:[%s4712_s1 + $0x60] sm:$0xff] }
  0x5e   : > { %v3447_v1 = vld [vmem:[%s3954_s21 + $0x20] sm:$0xff]  ;;  %v3473_v4 = vld [vmem:[%s4712_s1 + $0x70] sm:$0xff]  ;;  %v3472_v10 = vld [vmem:[%s4712_s1 + $0x68] sm:$0xff] }
  0x5f   : > { %3590 = vmatpush.bf16.msra.mxu1 %v3457_v55  ;;  %3591 = vmatpush.bf16.msra.mxu2 %v3457_v55  ;;  %v3506_v2 = vld [vmem:[%s4712_s1 + $0xf8] sm:$0xff]  ;;  %v3489_v5 = vld [vmem:[%s4712_s1 + $0xb0] sm:$0xff]  ;;  %v3488_v11 = vld [vmem:[%s4712_s1 + $0xa8] sm:$0xff] }
  0x60   : > { %3592 = vmatpush.bf16.msra.mxu3 %v3457_v55  ;;  %542 = vmatpush.bf16.msra.mxu0 %v3457_v55  ;;  %v3522_v3 = vld [vmem:[%s4712_s1 + $0x138] sm:$0xff]  ;;  %v3449_v6 = vld [vmem:[%s3954_s21 + $0x30] sm:$0xff]  ;;  %v3487_v15 = vld [vmem:[%s4712_s1 + $0xa0] sm:$0xff] }
  0x61   : > { %v3443_v7 = vld [vmem:[%s3954_s21] sm:$0xff]  ;;  %v3505_v8 = vld [vmem:[%s4712_s1 + $0xf0] sm:$0xff]  ;;  %v3504_v12 = vld [vmem:[%s4712_s1 + $0xe8] sm:$0xff] }
  0x62   : > { %v3521_v9 = vld [vmem:[%s4712_s1 + $0x130] sm:$0xff]  ;;  %v3520_v13 = vld [vmem:[%s4712_s1 + $0x128] sm:$0xff]  ;;  %v3503_v16 = vld [vmem:[%s4712_s1 + $0xe0] sm:$0xff] }
  0x63   : > { %3593 = vmatpush.bf16.msra.mxu1 %v3456_v56  ;;  %3594 = vmatpush.bf16.msra.mxu2 %v3456_v56  ;;  %v3519_v17 = vld [vmem:[%s4712_s1 + $0x120] sm:$0xff]  ;;  %v3470_v18 = vld [vmem:[%s4712_s1 + $0x58] sm:$0xff]  ;;  %v3469_v24 = vld [vmem:[%s4712_s1 + $0x50] sm:$0xff] }
  0x64   : > { %3595 = vmatpush.bf16.msra.mxu3 %v3456_v56  ;;  %543 = vmatpush.bf16.msra.mxu0 %v3456_v56  ;;  %v3486_v19 = vld [vmem:[%s4712_s1 + $0x98] sm:$0xff]  ;;  %v3448_v21 = vld [vmem:[%s3954_s21 + $0x28] sm:$0xff]  ;;  %v3485_v25 = vld [vmem:[%s4712_s1 + $0x90] sm:$0xff] }
  0x65   : > { %v3446_v20 = vld [vmem:[%s3954_s21 + $0x18] sm:$0xff]  ;;  %v3444_v27 = vld [vmem:[%s3954_s21 + $0x8] sm:$0xff]  ;;  %v3475_v45 = vld [vmem:[%s3954_s21 + $0x90] sm:$0xff] }
  0x66   : > { %v3502_v22 = vld [vmem:[%s4712_s1 + $0xd8] sm:$0xff]  ;;  %v3501_v28 = vld [vmem:[%s4712_s1 + $0xd0] sm:$0xff]  ;;  %v3468_v30 = vld [vmem:[%s4712_s1 + $0x48] sm:$0xff] }
  0x67   : > { %3596 = vmatpush.bf16.msra.mxu1 %v3455_v57  ;;  %3597 = vmatpush.bf16.msra.mxu2 %v3455_v57  ;;  %v3518_v23 = vld [vmem:[%s4712_s1 + $0x118] sm:$0xff]  ;;  %v3517_v29 = vld [vmem:[%s4712_s1 + $0x110] sm:$0xff]  ;;  %v3484_v31 = vld [vmem:[%s4712_s1 + $0x88] sm:$0xff] }
  0x68   : > { %3598 = vmatpush.bf16.msra.mxu3 %v3455_v57  ;;  %544 = vmatpush.bf16.msra.mxu0 %v3455_v57  ;;  %v3450_v26 = vld [vmem:[%s3954_s21 + $0x38] sm:$0xff]  ;;  %v3500_v32 = vld [vmem:[%s4712_s1 + $0xc8] sm:$0xff]  ;;  %v3467_v34 = vld [vmem:[%s4712_s1 + $0x40] sm:$0xff] }
  0x69   : > { %v3516_v33 = vld [vmem:[%s4712_s1 + $0x108] sm:$0xff]  ;;  %v3483_v35 = vld [vmem:[%s4712_s1 + $0x80] sm:$0xff]  ;;  %v3538_v36 = vld [vmem:[%s4712_s1 + $0x178] sm:$0xff] }
  0x6a   : > { %v3554_v37 = vld [vmem:[%s4712_s1 + $0x1b8] sm:$0xff]  ;;  %v3499_v38 = vld [vmem:[%s4712_s1 + $0xc0] sm:$0xff]  ;;  %v3537_v42 = vld [vmem:[%s4712_s1 + $0x170] sm:$0xff] }
  0x6b   : > { %3599 = vmatpush.bf16.msra.mxu1 %v3454_v58  ;;  %3600 = vmatpush.bf16.msra.mxu2 %v3454_v58  ;;  %v3515_v39 = vld [vmem:[%s4712_s1 + $0x100] sm:$0xff]  ;;  %v3570_v40 = vld [vmem:[%s4712_s1 + $0x1f8] sm:$0xff]  ;;  %v3553_v43 = vld [vmem:[%s4712_s1 + $0x1b0] sm:$0xff] }
  0x6c   : > { %3601 = vmatpush.bf16.msra.mxu3 %v3454_v58  ;;  %545 = vmatpush.bf16.msra.mxu0 %v3454_v58  ;;  %v3586_v41 = vld [vmem:[%s4712_s1 + $0x238] sm:$0xff]  ;;  %v3459_v44 = vld [vmem:[%s3954_s21 + $0x48] sm:$0xff]  ;;  %v3569_v46 = vld [vmem:[%s4712_s1 + $0x1f0] sm:$0xff] }
  0x6d   : > { %v3491_v47 = vld [vmem:[%s3954_s21 + $0x4] sm:$0xff]  ;;  %v3507_v48 = vld [vmem:[%s3954_s21 + $0x4c] sm:$0xff]  ;;  %v3476_v54 = vld [vmem:[%s3954_s21 + $0x98] sm:$0xff] }
  0x6e   : > { %v3536_v49 = vld [vmem:[%s4712_s1 + $0x168] sm:$0xff]  ;;  %v3585_v52 = vld [vmem:[%s4712_s1 + $0x230] sm:$0xff]  ;;  %v3535_v57 = vld [vmem:[%s4712_s1 + $0x160] sm:$0xff] }
  0x6f   : > { %3602 = vmatpush.bf16.msra.mxu1 %v3453_v59  ;;  %3603 = vmatpush.bf16.msra.mxu2 %v3453_v59  ;;  %v3552_v50 = vld [vmem:[%s4712_s1 + $0x1a8] sm:$0xff]  ;;  %v3551_v58 = vld [vmem:[%s4712_s1 + $0x1a0] sm:$0xff] }
  0x70   : > { %3604 = vmatpush.bf16.msra.mxu3 %v3453_v59  ;;  %546 = vmatpush.bf16.msra.mxu0 %v3453_v59  ;;  %v3568_v51 = vld [vmem:[%s4712_s1 + $0x1e8] sm:$0xff]  ;;  %v3567_v59 = vld [vmem:[%s4712_s1 + $0x1e0] sm:$0xff] }
  0x71   : > { %v3460_v53 = vld [vmem:[%s3954_s21 + $0x50] sm:$0xff] }
  0x72   : > { %v3492_v55 = vld [vmem:[%s3954_s21 + $0xc] sm:$0xff]  ;;  %v3508_v56 = vld [vmem:[%s3954_s21 + $0x54] sm:$0xff] }
  0x73   : > { %3605 = vmatpush.bf16.msra.mxu1 %v3452_v60  ;;  %3606 = vmatpush.bf16.msra.mxu2 %v3452_v60 }
  0x74   : > { %3607 = vmatpush.bf16.msra.mxu3 %v3452_v60  ;;  %547 = vmatpush.bf16.msra.mxu0 %v3452_v60  ;;  %v3584_v60 = vld [vmem:[%s4712_s1 + $0x228] sm:$0xff] }
  0x77   : > { %3608 = vmatpush.bf16.msra.mxu1 %v3451_v61  ;;  %3609 = vmatpush.bf16.msra.mxu2 %v3451_v61 }
  0x78   : > { %3610 = vmatpush.bf16.msra.mxu3 %v3451_v61  ;;  %548 = vmatpush.bf16.msra.mxu0 %v3451_v61  ;;  %v3461_v61 = vld [vmem:[%s3954_s21 + $0x58] sm:$0xff] }
  0x7a   : > { %559 = vmatmul.bf16.vlgmr.msra.gmra.mxu1 %v3445_v0  ;;  %569 = vmatmul.bf16.vlgmr.msra.gmra.mxu2 %v3447_v1  ;;  %v3509_v0 = vld [vmem:[%s3954_s21 + $0x5c] sm:$0xff] }
  0x7b   : > { %737 = vmatpush.bf16.msrb.mxu1 %v3474_v62  ;;  %964 = vmatpush.bf16.msrb.mxu2 %v3490_v63  ;;  %v3477_v62 = vld [vmem:[%s3954_s21 + $0xa0] sm:$0xff]  ;;  %v3493_v63 = vld [vmem:[%s3954_s21 + $0x14] sm:$0xff] }
  0x7c   : > { %1191 = vmatpush.bf16.msrb.mxu3 %v3506_v2  ;;  %1418 = vmatpush.bf16.msrb.mxu0 %v3522_v3  ;;  %v3534_v1 = vld [vmem:[%s4712_s1 + $0x158] sm:$0xff] }
  0x7d   : > { %579 = vmatmul.bf16.vlgmr.msra.gmra.mxu3 %v3449_v6  ;;  %549 = vmatmul.bf16.vlgmr.msra.gmra.mxu0 %v3443_v7  ;;  %v3550_v2 = vld [vmem:[%s4712_s1 + $0x198] sm:$0xff]  ;;  %v3478_v6 = vld [vmem:[%s3954_s21 + $0xa8] sm:$0xff] }
  0x7e   : > { %v3566_v3 = vld [vmem:[%s4712_s1 + $0x1d8] sm:$0xff] }
  0x7f   : > { %738 = vmatpush.bf16.msrb.mxu1 %v3473_v4  ;;  %965 = vmatpush.bf16.msrb.mxu2 %v3489_v5  ;;  %v3583_v4 = vld [vmem:[%s4712_s1 + $0x220] sm:$0xff] }
  0x80   : > { %1192 = vmatpush.bf16.msrb.mxu3 %v3505_v8  ;;  %1419 = vmatpush.bf16.msrb.mxu0 %v3521_v9  ;;  %v3462_v5 = vld [vmem:[%s3954_s21 + $0x60] sm:$0xff]  ;;  %v3533_v9 = vld [vmem:[%s4712_s1 + $0x150] sm:$0xff] }
  0x81   : > { %v3494_v7 = vld [vmem:[%s3954_s21 + $0x1c] sm:$0xff]  ;;  %v3510_v8 = vld [vmem:[%s3954_s21 + $0x64] sm:$0xff] }
  0x83   : > { %739 = vmatpush.bf16.msrb.mxu1 %v3472_v10  ;;  %966 = vmatpush.bf16.msrb.mxu2 %v3488_v11  ;;  %v3549_v10 = vld [vmem:[%s4712_s1 + $0x190] sm:$0xff]  ;;  %v3463_v11 = vld [vmem:[%s3954_s21 + $0x68] sm:$0xff] }
  0x84   : > { %1193 = vmatpush.bf16.msrb.mxu3 %v3504_v12  ;;  %1420 = vmatpush.bf16.msrb.mxu0 %v3520_v13  ;;  %v3479_v12 = vld [vmem:[%s3954_s21 + $0xb0] sm:$0xff] }
  0x85   : > { %v3565_v13 = vld [vmem:[%s4712_s1 + $0x1d0] sm:$0xff] }
  0x87   : > { %740 = vmatpush.bf16.msrb.mxu1 %v3471_v14  ;;  %967 = vmatpush.bf16.msrb.mxu2 %v3487_v15  ;;  %v3582_v14 = vld [vmem:[%s4712_s1 + $0x218] sm:$0xff] }
  0x88   : > { %1194 = vmatpush.bf16.msrb.mxu3 %v3503_v16  ;;  %1421 = vmatpush.bf16.msrb.mxu0 %v3519_v17  ;;  %v3495_v15 = vld [vmem:[%s3954_s21 + $0x24] sm:$0xff]  ;;  %v3511_v16 = vld [vmem:[%s3954_s21 + $0x6c] sm:$0xff] }
  0x89   : > { %v3532_v17 = vld [vmem:[%s4712_s1 + $0x148] sm:$0xff] }
  0x8a   : > { %564 = vmatmul.bf16.gmra.mxu1 %v3446_v20  ;;  %574 = vmatmul.bf16.gmra.mxu2 %v3448_v21  ;;  %v3480_v20 = vld [vmem:[%s3954_s21 + $0xb8] sm:$0xff]  ;;  %v3564_v21 = vld [vmem:[%s4712_s1 + $0x1c8] sm:$0xff] }
  0x8b   : > { %741 = vmatpush.bf16.msrb.mxu1 %v3470_v18  ;;  %968 = vmatpush.bf16.msrb.mxu2 %v3486_v19  ;;  %v3548_v18 = vld [vmem:[%s4712_s1 + $0x188] sm:$0xff] }
  0x8c   : > { %1195 = vmatpush.bf16.msrb.mxu3 %v3502_v22  ;;  %1422 = vmatpush.bf16.msrb.mxu0 %v3518_v23  ;;  %v3464_v19 = vld [vmem:[%s3954_s21 + $0x70] sm:$0xff] }
  0x8d   : > { %584 = vmatmul.bf16.gmra.mxu3 %v3450_v26  ;;  %554 = vmatmul.bf16.gmra.mxu0 %v3444_v27  ;;  %v3581_v22 = vld [vmem:[%s4712_s1 + $0x210] sm:$0xff]  ;;  %v3547_v26 = vld [vmem:[%s4712_s1 + $0x180] sm:$0xff] }
  0x8e   : > { %v3496_v23 = vld [vmem:[%s3954_s21 + $0x2c] sm:$0xff]  ;;  %v3465_v27 = vld [vmem:[%s3954_s21 + $0x78] sm:$0xff] }
  0x8f   : > { %742 = vmatpush.bf16.msrb.mxu1 %v3469_v24  ;;  %969 = vmatpush.bf16.msrb.mxu2 %v3485_v25  ;;  %v3512_v24 = vld [vmem:[%s3954_s21 + $0x74] sm:$0xff]  ;;  %v3531_v25 = vld [vmem:[%s4712_s1 + $0x140] sm:$0xff] }
  0x90   : > { %1196 = vmatpush.bf16.msrb.mxu3 %v3501_v28  ;;  %1423 = vmatpush.bf16.msrb.mxu0 %v3517_v29  ;;  %v3481_v28 = vld [vmem:[%s3954_s21 + $0xc0] sm:$0xff] }
  0x93   : > { %743 = vmatpush.bf16.msrb.mxu1 %v3468_v30  ;;  %970 = vmatpush.bf16.msrb.mxu2 %v3484_v31  ;;  %v3497_v30 = vld [vmem:[%s3954_s21 + $0x34] sm:$0xff]  ;;  %v3513_v31 = vld [vmem:[%s3954_s21 + $0x7c] sm:$0xff] }
  0x94   : > { %1197 = vmatpush.bf16.msrb.mxu3 %v3500_v32  ;;  %1424 = vmatpush.bf16.msrb.mxu0 %v3516_v33  ;;  %v3563_v33 = vld [vmem:[%s4712_s1 + $0x1c0] sm:$0xff] }
  0x97   : > { %744 = vmatpush.bf16.msrb.mxu1 %v3467_v34  ;;  %971 = vmatpush.bf16.msrb.mxu2 %v3483_v35  ;;  %v3580_v34 = vld [vmem:[%s4712_s1 + $0x208] sm:$0xff] }
  0x98   : > { %1198 = vmatpush.bf16.msrb.mxu3 %v3499_v38  ;;  %1425 = vmatpush.bf16.msrb.mxu0 %v3515_v39 }
  0x9a   : > { %745 = vmatmul.bf16.vlgmr.msrb.gmra.mxu1 %v3459_v44  ;;  %972 = vmatmul.bf16.vlgmr.msrb.gmra.mxu2 %v3475_v45  ;;  %v3498_v44 = vld [vmem:[%s3954_s21 + $0x3c] sm:$0xff]  ;;  %v3514_v45 = vld [vmem:[%s3954_s21 + $0x84] sm:$0xff] }
  0x9b   : > { %1645 = vmatpush.bf16.msra.mxu1 %v3538_v36  ;;  %1872 = vmatpush.bf16.msra.mxu2 %v3554_v37 }
  0x9c   : > { %2099 = vmatpush.bf16.msra.mxu3 %v3570_v40  ;;  %2326 = vmatpush.bf16.msra.mxu0 %v3586_v41  ;;  %v3466_v40 = vld [vmem:[%s3954_s21 + $0x80] sm:$0xff]  ;;  %v3482_v41 = vld [vmem:[%s3954_s21 + $0xc8] sm:$0xff] }
  0x9d   : > { %1199 = vmatmul.bf16.vlgmr.msrb.gmra.mxu3 %v3491_v47  ;;  %1426 = vmatmul.bf16.vlgmr.msrb.gmra.mxu0 %v3507_v48  ;;  %v3579_v47 = vld [vmem:[%s4712_s1 + $0x200] sm:$0xff] }
  0x9f   : > { %1646 = vmatpush.bf16.msra.mxu1 %v3537_v42  ;;  %1873 = vmatpush.bf16.msra.mxu2 %v3553_v43 }
  0xa0   : > { %2100 = vmatpush.bf16.msra.mxu3 %v3569_v46  ;;  %2327 = vmatpush.bf16.msra.mxu0 %v3585_v52 }
  0xa3   : > { %1647 = vmatpush.bf16.msra.mxu1 %v3536_v49  ;;  %1874 = vmatpush.bf16.msra.mxu2 %v3552_v50 }
  0xa4   : > { %2101 = vmatpush.bf16.msra.mxu3 %v3568_v51  ;;  %2328 = vmatpush.bf16.msra.mxu0 %v3584_v60  ;;  %v3571_v60 = vld [vmem:[%s3954_s21 + $0x98] sm:$0xff] }
  0xa7   : > { %1648 = vmatpush.bf16.msra.mxu1 %v3535_v57  ;;  %1875 = vmatpush.bf16.msra.mxu2 %v3551_v58 }
  0xa8   : > { %2102 = vmatpush.bf16.msra.mxu3 %v3567_v59  ;;  %2329 = vmatpush.bf16.msra.mxu0 %v3583_v4  ;;  %v3555_v59 = vld [vmem:[%s3954_s21 + $0x50] sm:$0xff] }
  0xaa   : > { %750 = vmatmul.bf16.gmra.mxu1 %v3460_v53  ;;  %977 = vmatmul.bf16.gmra.mxu2 %v3476_v54  ;;  %v3523_v54 = vld [vmem:[%s3954_s21 + $0x94] sm:$0xff] }
  0xab   : > { %1649 = vmatpush.bf16.msra.mxu1 %v3534_v1  ;;  %1876 = vmatpush.bf16.msra.mxu2 %v3550_v2 }
  0xac   : > { %2103 = vmatpush.bf16.msra.mxu3 %v3566_v3  ;;  %2330 = vmatpush.bf16.msra.mxu0 %v3582_v14  ;;  %v3556_v14 = vld [vmem:[%s3954_s21 + $0x58] sm:$0xff] }
  0xad   : > { %1204 = vmatmul.bf16.gmra.mxu3 %v3492_v55  ;;  %1431 = vmatmul.bf16.gmra.mxu0 %v3508_v56  ;;  %v3539_v55 = vld [vmem:[%s3954_s21 + $0x8] sm:$0xff] }
  0xaf   : > { %1650 = vmatpush.bf16.msra.mxu1 %v3533_v9  ;;  %1877 = vmatpush.bf16.msra.mxu2 %v3549_v10  ;;  %v3540_v9 = vld [vmem:[%s3954_s21 + $0x10] sm:$0xff] }
  0xb0   : > { %2104 = vmatpush.bf16.msra.mxu3 %v3565_v13  ;;  %2331 = vmatpush.bf16.msra.mxu0 %v3581_v22 }
  0xb3   : > { %1651 = vmatpush.bf16.msra.mxu1 %v3532_v17  ;;  %1878 = vmatpush.bf16.msra.mxu2 %v3548_v18 }
  0xb4   : > { %2105 = vmatpush.bf16.msra.mxu3 %v3564_v21  ;;  %2332 = vmatpush.bf16.msra.mxu0 %v3580_v34  ;;  %v3541_v34 = vld [vmem:[%s3954_s21 + $0x18] sm:$0xff] }
  0xb7   : > { %1652 = vmatpush.bf16.msra.mxu1 %v3531_v25  ;;  %1879 = vmatpush.bf16.msra.mxu2 %v3547_v26 }
  0xb8   : > { %2106 = vmatpush.bf16.msra.mxu3 %v3563_v33  ;;  %2333 = vmatpush.bf16.msra.mxu0 %v3579_v47  ;;  %v3525_v33 = vld [vmem:[%s3954_s21 + $0xa4] sm:$0xff] }
  0xba   : > { %755 = vmatmul.bf16.gmra.mxu1 %v3461_v61  ;;  %982 = vmatmul.bf16.gmra.mxu2 %v3477_v62 }
  0xbd   : > { %1209 = vmatmul.bf16.gmra.mxu3 %v3493_v63  ;;  %1436 = vmatmul.bf16.gmra.mxu0 %v3509_v0 }
  0xca   : > { %760 = vmatmul.bf16.gmra.mxu1 %v3462_v5  ;;  %987 = vmatmul.bf16.gmra.mxu2 %v3478_v6 }
  0xcd   : > { %1214 = vmatmul.bf16.gmra.mxu3 %v3494_v7  ;;  %1441 = vmatmul.bf16.gmra.mxu0 %v3510_v8  ;;  %v3524_v8 = vld [vmem:[%s3954_s21 + $0x9c] sm:$0xff] }
  0xda   : > { %765 = vmatmul.bf16.gmra.mxu1 %v3463_v11  ;;  %992 = vmatmul.bf16.gmra.mxu2 %v3479_v12 }
  0xdd   : > { %1219 = vmatmul.bf16.gmra.mxu3 %v3495_v15  ;;  %1446 = vmatmul.bf16.gmra.mxu0 %v3511_v16  ;;  %v3572_v15 = vld [vmem:[%s3954_s21 + $0xa0] sm:$0xff] }
  0xea   : > { %770 = vmatmul.bf16.gmra.mxu1 %v3464_v19  ;;  %997 = vmatmul.bf16.gmra.mxu2 %v3480_v20 }
  0xed   : > { %1224 = vmatmul.bf16.gmra.mxu3 %v3496_v23  ;;  %1451 = vmatmul.bf16.gmra.mxu0 %v3512_v24 }
  0xf7   : > { %v560_v29 = vpop.f32.mrf.mxu1 }
  0xf8   : > { %595 = vst.msk [vmem:[%s4169_s19 + $0x20] sm:$0xff] %vm590_vm0, %v560_v29 }
  0xfa   : > { %775 = vmatmul.bf16.gmra.mxu1 %v3465_v27  ;;  %1002 = vmatmul.bf16.gmra.mxu2 %v3481_v28  ;;  %v550_v32 = vpop.f32.mrf.mxu0 }
  0xfb   : > { %591 = vst.msk [vmem:[%s4169_s19] sm:$0xff] %vm590_vm0, %v550_v32 }
  0xfd   : > { %v570_v35 = vpop.f32.mrf.mxu2  ;;  %1229 = vmatmul.bf16.gmra.mxu3 %v3497_v30  ;;  %1456 = vmatmul.bf16.gmra.mxu0 %v3513_v31 }
  0xfe   : > { %599 = vst.msk [vmem:[%s4169_s19 + $0x40] sm:$0xff] %vm590_vm0, %v570_v35 }
  0xff   : > { %v562_v36 = vpop.f32.mrf.mxu1 }
 0x100   : > { %596 = vst.msk [vmem:[%s4169_s19 + $0x28] sm:$0xff] %vm590_vm0, %v562_v36  ;;  %v580_v37 = vpop.f32.mrf.mxu3  ;;  %v790_v36 = vld [vmem:[%s4169_s19 + $0x20] sm:$0xff] }
 0x101   : > { %603 = vst.msk [vmem:[%s4169_s19 + $0x60] sm:$0xff] %vm590_vm0, %v580_v37 }
 0x102   : > { %v552_v38 = vpop.f32.mrf.mxu0  ;;  %v786_v53 = vld [vmem:[%s4169_s19] sm:$0xff] }
 0x103   : > { %592 = vst.msk [vmem:[%s4169_s19 + $0x8] sm:$0xff] %vm590_vm0, %v552_v38 }
 0x105   : > { %v572_v39 = vpop.f32.mrf.mxu2 }
 0x106   : > { %600 = vst.msk [vmem:[%s4169_s19 + $0x48] sm:$0xff] %vm590_vm0, %v572_v39 }
 0x107   : > { %v565_v42 = vpop.f32.mrf.mxu1 }
 0x108   : > { %597 = vst.msk [vmem:[%s4169_s19 + $0x30] sm:$0xff] %vm590_vm0, %v565_v42  ;;  %v582_v43 = vpop.f32.mrf.mxu3 }
 0x109   : > { %604 = vst.msk [vmem:[%s4169_s19 + $0x68] sm:$0xff] %vm590_vm0, %v582_v43 }
 0x10a   : > { %780 = vmatmul.bf16.gmra.mxu1 %v3466_v40  ;;  %1007 = vmatmul.bf16.gmra.mxu2 %v3482_v41  ;;  %v555_v46 = vpop.f32.mrf.mxu0  ;;  %v787_v0 = vld [vmem:[%s4169_s19 + $0x8] sm:$0xff]  ;;  %v3573_v41 = vld [vmem:[%s3954_s21 + $0xa8] sm:$0xff] }
 0x10b   : > { %593 = vst.msk [vmem:[%s4169_s19 + $0x10] sm:$0xff] %vm590_vm0, %v555_v46  ;;  %v3557_v40 = vld [vmem:[%s3954_s21 + $0x60] sm:$0xff] }
 0x10d   : > { %v575_v48 = vpop.f32.mrf.mxu2  ;;  %1234 = vmatmul.bf16.gmra.mxu3 %v3498_v44  ;;  %1461 = vmatmul.bf16.gmra.mxu0 %v3514_v45 }
 0x10e   : > { %601 = vst.msk [vmem:[%s4169_s19 + $0x50] sm:$0xff] %vm590_vm0, %v575_v48 }
 0x10f   : > { %v567_v49 = vpop.f32.mrf.mxu1 }
 0x110   : > { %598 = vst.msk [vmem:[%s4169_s19 + $0x38] sm:$0xff] %vm590_vm0, %v567_v49  ;;  %v585_v50 = vpop.f32.mrf.mxu3 }
 0x111   : > { %605 = vst.msk [vmem:[%s4169_s19 + $0x70] sm:$0xff] %vm590_vm0, %v585_v50  ;;  %v791_v50 = vld [vmem:[%s4169_s19 + $0x28] sm:$0xff] }
 0x112   : > { %v557_v51 = vpop.f32.mrf.mxu0  ;;  %v788_v7 = vld [vmem:[%s4169_s19 + $0x10] sm:$0xff] }
 0x113   : > { %594 = vst.msk [vmem:[%s4169_s19 + $0x18] sm:$0xff] %vm590_vm0, %v557_v51 }
 0x115   : > { %v577_v52 = vpop.f32.mrf.mxu2 }
 0x116   : > { %602 = vst.msk [vmem:[%s4169_s19 + $0x58] sm:$0xff] %vm590_vm0, %v577_v52 }
 0x117   : > { %v746_v56 = vpop.f32.mrf.mxu1 }
 0x118   : > { %v802_v57 = vadd.f32 %v786_v53, %v746_v56  ;;  %v587_v58 = vpop.f32.mrf.mxu3 }
 0x119   : > { %606 = vst.msk [vmem:[%s4169_s19 + $0x78] sm:$0xff] %vm590_vm0, %v587_v58 }
 0x11a   : > { %818 = vst.msk [vmem:[%s4169_s19] sm:$0xff] %vm590_vm0, %v802_v57  ;;  %1653 = vmatmul.bf16.vlgmr.msra.gmra.mxu1 %v3523_v54  ;;  %1880 = vmatmul.bf16.vlgmr.msra.gmra.mxu2 %v3539_v55  ;;  %v1427_v61 = vpop.f32.mrf.mxu0  ;;  %v789_v22 = vld [vmem:[%s4169_s19 + $0x18] sm:$0xff] }
 0x11d   : > { %v973_v62 = vpop.f32.mrf.mxu2  ;;  %2107 = vmatmul.bf16.vlgmr.msra.gmra.mxu3 %v3555_v59  ;;  %2334 = vmatmul.bf16.vlgmr.msra.gmra.mxu0 %v3571_v60 }
 0x11f   : > { %v748_v63 = vpop.f32.mrf.mxu1 }
 0x120   : > { %v803_v1 = vadd.f32 %v787_v0, %v748_v63  ;;  %v1200_v2 = vpop.f32.mrf.mxu3  ;;  %v792_v0 = vld [vmem:[%s4169_s19 + $0x30] sm:$0xff] }
 0x121   : > { %v1013_v3 = vld [vmem:[%s4169_s19] sm:$0xff] }
 0x122   : > { %v1029_v4 = vadd.f32 %v1013_v3, %v973_v62  ;;  %819 = vst.msk [vmem:[%s4169_s19 + $0x8] sm:$0xff] %vm590_vm0, %v803_v1  ;;  %v1429_v5 = vpop.f32.mrf.mxu0  ;;  %v3542_v62 = vld [vmem:[%s3954_s21 + $0x20] sm:$0xff] }
 0x124   : > { %1045 = vst.msk [vmem:[%s4169_s19] sm:$0xff] %vm590_vm0, %v1029_v4  ;;  %v3558_v4 = vld [vmem:[%s3954_s21 + $0x68] sm:$0xff] }
 0x125   : > { %v975_v6 = vpop.f32.mrf.mxu2 }
 0x127   : > { %v751_v10 = vpop.f32.mrf.mxu1 }
 0x128   : > { %v804_v11 = vadd.f32 %v788_v7, %v751_v10  ;;  %v1202_v12 = vpop.f32.mrf.mxu3 }
 0x129   : > { %v1014_v13 = vld [vmem:[%s4169_s19 + $0x8] sm:$0xff] }
 0x12a   : > { %v1030_v16 = vadd.f32 %v1014_v13, %v975_v6  ;;  %820 = vst.msk [vmem:[%s4169_s19 + $0x10] sm:$0xff] %vm590_vm0, %v804_v11  ;;  %1658 = vmatmul.bf16.gmra.mxu1 %v3524_v8  ;;  %1885 = vmatmul.bf16.gmra.mxu2 %v3540_v9  ;;  %v1432_v17 = vpop.f32.mrf.mxu0 }
 0x12b   : > { %v1240_v18 = vld [vmem:[%s4169_s19] sm:$0xff] }
 0x12c   : > { %v1256_v19 = vadd.f32 %v1240_v18, %v1200_v2  ;;  %1046 = vst.msk [vmem:[%s4169_s19 + $0x8] sm:$0xff] %vm590_vm0, %v1030_v16 }
 0x12d   : > { %v978_v20 = vpop.f32.mrf.mxu2  ;;  %2112 = vmatmul.bf16.gmra.mxu3 %v3556_v14  ;;  %2339 = vmatmul.bf16.gmra.mxu0 %v3572_v15  ;;  %v793_v14 = vld [vmem:[%s4169_s19 + $0x38] sm:$0xff] }
 0x12e   : > { %1272 = vst.msk [vmem:[%s4169_s19] sm:$0xff] %vm590_vm0, %v1256_v19 }
 0x12f   : > { %v753_v21 = vpop.f32.mrf.mxu1 }
 0x130   : > { %v805_v23 = vadd.f32 %v789_v22, %v753_v21  ;;  %v1205_v24 = vpop.f32.mrf.mxu3 }
 0x131   : > { %v1015_v25 = vld [vmem:[%s4169_s19 + $0x10] sm:$0xff] }
 0x132   : > { %v1031_v26 = vadd.f32 %v1015_v25, %v978_v20  ;;  %821 = vst.msk [vmem:[%s4169_s19 + $0x18] sm:$0xff] %vm590_vm0, %v805_v23  ;;  %v4248_v27 = vpop.f32.mrf.mxu0  ;;  %v3527_v25 = vld [vmem:[%s3954_s21 + $0xb4] sm:$0xff] }
 0x133   : > { %v1241_v28 = vld [vmem:[%s4169_s19 + $0x8] sm:$0xff] }
 0x134   : > { %v1257_v29 = vadd.f32 %v1241_v28, %v1202_v12  ;;  %1047 = vst.msk [vmem:[%s4169_s19 + $0x10] sm:$0xff] %vm590_vm0, %v1031_v26  ;;  %v3543_v26 = vld [vmem:[%s3954_s21 + $0x28] sm:$0xff]  ;;  %v794_v28 = vld [vmem:[%s4169_s19 + $0x40] sm:$0xff] }
 0x135   : > { %v1467_v30 = vld [vmem:[%s4169_s19] sm:$0xff]  ;;  %v980_v31 = vpop.f32.mrf.mxu2 }
 0x136   : > { %1273 = vst.msk [vmem:[%s4169_s19 + $0x8] sm:$0xff] %vm590_vm0, %v1257_v29  ;;  %v1483_v32 = vadd.f32 %v1467_v30, %v1427_v61  ;;  %v3526_v61 = vld [vmem:[%s3954_s21 + $0xac] sm:$0xff] }
 0x137   : > { %v756_v35 = vpop.f32.mrf.mxu1 }
 0x138   : > { %1499 = vst.msk [vmem:[%s4169_s19] sm:$0xff] %vm590_vm0, %v1483_v32  ;;  %v806_v37 = vadd.f32 %v790_v36, %v756_v35  ;;  %v1207_v38 = vpop.f32.mrf.mxu3  ;;  %v3559_v32 = vld [vmem:[%s3954_s21 + $0x70] sm:$0xff] }
 0x139   : > { %v1016_v39 = vld [vmem:[%s4169_s19 + $0x18] sm:$0xff] }
 0x13a   : > { %v1032_v42 = vadd.f32 %v1016_v39, %v980_v31  ;;  %822 = vst.msk [vmem:[%s4169_s19 + $0x20] sm:$0xff] %vm590_vm0, %v806_v37  ;;  %1663 = vmatmul.bf16.gmra.mxu1 %v3525_v33  ;;  %1890 = vmatmul.bf16.gmra.mxu2 %v3541_v34  ;;  %v4266_v43 = vpop.f32.mrf.mxu0  ;;  %v3575_v33 = vld [vmem:[%s3954_s21 + $0xb8] sm:$0xff] }
 0x13b   : > { %v1242_v44 = vld [vmem:[%s4169_s19 + $0x10] sm:$0xff] }
 0x13c   : > { %v1258_v45 = vadd.f32 %v1242_v44, %v1205_v24  ;;  %1048 = vst.msk [vmem:[%s4169_s19 + $0x18] sm:$0xff] %vm590_vm0, %v1032_v42  ;;  %v795_v42 = vld [vmem:[%s4169_s19 + $0x48] sm:$0xff] }
 0x13d   : > { %v1468_v46 = vld [vmem:[%s4169_s19 + $0x8] sm:$0xff]  ;;  %v983_v47 = vpop.f32.mrf.mxu2  ;;  %2117 = vmatmul.bf16.gmra.mxu3 %v3557_v40  ;;  %2344 = vmatmul.bf16.gmra.mxu0 %v3573_v41 }
 0x13e   : > { %1274 = vst.msk [vmem:[%s4169_s19 + $0x10] sm:$0xff] %vm590_vm0, %v1258_v45  ;;  %v1484_v48 = vadd.f32 %v1468_v46, %v1429_v5  ;;  %v3574_v5 = vld [vmem:[%s3954_s21 + $0xb0] sm:$0xff] }
 0x13f   : > { %v758_v49 = vpop.f32.mrf.mxu1 }
 0x140   : > { %1500 = vst.msk [vmem:[%s4169_s19 + $0x8] sm:$0xff] %vm590_vm0, %v1484_v48  ;;  %v807_v51 = vadd.f32 %v791_v50, %v758_v49  ;;  %v1210_v52 = vpop.f32.mrf.mxu3 }
 0x141   : > { %v1017_v53 = vld [vmem:[%s4169_s19 + $0x20] sm:$0xff] }
 0x142   : > { %v1033_v54 = vadd.f32 %v1017_v53, %v983_v47  ;;  %823 = vst.msk [vmem:[%s4169_s19 + $0x28] sm:$0xff] %vm590_vm0, %v807_v51  ;;  %v4280_v55 = vpop.f32.mrf.mxu0  ;;  %v3528_v53 = vld [vmem:[%s3954_s21 + $0xbc] sm:$0xff] }
 0x143   : > { %v1243_v56 = vld [vmem:[%s4169_s19 + $0x18] sm:$0xff] }
 0x144   : > { %v1259_v57 = vadd.f32 %v1243_v56, %v1207_v38  ;;  %1049 = vst.msk [vmem:[%s4169_s19 + $0x20] sm:$0xff] %vm590_vm0, %v1033_v54  ;;  %v3544_v54 = vld [vmem:[%s3954_s21 + $0x30] sm:$0xff]  ;;  %v796_v56 = vld [vmem:[%s4169_s19 + $0x50] sm:$0xff] }
 0x145   : > { %v1469_v58 = vld [vmem:[%s4169_s19 + $0x10] sm:$0xff]  ;;  %v985_v59 = vpop.f32.mrf.mxu2 }
 0x146   : > { %1275 = vst.msk [vmem:[%s4169_s19 + $0x18] sm:$0xff] %vm590_vm0, %v1259_v57  ;;  %v1485_v60 = vadd.f32 %v1469_v58, %v1432_v17 }
 0x147   : > { %v761_v63 = vpop.f32.mrf.mxu1 }
 0x148   : > { %1501 = vst.msk [vmem:[%s4169_s19 + $0x10] sm:$0xff] %vm590_vm0, %v1485_v60  ;;  %v808_v1 = vadd.f32 %v792_v0, %v761_v63  ;;  %v1212_v2 = vpop.f32.mrf.mxu3  ;;  %v3560_v60 = vld [vmem:[%s3954_s21 + $0x78] sm:$0xff] }
 0x149   : > { %v1018_v3 = vld [vmem:[%s4169_s19 + $0x28] sm:$0xff] }
 0x14a   : > { %v1034_v6 = vadd.f32 %v1018_v3, %v985_v59  ;;  %824 = vst.msk [vmem:[%s4169_s19 + $0x30] sm:$0xff] %vm590_vm0, %v808_v1  ;;  %1668 = vmatmul.bf16.gmra.mxu1 %v3526_v61  ;;  %1895 = vmatmul.bf16.gmra.mxu2 %v3542_v62  ;;  %v4298_v7 = vpop.f32.mrf.mxu0  ;;  %v3576_v61 = vld [vmem:[%s3954_s21 + $0xc0] sm:$0xff] }
 0x14b   : > { %v1244_v8 = vld [vmem:[%s4169_s19 + $0x20] sm:$0xff] }
 0x14c   : > { %v1260_v9 = vadd.f32 %v1244_v8, %v1210_v52  ;;  %1050 = vst.msk [vmem:[%s4169_s19 + $0x28] sm:$0xff] %vm590_vm0, %v1034_v6  ;;  %v797_v6 = vld [vmem:[%s4169_s19 + $0x58] sm:$0xff] }
 0x14d   : > { %v1470_v10 = vld [vmem:[%s4169_s19 + $0x18] sm:$0xff]  ;;  %v988_v11 = vpop.f32.mrf.mxu2  ;;  %2122 = vmatmul.bf16.gmra.mxu3 %v3558_v4  ;;  %2349 = vmatmul.bf16.gmra.mxu0 %v3574_v5 }
 0x14e   : > { %1276 = vst.msk [vmem:[%s4169_s19 + $0x20] sm:$0xff] %vm590_vm0, %v1260_v9  ;;  %v1486_v12 = vadd.f32 %v1470_v10, %v4248_v27 }
 0x14f   : > { %v763_v13 = vpop.f32.mrf.mxu1 }
 0x150   : > { %1502 = vst.msk [vmem:[%s4169_s19 + $0x18] sm:$0xff] %vm590_vm0, %v1486_v12  ;;  %v809_v15 = vadd.f32 %v793_v14, %v763_v13  ;;  %v1215_v16 = vpop.f32.mrf.mxu3 }
 0x151   : > { %v1019_v17 = vld [vmem:[%s4169_s19 + $0x30] sm:$0xff] }
 0x152   : > { %v1035_v18 = vadd.f32 %v1019_v17, %v988_v11  ;;  %825 = vst.msk [vmem:[%s4169_s19 + $0x38] sm:$0xff] %vm590_vm0, %v809_v15  ;;  %v4313_v19 = vpop.f32.mrf.mxu0  ;;  %v3529_v17 = vld [vmem:[%s3954_s21 + $0xc4] sm:$0xff] }
 0x153   : > { %v1245_v20 = vld [vmem:[%s4169_s19 + $0x28] sm:$0xff] }
 0x154   : > { %v1261_v21 = vadd.f32 %v1245_v20, %v1212_v2  ;;  %1051 = vst.msk [vmem:[%s4169_s19 + $0x30] sm:$0xff] %vm590_vm0, %v1035_v18  ;;  %v3545_v18 = vld [vmem:[%s3954_s21 + $0x38] sm:$0xff] }
 0x155   : > { %v1471_v22 = vld [vmem:[%s4169_s19 + $0x20] sm:$0xff]  ;;  %v990_v23 = vpop.f32.mrf.mxu2 }
 0x156   : > { %1277 = vst.msk [vmem:[%s4169_s19 + $0x28] sm:$0xff] %vm590_vm0, %v1261_v21  ;;  %v1487_v24 = vadd.f32 %v1471_v22, %v4266_v43  ;;  %v798_v20 = vld [vmem:[%s4169_s19 + $0x60] sm:$0xff] }
 0x157   : > { %v766_v27 = vpop.f32.mrf.mxu1 }
 0x158   : > { %1503 = vst.msk [vmem:[%s4169_s19 + $0x20] sm:$0xff] %vm590_vm0, %v1487_v24  ;;  %v810_v29 = vadd.f32 %v794_v28, %v766_v27  ;;  %v1217_v30 = vpop.f32.mrf.mxu3  ;;  %v3561_v24 = vld [vmem:[%s3954_s21 + $0x80] sm:$0xff] }
 0x159   : > { %v1020_v31 = vld [vmem:[%s4169_s19 + $0x38] sm:$0xff] }
 0x15a   : > { %v1036_v34 = vadd.f32 %v1020_v31, %v990_v23  ;;  %826 = vst.msk [vmem:[%s4169_s19 + $0x40] sm:$0xff] %vm590_vm0, %v810_v29  ;;  %1673 = vmatmul.bf16.gmra.mxu1 %v3527_v25  ;;  %1900 = vmatmul.bf16.gmra.mxu2 %v3543_v26  ;;  %v4332_v35 = vpop.f32.mrf.mxu0  ;;  %v3577_v25 = vld [vmem:[%s3954_s21 + $0xc8] sm:$0xff] }
 0x15b   : > { %v1246_v36 = vld [vmem:[%s4169_s19 + $0x30] sm:$0xff] }
 0x15c   : > { %v1262_v37 = vadd.f32 %v1246_v36, %v1215_v16  ;;  %1052 = vst.msk [vmem:[%s4169_s19 + $0x38] sm:$0xff] %vm590_vm0, %v1036_v34  ;;  %v799_v34 = vld [vmem:[%s4169_s19 + $0x68] sm:$0xff] }
 0x15d   : > { %v1472_v38 = vld [vmem:[%s4169_s19 + $0x28] sm:$0xff]  ;;  %v993_v39 = vpop.f32.mrf.mxu2  ;;  %2127 = vmatmul.bf16.gmra.mxu3 %v3559_v32  ;;  %2354 = vmatmul.bf16.gmra.mxu0 %v3575_v33 }
 0x15e   : > { %1278 = vst.msk [vmem:[%s4169_s19 + $0x30] sm:$0xff] %vm590_vm0, %v1262_v37  ;;  %v1488_v40 = vadd.f32 %v1472_v38, %v4280_v55 }
 0x15f   : > { %v768_v41 = vpop.f32.mrf.mxu1 }
 0x160   : > { %1504 = vst.msk [vmem:[%s4169_s19 + $0x28] sm:$0xff] %vm590_vm0, %v1488_v40  ;;  %v811_v43 = vadd.f32 %v795_v42, %v768_v41  ;;  %v1220_v44 = vpop.f32.mrf.mxu3 }
 0x161   : > { %v1021_v45 = vld [vmem:[%s4169_s19 + $0x40] sm:$0xff] }
 0x162   : > { %v1037_v46 = vadd.f32 %v1021_v45, %v993_v39  ;;  %827 = vst.msk [vmem:[%s4169_s19 + $0x48] sm:$0xff] %vm590_vm0, %v811_v43  ;;  %v4347_v47 = vpop.f32.mrf.mxu0  ;;  %v3530_v45 = vld [vmem:[%s3954_s21 + $0xcc] sm:$0xff] }
 0x163   : > { %v1247_v48 = vld [vmem:[%s4169_s19 + $0x38] sm:$0xff] }
 0x164   : > { %v1263_v49 = vadd.f32 %v1247_v48, %v1217_v30  ;;  %1053 = vst.msk [vmem:[%s4169_s19 + $0x40] sm:$0xff] %vm590_vm0, %v1037_v46  ;;  %v3546_v46 = vld [vmem:[%s3954_s21 + $0x40] sm:$0xff] }
 0x165   : > { %v1473_v50 = vld [vmem:[%s4169_s19 + $0x30] sm:$0xff]  ;;  %v995_v51 = vpop.f32.mrf.mxu2 }
 0x166   : > { %1279 = vst.msk [vmem:[%s4169_s19 + $0x38] sm:$0xff] %vm590_vm0, %v1263_v49  ;;  %v1489_v52 = vadd.f32 %v1473_v50, %v4298_v7  ;;  %v800_v48 = vld [vmem:[%s4169_s19 + $0x70] sm:$0xff] }
 0x167   : > { %v771_v55 = vpop.f32.mrf.mxu1 }
 0x168   : > { %1505 = vst.msk [vmem:[%s4169_s19 + $0x30] sm:$0xff] %vm590_vm0, %v1489_v52  ;;  %v812_v57 = vadd.f32 %v796_v56, %v771_v55  ;;  %v1222_v58 = vpop.f32.mrf.mxu3  ;;  %v3562_v52 = vld [vmem:[%s3954_s21 + $0x88] sm:$0xff] }
 0x169   : > { %v1022_v59 = vld [vmem:[%s4169_s19 + $0x48] sm:$0xff] }
 0x16a   : > { %v1038_v62 = vadd.f32 %v1022_v59, %v995_v51  ;;  %828 = vst.msk [vmem:[%s4169_s19 + $0x50] sm:$0xff] %vm590_vm0, %v812_v57  ;;  %1678 = vmatmul.bf16.gmra.mxu1 %v3528_v53  ;;  %1905 = vmatmul.bf16.gmra.mxu2 %v3544_v54  ;;  %v4366_v63 = vpop.f32.mrf.mxu0  ;;  %v3578_v53 = vld [vmem:[%s3954_s21 + $0xd0] sm:$0xff]  ;;  %s3439_s21 = sshll.u32 (%p3790_p6), %s3713_s12, 5 }
 0x16b   : > { %v1248_v0 = vld [vmem:[%s4169_s19 + $0x40] sm:$0xff]  ;;  %s2431_s27 = sadd.s32 (%p3790_p6), %s3709_s11, %s3439_s21 }
 0x16c   : > { %v1264_v1 = vadd.f32 %v1248_v0, %v1220_v44  ;;  %1054 = vst.msk [vmem:[%s4169_s19 + $0x48] sm:$0xff] %vm590_vm0, %v1038_v62  ;;  %v801_v62 = vld [vmem:[%s4169_s19 + $0x78] sm:$0xff]  ;;  %s3440_s28 = sshll.u32 (%p3790_p6), %s2431_s27, 3 }
 0x16d   : > { %v1474_v2 = vld [vmem:[%s4169_s19 + $0x38] sm:$0xff]  ;;  %v998_v3 = vpop.f32.mrf.mxu2  ;;  %2132 = vmatmul.bf16.gmra.mxu3 %v3560_v60  ;;  %2359 = vmatmul.bf16.gmra.mxu0 %v3576_v61  ;;  %s2433_s20 = scalar_lea.vmem (%p3790_p6), %s4713_s2, %s3440_s28 }
 0x16e   : > { %1280 = vst.msk [vmem:[%s4169_s19 + $0x40] sm:$0xff] %vm590_vm0, %v1264_v1  ;;  %v1490_v4 = vadd.f32 %v1474_v2, %v4313_v19 }
 0x16f   : > { %v773_v5 = vpop.f32.mrf.mxu1 }
 0x170   : > { %1506 = vst.msk [vmem:[%s4169_s19 + $0x38] sm:$0xff] %vm590_vm0, %v1490_v4  ;;  %v813_v7 = vadd.f32 %v797_v6, %v773_v5  ;;  %v1225_v8 = vpop.f32.mrf.mxu3 }
 0x171   : > { %v1023_v9 = vld [vmem:[%s4169_s19 + $0x50] sm:$0xff] }
 0x172   : > { %v1039_v10 = vadd.f32 %v1023_v9, %v998_v3  ;;  %829 = vst.msk [vmem:[%s4169_s19 + $0x58] sm:$0xff] %vm590_vm0, %v813_v7  ;;  %v4381_v11 = vpop.f32.mrf.mxu0 }
 0x173   : > { %v1249_v12 = vld [vmem:[%s4169_s19 + $0x48] sm:$0xff] }
 0x174   : > { %v1265_v13 = vadd.f32 %v1249_v12, %v1222_v58  ;;  %1055 = vst.msk [vmem:[%s4169_s19 + $0x50] sm:$0xff] %vm590_vm0, %v1039_v10  ;;  %v1694_v10 = vld [vmem:[%s4169_s19] sm:$0xff] }
 0x175   : > { %v1475_v14 = vld [vmem:[%s4169_s19 + $0x40] sm:$0xff]  ;;  %v1000_v15 = vpop.f32.mrf.mxu2 }
 0x176   : > { %1281 = vst.msk [vmem:[%s4169_s19 + $0x48] sm:$0xff] %vm590_vm0, %v1265_v13  ;;  %v1491_v16 = vadd.f32 %v1475_v14, %v4332_v35 }
 0x177   : > { %v776_v19 = vpop.f32.mrf.mxu1 }
 0x178   : > { %1507 = vst.msk [vmem:[%s4169_s19 + $0x40] sm:$0xff] %vm590_vm0, %v1491_v16  ;;  %v814_v21 = vadd.f32 %v798_v20, %v776_v19  ;;  %v1227_v22 = vpop.f32.mrf.mxu3 }
 0x179   : > { %v1024_v23 = vld [vmem:[%s4169_s19 + $0x58] sm:$0xff] }
 0x17a   : > { %v1040_v26 = vadd.f32 %v1024_v23, %v1000_v15  ;;  %830 = vst.msk [vmem:[%s4169_s19 + $0x60] sm:$0xff] %vm590_vm0, %v814_v21  ;;  %1683 = vmatmul.bf16.gmra.mxu1 %v3529_v17  ;;  %1910 = vmatmul.bf16.gmra.mxu2 %v3545_v18  ;;  %v4400_v27 = vpop.f32.mrf.mxu0 }
 0x17b   : > { %v1250_v28 = vld [vmem:[%s4169_s19 + $0x50] sm:$0xff] }
 0x17c   : > { %v1266_v29 = vadd.f32 %v1250_v28, %v1225_v8  ;;  %1056 = vst.msk [vmem:[%s4169_s19 + $0x58] sm:$0xff] %vm590_vm0, %v1040_v26 }
 0x17d   : > { %v1476_v30 = vld [vmem:[%s4169_s19 + $0x48] sm:$0xff]  ;;  %v1003_v31 = vpop.f32.mrf.mxu2  ;;  %2137 = vmatmul.bf16.gmra.mxu3 %v3561_v24  ;;  %2364 = vmatmul.bf16.gmra.mxu0 %v3577_v25 }
 0x17e   : > { %1282 = vst.msk [vmem:[%s4169_s19 + $0x50] sm:$0xff] %vm590_vm0, %v1266_v29  ;;  %v1492_v32 = vadd.f32 %v1476_v30, %v4347_v47 }
 0x17f   : > { %v778_v33 = vpop.f32.mrf.mxu1 }
 0x180   : > { %1508 = vst.msk [vmem:[%s4169_s19 + $0x48] sm:$0xff] %vm590_vm0, %v1492_v32  ;;  %v815_v35 = vadd.f32 %v799_v34, %v778_v33  ;;  %v1230_v36 = vpop.f32.mrf.mxu3  ;;  %v1696_v34 = vld [vmem:[%s4169_s19 + $0x10] sm:$0xff] }
 0x181   : > { %v1025_v37 = vld [vmem:[%s4169_s19 + $0x60] sm:$0xff] }
 0x182   : > { %v1041_v38 = vadd.f32 %v1025_v37, %v1003_v31  ;;  %831 = vst.msk [vmem:[%s4169_s19 + $0x68] sm:$0xff] %vm590_vm0, %v815_v35  ;;  %v4415_v39 = vpop.f32.mrf.mxu0 }
 0x183   : > { %v1251_v40 = vld [vmem:[%s4169_s19 + $0x58] sm:$0xff] }
 0x184   : > { %v1267_v41 = vadd.f32 %v1251_v40, %v1227_v22  ;;  %1057 = vst.msk [vmem:[%s4169_s19 + $0x60] sm:$0xff] %vm590_vm0, %v1041_v38  ;;  %v1695_v22 = vld [vmem:[%s4169_s19 + $0x8] sm:$0xff] }
 0x185   : > { %v1477_v42 = vld [vmem:[%s4169_s19 + $0x50] sm:$0xff]  ;;  %v1005_v43 = vpop.f32.mrf.mxu2 }
 0x186   : > { %1283 = vst.msk [vmem:[%s4169_s19 + $0x58] sm:$0xff] %vm590_vm0, %v1267_v41  ;;  %v1493_v44 = vadd.f32 %v1477_v42, %v4366_v63 }
 0x187   : > { %v781_v47 = vpop.f32.mrf.mxu1 }
 0x188   : > { %1509 = vst.msk [vmem:[%s4169_s19 + $0x50] sm:$0xff] %vm590_vm0, %v1493_v44  ;;  %v816_v49 = vadd.f32 %v800_v48, %v781_v47  ;;  %v1232_v50 = vpop.f32.mrf.mxu3 }
 0x189   : > { %v1026_v51 = vld [vmem:[%s4169_s19 + $0x68] sm:$0xff] }
 0x18a   : > { %v1042_v54 = vadd.f32 %v1026_v51, %v1005_v43  ;;  %832 = vst.msk [vmem:[%s4169_s19 + $0x70] sm:$0xff] %vm590_vm0, %v816_v49  ;;  %1688 = vmatmul.bf16.gmra.mxu1 %v3530_v45  ;;  %1915 = vmatmul.bf16.gmra.mxu2 %v3546_v46  ;;  %v1462_v55 = vpop.f32.mrf.mxu0  ;;  %v1697_v46 = vld [vmem:[%s4169_s19 + $0x18] sm:$0xff] }
 0x18b   : > { %v1252_v56 = vld [vmem:[%s4169_s19 + $0x60] sm:$0xff] }
 0x18c   : > { %v1268_v57 = vadd.f32 %v1252_v56, %v1230_v36  ;;  %1058 = vst.msk [vmem:[%s4169_s19 + $0x68] sm:$0xff] %vm590_vm0, %v1042_v54 }
 0x18d   : > { %v1478_v58 = vld [vmem:[%s4169_s19 + $0x58] sm:$0xff]  ;;  %v1008_v59 = vpop.f32.mrf.mxu2  ;;  %2142 = vmatmul.bf16.gmra.mxu3 %v3562_v52  ;;  %2369 = vmatmul.bf16.gmra.mxu0 %v3578_v53 }
 0x18e   : > { %1284 = vst.msk [vmem:[%s4169_s19 + $0x60] sm:$0xff] %vm590_vm0, %v1268_v57  ;;  %v1494_v60 = vadd.f32 %v1478_v58, %v4381_v11  ;;  %v1698_v58 = vld [vmem:[%s4169_s19 + $0x20] sm:$0xff] }
 0x18f   : > { %v783_v61 = vpop.f32.mrf.mxu1 }
 0x190   : > { %1510 = vst.msk [vmem:[%s4169_s19 + $0x58] sm:$0xff] %vm590_vm0, %v1494_v60  ;;  %v817_v63 = vadd.f32 %v801_v62, %v783_v61  ;;  %v1235_v0 = vpop.f32.mrf.mxu3 }
 0x191   : > { %v1027_v1 = vld [vmem:[%s4169_s19 + $0x70] sm:$0xff] }
 0x192   : > { %v1043_v2 = vadd.f32 %v1027_v1, %v1008_v59  ;;  %833 = vst.msk [vmem:[%s4169_s19 + $0x78] sm:$0xff] %vm590_vm0, %v817_v63  ;;  %v1464_v3 = vpop.f32.mrf.mxu0 }
 0x193   : > { %v1253_v4 = vld [vmem:[%s4169_s19 + $0x68] sm:$0xff] }
 0x194   : > { %v1269_v5 = vadd.f32 %v1253_v4, %v1232_v50  ;;  %1059 = vst.msk [vmem:[%s4169_s19 + $0x70] sm:$0xff] %vm590_vm0, %v1043_v2 }
 0x195   : > { %v1479_v6 = vld [vmem:[%s4169_s19 + $0x60] sm:$0xff]  ;;  %v1010_v7 = vpop.f32.mrf.mxu2 }
 0x196   : > { %1285 = vst.msk [vmem:[%s4169_s19 + $0x68] sm:$0xff] %vm590_vm0, %v1269_v5  ;;  %v1495_v8 = vadd.f32 %v1479_v6, %v4400_v27  ;;  %v1699_v6 = vld [vmem:[%s4169_s19 + $0x28] sm:$0xff] }
 0x197   : > { %v1654_v9 = vpop.f32.mrf.mxu1 }
 0x198   : > { %1511 = vst.msk [vmem:[%s4169_s19 + $0x60] sm:$0xff] %vm590_vm0, %v1495_v8  ;;  %v1710_v11 = vadd.f32 %v1694_v10, %v1654_v9  ;;  %v1237_v12 = vpop.f32.mrf.mxu3 }
 0x199   : > { %v1028_v13 = vld [vmem:[%s4169_s19 + $0x78] sm:$0xff] }
 0x19a   : > { %v1044_v14 = vadd.f32 %v1028_v13, %v1010_v7  ;;  %1726 = vst.msk [vmem:[%s4169_s19] sm:$0xff] %vm590_vm0, %v1710_v11  ;;  %v2335_v15 = vpop.f32.mrf.mxu0 }
 0x19b   : > { %v1254_v16 = vld [vmem:[%s4169_s19 + $0x70] sm:$0xff] }
 0x19c   : > { %v1270_v17 = vadd.f32 %v1254_v16, %v1235_v0  ;;  %1060 = vst.msk [vmem:[%s4169_s19 + $0x78] sm:$0xff] %vm590_vm0, %v1044_v14 }
 0x19d   : > { %v1480_v18 = vld [vmem:[%s4169_s19 + $0x68] sm:$0xff]  ;;  %v1881_v19 = vpop.f32.mrf.mxu2 }
 0x19e   : > { %1286 = vst.msk [vmem:[%s4169_s19 + $0x70] sm:$0xff] %vm590_vm0, %v1270_v17  ;;  %v1496_v20 = vadd.f32 %v1480_v18, %v4415_v39  ;;  %v1700_v17 = vld [vmem:[%s4169_s19 + $0x30] sm:$0xff] }
 0x19f   : > { %v1656_v21 = vpop.f32.mrf.mxu1 }
 0x1a0   : > { %1512 = vst.msk [vmem:[%s4169_s19 + $0x68] sm:$0xff] %vm590_vm0, %v1496_v20  ;;  %v1711_v23 = vadd.f32 %v1695_v22, %v1656_v21  ;;  %v2108_v24 = vpop.f32.mrf.mxu3 }
 0x1a1   : > { %v1921_v25 = vld [vmem:[%s4169_s19] sm:$0xff] }
 0x1a2   : > { %v1937_v26 = vadd.f32 %v1921_v25, %v1881_v19  ;;  %1727 = vst.msk [vmem:[%s4169_s19 + $0x8] sm:$0xff] %vm590_vm0, %v1711_v23  ;;  %v2337_v27 = vpop.f32.mrf.mxu0 }
 0x1a3   : > { %v1255_v28 = vld [vmem:[%s4169_s19 + $0x78] sm:$0xff] }
 0x1a4   : > { %v1271_v29 = vadd.f32 %v1255_v28, %v1237_v12  ;;  %1953 = vst.msk [vmem:[%s4169_s19] sm:$0xff] %vm590_vm0, %v1937_v26 }
 0x1a5   : > { %v1481_v30 = vld [vmem:[%s4169_s19 + $0x70] sm:$0xff]  ;;  %v1883_v31 = vpop.f32.mrf.mxu2 }
 0x1a6   : > { %1287 = vst.msk [vmem:[%s4169_s19 + $0x78] sm:$0xff] %vm590_vm0, %v1271_v29  ;;  %v1497_v32 = vadd.f32 %v1481_v30, %v1462_v55  ;;  %v1701_v29 = vld [vmem:[%s4169_s19 + $0x38] sm:$0xff] }
 0x1a7   : > { %v1659_v33 = vpop.f32.mrf.mxu1 }
 0x1a8   : > { %1513 = vst.msk [vmem:[%s4169_s19 + $0x70] sm:$0xff] %vm590_vm0, %v1497_v32  ;;  %v1712_v35 = vadd.f32 %v1696_v34, %v1659_v33  ;;  %v2110_v36 = vpop.f32.mrf.mxu3 }
 0x1a9   : > { %v1922_v37 = vld [vmem:[%s4169_s19 + $0x8] sm:$0xff] }
 0x1aa   : > { %v1938_v38 = vadd.f32 %v1922_v37, %v1883_v31  ;;  %1728 = vst.msk [vmem:[%s4169_s19 + $0x10] sm:$0xff] %vm590_vm0, %v1712_v35  ;;  %v2340_v39 = vpop.f32.mrf.mxu0 }
 0x1ab   : > { %v2148_v40 = vld [vmem:[%s4169_s19] sm:$0xff] }
 0x1ac   : > { %v2164_v41 = vadd.f32 %v2148_v40, %v2108_v24  ;;  %1954 = vst.msk [vmem:[%s4169_s19 + $0x8] sm:$0xff] %vm590_vm0, %v1938_v38 }
 0x1ad   : > { %v1482_v42 = vld [vmem:[%s4169_s19 + $0x78] sm:$0xff]  ;;  %v1886_v43 = vpop.f32.mrf.mxu2 }
 0x1ae   : > { %2180 = vst.msk [vmem:[%s4169_s19] sm:$0xff] %vm590_vm0, %v2164_v41  ;;  %v1498_v44 = vadd.f32 %v1482_v42, %v1464_v3  ;;  %v1702_v41 = vld [vmem:[%s4169_s19 + $0x40] sm:$0xff] }
 0x1af   : > { %v1661_v45 = vpop.f32.mrf.mxu1 }
 0x1b0   : > { %1514 = vst.msk [vmem:[%s4169_s19 + $0x78] sm:$0xff] %vm590_vm0, %v1498_v44  ;;  %v1713_v47 = vadd.f32 %v1697_v46, %v1661_v45  ;;  %v2113_v48 = vpop.f32.mrf.mxu3 }
 0x1b1   : > { %v1923_v49 = vld [vmem:[%s4169_s19 + $0x10] sm:$0xff] }
 0x1b2   : > { %v1939_v50 = vadd.f32 %v1923_v49, %v1886_v43  ;;  %1729 = vst.msk [vmem:[%s4169_s19 + $0x18] sm:$0xff] %vm590_vm0, %v1713_v47  ;;  %v2342_v53 = vpop.f32.mrf.mxu0 }
 0x1b3   : > { %v2149_v51 = vld [vmem:[%s4169_s19 + $0x8] sm:$0xff] }
 0x1b4   : > { %v2165_v52 = vadd.f32 %v2149_v51, %v2110_v36  ;;  %1955 = vst.msk [vmem:[%s4169_s19 + $0x10] sm:$0xff] %vm590_vm0, %v1939_v50 }
 0x1b5   : > { %v2375_v54 = vld [vmem:[%s4169_s19] sm:$0xff]  ;;  %v1888_v55 = vpop.f32.mrf.mxu2 }
 0x1b6   : > { %2181 = vst.msk [vmem:[%s4169_s19 + $0x8] sm:$0xff] %vm590_vm0, %v2165_v52  ;;  %v2391_v56 = vadd.f32 %v2375_v54, %v2335_v15 }
 0x1b7   : > { %v1664_v57 = vpop.f32.mrf.mxu1 }
 0x1b8   : > { %2407 = vst.msk [vmem:[%s4169_s19] sm:$0xff] %vm590_vm0, %v2391_v56  ;;  %v1714_v59 = vadd.f32 %v1698_v58, %v1664_v57  ;;  %v2115_v60 = vpop.f32.mrf.mxu3 }
 0x1b9   : > { %v1924_v61 = vld [vmem:[%s4169_s19 + $0x18] sm:$0xff] }
 0x1ba   : > { %v1940_v62 = vadd.f32 %v1924_v61, %v1888_v55  ;;  %1730 = vst.msk [vmem:[%s4169_s19 + $0x20] sm:$0xff] %vm590_vm0, %v1714_v59  ;;  %v2345_v4 = vpop.f32.mrf.mxu0 }
 0x1bb   : > { %v2150_v63 = vld [vmem:[%s4169_s19 + $0x10] sm:$0xff] }
 0x1bc   : > { %v2166_v0 = vadd.f32 %v2150_v63, %v2113_v48  ;;  %1956 = vst.msk [vmem:[%s4169_s19 + $0x18] sm:$0xff] %vm590_vm0, %v1940_v62 }
 0x1bd   : > { %v2376_v1 = vld [vmem:[%s4169_s19 + $0x8] sm:$0xff]  ;;  %v1891_v2 = vpop.f32.mrf.mxu2 }
 0x1be   : > { %2182 = vst.msk [vmem:[%s4169_s19 + $0x10] sm:$0xff] %vm590_vm0, %v2166_v0  ;;  %v2392_v3 = vadd.f32 %v2376_v1, %v2337_v27  ;;  %v1704_v1 = vld [vmem:[%s4169_s19 + $0x50] sm:$0xff] }
 0x1bf   : > { %v1666_v5 = vpop.f32.mrf.mxu1 }
 0x1c0   : > { %2408 = vst.msk [vmem:[%s4169_s19 + $0x8] sm:$0xff] %vm590_vm0, %v2392_v3  ;;  %v1715_v7 = vadd.f32 %v1699_v6, %v1666_v5  ;;  %v2118_v8 = vpop.f32.mrf.mxu3 }
 0x1c1   : > { %v1925_v9 = vld [vmem:[%s4169_s19 + $0x20] sm:$0xff] }
 0x1c2   : > { %v1941_v10 = vadd.f32 %v1925_v9, %v1891_v2  ;;  %1731 = vst.msk [vmem:[%s4169_s19 + $0x28] sm:$0xff] %vm590_vm0, %v1715_v7  ;;  %v2347_v20 = vpop.f32.mrf.mxu0 }
 0x1c3   : > { %v2151_v11 = vld [vmem:[%s4169_s19 + $0x18] sm:$0xff] }
 0x1c4   : > { %v2167_v12 = vadd.f32 %v2151_v11, %v2115_v60  ;;  %1957 = vst.msk [vmem:[%s4169_s19 + $0x20] sm:$0xff] %vm590_vm0, %v1941_v10 }
 0x1c5   : > { %v2377_v13 = vld [vmem:[%s4169_s19 + $0x10] sm:$0xff]  ;;  %v1893_v14 = vpop.f32.mrf.mxu2 }
 0x1c6   : > { %2183 = vst.msk [vmem:[%s4169_s19 + $0x18] sm:$0xff] %vm590_vm0, %v2167_v12  ;;  %v2393_v15 = vadd.f32 %v2377_v13, %v2340_v39  ;;  %v1705_v12 = vld [vmem:[%s4169_s19 + $0x58] sm:$0xff] }
 0x1c7   : > { %v1669_v16 = vpop.f32.mrf.mxu1 }
 0x1c8   : > { %2409 = vst.msk [vmem:[%s4169_s19 + $0x10] sm:$0xff] %vm590_vm0, %v2393_v15  ;;  %v1716_v18 = vadd.f32 %v1700_v17, %v1669_v16  ;;  %v2120_v19 = vpop.f32.mrf.mxu3 }
 0x1c9   : > { %v1926_v21 = vld [vmem:[%s4169_s19 + $0x28] sm:$0xff] }
 0x1ca   : > { %v1942_v22 = vadd.f32 %v1926_v21, %v1893_v14  ;;  %1732 = vst.msk [vmem:[%s4169_s19 + $0x30] sm:$0xff] %vm590_vm0, %v1716_v18  ;;  %v2350_v34 = vpop.f32.mrf.mxu0 }
 0x1cb   : > { %v2152_v23 = vld [vmem:[%s4169_s19 + $0x20] sm:$0xff] }
 0x1cc   : > { %v2168_v24 = vadd.f32 %v2152_v23, %v2118_v8  ;;  %1958 = vst.msk [vmem:[%s4169_s19 + $0x28] sm:$0xff] %vm590_vm0, %v1942_v22 }
 0x1cd   : > { %v2378_v25 = vld [vmem:[%s4169_s19 + $0x18] sm:$0xff]  ;;  %v1896_v26 = vpop.f32.mrf.mxu2 }
 0x1ce   : > { %2184 = vst.msk [vmem:[%s4169_s19 + $0x20] sm:$0xff] %vm590_vm0, %v2168_v24  ;;  %v2394_v27 = vadd.f32 %v2378_v25, %v2342_v53  ;;  %v1703_v53 = vld [vmem:[%s4169_s19 + $0x48] sm:$0xff]  ;;  %v1706_v24 = vld [vmem:[%s4169_s19 + $0x60] sm:$0xff] }
 0x1cf   : > { %v1671_v28 = vpop.f32.mrf.mxu1 }
 0x1d0   : > { %2410 = vst.msk [vmem:[%s4169_s19 + $0x18] sm:$0xff] %vm590_vm0, %v2394_v27  ;;  %v1717_v30 = vadd.f32 %v1701_v29, %v1671_v28  ;;  %v2123_v31 = vpop.f32.mrf.mxu3 }
 0x1d1   : > { %v1927_v32 = vld [vmem:[%s4169_s19 + $0x30] sm:$0xff] }
 0x1d2   : > { %v1943_v33 = vadd.f32 %v1927_v32, %v1896_v26  ;;  %1733 = vst.msk [vmem:[%s4169_s19 + $0x38] sm:$0xff] %vm590_vm0, %v1717_v30  ;;  %v2352_v48 = vpop.f32.mrf.mxu0 }
 0x1d3   : > { %v2153_v35 = vld [vmem:[%s4169_s19 + $0x28] sm:$0xff] }
 0x1d4   : > { %v2169_v36 = vadd.f32 %v2153_v35, %v2120_v19  ;;  %1959 = vst.msk [vmem:[%s4169_s19 + $0x30] sm:$0xff] %vm590_vm0, %v1943_v33 }
 0x1d5   : > { %v2379_v37 = vld [vmem:[%s4169_s19 + $0x20] sm:$0xff]  ;;  %v1898_v38 = vpop.f32.mrf.mxu2 }
 0x1d6   : > { %2185 = vst.msk [vmem:[%s4169_s19 + $0x28] sm:$0xff] %vm590_vm0, %v2169_v36  ;;  %v2395_v39 = vadd.f32 %v2379_v37, %v2345_v4  ;;  %v1707_v36 = vld [vmem:[%s4169_s19 + $0x68] sm:$0xff] }
 0x1d7   : > { %v1674_v40 = vpop.f32.mrf.mxu1 }
 0x1d8   : > { %2411 = vst.msk [vmem:[%s4169_s19 + $0x20] sm:$0xff] %vm590_vm0, %v2395_v39  ;;  %v1718_v42 = vadd.f32 %v1702_v41, %v1674_v40  ;;  %v2125_v43 = vpop.f32.mrf.mxu3 }
 0x1d9   : > { %v1928_v44 = vld [vmem:[%s4169_s19 + $0x38] sm:$0xff] }
 0x1da   : > { %v1944_v45 = vadd.f32 %v1928_v44, %v1898_v38  ;;  %1734 = vst.msk [vmem:[%s4169_s19 + $0x40] sm:$0xff] %vm590_vm0, %v1718_v42  ;;  %v2355_v63 = vpop.f32.mrf.mxu0 }
 0x1db   : > { %v2154_v46 = vld [vmem:[%s4169_s19 + $0x30] sm:$0xff] }
 0x1dc   : > { %v2170_v47 = vadd.f32 %v2154_v46, %v2123_v31  ;;  %1960 = vst.msk [vmem:[%s4169_s19 + $0x38] sm:$0xff] %vm590_vm0, %v1944_v45 }
 0x1dd   : > { %v2380_v49 = vld [vmem:[%s4169_s19 + $0x28] sm:$0xff]  ;;  %v1901_v50 = vpop.f32.mrf.mxu2 }
 0x1de   : > { %2186 = vst.msk [vmem:[%s4169_s19 + $0x30] sm:$0xff] %vm590_vm0, %v2170_v47  ;;  %v2396_v51 = vadd.f32 %v2380_v49, %v2347_v20 }
 0x1df   : > { %v1676_v52 = vpop.f32.mrf.mxu1 }
 0x1e0   : > { %2412 = vst.msk [vmem:[%s4169_s19 + $0x28] sm:$0xff] %vm590_vm0, %v2396_v51  ;;  %v1719_v54 = vadd.f32 %v1703_v53, %v1676_v52  ;;  %v2128_v55 = vpop.f32.mrf.mxu3 }
 0x1e1   : > { %v1929_v56 = vld [vmem:[%s4169_s19 + $0x40] sm:$0xff] }
 0x1e2   : > { %v1945_v57 = vadd.f32 %v1929_v56, %v1901_v50  ;;  %1735 = vst.msk [vmem:[%s4169_s19 + $0x48] sm:$0xff] %vm590_vm0, %v1719_v54  ;;  %v2357_v15 = vpop.f32.mrf.mxu0 }
 0x1e3   : > { %v2155_v58 = vld [vmem:[%s4169_s19 + $0x38] sm:$0xff] }
 0x1e4   : > { %v2171_v59 = vadd.f32 %v2155_v58, %v2125_v43  ;;  %1961 = vst.msk [vmem:[%s4169_s19 + $0x40] sm:$0xff] %vm590_vm0, %v1945_v57 }
 0x1e5   : > { %v2381_v60 = vld [vmem:[%s4169_s19 + $0x30] sm:$0xff]  ;;  %v1903_v61 = vpop.f32.mrf.mxu2 }
 0x1e6   : > { %2187 = vst.msk [vmem:[%s4169_s19 + $0x38] sm:$0xff] %vm590_vm0, %v2171_v59  ;;  %v2397_v62 = vadd.f32 %v2381_v60, %v2350_v34  ;;  %v1709_v60 = vld [vmem:[%s4169_s19 + $0x78] sm:$0xff] }
 0x1e7   : > { %v1679_v0 = vpop.f32.mrf.mxu1 }
 0x1e8   : > { %2413 = vst.msk [vmem:[%s4169_s19 + $0x30] sm:$0xff] %vm590_vm0, %v2397_v62  ;;  %v1720_v2 = vadd.f32 %v1704_v1, %v1679_v0  ;;  %v2130_v3 = vpop.f32.mrf.mxu3 }
 0x1e9   : > { %v1930_v4 = vld [vmem:[%s4169_s19 + $0x48] sm:$0xff] }
 0x1ea   : > { %v1946_v5 = vadd.f32 %v1930_v4, %v1903_v61  ;;  %1736 = vst.msk [vmem:[%s4169_s19 + $0x50] sm:$0xff] %vm590_vm0, %v1720_v2  ;;  %v2360_v29 = vpop.f32.mrf.mxu0 }
 0x1eb   : > { %v2156_v6 = vld [vmem:[%s4169_s19 + $0x40] sm:$0xff] }
 0x1ec   : > { %v2172_v7 = vadd.f32 %v2156_v6, %v2128_v55  ;;  %1962 = vst.msk [vmem:[%s4169_s19 + $0x48] sm:$0xff] %vm590_vm0, %v1946_v5 }
 0x1ed   : > { %v2382_v8 = vld [vmem:[%s4169_s19 + $0x38] sm:$0xff]  ;;  %v1906_v9 = vpop.f32.mrf.mxu2 }
 0x1ee   : > { %2188 = vst.msk [vmem:[%s4169_s19 + $0x40] sm:$0xff] %vm590_vm0, %v2172_v7  ;;  %v2398_v10 = vadd.f32 %v2382_v8, %v2352_v48  ;;  %v1708_v48 = vld [vmem:[%s4169_s19 + $0x70] sm:$0xff] }
 0x1ef   : > { %v1681_v11 = vpop.f32.mrf.mxu1 }
 0x1f0   : > { %2414 = vst.msk [vmem:[%s4169_s19 + $0x38] sm:$0xff] %vm590_vm0, %v2398_v10  ;;  %v1721_v13 = vadd.f32 %v1705_v12, %v1681_v11  ;;  %v2133_v14 = vpop.f32.mrf.mxu3 }
 0x1f1   : > { %v1931_v16 = vld [vmem:[%s4169_s19 + $0x50] sm:$0xff] }
 0x1f2   : > { %v1947_v17 = vadd.f32 %v1931_v16, %v1906_v9  ;;  %1737 = vst.msk [vmem:[%s4169_s19 + $0x58] sm:$0xff] %vm590_vm0, %v1721_v13  ;;  %v2362_v43 = vpop.f32.mrf.mxu0 }
 0x1f3   : > { %v2157_v18 = vld [vmem:[%s4169_s19 + $0x48] sm:$0xff] }
 0x1f4   : > { %v2173_v19 = vadd.f32 %v2157_v18, %v2130_v3  ;;  %1963 = vst.msk [vmem:[%s4169_s19 + $0x50] sm:$0xff] %vm590_vm0, %v1947_v17 }
 0x1f5   : > { %v2383_v20 = vld [vmem:[%s4169_s19 + $0x40] sm:$0xff]  ;;  %v1908_v21 = vpop.f32.mrf.mxu2 }
 0x1f6   : > { %2189 = vst.msk [vmem:[%s4169_s19 + $0x48] sm:$0xff] %vm590_vm0, %v2173_v19  ;;  %v2399_v22 = vadd.f32 %v2383_v20, %v2355_v63 }
 0x1f7   : > { %v1684_v23 = vpop.f32.mrf.mxu1 }
 0x1f8   : > { %2415 = vst.msk [vmem:[%s4169_s19 + $0x40] sm:$0xff] %vm590_vm0, %v2399_v22  ;;  %v1722_v25 = vadd.f32 %v1706_v24, %v1684_v23  ;;  %v2135_v28 = vpop.f32.mrf.mxu3  ;;  %v2492_v22 = vld [vmem:[%s4169_s19] sm:$0xff] (%p3790_p6)  ;;  %v2494_v23 = vld [vmem:[%s4169_s19 + $0x8] sm:$0xff] (%p3790_p6)  ;;  %v2496_v24 = vld [vmem:[%s4169_s19 + $0x10] sm:$0xff] (%p3790_p6) }
 0x1f9   : > { %v1932_v26 = vld [vmem:[%s4169_s19 + $0x58] sm:$0xff]  ;;  %2493 = vst [vmem:[%s2433_s20] sm:$0xff] (%p3790_p6), %v2492_v22 }
 0x1fa   : > { %v1948_v27 = vadd.f32 %v1932_v26, %v1908_v21  ;;  %1738 = vst.msk [vmem:[%s4169_s19 + $0x60] sm:$0xff] %vm590_vm0, %v1722_v25  ;;  %v2365_v57 = vpop.f32.mrf.mxu0  ;;  %v2498_v25 = vld [vmem:[%s4169_s19 + $0x18] sm:$0xff] (%p3790_p6)  ;;  %v2500_v26 = vld [vmem:[%s4169_s19 + $0x20] sm:$0xff] (%p3790_p6) }
 0x1fb   : > { %v2158_v30 = vld [vmem:[%s4169_s19 + $0x50] sm:$0xff]  ;;  %2495 = vst [vmem:[%s2433_s20 + $0x10] sm:$0xff] (%p3790_p6), %v2494_v23 }
 0x1fc   : > { %v2174_v31 = vadd.f32 %v2158_v30, %v2133_v14  ;;  %1964 = vst.msk [vmem:[%s4169_s19 + $0x58] sm:$0xff] %vm590_vm0, %v1948_v27  ;;  %v2502_v27 = vld [vmem:[%s4169_s19 + $0x28] sm:$0xff] (%p3790_p6) }
 0x1fd   : > { %v2384_v32 = vld [vmem:[%s4169_s19 + $0x48] sm:$0xff]  ;;  %v1911_v33 = vpop.f32.mrf.mxu2  ;;  %2497 = vst [vmem:[%s2433_s20 + $0x20] sm:$0xff] (%p3790_p6), %v2496_v24 }
 0x1fe   : > { %2190 = vst.msk [vmem:[%s4169_s19 + $0x50] sm:$0xff] %vm590_vm0, %v2174_v31  ;;  %v2400_v34 = vadd.f32 %v2384_v32, %v2357_v15 }
 0x1ff   : > { %v1686_v35 = vpop.f32.mrf.mxu1  ;;  %2499 = vst [vmem:[%s2433_s20 + $0x30] sm:$0xff] (%p3790_p6), %v2498_v25  ;;  %v2508_v30 = vld [vmem:[%s4169_s19 + $0x40] sm:$0xff] (%p3790_p6) }
 0x200   : > { %2416 = vst.msk [vmem:[%s4169_s19 + $0x48] sm:$0xff] %vm590_vm0, %v2400_v34  ;;  %v1723_v37 = vadd.f32 %v1707_v36, %v1686_v35  ;;  %v2138_v42 = vpop.f32.mrf.mxu3 }
 0x201   : > { %v1933_v38 = vld [vmem:[%s4169_s19 + $0x60] sm:$0xff]  ;;  %2501 = vst [vmem:[%s2433_s20 + $0x40] sm:$0xff] (%p3790_p6), %v2500_v26 }
 0x202   : > { %v1949_v39 = vadd.f32 %v1933_v38, %v1911_v33  ;;  %1739 = vst.msk [vmem:[%s4169_s19 + $0x68] sm:$0xff] %vm590_vm0, %v1723_v37  ;;  %v2367_v4 = vpop.f32.mrf.mxu0 }
 0x203   : > { %v2159_v40 = vld [vmem:[%s4169_s19 + $0x58] sm:$0xff]  ;;  %2503 = vst [vmem:[%s2433_s20 + $0x50] sm:$0xff] (%p3790_p6), %v2502_v27 }
 0x204   : > { %v2175_v41 = vadd.f32 %v2159_v40, %v2135_v28  ;;  %1965 = vst.msk [vmem:[%s4169_s19 + $0x60] sm:$0xff] %vm590_vm0, %v1949_v39  ;;  %v2504_v28 = vld [vmem:[%s4169_s19 + $0x30] sm:$0xff] (%p3790_p6) }
 0x205   : > { %v2385_v44 = vld [vmem:[%s4169_s19 + $0x50] sm:$0xff]  ;;  %v1913_v45 = vpop.f32.mrf.mxu2  ;;  %2505 = vst [vmem:[%s2433_s20 + $0x60] sm:$0xff] (%p3790_p6), %v2504_v28 }
 0x206   : > { %2191 = vst.msk [vmem:[%s4169_s19 + $0x58] sm:$0xff] %vm590_vm0, %v2175_v41  ;;  %v2401_v46 = vadd.f32 %v2385_v44, %v2360_v29  ;;  %v2506_v29 = vld [vmem:[%s4169_s19 + $0x38] sm:$0xff] (%p3790_p6) }
 0x207   : > { %v1689_v47 = vpop.f32.mrf.mxu1  ;;  %v2510_v31 = vld [vmem:[%s4169_s19 + $0x48] sm:$0xff] (%p3790_p6)  ;;  %2507 = vst [vmem:[%s2433_s20 + $0x70] sm:$0xff] (%p3790_p6), %v2506_v29 }
 0x208   : > { %2417 = vst.msk [vmem:[%s4169_s19 + $0x50] sm:$0xff] %vm590_vm0, %v2401_v46  ;;  %v1724_v49 = vadd.f32 %v1708_v48, %v1689_v47  ;;  %v2140_v56 = vpop.f32.mrf.mxu3 }
 0x209   : > { %v1934_v50 = vld [vmem:[%s4169_s19 + $0x68] sm:$0xff]  ;;  %2509 = vst [vmem:[%s2433_s20 + $0x80] sm:$0xff] (%p3790_p6), %v2508_v30 }
 0x20a   : > { %v1950_v51 = vadd.f32 %v1934_v50, %v1913_v45  ;;  %1740 = vst.msk [vmem:[%s4169_s19 + $0x70] sm:$0xff] %vm590_vm0, %v1724_v49  ;;  %v2370_v15 = vpop.f32.mrf.mxu0 }
 0x20b   : > { %v2160_v52 = vld [vmem:[%s4169_s19 + $0x60] sm:$0xff]  ;;  %2511 = vst [vmem:[%s2433_s20 + $0x90] sm:$0xff] (%p3790_p6), %v2510_v31 }
 0x20c   : > { %v2176_v53 = vadd.f32 %v2160_v52, %v2138_v42  ;;  %1966 = vst.msk [vmem:[%s4169_s19 + $0x68] sm:$0xff] %vm590_vm0, %v1950_v51 }
 0x20d   : > { %v2386_v54 = vld [vmem:[%s4169_s19 + $0x58] sm:$0xff]  ;;  %v1916_v58 = vpop.f32.mrf.mxu2 }
 0x20e   : > { %2192 = vst.msk [vmem:[%s4169_s19 + $0x60] sm:$0xff] %vm590_vm0, %v2176_v53  ;;  %v2402_v55 = vadd.f32 %v2386_v54, %v2362_v43 }
 0x20f   : > { %v1691_v59 = vpop.f32.mrf.mxu1  ;;  %v2512_v32 = vld [vmem:[%s4169_s19 + $0x50] sm:$0xff] (%p3790_p6) }
 0x210   : > { %2418 = vst.msk [vmem:[%s4169_s19 + $0x58] sm:$0xff] %vm590_vm0, %v2402_v55  ;;  %v1725_v61 = vadd.f32 %v1709_v60, %v1691_v59  ;;  %v2143_v5 = vpop.f32.mrf.mxu3 }
 0x211   : > { %v1935_v62 = vld [vmem:[%s4169_s19 + $0x70] sm:$0xff]  ;;  %2513 = vst [vmem:[%s2433_s20 + $0xa0] sm:$0xff] (%p3790_p6), %v2512_v32 }
 0x212   : > { %v1951_v63 = vadd.f32 %v1935_v62, %v1916_v58  ;;  %1741 = vst.msk [vmem:[%s4169_s19 + $0x78] sm:$0xff] %vm590_vm0, %v1725_v61  ;;  %v2372_v19 = vpop.f32.mrf.mxu0 }
 0x213   : > { %v2161_v0 = vld [vmem:[%s4169_s19 + $0x68] sm:$0xff] }
 0x214   : > { %v2177_v1 = vadd.f32 %v2161_v0, %v2140_v56  ;;  %1967 = vst.msk [vmem:[%s4169_s19 + $0x70] sm:$0xff] %vm590_vm0, %v1951_v63 }
 0x215   : > { %v2387_v2 = vld [vmem:[%s4169_s19 + $0x60] sm:$0xff]  ;;  %v1918_v6 = vpop.f32.mrf.mxu2 }
 0x216   : > { %2193 = vst.msk [vmem:[%s4169_s19 + $0x68] sm:$0xff] %vm590_vm0, %v2177_v1  ;;  %v2403_v3 = vadd.f32 %v2387_v2, %v2365_v57 }
 0x217   : > { %v2514_v33 = vld [vmem:[%s4169_s19 + $0x58] sm:$0xff] (%p3790_p6) }
 0x218   : > { %2419 = vst.msk [vmem:[%s4169_s19 + $0x60] sm:$0xff] %vm590_vm0, %v2403_v3  ;;  %v2145_v13 = vpop.f32.mrf.mxu3 }
 0x219   : > { %v1936_v7 = vld [vmem:[%s4169_s19 + $0x78] sm:$0xff]  ;;  %2515 = vst [vmem:[%s2433_s20 + $0xb0] sm:$0xff] (%p3790_p6), %v2514_v33 }
 0x21a   : > { %v1952_v8 = vadd.f32 %v1936_v7, %v1918_v6 }
 0x21b   : > { %v2162_v9 = vld [vmem:[%s4169_s19 + $0x70] sm:$0xff] }
 0x21c   : > { %v2178_v10 = vadd.f32 %v2162_v9, %v2143_v5  ;;  %1968 = vst.msk [vmem:[%s4169_s19 + $0x78] sm:$0xff] %vm590_vm0, %v1952_v8 }
 0x21d   : > { %v2388_v11 = vld [vmem:[%s4169_s19 + $0x68] sm:$0xff] }
 0x21e   : > { %2194 = vst.msk [vmem:[%s4169_s19 + $0x70] sm:$0xff] %vm590_vm0, %v2178_v10  ;;  %v2404_v12 = vadd.f32 %v2388_v11, %v2367_v4 }
 0x21f   : > { %v2516_v34 = vld [vmem:[%s4169_s19 + $0x60] sm:$0xff] (%p3790_p6) }
 0x220   : > { %2420 = vst.msk [vmem:[%s4169_s19 + $0x68] sm:$0xff] %vm590_vm0, %v2404_v12 }
 0x221   : > { %2517 = vst [vmem:[%s2433_s20 + $0xc0] sm:$0xff] (%p3790_p6), %v2516_v34 }
 0x223   : > { %v2163_v14 = vld [vmem:[%s4169_s19 + $0x78] sm:$0xff] }
 0x224   : > { %v2179_v16 = vadd.f32 %v2163_v14, %v2145_v13 }
 0x225   : > { %v2389_v17 = vld [vmem:[%s4169_s19 + $0x70] sm:$0xff] }
 0x226   : > { %2195 = vst.msk [vmem:[%s4169_s19 + $0x78] sm:$0xff] %vm590_vm0, %v2179_v16  ;;  %v2405_v18 = vadd.f32 %v2389_v17, %v2370_v15 }
 0x227   : > { %v2518_v35 = vld [vmem:[%s4169_s19 + $0x68] sm:$0xff] (%p3790_p6) }
 0x228   : > { %2421 = vst.msk [vmem:[%s4169_s19 + $0x70] sm:$0xff] %vm590_vm0, %v2405_v18 }
 0x229   : > { %2519 = vst [vmem:[%s2433_s20 + $0xd0] sm:$0xff] (%p3790_p6), %v2518_v35 }
 0x22c   : > { %2429 = sbr.rel (!%p3790_p6) target bundleno = 569 (0x239), region = 73 }
 0x22d   : > { %v2390_v20 = vld [vmem:[%s4169_s19 + $0x78] sm:$0xff] }
 0x22e   : > { %v2406_v21 = vadd.f32 %v2390_v20, %v2372_v19 }
 0x22f   : > { %v2520_v36 = vld [vmem:[%s4169_s19 + $0x70] sm:$0xff] (%p3790_p6) }
 0x230   : > { %2422 = vst.msk [vmem:[%s4169_s19 + $0x78] sm:$0xff] %vm590_vm0, %v2406_v21 }
 0x231   : > { %2521 = vst [vmem:[%s2433_s20 + $0xe0] sm:$0xff] %v2520_v36 }
 0x237   : > { %v2522_v37 = vld [vmem:[%s4169_s19 + $0x78] sm:$0xff] }
 0x238   : > { %2523 = vst [vmem:[%s2433_s20 + $0xf0] sm:$0xff] %v2522_v37 }
 0x239 PF: > { %s12_s15 = sadd.s32 1, %s3725_s15   ;;  %s4715_s9 = smov %s3705_s10 }
 0x23a   : > { %p9_p12 = scmp.ge.s32.totalorder %s12_s15, 6   ;;  %s4716_s10 = smov %s3798_s24 }
 0x23b   : > { %s4717_s11 = smov %s3717_s13  ;;  %s4718_s12 = smov %s3721_s14 }
 0x23c   : > { %s4719_s13 = smov %s4722_s16  ;;  %s4720_s14 = smov %s4726_s17 }
 0x23d   :  { %11 = sbr.rel (!%p9_p12) target bundleno = 4 (0x4), region = 158 }

// kernel: densenet_forward.20
= control target key start
LH: loop header
LB: loop body
LE: loop exit
PB: predicated region body
PF: predicated region fallthrough
CT: control target
= control target key end

     0   :  { %s3742_s9 = smov 0   ;;  %s3744_s10 = smov 0   ;;  %s4711_s0 = inlined_call_operand.vmem [shape: bf16[6,18,16,128], index: 0, kind: input, shape index: {}]   ;;  %s4712_s1 = inlined_call_operand.vmem [shape: bf16[3,3,128,12], index: 1, kind: input, shape index: {}]   ;;  %s4713_s2 = inlined_call_operand.vmem [shape: f32[2,16,16,12], index: 2, kind: output, shape index: {}]  }
   0x1   :  { %s3746_s11 = smov 0   ;;  %s3748_s12 = smov 0  }
   0x2   :  { %s3750_s13 = smov 0   ;;  %s3752_s14 = smov 0  }
   0x3   :  { %s3754_s15 = smov 0  }
   0x4 LB: > { %s21_s16 = sadd.s32 1, %s3717_s13  ;;  %s24_s17 = sadd.s32 1, %s3721_s14  ;;  %s3725_s15 = sphi %s3754_s15, %s12_s15   ;;  %s3721_s14 = sphi %s3752_s14, %s4720_s14   ;;  %s3717_s13 = sphi %s3750_s13, %s4719_s13   ;;  %s3713_s12 = sphi %s3748_s12, %s4718_s12   ;;  %s3709_s11 = sphi %s3746_s11, %s4717_s11   ;;  %s3705_s10 = sphi %s3744_s10, %s4716_s10   ;;  %s3701_s9 = sphi %s3742_s9, %s4715_s9  }
   0x5   : > { %p22_p0 = scmp.ge.s32.totalorder %s21_s16, 2  ;;  %s2599_s18 = sadd.s32 4294967295, %s3725_s15  }
   0x6   : > { %p40_p1 = scmp.ne.s32.totalorder %s3705_s10, %s3701_s9  ;;  %p41_p2 = scmp.eq.s32.totalorder %s3725_s15, 0 }
   0x7   : > { %s4722_s16 = smov (%p22_p0, %s21_s16), 0  ;;  %s4724_s17 = smov (!%p22_p0, %s24_s17), %s3721_s14 }
   0x8   : > { %p26_p3 = scmp.ge.s32.totalorder %s4724_s17, 2  ;;  %p93_p4 = scmp.eq.s32.totalorder %s2599_s18, 3 }
   0x9   : > { %s29_s19 = ssub.s32 %s3717_s13, %s4722_s16  ;;  %p42_p5 = por %p41_p2, %p40_p1 }
   0xa   : > { %s4726_s17 = smov (%p26_p3, %s4724_s17), 0  ;;  %p3790_p6 = por %p93_p4, %p40_p1 }
   0xb   : > { %s28_s21 = ssub.s32 %s3721_s14, %s4726_s17  ;;  %s33_s23 = sadd.s32 1, %s3705_s10 }
   0xc   : > { %s30_s22 = sor.u32 %s29_s19, %s28_s21  ;;  %p2602_p8 = scmp.ge.s32.totalorder %s3725_s15, 4 }
   0xd   : > { %p31_p7 = scmp.eq.s32.totalorder %s30_s22, 0 }
   0xe   : > { %118 = sbr.rel (%p2602_p8) target bundleno = 81 (0x51), region = 20 }
   0xf   : > { %s3798_s24 = scalar_select %p31_p7, %s3705_s10, %s33_s23  }
  0x13   : > { %121 = sbr.rel (!%p42_p5) target bundleno = 81 (0x51), region = 24  ;;  %s123_s25 = sand.u32 (%p42_p5), 1, %s3705_s10  }
  0x14   : > { %s3611_s26 = smul.u32 (%p42_p5), 216, %s123_s25 }
  0x15   : > { %s3614_s27 = smul.u32 (%p42_p5), 108, %s3721_s14 }
  0x16   : > { %s3812_s5 = scalar_lea.vmem (%p42_p5), [#allocation2], %s3611_s26 }
  0x17   : > { %s128_s28 = sadd.s32 (%p42_p5), %s3717_s13, %s3614_s27 }
  0x18   : > { %s2603_s29 = sshll.u32 %s128_s28, 2 }
  0x19   : > { %s3807_s4 = scalar_lea.vmem %s4711_s0, %s2603_s29 }
  0x1a   : > { %v147_v0 = vld [vmem:[%s3807_s4] sm:$0xf]  ;;  %v149_v1 = vld [vmem:[%s3807_s4 + $0x8] sm:$0xf]  ;;  %v151_v2 = vld [vmem:[%s3807_s4 + $0x10] sm:$0xf] }
  0x1b   : > { %148 = vst [vmem:[%s3812_s5] sm:$0xf] %v147_v0  ;;  %v153_v3 = vld [vmem:[%s3807_s4 + $0x18] sm:$0xf]  ;;  %v155_v4 = vld [vmem:[%s3807_s4 + $0x20] sm:$0xf] }
  0x1c   : > { %150 = vst [vmem:[%s3812_s5 + $0x4] sm:$0xf] %v149_v1  ;;  %v157_v5 = vld [vmem:[%s3807_s4 + $0x28] sm:$0xf]  ;;  %v159_v6 = vld [vmem:[%s3807_s4 + $0x30] sm:$0xf] }
  0x1d   : > { %152 = vst [vmem:[%s3812_s5 + $0x8] sm:$0xf] %v151_v2  ;;  %v161_v7 = vld [vmem:[%s3807_s4 + $0x38] sm:$0xf]  ;;  %v163_v8 = vld [vmem:[%s3807_s4 + $0x40] sm:$0xf] }
  0x1e   : > { %154 = vst [vmem:[%s3812_s5 + $0xc] sm:$0xf] %v153_v3  ;;  %v165_v9 = vld [vmem:[%s3807_s4 + $0x48] sm:$0xf]  ;;  %v167_v10 = vld [vmem:[%s3807_s4 + $0x50] sm:$0xf] }
  0x1f   : > { %156 = vst [vmem:[%s3812_s5 + $0x10] sm:$0xf] %v155_v4  ;;  %v169_v11 = vld [vmem:[%s3807_s4 + $0x58] sm:$0xf]  ;;  %v171_v12 = vld [vmem:[%s3807_s4 + $0x60] sm:$0xf] }
  0x20   : > { %158 = vst [vmem:[%s3812_s5 + $0x14] sm:$0xf] %v157_v5  ;;  %v173_v13 = vld [vmem:[%s3807_s4 + $0x68] sm:$0xf]  ;;  %v175_v14 = vld [vmem:[%s3807_s4 + $0x70] sm:$0xf] }
  0x21   : > { %160 = vst [vmem:[%s3812_s5 + $0x18] sm:$0xf] %v159_v6  ;;  %v177_v15 = vld [vmem:[%s3807_s4 + $0x78] sm:$0xf]  ;;  %v179_v16 = vld [vmem:[%s3807_s4 + $0x80] sm:$0xf] }
  0x22   : > { %162 = vst [vmem:[%s3812_s5 + $0x1c] sm:$0xf] %v161_v7  ;;  %v181_v17 = vld [vmem:[%s3807_s4 + $0x88] sm:$0xf]  ;;  %v183_v18 = vld [vmem:[%s3807_s4 + $0x90] sm:$0xf] }
  0x23   : > { %164 = vst [vmem:[%s3812_s5 + $0x20] sm:$0xf] %v163_v8  ;;  %v185_v19 = vld [vmem:[%s3807_s4 + $0x98] sm:$0xf]  ;;  %v187_v20 = vld [vmem:[%s3807_s4 + $0xa0] sm:$0xf] }
  0x24   : > { %166 = vst [vmem:[%s3812_s5 + $0x24] sm:$0xf] %v165_v9  ;;  %v189_v21 = vld [vmem:[%s3807_s4 + $0xa8] sm:$0xf]  ;;  %v191_v22 = vld [vmem:[%s3807_s4 + $0xb0] sm:$0xf] }
  0x25   : > { %168 = vst [vmem:[%s3812_s5 + $0x28] sm:$0xf] %v167_v10  ;;  %v193_v23 = vld [vmem:[%s3807_s4 + $0xb8] sm:$0xf]  ;;  %v195_v24 = vld [vmem:[%s3807_s4 + $0xc0] sm:$0xf] }
  0x26   : > { %170 = vst [vmem:[%s3812_s5 + $0x2c] sm:$0xf] %v169_v11  ;;  %v197_v25 = vld [vmem:[%s3807_s4 + $0xc8] sm:$0xf]  ;;  %v199_v26 = vld [vmem:[%s3807_s4 + $0xd0] sm:$0xf] }
  0x27   : > { %172 = vst [vmem:[%s3812_s5 + $0x30] sm:$0xf] %v171_v12  ;;  %v201_v27 = vld [vmem:[%s3807_s4 + $0xd8] sm:$0xf]  ;;  %v203_v28 = vld [vmem:[%s3807_s4 + $0xe0] sm:$0xf] }
  0x28   : > { %174 = vst [vmem:[%s3812_s5 + $0x34] sm:$0xf] %v173_v13  ;;  %v205_v29 = vld [vmem:[%s3807_s4 + $0xe8] sm:$0xf]  ;;  %v207_v30 = vld [vmem:[%s3807_s4 + $0xf0] sm:$0xf] }
  0x29   : > { %176 = vst [vmem:[%s3812_s5 + $0x38] sm:$0xf] %v175_v14  ;;  %v209_v31 = vld [vmem:[%s3807_s4 + $0xf8] sm:$0xf]  ;;  %v211_v32 = vld [vmem:[%s3807_s4 + $0x100] sm:$0xf] }
  0x2a   : > { %178 = vst [vmem:[%s3812_s5 + $0x3c] sm:$0xf] %v177_v15  ;;  %v213_v33 = vld [vmem:[%s3807_s4 + $0x108] sm:$0xf]  ;;  %v215_v34 = vld [vmem:[%s3807_s4 + $0x110] sm:$0xf] }
  0x2b   : > { %180 = vst [vmem:[%s3812_s5 + $0x40] sm:$0xf] %v179_v16  ;;  %v217_v35 = vld [vmem:[%s3807_s4 + $0x118] sm:$0xf]  ;;  %v219_v36 = vld [vmem:[%s3807_s4 + $0x120] sm:$0xf] }
  0x2c   : > { %182 = vst [vmem:[%s3812_s5 + $0x44] sm:$0xf] %v181_v17  ;;  %v221_v37 = vld [vmem:[%s3807_s4 + $0x128] sm:$0xf]  ;;  %v223_v38 = vld [vmem:[%s3807_s4 + $0x130] sm:$0xf] }
  0x2d   : > { %184 = vst [vmem:[%s3812_s5 + $0x48] sm:$0xf] %v183_v18  ;;  %v225_v39 = vld [vmem:[%s3807_s4 + $0x138] sm:$0xf]  ;;  %v227_v40 = vld [vmem:[%s3807_s4 + $0x140] sm:$0xf] }
  0x2e   : > { %186 = vst [vmem:[%s3812_s5 + $0x4c] sm:$0xf] %v185_v19  ;;  %v229_v41 = vld [vmem:[%s3807_s4 + $0x148] sm:$0xf]  ;;  %v231_v42 = vld [vmem:[%s3807_s4 + $0x150] sm:$0xf] }
  0x2f   : > { %188 = vst [vmem:[%s3812_s5 + $0x50] sm:$0xf] %v187_v20  ;;  %v233_v43 = vld [vmem:[%s3807_s4 + $0x158] sm:$0xf]  ;;  %v235_v44 = vld [vmem:[%s3807_s4 + $0x160] sm:$0xf] }
  0x30   : > { %190 = vst [vmem:[%s3812_s5 + $0x54] sm:$0xf] %v189_v21  ;;  %v237_v45 = vld [vmem:[%s3807_s4 + $0x168] sm:$0xf]  ;;  %v239_v46 = vld [vmem:[%s3807_s4 + $0x170] sm:$0xf] }
  0x31   : > { %192 = vst [vmem:[%s3812_s5 + $0x58] sm:$0xf] %v191_v22  ;;  %v241_v47 = vld [vmem:[%s3807_s4 + $0x178] sm:$0xf]  ;;  %v243_v48 = vld [vmem:[%s3807_s4 + $0x180] sm:$0xf] }
  0x32   : > { %194 = vst [vmem:[%s3812_s5 + $0x5c] sm:$0xf] %v193_v23  ;;  %v245_v49 = vld [vmem:[%s3807_s4 + $0x188] sm:$0xf]  ;;  %v247_v50 = vld [vmem:[%s3807_s4 + $0x190] sm:$0xf] }
  0x33   : > { %196 = vst [vmem:[%s3812_s5 + $0x60] sm:$0xf] %v195_v24  ;;  %v249_v51 = vld [vmem:[%s3807_s4 + $0x198] sm:$0xf]  ;;  %v251_v52 = vld [vmem:[%s3807_s4 + $0x1a0] sm:$0xf] }
  0x34   : > { %198 = vst [vmem:[%s3812_s5 + $0x64] sm:$0xf] %v197_v25  ;;  %v253_v53 = vld [vmem:[%s3807_s4 + $0x1a8] sm:$0xf] }
  0x35   : > { %200 = vst [vmem:[%s3812_s5 + $0x68] sm:$0xf] %v199_v26 }
  0x36   : > { %202 = vst [vmem:[%s3812_s5 + $0x6c] sm:$0xf] %v201_v27 }
  0x37   : > { %204 = vst [vmem:[%s3812_s5 + $0x70] sm:$0xf] %v203_v28 }
  0x38   : > { %206 = vst [vmem:[%s3812_s5 + $0x74] sm:$0xf] %v205_v29 }
  0x39   : > { %208 = vst [vmem:[%s3812_s5 + $0x78] sm:$0xf] %v207_v30 }
  0x3a   : > { %210 = vst [vmem:[%s3812_s5 + $0x7c] sm:$0xf] %v209_v31 }
  0x3b   : > { %212 = vst [vmem:[%s3812_s5 + $0x80] sm:$0xf] %v211_v32 }
  0x3c   : > { %214 = vst [vmem:[%s3812_s5 + $0x84] sm:$0xf] %v213_v33 }
  0x3d   : > { %216 = vst [vmem:[%s3812_s5 + $0x88] sm:$0xf] %v215_v34 }
  0x3e   : > { %218 = vst [vmem:[%s3812_s5 + $0x8c] sm:$0xf] %v217_v35 }
  0x3f   : > { %220 = vst [vmem:[%s3812_s5 + $0x90] sm:$0xf] %v219_v36 }
  0x40   : > { %222 = vst [vmem:[%s3812_s5 + $0x94] sm:$0xf] %v221_v37 }
  0x41   : > { %224 = vst [vmem:[%s3812_s5 + $0x98] sm:$0xf] %v223_v38 }
  0x42   : > { %226 = vst [vmem:[%s3812_s5 + $0x9c] sm:$0xf] %v225_v39 }
  0x43   : > { %228 = vst [vmem:[%s3812_s5 + $0xa0] sm:$0xf] %v227_v40 }
  0x44   : > { %230 = vst [vmem:[%s3812_s5 + $0xa4] sm:$0xf] %v229_v41 }
  0x45   : > { %232 = vst [vmem:[%s3812_s5 + $0xa8] sm:$0xf] %v231_v42 }
  0x46   : > { %234 = vst [vmem:[%s3812_s5 + $0xac] sm:$0xf] %v233_v43 }
  0x47   : > { %236 = vst [vmem:[%s3812_s5 + $0xb0] sm:$0xf] %v235_v44 }
  0x48   : > { %238 = vst [vmem:[%s3812_s5 + $0xb4] sm:$0xf] %v237_v45 }
  0x49   : > { %240 = vst [vmem:[%s3812_s5 + $0xb8] sm:$0xf] %v239_v46 }
  0x4a   : > { %242 = vst [vmem:[%s3812_s5 + $0xbc] sm:$0xf] %v241_v47 }
  0x4b   : > { %244 = vst [vmem:[%s3812_s5 + $0xc0] sm:$0xf] %v243_v48 }
  0x4c   : > { %246 = vst [vmem:[%s3812_s5 + $0xc4] sm:$0xf] %v245_v49 }
  0x4d   : > { %248 = vst [vmem:[%s3812_s5 + $0xc8] sm:$0xf] %v247_v50 }
  0x4e   : > { %250 = vst [vmem:[%s3812_s5 + $0xcc] sm:$0xf] %v249_v51 }
  0x4f   : > { %252 = vst [vmem:[%s3812_s5 + $0xd0] sm:$0xf] %v251_v52 }
  0x50   : > { %254 = vst [vmem:[%s3812_s5 + $0xd4] sm:$0xf] %v253_v53 }
  0x51 PF: > { %p2604_p9 = scmp.ge.s32.totalorder %s3725_s15, 1  ;;  %p385_p10 = scmp.lt.s32.totalorder %s3725_s15, 5 }
  0x53   : > { %p386_p11 = pnand %p2604_p9, %p385_p10 }
  0x54   : > { %s392_s29 = sand.u32 (!%p386_p11), 1, %s3701_s9  }
  0x55   : > { %389 = sbr.rel (%p386_p11) target bundleno = 569 (0x239), region = 65  ;;  %s2605_s18 = sshll.u32 (!%p386_p11), %s392_s29, 7 }
  0x56   : > { %s3613_s4 = smul.u32 (!%p386_p11), 216, %s392_s29  ;;  %s4169_s19 = scalar_lea.vmem (!%p386_p11), [#allocation3], %s2605_s18 }
  0x58   : > { %s3954_s21 = scalar_lea.vmem (!%p386_p11), [#allocation2], %s3613_s4 }
  0x5a   : > { %v3458_v54 = vld [vmem:[%s4712_s1 + $0x38] sm:$0xff]  ;;  %v3457_v55 = vld [vmem:[%s4712_s1 + $0x30] sm:$0xff]  ;;  %v3456_v56 = vld [vmem:[%s4712_s1 + $0x28] sm:$0xff]  ;;  %vm590_vm0 = vcmask 97280  }
  0x5b   : > { %3587 = vmatpush.bf16.msra.mxu1 %v3458_v54  ;;  %3588 = vmatpush.bf16.msra.mxu2 %v3458_v54  ;;  %v3455_v57 = vld [vmem:[%s4712_s1 + $0x20] sm:$0xff]  ;;  %v3454_v58 = vld [vmem:[%s4712_s1 + $0x18] sm:$0xff]  ;;  %v3453_v59 = vld [vmem:[%s4712_s1 + $0x10] sm:$0xff] }
  0x5c   : > { %3589 = vmatpush.bf16.msra.mxu3 %v3458_v54  ;;  %541 = vmatpush.bf16.msra.mxu0 %v3458_v54  ;;  %v3452_v60 = vld [vmem:[%s4712_s1 + $0x8] sm:$0xff]  ;;  %v3451_v61 = vld [vmem:[%s4712_s1] sm:$0xff]  ;;  %v3474_v62 = vld [vmem:[%s4712_s1 + $0x78] sm:$0xff] }
  0x5d   : > { %v3490_v63 = vld [vmem:[%s4712_s1 + $0xb8] sm:$0xff]  ;;  %v3445_v0 = vld [vmem:[%s3954_s21 + $0x10] sm:$0xff]  ;;  %v3471_v14 = vld [vmem:[%s4712_s1 + $0x60] sm:$0xff] }
  0x5e   : > { %v3447_v1 = vld [vmem:[%s3954_s21 + $0x20] sm:$0xff]  ;;  %v3473_v4 = vld [vmem:[%s4712_s1 + $0x70] sm:$0xff]  ;;  %v3472_v10 = vld [vmem:[%s4712_s1 + $0x68] sm:$0xff] }
  0x5f   : > { %3590 = vmatpush.bf16.msra.mxu1 %v3457_v55  ;;  %3591 = vmatpush.bf16.msra.mxu2 %v3457_v55  ;;  %v3506_v2 = vld [vmem:[%s4712_s1 + $0xf8] sm:$0xff]  ;;  %v3489_v5 = vld [vmem:[%s4712_s1 + $0xb0] sm:$0xff]  ;;  %v3488_v11 = vld [vmem:[%s4712_s1 + $0xa8] sm:$0xff] }
  0x60   : > { %3592 = vmatpush.bf16.msra.mxu3 %v3457_v55  ;;  %542 = vmatpush.bf16.msra.mxu0 %v3457_v55  ;;  %v3522_v3 = vld [vmem:[%s4712_s1 + $0x138] sm:$0xff]  ;;  %v3449_v6 = vld [vmem:[%s3954_s21 + $0x30] sm:$0xff]  ;;  %v3487_v15 = vld [vmem:[%s4712_s1 + $0xa0] sm:$0xff] }
  0x61   : > { %v3443_v7 = vld [vmem:[%s3954_s21] sm:$0xff]  ;;  %v3505_v8 = vld [vmem:[%s4712_s1 + $0xf0] sm:$0xff]  ;;  %v3504_v12 = vld [vmem:[%s4712_s1 + $0xe8] sm:$0xff] }
  0x62   : > { %v3521_v9 = vld [vmem:[%s4712_s1 + $0x130] sm:$0xff]  ;;  %v3520_v13 = vld [vmem:[%s4712_s1 + $0x128] sm:$0xff]  ;;  %v3503_v16 = vld [vmem:[%s4712_s1 + $0xe0] sm:$0xff] }
  0x63   : > { %3593 = vmatpush.bf16.msra.mxu1 %v3456_v56  ;;  %3594 = vmatpush.bf16.msra.mxu2 %v3456_v56  ;;  %v3519_v17 = vld [vmem:[%s4712_s1 + $0x120] sm:$0xff]  ;;  %v3470_v18 = vld [vmem:[%s4712_s1 + $0x58] sm:$0xff]  ;;  %v3469_v24 = vld [vmem:[%s4712_s1 + $0x50] sm:$0xff] }
  0x64   : > { %3595 = vmatpush.bf16.msra.mxu3 %v3456_v56  ;;  %543 = vmatpush.bf16.msra.mxu0 %v3456_v56  ;;  %v3486_v19 = vld [vmem:[%s4712_s1 + $0x98] sm:$0xff]  ;;  %v3448_v21 = vld [vmem:[%s3954_s21 + $0x28] sm:$0xff]  ;;  %v3485_v25 = vld [vmem:[%s4712_s1 + $0x90] sm:$0xff] }
  0x65   : > { %v3446_v20 = vld [vmem:[%s3954_s21 + $0x18] sm:$0xff]  ;;  %v3444_v27 = vld [vmem:[%s3954_s21 + $0x8] sm:$0xff]  ;;  %v3475_v45 = vld [vmem:[%s3954_s21 + $0x90] sm:$0xff] }
  0x66   : > { %v3502_v22 = vld [vmem:[%s4712_s1 + $0xd8] sm:$0xff]  ;;  %v3501_v28 = vld [vmem:[%s4712_s1 + $0xd0] sm:$0xff]  ;;  %v3468_v30 = vld [vmem:[%s4712_s1 + $0x48] sm:$0xff] }
  0x67   : > { %3596 = vmatpush.bf16.msra.mxu1 %v3455_v57  ;;  %3597 = vmatpush.bf16.msra.mxu2 %v3455_v57  ;;  %v3518_v23 = vld [vmem:[%s4712_s1 + $0x118] sm:$0xff]  ;;  %v3517_v29 = vld [vmem:[%s4712_s1 + $0x110] sm:$0xff]  ;;  %v3484_v31 = vld [vmem:[%s4712_s1 + $0x88] sm:$0xff] }
  0x68   : > { %3598 = vmatpush.bf16.msra.mxu3 %v3455_v57  ;;  %544 = vmatpush.bf16.msra.mxu0 %v3455_v57  ;;  %v3450_v26 = vld [vmem:[%s3954_s21 + $0x38] sm:$0xff]  ;;  %v3500_v32 = vld [vmem:[%s4712_s1 + $0xc8] sm:$0xff]  ;;  %v3467_v34 = vld [vmem:[%s4712_s1 + $0x40] sm:$0xff] }
  0x69   : > { %v3516_v33 = vld [vmem:[%s4712_s1 + $0x108] sm:$0xff]  ;;  %v3483_v35 = vld [vmem:[%s4712_s1 + $0x80] sm:$0xff]  ;;  %v3538_v36 = vld [vmem:[%s4712_s1 + $0x178] sm:$0xff] }
  0x6a   : > { %v3554_v37 = vld [vmem:[%s4712_s1 + $0x1b8] sm:$0xff]  ;;  %v3499_v38 = vld [vmem:[%s4712_s1 + $0xc0] sm:$0xff]  ;;  %v3537_v42 = vld [vmem:[%s4712_s1 + $0x170] sm:$0xff] }
  0x6b   : > { %3599 = vmatpush.bf16.msra.mxu1 %v3454_v58  ;;  %3600 = vmatpush.bf16.msra.mxu2 %v3454_v58  ;;  %v3515_v39 = vld [vmem:[%s4712_s1 + $0x100] sm:$0xff]  ;;  %v3570_v40 = vld [vmem:[%s4712_s1 + $0x1f8] sm:$0xff]  ;;  %v3553_v43 = vld [vmem:[%s4712_s1 + $0x1b0] sm:$0xff] }
  0x6c   : > { %3601 = vmatpush.bf16.msra.mxu3 %v3454_v58  ;;  %545 = vmatpush.bf16.msra.mxu0 %v3454_v58  ;;  %v3586_v41 = vld [vmem:[%s4712_s1 + $0x238] sm:$0xff]  ;;  %v3459_v44 = vld [vmem:[%s3954_s21 + $0x48] sm:$0xff]  ;;  %v3569_v46 = vld [vmem:[%s4712_s1 + $0x1f0] sm:$0xff] }
  0x6d   : > { %v3491_v47 = vld [vmem:[%s3954_s21 + $0x4] sm:$0xff]  ;;  %v3507_v48 = vld [vmem:[%s3954_s21 + $0x4c] sm:$0xff]  ;;  %v3476_v54 = vld [vmem:[%s3954_s21 + $0x98] sm:$0xff] }
  0x6e   : > { %v3536_v49 = vld [vmem:[%s4712_s1 + $0x168] sm:$0xff]  ;;  %v3585_v52 = vld [vmem:[%s4712_s1 + $0x230] sm:$0xff]  ;;  %v3535_v57 = vld [vmem:[%s4712_s1 + $0x160] sm:$0xff] }
  0x6f   : > { %3602 = vmatpush.bf16.msra.mxu1 %v3453_v59  ;;  %3603 = vmatpush.bf16.msra.mxu2 %v3453_v59  ;;  %v3552_v50 = vld [vmem:[%s4712_s1 + $0x1a8] sm:$0xff]  ;;  %v3551_v58 = vld [vmem:[%s4712_s1 + $0x1a0] sm:$0xff] }
  0x70   : > { %3604 = vmatpush.bf16.msra.mxu3 %v3453_v59  ;;  %546 = vmatpush.bf16.msra.mxu0 %v3453_v59  ;;  %v3568_v51 = vld [vmem:[%s4712_s1 + $0x1e8] sm:$0xff]  ;;  %v3567_v59 = vld [vmem:[%s4712_s1 + $0x1e0] sm:$0xff] }
  0x71   : > { %v3460_v53 = vld [vmem:[%s3954_s21 + $0x50] sm:$0xff] }
  0x72   : > { %v3492_v55 = vld [vmem:[%s3954_s21 + $0xc] sm:$0xff]  ;;  %v3508_v56 = vld [vmem:[%s3954_s21 + $0x54] sm:$0xff] }
  0x73   : > { %3605 = vmatpush.bf16.msra.mxu1 %v3452_v60  ;;  %3606 = vmatpush.bf16.msra.mxu2 %v3452_v60 }
  0x74   : > { %3607 = vmatpush.bf16.msra.mxu3 %v3452_v60  ;;  %547 = vmatpush.bf16.msra.mxu0 %v3452_v60  ;;  %v3584_v60 = vld [vmem:[%s4712_s1 + $0x228] sm:$0xff] }
  0x77   : > { %3608 = vmatpush.bf16.msra.mxu1 %v3451_v61  ;;  %3609 = vmatpush.bf16.msra.mxu2 %v3451_v61 }
  0x78   : > { %3610 = vmatpush.bf16.msra.mxu3 %v3451_v61  ;;  %548 = vmatpush.bf16.msra.mxu0 %v3451_v61  ;;  %v3461_v61 = vld [vmem:[%s3954_s21 + $0x58] sm:$0xff] }
  0x7a   : > { %559 = vmatmul.bf16.vlgmr.msra.gmra.mxu1 %v3445_v0  ;;  %569 = vmatmul.bf16.vlgmr.msra.gmra.mxu2 %v3447_v1  ;;  %v3509_v0 = vld [vmem:[%s3954_s21 + $0x5c] sm:$0xff] }
  0x7b   : > { %737 = vmatpush.bf16.msrb.mxu1 %v3474_v62  ;;  %964 = vmatpush.bf16.msrb.mxu2 %v3490_v63  ;;  %v3477_v62 = vld [vmem:[%s3954_s21 + $0xa0] sm:$0xff]  ;;  %v3493_v63 = vld [vmem:[%s3954_s21 + $0x14] sm:$0xff] }
  0x7c   : > { %1191 = vmatpush.bf16.msrb.mxu3 %v3506_v2  ;;  %1418 = vmatpush.bf16.msrb.mxu0 %v3522_v3  ;;  %v3534_v1 = vld [vmem:[%s4712_s1 + $0x158] sm:$0xff] }
  0x7d   : > { %579 = vmatmul.bf16.vlgmr.msra.gmra.mxu3 %v3449_v6  ;;  %549 = vmatmul.bf16.vlgmr.msra.gmra.mxu0 %v3443_v7  ;;  %v3550_v2 = vld [vmem:[%s4712_s1 + $0x198] sm:$0xff]  ;;  %v3478_v6 = vld [vmem:[%s3954_s21 + $0xa8] sm:$0xff] }
  0x7e   : > { %v3566_v3 = vld [vmem:[%s4712_s1 + $0x1d8] sm:$0xff] }
  0x7f   : > { %738 = vmatpush.bf16.msrb.mxu1 %v3473_v4  ;;  %965 = vmatpush.bf16.msrb.mxu2 %v3489_v5  ;;  %v3583_v4 = vld [vmem:[%s4712_s1 + $0x220] sm:$0xff] }
  0x80   : > { %1192 = vmatpush.bf16.msrb.mxu3 %v3505_v8  ;;  %1419 = vmatpush.bf16.msrb.mxu0 %v3521_v9  ;;  %v3462_v5 = vld [vmem:[%s3954_s21 + $0x60] sm:$0xff]  ;;  %v3533_v9 = vld [vmem:[%s4712_s1 + $0x150] sm:$0xff] }
  0x81   : > { %v3494_v7 = vld [vmem:[%s3954_s21 + $0x1c] sm:$0xff]  ;;  %v3510_v8 = vld [vmem:[%s3954_s21 + $0x64] sm:$0xff] }
  0x83   : > { %739 = vmatpush.bf16.msrb.mxu1 %v3472_v10  ;;  %966 = vmatpush.bf16.msrb.mxu2 %v3488_v11  ;;  %v3549_v10 = vld [vmem:[%s4712_s1 + $0x190] sm:$0xff]  ;;  %v3463_v11 = vld [vmem:[%s3954_s21 + $0x68] sm:$0xff] }
  0x84   : > { %1193 = vmatpush.bf16.msrb.mxu3 %v3504_v12  ;;  %1420 = vmatpush.bf16.msrb.mxu0 %v3520_v13  ;;  %v3479_v12 = vld [vmem:[%s3954_s21 + $0xb0] sm:$0xff] }
  0x85   : > { %v3565_v13 = vld [vmem:[%s4712_s1 + $0x1d0] sm:$0xff] }
  0x87   : > { %740 = vmatpush.bf16.msrb.mxu1 %v3471_v14  ;;  %967 = vmatpush.bf16.msrb.mxu2 %v3487_v15  ;;  %v3582_v14 = vld [vmem:[%s4712_s1 + $0x218] sm:$0xff] }
  0x88   : > { %1194 = vmatpush.bf16.msrb.mxu3 %v3503_v16  ;;  %1421 = vmatpush.bf16.msrb.mxu0 %v3519_v17  ;;  %v3495_v15 = vld [vmem:[%s3954_s21 + $0x24] sm:$0xff]  ;;  %v3511_v16 = vld [vmem:[%s3954_s21 + $0x6c] sm:$0xff] }
  0x89   : > { %v3532_v17 = vld [vmem:[%s4712_s1 + $0x148] sm:$0xff] }
  0x8a   : > { %564 = vmatmul.bf16.gmra.mxu1 %v3446_v20  ;;  %574 = vmatmul.bf16.gmra.mxu2 %v3448_v21  ;;  %v3480_v20 = vld [vmem:[%s3954_s21 + $0xb8] sm:$0xff]  ;;  %v3564_v21 = vld [vmem:[%s4712_s1 + $0x1c8] sm:$0xff] }
  0x8b   : > { %741 = vmatpush.bf16.msrb.mxu1 %v3470_v18  ;;  %968 = vmatpush.bf16.msrb.mxu2 %v3486_v19  ;;  %v3548_v18 = vld [vmem:[%s4712_s1 + $0x188] sm:$0xff] }
  0x8c   : > { %1195 = vmatpush.bf16.msrb.mxu3 %v3502_v22  ;;  %1422 = vmatpush.bf16.msrb.mxu0 %v3518_v23  ;;  %v3464_v19 = vld [vmem:[%s3954_s21 + $0x70] sm:$0xff] }
  0x8d   : > { %584 = vmatmul.bf16.gmra.mxu3 %v3450_v26  ;;  %554 = vmatmul.bf16.gmra.mxu0 %v3444_v27  ;;  %v3581_v22 = vld [vmem:[%s4712_s1 + $0x210] sm:$0xff]  ;;  %v3547_v26 = vld [vmem:[%s4712_s1 + $0x180] sm:$0xff] }
  0x8e   : > { %v3496_v23 = vld [vmem:[%s3954_s21 + $0x2c] sm:$0xff]  ;;  %v3465_v27 = vld [vmem:[%s3954_s21 + $0x78] sm:$0xff] }
  0x8f   : > { %742 = vmatpush.bf16.msrb.mxu1 %v3469_v24  ;;  %969 = vmatpush.bf16.msrb.mxu2 %v3485_v25  ;;  %v3512_v24 = vld [vmem:[%s3954_s21 + $0x74] sm:$0xff]  ;;  %v3531_v25 = vld [vmem:[%s4712_s1 + $0x140] sm:$0xff] }
  0x90   : > { %1196 = vmatpush.bf16.msrb.mxu3 %v3501_v28  ;;  %1423 = vmatpush.bf16.msrb.mxu0 %v3517_v29  ;;  %v3481_v28 = vld [vmem:[%s3954_s21 + $0xc0] sm:$0xff] }
  0x93   : > { %743 = vmatpush.bf16.msrb.mxu1 %v3468_v30  ;;  %970 = vmatpush.bf16.msrb.mxu2 %v3484_v31  ;;  %v3497_v30 = vld [vmem:[%s3954_s21 + $0x34] sm:$0xff]  ;;  %v3513_v31 = vld [vmem:[%s3954_s21 + $0x7c] sm:$0xff] }
  0x94   : > { %1197 = vmatpush.bf16.msrb.mxu3 %v3500_v32  ;;  %1424 = vmatpush.bf16.msrb.mxu0 %v3516_v33  ;;  %v3563_v33 = vld [vmem:[%s4712_s1 + $0x1c0] sm:$0xff] }
  0x97   : > { %744 = vmatpush.bf16.msrb.mxu1 %v3467_v34  ;;  %971 = vmatpush.bf16.msrb.mxu2 %v3483_v35  ;;  %v3580_v34 = vld [vmem:[%s4712_s1 + $0x208] sm:$0xff] }
  0x98   : > { %1198 = vmatpush.bf16.msrb.mxu3 %v3499_v38  ;;  %1425 = vmatpush.bf16.msrb.mxu0 %v3515_v39 }
  0x9a   : > { %745 = vmatmul.bf16.vlgmr.msrb.gmra.mxu1 %v3459_v44  ;;  %972 = vmatmul.bf16.vlgmr.msrb.gmra.mxu2 %v3475_v45  ;;  %v3498_v44 = vld [vmem:[%s3954_s21 + $0x3c] sm:$0xff]  ;;  %v3514_v45 = vld [vmem:[%s3954_s21 + $0x84] sm:$0xff] }
  0x9b   : > { %1645 = vmatpush.bf16.msra.mxu1 %v3538_v36  ;;  %1872 = vmatpush.bf16.msra.mxu2 %v3554_v37 }
  0x9c   : > { %2099 = vmatpush.bf16.msra.mxu3 %v3570_v40  ;;  %2326 = vmatpush.bf16.msra.mxu0 %v3586_v41  ;;  %v3466_v40 = vld [vmem:[%s3954_s21 + $0x80] sm:$0xff]  ;;  %v3482_v41 = vld [vmem:[%s3954_s21 + $0xc8] sm:$0xff] }
  0x9d   : > { %1199 = vmatmul.bf16.vlgmr.msrb.gmra.mxu3 %v3491_v47  ;;  %1426 = vmatmul.bf16.vlgmr.msrb.gmra.mxu0 %v3507_v48  ;;  %v3579_v47 = vld [vmem:[%s4712_s1 + $0x200] sm:$0xff] }
  0x9f   : > { %1646 = vmatpush.bf16.msra.mxu1 %v3537_v42  ;;  %1873 = vmatpush.bf16.msra.mxu2 %v3553_v43 }
  0xa0   : > { %2100 = vmatpush.bf16.msra.mxu3 %v3569_v46  ;;  %2327 = vmatpush.bf16.msra.mxu0 %v3585_v52 }
  0xa3   : > { %1647 = vmatpush.bf16.msra.mxu1 %v3536_v49  ;;  %1874 = vmatpush.bf16.msra.mxu2 %v3552_v50 }
  0xa4   : > { %2101 = vmatpush.bf16.msra.mxu3 %v3568_v51  ;;  %2328 = vmatpush.bf16.msra.mxu0 %v3584_v60  ;;  %v3571_v60 = vld [vmem:[%s3954_s21 + $0x98] sm:$0xff] }
  0xa7   : > { %1648 = vmatpush.bf16.msra.mxu1 %v3535_v57  ;;  %1875 = vmatpush.bf16.msra.mxu2 %v3551_v58 }
  0xa8   : > { %2102 = vmatpush.bf16.msra.mxu3 %v3567_v59  ;;  %2329 = vmatpush.bf16.msra.mxu0 %v3583_v4  ;;  %v3555_v59 = vld [vmem:[%s3954_s21 + $0x50] sm:$0xff] }
  0xaa   : > { %750 = vmatmul.bf16.gmra.mxu1 %v3460_v53  ;;  %977 = vmatmul.bf16.gmra.mxu2 %v3476_v54  ;;  %v3523_v54 = vld [vmem:[%s3954_s21 + $0x94] sm:$0xff] }
  0xab   : > { %1649 = vmatpush.bf16.msra.mxu1 %v3534_v1  ;;  %1876 = vmatpush.bf16.msra.mxu2 %v3550_v2 }
  0xac   : > { %2103 = vmatpush.bf16.msra.mxu3 %v3566_v3  ;;  %2330 = vmatpush.bf16.msra.mxu0 %v3582_v14  ;;  %v3556_v14 = vld [vmem:[%s3954_s21 + $0x58] sm:$0xff] }
  0xad   : > { %1204 = vmatmul.bf16.gmra.mxu3 %v3492_v55  ;;  %1431 = vmatmul.bf16.gmra.mxu0 %v3508_v56  ;;  %v3539_v55 = vld [vmem:[%s3954_s21 + $0x8] sm:$0xff] }
  0xaf   : > { %1650 = vmatpush.bf16.msra.mxu1 %v3533_v9  ;;  %1877 = vmatpush.bf16.msra.mxu2 %v3549_v10  ;;  %v3540_v9 = vld [vmem:[%s3954_s21 + $0x10] sm:$0xff] }
  0xb0   : > { %2104 = vmatpush.bf16.msra.mxu3 %v3565_v13  ;;  %2331 = vmatpush.bf16.msra.mxu0 %v3581_v22 }
  0xb3   : > { %1651 = vmatpush.bf16.msra.mxu1 %v3532_v17  ;;  %1878 = vmatpush.bf16.msra.mxu2 %v3548_v18 }
  0xb4   : > { %2105 = vmatpush.bf16.msra.mxu3 %v3564_v21  ;;  %2332 = vmatpush.bf16.msra.mxu0 %v3580_v34  ;;  %v3541_v34 = vld [vmem:[%s3954_s21 + $0x18] sm:$0xff] }
  0xb7   : > { %1652 = vmatpush.bf16.msra.mxu1 %v3531_v25  ;;  %1879 = vmatpush.bf16.msra.mxu2 %v3547_v26 }
  0xb8   : > { %2106 = vmatpush.bf16.msra.mxu3 %v3563_v33  ;;  %2333 = vmatpush.bf16.msra.mxu0 %v3579_v47  ;;  %v3525_v33 = vld [vmem:[%s3954_s21 + $0xa4] sm:$0xff] }
  0xba   : > { %755 = vmatmul.bf16.gmra.mxu1 %v3461_v61  ;;  %982 = vmatmul.bf16.gmra.mxu2 %v3477_v62 }
  0xbd   : > { %1209 = vmatmul.bf16.gmra.mxu3 %v3493_v63  ;;  %1436 = vmatmul.bf16.gmra.mxu0 %v3509_v0 }
  0xca   : > { %760 = vmatmul.bf16.gmra.mxu1 %v3462_v5  ;;  %987 = vmatmul.bf16.gmra.mxu2 %v3478_v6 }
  0xcd   : > { %1214 = vmatmul.bf16.gmra.mxu3 %v3494_v7  ;;  %1441 = vmatmul.bf16.gmra.mxu0 %v3510_v8  ;;  %v3524_v8 = vld [vmem:[%s3954_s21 + $0x9c] sm:$0xff] }
  0xda   : > { %765 = vmatmul.bf16.gmra.mxu1 %v3463_v11  ;;  %992 = vmatmul.bf16.gmra.mxu2 %v3479_v12 }
  0xdd   : > { %1219 = vmatmul.bf16.gmra.mxu3 %v3495_v15  ;;  %1446 = vmatmul.bf16.gmra.mxu0 %v3511_v16  ;;  %v3572_v15 = vld [vmem:[%s3954_s21 + $0xa0] sm:$0xff] }
  0xea   : > { %770 = vmatmul.bf16.gmra.mxu1 %v3464_v19  ;;  %997 = vmatmul.bf16.gmra.mxu2 %v3480_v20 }
  0xed   : > { %1224 = vmatmul.bf16.gmra.mxu3 %v3496_v23  ;;  %1451 = vmatmul.bf16.gmra.mxu0 %v3512_v24 }
  0xf7   : > { %v560_v29 = vpop.f32.mrf.mxu1 }
  0xf8   : > { %595 = vst.msk [vmem:[%s4169_s19 + $0x20] sm:$0xff] %vm590_vm0, %v560_v29 }
  0xfa   : > { %775 = vmatmul.bf16.gmra.mxu1 %v3465_v27  ;;  %1002 = vmatmul.bf16.gmra.mxu2 %v3481_v28  ;;  %v550_v32 = vpop.f32.mrf.mxu0 }
  0xfb   : > { %591 = vst.msk [vmem:[%s4169_s19] sm:$0xff] %vm590_vm0, %v550_v32 }
  0xfd   : > { %v570_v35 = vpop.f32.mrf.mxu2  ;;  %1229 = vmatmul.bf16.gmra.mxu3 %v3497_v30  ;;  %1456 = vmatmul.bf16.gmra.mxu0 %v3513_v31 }
  0xfe   : > { %599 = vst.msk [vmem:[%s4169_s19 + $0x40] sm:$0xff] %vm590_vm0, %v570_v35 }
  0xff   : > { %v562_v36 = vpop.f32.mrf.mxu1 }
 0x100   : > { %596 = vst.msk [vmem:[%s4169_s19 + $0x28] sm:$0xff] %vm590_vm0, %v562_v36  ;;  %v580_v37 = vpop.f32.mrf.mxu3  ;;  %v790_v36 = vld [vmem:[%s4169_s19 + $0x20] sm:$0xff] }
 0x101   : > { %603 = vst.msk [vmem:[%s4169_s19 + $0x60] sm:$0xff] %vm590_vm0, %v580_v37 }
 0x102   : > { %v552_v38 = vpop.f32.mrf.mxu0  ;;  %v786_v53 = vld [vmem:[%s4169_s19] sm:$0xff] }
 0x103   : > { %592 = vst.msk [vmem:[%s4169_s19 + $0x8] sm:$0xff] %vm590_vm0, %v552_v38 }
 0x105   : > { %v572_v39 = vpop.f32.mrf.mxu2 }
 0x106   : > { %600 = vst.msk [vmem:[%s4169_s19 + $0x48] sm:$0xff] %vm590_vm0, %v572_v39 }
 0x107   : > { %v565_v42 = vpop.f32.mrf.mxu1 }
 0x108   : > { %597 = vst.msk [vmem:[%s4169_s19 + $0x30] sm:$0xff] %vm590_vm0, %v565_v42  ;;  %v582_v43 = vpop.f32.mrf.mxu3 }
 0x109   : > { %604 = vst.msk [vmem:[%s4169_s19 + $0x68] sm:$0xff] %vm590_vm0, %v582_v43 }
 0x10a   : > { %780 = vmatmul.bf16.gmra.mxu1 %v3466_v40  ;;  %1007 = vmatmul.bf16.gmra.mxu2 %v3482_v41  ;;  %v555_v46 = vpop.f32.mrf.mxu0  ;;  %v787_v0 = vld [vmem:[%s4169_s19 + $0x8] sm:$0xff]  ;;  %v3573_v41 = vld [vmem:[%s3954_s21 + $0xa8] sm:$0xff] }
 0x10b   : > { %593 = vst.msk [vmem:[%s4169_s19 + $0x10] sm:$0xff] %vm590_vm0, %v555_v46  ;;  %v3557_v40 = vld [vmem:[%s3954_s21 + $0x60] sm:$0xff] }
 0x10d   : > { %v575_v48 = vpop.f32.mrf.mxu2  ;;  %1234 = vmatmul.bf16.gmra.mxu3 %v3498_v44  ;;  %1461 = vmatmul.bf16.gmra.mxu0 %v3514_v45 }
 0x10e   : > { %601 = vst.msk [vmem:[%s4169_s19 + $0x50] sm:$0xff] %vm590_vm0, %v575_v48 }
 0x10f   : > { %v567_v49 = vpop.f32.mrf.mxu1 }
 0x110   : > { %598 = vst.msk [vmem:[%s4169_s19 + $0x38] sm:$0xff] %vm590_vm0, %v567_v49  ;;  %v585_v50 = vpop.f32.mrf.mxu3 }
 0x111   : > { %605 = vst.msk [vmem:[%s4169_s19 + $0x70] sm:$0xff] %vm590_vm0, %v585_v50  ;;  %v791_v50 = vld [vmem:[%s4169_s19 + $0x28] sm:$0xff] }
 0x112   : > { %v557_v51 = vpop.f32.mrf.mxu0  ;;  %v788_v7 = vld [vmem:[%s4169_s19 + $0x10] sm:$0xff] }
 0x113   : > { %594 = vst.msk [vmem:[%s4169_s19 + $0x18] sm:$0xff] %vm590_vm0, %v557_v51 }
 0x115   : > { %v577_v52 = vpop.f32.mrf.mxu2 }
 0x116   : > { %602 = vst.msk [vmem:[%s4169_s19 + $0x58] sm:$0xff] %vm590_vm0, %v577_v52 }
 0x117   : > { %v746_v56 = vpop.f32.mrf.mxu1 }
 0x118   : > { %v802_v57 = vadd.f32 %v786_v53, %v746_v56  ;;  %v587_v58 = vpop.f32.mrf.mxu3 }
 0x119   : > { %606 = vst.msk [vmem:[%s4169_s19 + $0x78] sm:$0xff] %vm590_vm0, %v587_v58 }
 0x11a   : > { %818 = vst.msk [vmem:[%s4169_s19] sm:$0xff] %vm590_vm0, %v802_v57  ;;  %1653 = vmatmul.bf16.vlgmr.msra.gmra.mxu1 %v3523_v54  ;;  %1880 = vmatmul.bf16.vlgmr.msra.gmra.mxu2 %v3539_v55  ;;  %v1427_v61 = vpop.f32.mrf.mxu0  ;;  %v789_v22 = vld [vmem:[%s4169_s19 + $0x18] sm:$0xff] }
 0x11d   : > { %v973_v62 = vpop.f32.mrf.mxu2  ;;  %2107 = vmatmul.bf16.vlgmr.msra.gmra.mxu3 %v3555_v59  ;;  %2334 = vmatmul.bf16.vlgmr.msra.gmra.mxu0 %v3571_v60 }
 0x11f   : > { %v748_v63 = vpop.f32.mrf.mxu1 }
 0x120   : > { %v803_v1 = vadd.f32 %v787_v0, %v748_v63  ;;  %v1200_v2 = vpop.f32.mrf.mxu3  ;;  %v792_v0 = vld [vmem:[%s4169_s19 + $0x30] sm:$0xff] }
 0x121   : > { %v1013_v3 = vld [vmem:[%s4169_s19] sm:$0xff] }
 0x122   : > { %v1029_v4 = vadd.f32 %v1013_v3, %v973_v62  ;;  %819 = vst.msk [vmem:[%s4169_s19 + $0x8] sm:$0xff] %vm590_vm0, %v803_v1  ;;  %v1429_v5 = vpop.f32.mrf.mxu0  ;;  %v3542_v62 = vld [vmem:[%s3954_s21 + $0x20] sm:$0xff] }
 0x124   : > { %1045 = vst.msk [vmem:[%s4169_s19] sm:$0xff] %vm590_vm0, %v1029_v4  ;;  %v3558_v4 = vld [vmem:[%s3954_s21 + $0x68] sm:$0xff] }
 0x125   : > { %v975_v6 = vpop.f32.mrf.mxu2 }
 0x127   : > { %v751_v10 = vpop.f32.mrf.mxu1 }
 0x128   : > { %v804_v11 = vadd.f32 %v788_v7, %v751_v10  ;;  %v1202_v12 = vpop.f32.mrf.mxu3 }
 0x129   : > { %v1014_v13 = vld [vmem:[%s4169_s19 + $0x8] sm:$0xff] }
 0x12a   : > { %v1030_v16 = vadd.f32 %v1014_v13, %v975_v6  ;;  %820 = vst.msk [vmem:[%s4169_s19 + $0x10] sm:$0xff] %vm590_vm0, %v804_v11  ;;  %1658 = vmatmul.bf16.gmra.mxu1 %v3524_v8  ;;  %1885 = vmatmul.bf16.gmra.mxu2 %v3540_v9  ;;  %v1432_v17 = vpop.f32.mrf.mxu0 }
 0x12b   : > { %v1240_v18 = vld [vmem:[%s4169_s19] sm:$0xff] }
 0x12c   : > { %v1256_v19 = vadd.f32 %v1240_v18, %v1200_v2  ;;  %1046 = vst.msk [vmem:[%s4169_s19 + $0x8] sm:$0xff] %vm590_vm0, %v1030_v16 }
 0x12d   : > { %v978_v20 = vpop.f32.mrf.mxu2  ;;  %2112 = vmatmul.bf16.gmra.mxu3 %v3556_v14  ;;  %2339 = vmatmul.bf16.gmra.mxu0 %v3572_v15  ;;  %v793_v14 = vld [vmem:[%s4169_s19 + $0x38] sm:$0xff] }
 0x12e   : > { %1272 = vst.msk [vmem:[%s4169_s19] sm:$0xff] %vm590_vm0, %v1256_v19 }
 0x12f   : > { %v753_v21 = vpop.f32.mrf.mxu1 }
 0x130   : > { %v805_v23 = vadd.f32 %v789_v22, %v753_v21  ;;  %v1205_v24 = vpop.f32.mrf.mxu3 }
 0x131   : > { %v1015_v25 = vld [vmem:[%s4169_s19 + $0x10] sm:$0xff] }
 0x132   : > { %v1031_v26 = vadd.f32 %v1015_v25, %v978_v20  ;;  %821 = vst.msk [vmem:[%s4169_s19 + $0x18] sm:$0xff] %vm590_vm0, %v805_v23  ;;  %v4248_v27 = vpop.f32.mrf.mxu0  ;;  %v3527_v25 = vld [vmem:[%s3954_s21 + $0xb4] sm:$0xff] }
 0x133   : > { %v1241_v28 = vld [vmem:[%s4169_s19 + $0x8] sm:$0xff] }
 0x134   : > { %v1257_v29 = vadd.f32 %v1241_v28, %v1202_v12  ;;  %1047 = vst.msk [vmem:[%s4169_s19 + $0x10] sm:$0xff] %vm590_vm0, %v1031_v26  ;;  %v3543_v26 = vld [vmem:[%s3954_s21 + $0x28] sm:$0xff]  ;;  %v794_v28 = vld [vmem:[%s4169_s19 + $0x40] sm:$0xff] }
 0x135   : > { %v1467_v30 = vld [vmem:[%s4169_s19] sm:$0xff]  ;;  %v980_v31 = vpop.f32.mrf.mxu2 }
 0x136   : > { %1273 = vst.msk [vmem:[%s4169_s19 + $0x8] sm:$0xff] %vm590_vm0, %v1257_v29  ;;  %v1483_v32 = vadd.f32 %v1467_v30, %v1427_v61  ;;  %v3526_v61 = vld [vmem:[%s3954_s21 + $0xac] sm:$0xff] }
 0x137   : > { %v756_v35 = vpop.f32.mrf.mxu1 }
 0x138   : > { %1499 = vst.msk [vmem:[%s4169_s19] sm:$0xff] %vm590_vm0, %v1483_v32  ;;  %v806_v37 = vadd.f32 %v790_v36, %v756_v35  ;;  %v1207_v38 = vpop.f32.mrf.mxu3  ;;  %v3559_v32 = vld [vmem:[%s3954_s21 + $0x70] sm:$0xff] }
 0x139   : > { %v1016_v39 = vld [vmem:[%s4169_s19 + $0x18] sm:$0xff] }
 0x13a   : > { %v1032_v42 = vadd.f32 %v1016_v39, %v980_v31  ;;  %822 = vst.msk [vmem:[%s4169_s19 + $0x20] sm:$0xff] %vm590_vm0, %v806_v37  ;;  %1663 = vmatmul.bf16.gmra.mxu1 %v3525_v33  ;;  %1890 = vmatmul.bf16.gmra.mxu2 %v3541_v34  ;;  %v4266_v43 = vpop.f32.mrf.mxu0  ;;  %v3575_v33 = vld [vmem:[%s3954_s21 + $0xb8] sm:$0xff] }
 0x13b   : > { %v1242_v44 = vld [vmem:[%s4169_s19 + $0x10] sm:$0xff] }
 0x13c   : > { %v1258_v45 = vadd.f32 %v1242_v44, %v1205_v24  ;;  %1048 = vst.msk [vmem:[%s4169_s19 + $0x18] sm:$0xff] %vm590_vm0, %v1032_v42  ;;  %v795_v42 = vld [vmem:[%s4169_s19 + $0x48] sm:$0xff] }
 0x13d   : > { %v1468_v46 = vld [vmem:[%s4169_s19 + $0x8] sm:$0xff]  ;;  %v983_v47 = vpop.f32.mrf.mxu2  ;;  %2117 = vmatmul.bf16.gmra.mxu3 %v3557_v40  ;;  %2344 = vmatmul.bf16.gmra.mxu0 %v3573_v41 }
 0x13e   : > { %1274 = vst.msk [vmem:[%s4169_s19 + $0x10] sm:$0xff] %vm590_vm0, %v1258_v45  ;;  %v1484_v48 = vadd.f32 %v1468_v46, %v1429_v5  ;;  %v3574_v5 = vld [vmem:[%s3954_s21 + $0xb0] sm:$0xff] }
 0x13f   : > { %v758_v49 = vpop.f32.mrf.mxu1 }
 0x140   : > { %1500 = vst.msk [vmem:[%s4169_s19 + $0x8] sm:$0xff] %vm590_vm0, %v1484_v48  ;;  %v807_v51 = vadd.f32 %v791_v50, %v758_v49  ;;  %v1210_v52 = vpop.f32.mrf.mxu3 }
 0x141   : > { %v1017_v53 = vld [vmem:[%s4169_s19 + $0x20] sm:$0xff] }
 0x142   : > { %v1033_v54 = vadd.f32 %v1017_v53, %v983_v47  ;;  %823 = vst.msk [vmem:[%s4169_s19 + $0x28] sm:$0xff] %vm590_vm0, %v807_v51  ;;  %v4280_v55 = vpop.f32.mrf.mxu0  ;;  %v3528_v53 = vld [vmem:[%s3954_s21 + $0xbc] sm:$0xff] }
 0x143   : > { %v1243_v56 = vld [vmem:[%s4169_s19 + $0x18] sm:$0xff] }
 0x144   : > { %v1259_v57 = vadd.f32 %v1243_v56, %v1207_v38  ;;  %1049 = vst.msk [vmem:[%s4169_s19 + $0x20] sm:$0xff] %vm590_vm0, %v1033_v54  ;;  %v3544_v54 = vld [vmem:[%s3954_s21 + $0x30] sm:$0xff]  ;;  %v796_v56 = vld [vmem:[%s4169_s19 + $0x50] sm:$0xff] }
 0x145   : > { %v1469_v58 = vld [vmem:[%s4169_s19 + $0x10] sm:$0xff]  ;;  %v985_v59 = vpop.f32.mrf.mxu2 }
 0x146   : > { %1275 = vst.msk [vmem:[%s4169_s19 + $0x18] sm:$0xff] %vm590_vm0, %v1259_v57  ;;  %v1485_v60 = vadd.f32 %v1469_v58, %v1432_v17 }
 0x147   : > { %v761_v63 = vpop.f32.mrf.mxu1 }
 0x148   : > { %1501 = vst.msk [vmem:[%s4169_s19 + $0x10] sm:$0xff] %vm590_vm0, %v1485_v60  ;;  %v808_v1 = vadd.f32 %v792_v0, %v761_v63  ;;  %v1212_v2 = vpop.f32.mrf.mxu3  ;;  %v3560_v60 = vld [vmem:[%s3954_s21 + $0x78] sm:$0xff] }
 0x149   : > { %v1018_v3 = vld [vmem:[%s4169_s19 + $0x28] sm:$0xff] }
 0x14a   : > { %v1034_v6 = vadd.f32 %v1018_v3, %v985_v59  ;;  %824 = vst.msk [vmem:[%s4169_s19 + $0x30] sm:$0xff] %vm590_vm0, %v808_v1  ;;  %1668 = vmatmul.bf16.gmra.mxu1 %v3526_v61  ;;  %1895 = vmatmul.bf16.gmra.mxu2 %v3542_v62  ;;  %v4298_v7 = vpop.f32.mrf.mxu0  ;;  %v3576_v61 = vld [vmem:[%s3954_s21 + $0xc0] sm:$0xff] }
 0x14b   : > { %v1244_v8 = vld [vmem:[%s4169_s19 + $0x20] sm:$0xff] }
 0x14c   : > { %v1260_v9 = vadd.f32 %v1244_v8, %v1210_v52  ;;  %1050 = vst.msk [vmem:[%s4169_s19 + $0x28] sm:$0xff] %vm590_vm0, %v1034_v6  ;;  %v797_v6 = vld [vmem:[%s4169_s19 + $0x58] sm:$0xff] }
 0x14d   : > { %v1470_v10 = vld [vmem:[%s4169_s19 + $0x18] sm:$0xff]  ;;  %v988_v11 = vpop.f32.mrf.mxu2  ;;  %2122 = vmatmul.bf16.gmra.mxu3 %v3558_v4  ;;  %2349 = vmatmul.bf16.gmra.mxu0 %v3574_v5 }
 0x14e   : > { %1276 = vst.msk [vmem:[%s4169_s19 + $0x20] sm:$0xff] %vm590_vm0, %v1260_v9  ;;  %v1486_v12 = vadd.f32 %v1470_v10, %v4248_v27 }
 0x14f   : > { %v763_v13 = vpop.f32.mrf.mxu1 }
 0x150   : > { %1502 = vst.msk [vmem:[%s4169_s19 + $0x18] sm:$0xff] %vm590_vm0, %v1486_v12  ;;  %v809_v15 = vadd.f32 %v793_v14, %v763_v13  ;;  %v1215_v16 = vpop.f32.mrf.mxu3 }
 0x151   : > { %v1019_v17 = vld [vmem:[%s4169_s19 + $0x30] sm:$0xff] }
 0x152   : > { %v1035_v18 = vadd.f32 %v1019_v17, %v988_v11  ;;  %825 = vst.msk [vmem:[%s4169_s19 + $0x38] sm:$0xff] %vm590_vm0, %v809_v15  ;;  %v4313_v19 = vpop.f32.mrf.mxu0  ;;  %v3529_v17 = vld [vmem:[%s3954_s21 + $0xc4] sm:$0xff] }
 0x153   : > { %v1245_v20 = vld [vmem:[%s4169_s19 + $0x28] sm:$0xff] }
 0x154   : > { %v1261_v21 = vadd.f32 %v1245_v20, %v1212_v2  ;;  %1051 = vst.msk [vmem:[%s4169_s19 + $0x30] sm:$0xff] %vm590_vm0, %v1035_v18  ;;  %v3545_v18 = vld [vmem:[%s3954_s21 + $0x38] sm:$0xff] }
 0x155   : > { %v1471_v22 = vld [vmem:[%s4169_s19 + $0x20] sm:$0xff]  ;;  %v990_v23 = vpop.f32.mrf.mxu2 }
 0x156   : > { %1277 = vst.msk [vmem:[%s4169_s19 + $0x28] sm:$0xff] %vm590_vm0, %v1261_v21  ;;  %v1487_v24 = vadd.f32 %v1471_v22, %v4266_v43  ;;  %v798_v20 = vld [vmem:[%s4169_s19 + $0x60] sm:$0xff] }
 0x157   : > { %v766_v27 = vpop.f32.mrf.mxu1 }
 0x158   : > { %1503 = vst.msk [vmem:[%s4169_s19 + $0x20] sm:$0xff] %vm590_vm0, %v1487_v24  ;;  %v810_v29 = vadd.f32 %v794_v28, %v766_v27  ;;  %v1217_v30 = vpop.f32.mrf.mxu3  ;;  %v3561_v24 = vld [vmem:[%s3954_s21 + $0x80] sm:$0xff] }
 0x159   : > { %v1020_v31 = vld [vmem:[%s4169_s19 + $0x38] sm:$0xff] }
 0x15a   : > { %v1036_v34 = vadd.f32 %v1020_v31, %v990_v23  ;;  %826 = vst.msk [vmem:[%s4169_s19 + $0x40] sm:$0xff] %vm590_vm0, %v810_v29  ;;  %1673 = vmatmul.bf16.gmra.mxu1 %v3527_v25  ;;  %1900 = vmatmul.bf16.gmra.mxu2 %v3543_v26  ;;  %v4332_v35 = vpop.f32.mrf.mxu0  ;;  %v3577_v25 = vld [vmem:[%s3954_s21 + $0xc8] sm:$0xff] }
 0x15b   : > { %v1246_v36 = vld [vmem:[%s4169_s19 + $0x30] sm:$0xff] }
 0x15c   : > { %v1262_v37 = vadd.f32 %v1246_v36, %v1215_v16  ;;  %1052 = vst.msk [vmem:[%s4169_s19 + $0x38] sm:$0xff] %vm590_vm0, %v1036_v34  ;;  %v799_v34 = vld [vmem:[%s4169_s19 + $0x68] sm:$0xff] }
 0x15d   : > { %v1472_v38 = vld [vmem:[%s4169_s19 + $0x28] sm:$0xff]  ;;  %v993_v39 = vpop.f32.mrf.mxu2  ;;  %2127 = vmatmul.bf16.gmra.mxu3 %v3559_v32  ;;  %2354 = vmatmul.bf16.gmra.mxu0 %v3575_v33 }
 0x15e   : > { %1278 = vst.msk [vmem:[%s4169_s19 + $0x30] sm:$0xff] %vm590_vm0, %v1262_v37  ;;  %v1488_v40 = vadd.f32 %v1472_v38, %v4280_v55 }
 0x15f   : > { %v768_v41 = vpop.f32.mrf.mxu1 }
 0x160   : > { %1504 = vst.msk [vmem:[%s4169_s19 + $0x28] sm:$0xff] %vm590_vm0, %v1488_v40  ;;  %v811_v43 = vadd.f32 %v795_v42, %v768_v41  ;;  %v1220_v44 = vpop.f32.mrf.mxu3 }
 0x161   : > { %v1021_v45 = vld [vmem:[%s4169_s19 + $0x40] sm:$0xff] }
 0x162   : > { %v1037_v46 = vadd.f32 %v1021_v45, %v993_v39  ;;  %827 = vst.msk [vmem:[%s4169_s19 + $0x48] sm:$0xff] %vm590_vm0, %v811_v43  ;;  %v4347_v47 = vpop.f32.mrf.mxu0  ;;  %v3530_v45 = vld [vmem:[%s3954_s21 + $0xcc] sm:$0xff] }
 0x163   : > { %v1247_v48 = vld [vmem:[%s4169_s19 + $0x38] sm:$0xff] }
 0x164   : > { %v1263_v49 = vadd.f32 %v1247_v48, %v1217_v30  ;;  %1053 = vst.msk [vmem:[%s4169_s19 + $0x40] sm:$0xff] %vm590_vm0, %v1037_v46  ;;  %v3546_v46 = vld [vmem:[%s3954_s21 + $0x40] sm:$0xff] }
 0x165   : > { %v1473_v50 = vld [vmem:[%s4169_s19 + $0x30] sm:$0xff]  ;;  %v995_v51 = vpop.f32.mrf.mxu2 }
 0x166   : > { %1279 = vst.msk [vmem:[%s4169_s19 + $0x38] sm:$0xff] %vm590_vm0, %v1263_v49  ;;  %v1489_v52 = vadd.f32 %v1473_v50, %v4298_v7  ;;  %v800_v48 = vld [vmem:[%s4169_s19 + $0x70] sm:$0xff] }
 0x167   : > { %v771_v55 = vpop.f32.mrf.mxu1 }
 0x168   : > { %1505 = vst.msk [vmem:[%s4169_s19 + $0x30] sm:$0xff] %vm590_vm0, %v1489_v52  ;;  %v812_v57 = vadd.f32 %v796_v56, %v771_v55  ;;  %v1222_v58 = vpop.f32.mrf.mxu3  ;;  %v3562_v52 = vld [vmem:[%s3954_s21 + $0x88] sm:$0xff] }
 0x169   : > { %v1022_v59 = vld [vmem:[%s4169_s19 + $0x48] sm:$0xff] }
 0x16a   : > { %v1038_v62 = vadd.f32 %v1022_v59, %v995_v51  ;;  %828 = vst.msk [vmem:[%s4169_s19 + $0x50] sm:$0xff] %vm590_vm0, %v812_v57  ;;  %1678 = vmatmul.bf16.gmra.mxu1 %v3528_v53  ;;  %1905 = vmatmul.bf16.gmra.mxu2 %v3544_v54  ;;  %v4366_v63 = vpop.f32.mrf.mxu0  ;;  %v3578_v53 = vld [vmem:[%s3954_s21 + $0xd0] sm:$0xff]  ;;  %s3439_s21 = sshll.u32 (%p3790_p6), %s3713_s12, 5 }
 0x16b   : > { %v1248_v0 = vld [vmem:[%s4169_s19 + $0x40] sm:$0xff]  ;;  %s2431_s27 = sadd.s32 (%p3790_p6), %s3709_s11, %s3439_s21 }
 0x16c   : > { %v1264_v1 = vadd.f32 %v1248_v0, %v1220_v44  ;;  %1054 = vst.msk [vmem:[%s4169_s19 + $0x48] sm:$0xff] %vm590_vm0, %v1038_v62  ;;  %v801_v62 = vld [vmem:[%s4169_s19 + $0x78] sm:$0xff]  ;;  %s3440_s28 = sshll.u32 (%p3790_p6), %s2431_s27, 3 }
 0x16d   : > { %v1474_v2 = vld [vmem:[%s4169_s19 + $0x38] sm:$0xff]  ;;  %v998_v3 = vpop.f32.mrf.mxu2  ;;  %2132 = vmatmul.bf16.gmra.mxu3 %v3560_v60  ;;  %2359 = vmatmul.bf16.gmra.mxu0 %v3576_v61  ;;  %s2433_s20 = scalar_lea.vmem (%p3790_p6), %s4713_s2, %s3440_s28 }
 0x16e   : > { %1280 = vst.msk [vmem:[%s4169_s19 + $0x40] sm:$0xff] %vm590_vm0, %v1264_v1  ;;  %v1490_v4 = vadd.f32 %v1474_v2, %v4313_v19 }
 0x16f   : > { %v773_v5 = vpop.f32.mrf.mxu1 }
 0x170   : > { %1506 = vst.msk [vmem:[%s4169_s19 + $0x38] sm:$0xff] %vm590_vm0, %v1490_v4  ;;  %v813_v7 = vadd.f32 %v797_v6, %v773_v5  ;;  %v1225_v8 = vpop.f32.mrf.mxu3 }
 0x171   : > { %v1023_v9 = vld [vmem:[%s4169_s19 + $0x50] sm:$0xff] }
 0x172   : > { %v1039_v10 = vadd.f32 %v1023_v9, %v998_v3  ;;  %829 = vst.msk [vmem:[%s4169_s19 + $0x58] sm:$0xff] %vm590_vm0, %v813_v7  ;;  %v4381_v11 = vpop.f32.mrf.mxu0 }
 0x173   : > { %v1249_v12 = vld [vmem:[%s4169_s19 + $0x48] sm:$0xff] }
 0x174   : > { %v1265_v13 = vadd.f32 %v1249_v12, %v1222_v58  ;;  %1055 = vst.msk [vmem:[%s4169_s19 + $0x50] sm:$0xff] %vm590_vm0, %v1039_v10  ;;  %v1694_v10 = vld [vmem:[%s4169_s19] sm:$0xff] }
 0x175   : > { %v1475_v14 = vld [vmem:[%s4169_s19 + $0x40] sm:$0xff]  ;;  %v1000_v15 = vpop.f32.mrf.mxu2 }
 0x176   : > { %1281 = vst.msk [vmem:[%s4169_s19 + $0x48] sm:$0xff] %vm590_vm0, %v1265_v13  ;;  %v1491_v16 = vadd.f32 %v1475_v14, %v4332_v35 }
 0x177   : > { %v776_v19 = vpop.f32.mrf.mxu1 }
 0x178   : > { %1507 = vst.msk [vmem:[%s4169_s19 + $0x40] sm:$0xff] %vm590_vm0, %v1491_v16  ;;  %v814_v21 = vadd.f32 %v798_v20, %v776_v19  ;;  %v1227_v22 = vpop.f32.mrf.mxu3 }
 0x179   : > { %v1024_v23 = vld [vmem:[%s4169_s19 + $0x58] sm:$0xff] }
 0x17a   : > { %v1040_v26 = vadd.f32 %v1024_v23, %v1000_v15  ;;  %830 = vst.msk [vmem:[%s4169_s19 + $0x60] sm:$0xff] %vm590_vm0, %v814_v21  ;;  %1683 = vmatmul.bf16.gmra.mxu1 %v3529_v17  ;;  %1910 = vmatmul.bf16.gmra.mxu2 %v3545_v18  ;;  %v4400_v27 = vpop.f32.mrf.mxu0 }
 0x17b   : > { %v1250_v28 = vld [vmem:[%s4169_s19 + $0x50] sm:$0xff] }
 0x17c   : > { %v1266_v29 = vadd.f32 %v1250_v28, %v1225_v8  ;;  %1056 = vst.msk [vmem:[%s4169_s19 + $0x58] sm:$0xff] %vm590_vm0, %v1040_v26 }
 0x17d   : > { %v1476_v30 = vld [vmem:[%s4169_s19 + $0x48] sm:$0xff]  ;;  %v1003_v31 = vpop.f32.mrf.mxu2  ;;  %2137 = vmatmul.bf16.gmra.mxu3 %v3561_v24  ;;  %2364 = vmatmul.bf16.gmra.mxu0 %v3577_v25 }
 0x17e   : > { %1282 = vst.msk [vmem:[%s4169_s19 + $0x50] sm:$0xff] %vm590_vm0, %v1266_v29  ;;  %v1492_v32 = vadd.f32 %v1476_v30, %v4347_v47 }
 0x17f   : > { %v778_v33 = vpop.f32.mrf.mxu1 }
 0x180   : > { %1508 = vst.msk [vmem:[%s4169_s19 + $0x48] sm:$0xff] %vm590_vm0, %v1492_v32  ;;  %v815_v35 = vadd.f32 %v799_v34, %v778_v33  ;;  %v1230_v36 = vpop.f32.mrf.mxu3  ;;  %v1696_v34 = vld [vmem:[%s4169_s19 + $0x10] sm:$0xff] }
 0x181   : > { %v1025_v37 = vld [vmem:[%s4169_s19 + $0x60] sm:$0xff] }
 0x182   : > { %v1041_v38 = vadd.f32 %v1025_v37, %v1003_v31  ;;  %831 = vst.msk [vmem:[%s4169_s19 + $0x68] sm:$0xff] %vm590_vm0, %v815_v35  ;;  %v4415_v39 = vpop.f32.mrf.mxu0 }
 0x183   : > { %v1251_v40 = vld [vmem:[%s4169_s19 + $0x58] sm:$0xff] }
 0x184   : > { %v1267_v41 = vadd.f32 %v1251_v40, %v1227_v22  ;;  %1057 = vst.msk [vmem:[%s4169_s19 + $0x60] sm:$0xff] %vm590_vm0, %v1041_v38  ;;  %v1695_v22 = vld [vmem:[%s4169_s19 + $0x8] sm:$0xff] }
 0x185   : > { %v1477_v42 = vld [vmem:[%s4169_s19 + $0x50] sm:$0xff]  ;;  %v1005_v43 = vpop.f32.mrf.mxu2 }
 0x186   : > { %1283 = vst.msk [vmem:[%s4169_s19 + $0x58] sm:$0xff] %vm590_vm0, %v1267_v41  ;;  %v1493_v44 = vadd.f32 %v1477_v42, %v4366_v63 }
 0x187   : > { %v781_v47 = vpop.f32.mrf.mxu1 }
 0x188   : > { %1509 = vst.msk [vmem:[%s4169_s19 + $0x50] sm:$0xff] %vm590_vm0, %v1493_v44  ;;  %v816_v49 = vadd.f32 %v800_v48, %v781_v47  ;;  %v1232_v50 = vpop.f32.mrf.mxu3 }
 0x189   : > { %v1026_v51 = vld [vmem:[%s4169_s19 + $0x68] sm:$0xff] }
 0x18a   : > { %v1042_v54 = vadd.f32 %v1026_v51, %v1005_v43  ;;  %832 = vst.msk [vmem:[%s4169_s19 + $0x70] sm:$0xff] %vm590_vm0, %v816_v49  ;;  %1688 = vmatmul.bf16.gmra.mxu1 %v3530_v45  ;;  %1915 = vmatmul.bf16.gmra.mxu2 %v3546_v46  ;;  %v1462_v55 = vpop.f32.mrf.mxu0  ;;  %v1697_v46 = vld [vmem:[%s4169_s19 + $0x18] sm:$0xff] }
 0x18b   : > { %v1252_v56 = vld [vmem:[%s4169_s19 + $0x60] sm:$0xff] }
 0x18c   : > { %v1268_v57 = vadd.f32 %v1252_v56, %v1230_v36  ;;  %1058 = vst.msk [vmem:[%s4169_s19 + $0x68] sm:$0xff] %vm590_vm0, %v1042_v54 }
 0x18d   : > { %v1478_v58 = vld [vmem:[%s4169_s19 + $0x58] sm:$0xff]  ;;  %v1008_v59 = vpop.f32.mrf.mxu2  ;;  %2142 = vmatmul.bf16.gmra.mxu3 %v3562_v52  ;;  %2369 = vmatmul.bf16.gmra.mxu0 %v3578_v53 }
 0x18e   : > { %1284 = vst.msk [vmem:[%s4169_s19 + $0x60] sm:$0xff] %vm590_vm0, %v1268_v57  ;;  %v1494_v60 = vadd.f32 %v1478_v58, %v4381_v11  ;;  %v1698_v58 = vld [vmem:[%s4169_s19 + $0x20] sm:$0xff] }
 0x18f   : > { %v783_v61 = vpop.f32.mrf.mxu1 }
 0x190   : > { %1510 = vst.msk [vmem:[%s4169_s19 + $0x58] sm:$0xff] %vm590_vm0, %v1494_v60  ;;  %v817_v63 = vadd.f32 %v801_v62, %v783_v61  ;;  %v1235_v0 = vpop.f32.mrf.mxu3 }
 0x191   : > { %v1027_v1 = vld [vmem:[%s4169_s19 + $0x70] sm:$0xff] }
 0x192   : > { %v1043_v2 = vadd.f32 %v1027_v1, %v1008_v59  ;;  %833 = vst.msk [vmem:[%s4169_s19 + $0x78] sm:$0xff] %vm590_vm0, %v817_v63  ;;  %v1464_v3 = vpop.f32.mrf.mxu0 }
 0x193   : > { %v1253_v4 = vld [vmem:[%s4169_s19 + $0x68] sm:$0xff] }
 0x194   : > { %v1269_v5 = vadd.f32 %v1253_v4, %v1232_v50  ;;  %1059 = vst.msk [vmem:[%s4169_s19 + $0x70] sm:$0xff] %vm590_vm0, %v1043_v2 }
 0x195   : > { %v1479_v6 = vld [vmem:[%s4169_s19 + $0x60] sm:$0xff]  ;;  %v1010_v7 = vpop.f32.mrf.mxu2 }
 0x196   : > { %1285 = vst.msk [vmem:[%s4169_s19 + $0x68] sm:$0xff] %vm590_vm0, %v1269_v5  ;;  %v1495_v8 = vadd.f32 %v1479_v6, %v4400_v27  ;;  %v1699_v6 = vld [vmem:[%s4169_s19 + $0x28] sm:$0xff] }
 0x197   : > { %v1654_v9 = vpop.f32.mrf.mxu1 }
 0x198   : > { %1511 = vst.msk [vmem:[%s4169_s19 + $0x60] sm:$0xff] %vm590_vm0, %v1495_v8  ;;  %v1710_v11 = vadd.f32 %v1694_v10, %v1654_v9  ;;  %v1237_v12 = vpop.f32.mrf.mxu3 }
 0x199   : > { %v1028_v13 = vld [vmem:[%s4169_s19 + $0x78] sm:$0xff] }
 0x19a   : > { %v1044_v14 = vadd.f32 %v1028_v13, %v1010_v7  ;;  %1726 = vst.msk [vmem:[%s4169_s19] sm:$0xff] %vm590_vm0, %v1710_v11  ;;  %v2335_v15 = vpop.f32.mrf.mxu0 }
 0x19b   : > { %v1254_v16 = vld [vmem:[%s4169_s19 + $0x70] sm:$0xff] }
 0x19c   : > { %v1270_v17 = vadd.f32 %v1254_v16, %v1235_v0  ;;  %1060 = vst.msk [vmem:[%s4169_s19 + $0x78] sm:$0xff] %vm590_vm0, %v1044_v14 }
 0x19d   : > { %v1480_v18 = vld [vmem:[%s4169_s19 + $0x68] sm:$0xff]  ;;  %v1881_v19 = vpop.f32.mrf.mxu2 }
 0x19e   : > { %1286 = vst.msk [vmem:[%s4169_s19 + $0x70] sm:$0xff] %vm590_vm0, %v1270_v17  ;;  %v1496_v20 = vadd.f32 %v1480_v18, %v4415_v39  ;;  %v1700_v17 = vld [vmem:[%s4169_s19 + $0x30] sm:$0xff] }
 0x19f   : > { %v1656_v21 = vpop.f32.mrf.mxu1 }
 0x1a0   : > { %1512 = vst.msk [vmem:[%s4169_s19 + $0x68] sm:$0xff] %vm590_vm0, %v1496_v20  ;;  %v1711_v23 = vadd.f32 %v1695_v22, %v1656_v21  ;;  %v2108_v24 = vpop.f32.mrf.mxu3 }
 0x1a1   : > { %v1921_v25 = vld [vmem:[%s4169_s19] sm:$0xff] }
 0x1a2   : > { %v1937_v26 = vadd.f32 %v1921_v25, %v1881_v19  ;;  %1727 = vst.msk [vmem:[%s4169_s19 + $0x8] sm:$0xff] %vm590_vm0, %v1711_v23  ;;  %v2337_v27 = vpop.f32.mrf.mxu0 }
 0x1a3   : > { %v1255_v28 = vld [vmem:[%s4169_s19 + $0x78] sm:$0xff] }
 0x1a4   : > { %v1271_v29 = vadd.f32 %v1255_v28, %v1237_v12  ;;  %1953 = vst.msk [vmem:[%s4169_s19] sm:$0xff] %vm590_vm0, %v1937_v26 }
 0x1a5   : > { %v1481_v30 = vld [vmem:[%s4169_s19 + $0x70] sm:$0xff]  ;;  %v1883_v31 = vpop.f32.mrf.mxu2 }
 0x1a6   : > { %1287 = vst.msk [vmem:[%s4169_s19 + $0x78] sm:$0xff] %vm590_vm0, %v1271_v29  ;;  %v1497_v32 = vadd.f32 %v1481_v30, %v1462_v55  ;;  %v1701_v29 = vld [vmem:[%s4169_s19 + $0x38] sm:$0xff] }
 0x1a7   : > { %v1659_v33 = vpop.f32.mrf.mxu1 }
 0x1a8   : > { %1513 = vst.msk [vmem:[%s4169_s19 + $0x70] sm:$0xff] %vm590_vm0, %v1497_v32  ;;  %v1712_v35 = vadd.f32 %v1696_v34, %v1659_v33  ;;  %v2110_v36 = vpop.f32.mrf.mxu3 }
 0x1a9   : > { %v1922_v37 = vld [vmem:[%s4169_s19 + $0x8] sm:$0xff] }
 0x1aa   : > { %v1938_v38 = vadd.f32 %v1922_v37, %v1883_v31  ;;  %1728 = vst.msk [vmem:[%s4169_s19 + $0x10] sm:$0xff] %vm590_vm0, %v1712_v35  ;;  %v2340_v39 = vpop.f32.mrf.mxu0 }
 0x1ab   : > { %v2148_v40 = vld [vmem:[%s4169_s19] sm:$0xff] }
 0x1ac   : > { %v2164_v41 = vadd.f32 %v2148_v40, %v2108_v24  ;;  %1954 = vst.msk [vmem:[%s4169_s19 + $0x8] sm:$0xff] %vm590_vm0, %v1938_v38 }
 0x1ad   : > { %v1482_v42 = vld [vmem:[%s4169_s19 + $0x78] sm:$0xff]  ;;  %v1886_v43 = vpop.f32.mrf.mxu2 }
 0x1ae   : > { %2180 = vst.msk [vmem:[%s4169_s19] sm:$0xff] %vm590_vm0, %v2164_v41  ;;  %v1498_v44 = vadd.f32 %v1482_v42, %v1464_v3  ;;  %v1702_v41 = vld [vmem:[%s4169_s19 + $0x40] sm:$0xff] }
 0x1af   : > { %v1661_v45 = vpop.f32.mrf.mxu1 }
 0x1b0   : > { %1514 = vst.msk [vmem:[%s4169_s19 + $0x78] sm:$0xff] %vm590_vm0, %v1498_v44  ;;  %v1713_v47 = vadd.f32 %v1697_v46, %v1661_v45  ;;  %v2113_v48 = vpop.f32.mrf.mxu3 }
 0x1b1   : > { %v1923_v49 = vld [vmem:[%s4169_s19 + $0x10] sm:$0xff] }
 0x1b2   : > { %v1939_v50 = vadd.f32 %v1923_v49, %v1886_v43  ;;  %1729 = vst.msk [vmem:[%s4169_s19 + $0x18] sm:$0xff] %vm590_vm0, %v1713_v47  ;;  %v2342_v53 = vpop.f32.mrf.mxu0 }
 0x1b3   : > { %v2149_v51 = vld [vmem:[%s4169_s19 + $0x8] sm:$0xff] }
 0x1b4   : > { %v2165_v52 = vadd.f32 %v2149_v51, %v2110_v36  ;;  %1955 = vst.msk [vmem:[%s4169_s19 + $0x10] sm:$0xff] %vm590_vm0, %v1939_v50 }
 0x1b5   : > { %v2375_v54 = vld [vmem:[%s4169_s19] sm:$0xff]  ;;  %v1888_v55 = vpop.f32.mrf.mxu2 }
 0x1b6   : > { %2181 = vst.msk [vmem:[%s4169_s19 + $0x8] sm:$0xff] %vm590_vm0, %v2165_v52  ;;  %v2391_v56 = vadd.f32 %v2375_v54, %v2335_v15 }
 0x1b7   : > { %v1664_v57 = vpop.f32.mrf.mxu1 }
 0x1b8   : > { %2407 = vst.msk [vmem:[%s4169_s19] sm:$0xff] %vm590_vm0, %v2391_v56  ;;  %v1714_v59 = vadd.f32 %v1698_v58, %v1664_v57  ;;  %v2115_v60 = vpop.f32.mrf.mxu3 }
 0x1b9   : > { %v1924_v61 = vld [vmem:[%s4169_s19 + $0x18] sm:$0xff] }
 0x1ba   : > { %v1940_v62 = vadd.f32 %v1924_v61, %v1888_v55  ;;  %1730 = vst.msk [vmem:[%s4169_s19 + $0x20] sm:$0xff] %vm590_vm0, %v1714_v59  ;;  %v2345_v4 = vpop.f32.mrf.mxu0 }
 0x1bb   : > { %v2150_v63 = vld [vmem:[%s4169_s19 + $0x10] sm:$0xff] }
 0x1bc   : > { %v2166_v0 = vadd.f32 %v2150_v63, %v2113_v48  ;;  %1956 = vst.msk [vmem:[%s4169_s19 + $0x18] sm:$0xff] %vm590_vm0, %v1940_v62 }
 0x1bd   : > { %v2376_v1 = vld [vmem:[%s4169_s19 + $0x8] sm:$0xff]  ;;  %v1891_v2 = vpop.f32.mrf.mxu2 }
 0x1be   : > { %2182 = vst.msk [vmem:[%s4169_s19 + $0x10] sm:$0xff] %vm590_vm0, %v2166_v0  ;;  %v2392_v3 = vadd.f32 %v2376_v1, %v2337_v27  ;;  %v1704_v1 = vld [vmem:[%s4169_s19 + $0x50] sm:$0xff] }
 0x1bf   : > { %v1666_v5 = vpop.f32.mrf.mxu1 }
 0x1c0   : > { %2408 = vst.msk [vmem:[%s4169_s19 + $0x8] sm:$0xff] %vm590_vm0, %v2392_v3  ;;  %v1715_v7 = vadd.f32 %v1699_v6, %v1666_v5  ;;  %v2118_v8 = vpop.f32.mrf.mxu3 }
 0x1c1   : > { %v1925_v9 = vld [vmem:[%s4169_s19 + $0x20] sm:$0xff] }
 0x1c2   : > { %v1941_v10 = vadd.f32 %v1925_v9, %v1891_v2  ;;  %1731 = vst.msk [vmem:[%s4169_s19 + $0x28] sm:$0xff] %vm590_vm0, %v1715_v7  ;;  %v2347_v20 = vpop.f32.mrf.mxu0 }
 0x1c3   : > { %v2151_v11 = vld [vmem:[%s4169_s19 + $0x18] sm:$0xff] }
 0x1c4   : > { %v2167_v12 = vadd.f32 %v2151_v11, %v2115_v60  ;;  %1957 = vst.msk [vmem:[%s4169_s19 + $0x20] sm:$0xff] %vm590_vm0, %v1941_v10 }
 0x1c5   : > { %v2377_v13 = vld [vmem:[%s4169_s19 + $0x10] sm:$0xff]  ;;  %v1893_v14 = vpop.f32.mrf.mxu2 }
 0x1c6   : > { %2183 = vst.msk [vmem:[%s4169_s19 + $0x18] sm:$0xff] %vm590_vm0, %v2167_v12  ;;  %v2393_v15 = vadd.f32 %v2377_v13, %v2340_v39  ;;  %v1705_v12 = vld [vmem:[%s4169_s19 + $0x58] sm:$0xff] }
 0x1c7   : > { %v1669_v16 = vpop.f32.mrf.mxu1 }
 0x1c8   : > { %2409 = vst.msk [vmem:[%s4169_s19 + $0x10] sm:$0xff] %vm590_vm0, %v2393_v15  ;;  %v1716_v18 = vadd.f32 %v1700_v17, %v1669_v16  ;;  %v2120_v19 = vpop.f32.mrf.mxu3 }
 0x1c9   : > { %v1926_v21 = vld [vmem:[%s4169_s19 + $0x28] sm:$0xff] }
 0x1ca   : > { %v1942_v22 = vadd.f32 %v1926_v21, %v1893_v14  ;;  %1732 = vst.msk [vmem:[%s4169_s19 + $0x30] sm:$0xff] %vm590_vm0, %v1716_v18  ;;  %v2350_v34 = vpop.f32.mrf.mxu0 }
 0x1cb   : > { %v2152_v23 = vld [vmem:[%s4169_s19 + $0x20] sm:$0xff] }
 0x1cc   : > { %v2168_v24 = vadd.f32 %v2152_v23, %v2118_v8  ;;  %1958 = vst.msk [vmem:[%s4169_s19 + $0x28] sm:$0xff] %vm590_vm0, %v1942_v22 }
 0x1cd   : > { %v2378_v25 = vld [vmem:[%s4169_s19 + $0x18] sm:$0xff]  ;;  %v1896_v26 = vpop.f32.mrf.mxu2 }
 0x1ce   : > { %2184 = vst.msk [vmem:[%s4169_s19 + $0x20] sm:$0xff] %vm590_vm0, %v2168_v24  ;;  %v2394_v27 = vadd.f32 %v2378_v25, %v2342_v53  ;;  %v1703_v53 = vld [vmem:[%s4169_s19 + $0x48] sm:$0xff]  ;;  %v1706_v24 = vld [vmem:[%s4169_s19 + $0x60] sm:$0xff] }
 0x1cf   : > { %v1671_v28 = vpop.f32.mrf.mxu1 }
 0x1d0   : > { %2410 = vst.msk [vmem:[%s4169_s19 + $0x18] sm:$0xff] %vm590_vm0, %v2394_v27  ;;  %v1717_v30 = vadd.f32 %v1701_v29, %v1671_v28  ;;  %v2123_v31 = vpop.f32.mrf.mxu3 }
 0x1d1   : > { %v1927_v32 = vld [vmem:[%s4169_s19 + $0x30] sm:$0xff] }
 0x1d2   : > { %v1943_v33 = vadd.f32 %v1927_v32, %v1896_v26  ;;  %1733 = vst.msk [vmem:[%s4169_s19 + $0x38] sm:$0xff] %vm590_vm0, %v1717_v30  ;;  %v2352_v48 = vpop.f32.mrf.mxu0 }
 0x1d3   : > { %v2153_v35 = vld [vmem:[%s4169_s19 + $0x28] sm:$0xff] }
 0x1d4   : > { %v2169_v36 = vadd.f32 %v2153_v35, %v2120_v19  ;;  %1959 = vst.msk [vmem:[%s4169_s19 + $0x30] sm:$0xff] %vm590_vm0, %v1943_v33 }
 0x1d5   : > { %v2379_v37 = vld [vmem:[%s4169_s19 + $0x20] sm:$0xff]  ;;  %v1898_v38 = vpop.f32.mrf.mxu2 }
 0x1d6   : > { %2185 = vst.msk [vmem:[%s4169_s19 + $0x28] sm:$0xff] %vm590_vm0, %v2169_v36  ;;  %v2395_v39 = vadd.f32 %v2379_v37, %v2345_v4  ;;  %v1707_v36 = vld [vmem:[%s4169_s19 + $0x68] sm:$0xff] }
 0x1d7   : > { %v1674_v40 = vpop.f32.mrf.mxu1 }
 0x1d8   : > { %2411 = vst.msk [vmem:[%s4169_s19 + $0x20] sm:$0xff] %vm590_vm0, %v2395_v39  ;;  %v1718_v42 = vadd.f32 %v1702_v41, %v1674_v40  ;;  %v2125_v43 = vpop.f32.mrf.mxu3 }
 0x1d9   : > { %v1928_v44 = vld [vmem:[%s4169_s19 + $0x38] sm:$0xff] }
 0x1da   : > { %v1944_v45 = vadd.f32 %v1928_v44, %v1898_v38  ;;  %1734 = vst.msk [vmem:[%s4169_s19 + $0x40] sm:$0xff] %vm590_vm0, %v1718_v42  ;;  %v2355_v63 = vpop.f32.mrf.mxu0 }
 0x1db   : > { %v2154_v46 = vld [vmem:[%s4169_s19 + $0x30] sm:$0xff] }
 0x1dc   : > { %v2170_v47 = vadd.f32 %v2154_v46, %v2123_v31  ;;  %1960 = vst.msk [vmem:[%s4169_s19 + $0x38] sm:$0xff] %vm590_vm0, %v1944_v45 }
 0x1dd   : > { %v2380_v49 = vld [vmem:[%s4169_s19 + $0x28] sm:$0xff]  ;;  %v1901_v50 = vpop.f32.mrf.mxu2 }
 0x1de   : > { %2186 = vst.msk [vmem:[%s4169_s19 + $0x30] sm:$0xff] %vm590_vm0, %v2170_v47  ;;  %v2396_v51 = vadd.f32 %v2380_v49, %v2347_v20 }
 0x1df   : > { %v1676_v52 = vpop.f32.mrf.mxu1 }
 0x1e0   : > { %2412 = vst.msk [vmem:[%s4169_s19 + $0x28] sm:$0xff] %vm590_vm0, %v2396_v51  ;;  %v1719_v54 = vadd.f32 %v1703_v53, %v1676_v52  ;;  %v2128_v55 = vpop.f32.mrf.mxu3 }
 0x1e1   : > { %v1929_v56 = vld [vmem:[%s4169_s19 + $0x40] sm:$0xff] }
 0x1e2   : > { %v1945_v57 = vadd.f32 %v1929_v56, %v1901_v50  ;;  %1735 = vst.msk [vmem:[%s4169_s19 + $0x48] sm:$0xff] %vm590_vm0, %v1719_v54  ;;  %v2357_v15 = vpop.f32.mrf.mxu0 }
 0x1e3   : > { %v2155_v58 = vld [vmem:[%s4169_s19 + $0x38] sm:$0xff] }
 0x1e4   : > { %v2171_v59 = vadd.f32 %v2155_v58, %v2125_v43  ;;  %1961 = vst.msk [vmem:[%s4169_s19 + $0x40] sm:$0xff] %vm590_vm0, %v1945_v57 }
 0x1e5   : > { %v2381_v60 = vld [vmem:[%s4169_s19 + $0x30] sm:$0xff]  ;;  %v1903_v61 = vpop.f32.mrf.mxu2 }
 0x1e6   : > { %2187 = vst.msk [vmem:[%s4169_s19 + $0x38] sm:$0xff] %vm590_vm0, %v2171_v59  ;;  %v2397_v62 = vadd.f32 %v2381_v60, %v2350_v34  ;;  %v1709_v60 = vld [vmem:[%s4169_s19 + $0x78] sm:$0xff] }
 0x1e7   : > { %v1679_v0 = vpop.f32.mrf.mxu1 }
 0x1e8   : > { %2413 = vst.msk [vmem:[%s4169_s19 + $0x30] sm:$0xff] %vm590_vm0, %v2397_v62  ;;  %v1720_v2 = vadd.f32 %v1704_v1, %v1679_v0  ;;  %v2130_v3 = vpop.f32.mrf.mxu3 }
 0x1e9   : > { %v1930_v4 = vld [vmem:[%s4169_s19 + $0x48] sm:$0xff] }
 0x1ea   : > { %v1946_v5 = vadd.f32 %v1930_v4, %v1903_v61  ;;  %1736 = vst.msk [vmem:[%s4169_s19 + $0x50] sm:$0xff] %vm590_vm0, %v1720_v2  ;;  %v2360_v29 = vpop.f32.mrf.mxu0 }
 0x1eb   : > { %v2156_v6 = vld [vmem:[%s4169_s19 + $0x40] sm:$0xff] }
 0x1ec   : > { %v2172_v7 = vadd.f32 %v2156_v6, %v2128_v55  ;;  %1962 = vst.msk [vmem:[%s4169_s19 + $0x48] sm:$0xff] %vm590_vm0, %v1946_v5 }
 0x1ed   : > { %v2382_v8 = vld [vmem:[%s4169_s19 + $0x38] sm:$0xff]  ;;  %v1906_v9 = vpop.f32.mrf.mxu2 }
 0x1ee   : > { %2188 = vst.msk [vmem:[%s4169_s19 + $0x40] sm:$0xff] %vm590_vm0, %v2172_v7  ;;  %v2398_v10 = vadd.f32 %v2382_v8, %v2352_v48  ;;  %v1708_v48 = vld [vmem:[%s4169_s19 + $0x70] sm:$0xff] }
 0x1ef   : > { %v1681_v11 = vpop.f32.mrf.mxu1 }
 0x1f0   : > { %2414 = vst.msk [vmem:[%s4169_s19 + $0x38] sm:$0xff] %vm590_vm0, %v2398_v10  ;;  %v1721_v13 = vadd.f32 %v1705_v12, %v1681_v11  ;;  %v2133_v14 = vpop.f32.mrf.mxu3 }
 0x1f1   : > { %v1931_v16 = vld [vmem:[%s4169_s19 + $0x50] sm:$0xff] }
 0x1f2   : > { %v1947_v17 = vadd.f32 %v1931_v16, %v1906_v9  ;;  %1737 = vst.msk [vmem:[%s4169_s19 + $0x58] sm:$0xff] %vm590_vm0, %v1721_v13  ;;  %v2362_v43 = vpop.f32.mrf.mxu0 }
 0x1f3   : > { %v2157_v18 = vld [vmem:[%s4169_s19 + $0x48] sm:$0xff] }
 0x1f4   : > { %v2173_v19 = vadd.f32 %v2157_v18, %v2130_v3  ;;  %1963 = vst.msk [vmem:[%s4169_s19 + $0x50] sm:$0xff] %vm590_vm0, %v1947_v17 }
 0x1f5   : > { %v2383_v20 = vld [vmem:[%s4169_s19 + $0x40] sm:$0xff]  ;;  %v1908_v21 = vpop.f32.mrf.mxu2 }
 0x1f6   : > { %2189 = vst.msk [vmem:[%s4169_s19 + $0x48] sm:$0xff] %vm590_vm0, %v2173_v19  ;;  %v2399_v22 = vadd.f32 %v2383_v20, %v2355_v63 }
 0x1f7   : > { %v1684_v23 = vpop.f32.mrf.mxu1 }
 0x1f8   : > { %2415 = vst.msk [vmem:[%s4169_s19 + $0x40] sm:$0xff] %vm590_vm0, %v2399_v22  ;;  %v1722_v25 = vadd.f32 %v1706_v24, %v1684_v23  ;;  %v2135_v28 = vpop.f32.mrf.mxu3  ;;  %v2492_v22 = vld [vmem:[%s4169_s19] sm:$0xff] (%p3790_p6)  ;;  %v2494_v23 = vld [vmem:[%s4169_s19 + $0x8] sm:$0xff] (%p3790_p6)  ;;  %v2496_v24 = vld [vmem:[%s4169_s19 + $0x10] sm:$0xff] (%p3790_p6) }
 0x1f9   : > { %v1932_v26 = vld [vmem:[%s4169_s19 + $0x58] sm:$0xff]  ;;  %2493 = vst [vmem:[%s2433_s20] sm:$0xff] (%p3790_p6), %v2492_v22 }
 0x1fa   : > { %v1948_v27 = vadd.f32 %v1932_v26, %v1908_v21  ;;  %1738 = vst.msk [vmem:[%s4169_s19 + $0x60] sm:$0xff] %vm590_vm0, %v1722_v25  ;;  %v2365_v57 = vpop.f32.mrf.mxu0  ;;  %v2498_v25 = vld [vmem:[%s4169_s19 + $0x18] sm:$0xff] (%p3790_p6)  ;;  %v2500_v26 = vld [vmem:[%s4169_s19 + $0x20] sm:$0xff] (%p3790_p6) }
 0x1fb   : > { %v2158_v30 = vld [vmem:[%s4169_s19 + $0x50] sm:$0xff]  ;;  %2495 = vst [vmem:[%s2433_s20 + $0x10] sm:$0xff] (%p3790_p6), %v2494_v23 }
 0x1fc   : > { %v2174_v31 = vadd.f32 %v2158_v30, %v2133_v14  ;;  %1964 = vst.msk [vmem:[%s4169_s19 + $0x58] sm:$0xff] %vm590_vm0, %v1948_v27  ;;  %v2502_v27 = vld [vmem:[%s4169_s19 + $0x28] sm:$0xff] (%p3790_p6) }
 0x1fd   : > { %v2384_v32 = vld [vmem:[%s4169_s19 + $0x48] sm:$0xff]  ;;  %v1911_v33 = vpop.f32.mrf.mxu2  ;;  %2497 = vst [vmem:[%s2433_s20 + $0x20] sm:$0xff] (%p3790_p6), %v2496_v24 }
 0x1fe   : > { %2190 = vst.msk [vmem:[%s4169_s19 + $0x50] sm:$0xff] %vm590_vm0, %v2174_v31  ;;  %v2400_v34 = vadd.f32 %v2384_v32, %v2357_v15 }
 0x1ff   : > { %v1686_v35 = vpop.f32.mrf.mxu1  ;;  %2499 = vst [vmem:[%s2433_s20 + $0x30] sm:$0xff] (%p3790_p6), %v2498_v25  ;;  %v2508_v30 = vld [vmem:[%s4169_s19 + $0x40] sm:$0xff] (%p3790_p6) }
 0x200   : > { %2416 = vst.msk [vmem:[%s4169_s19 + $0x48] sm:$0xff] %vm590_vm0, %v2400_v34  ;;  %v1723_v37 = vadd.f32 %v1707_v36, %v1686_v35  ;;  %v2138_v42 = vpop.f32.mrf.mxu3 }
 0x201   : > { %v1933_v38 = vld [vmem:[%s4169_s19 + $0x60] sm:$0xff]  ;;  %2501 = vst [vmem:[%s2433_s20 + $0x40] sm:$0xff] (%p3790_p6), %v2500_v26 }
 0x202   : > { %v1949_v39 = vadd.f32 %v1933_v38, %v1911_v33  ;;  %1739 = vst.msk [vmem:[%s4169_s19 + $0x68] sm:$0xff] %vm590_vm0, %v1723_v37  ;;  %v2367_v4 = vpop.f32.mrf.mxu0 }
 0x203   : > { %v2159_v40 = vld [vmem:[%s4169_s19 + $0x58] sm:$0xff]  ;;  %2503 = vst [vmem:[%s2433_s20 + $0x50] sm:$0xff] (%p3790_p6), %v2502_v27 }
 0x204   : > { %v2175_v41 = vadd.f32 %v2159_v40, %v2135_v28  ;;  %1965 = vst.msk [vmem:[%s4169_s19 + $0x60] sm:$0xff] %vm590_vm0, %v1949_v39  ;;  %v2504_v28 = vld [vmem:[%s4169_s19 + $0x30] sm:$0xff] (%p3790_p6) }
 0x205   : > { %v2385_v44 = vld [vmem:[%s4169_s19 + $0x50] sm:$0xff]  ;;  %v1913_v45 = vpop.f32.mrf.mxu2  ;;  %2505 = vst [vmem:[%s2433_s20 + $0x60] sm:$0xff] (%p3790_p6), %v2504_v28 }
 0x206   : > { %2191 = vst.msk [vmem:[%s4169_s19 + $0x58] sm:$0xff] %vm590_vm0, %v2175_v41  ;;  %v2401_v46 = vadd.f32 %v2385_v44, %v2360_v29  ;;  %v2506_v29 = vld [vmem:[%s4169_s19 + $0x38] sm:$0xff] (%p3790_p6) }
 0x207   : > { %v1689_v47 = vpop.f32.mrf.mxu1  ;;  %v2510_v31 = vld [vmem:[%s4169_s19 + $0x48] sm:$0xff] (%p3790_p6)  ;;  %2507 = vst [vmem:[%s2433_s20 + $0x70] sm:$0xff] (%p3790_p6), %v2506_v29 }
 0x208   : > { %2417 = vst.msk [vmem:[%s4169_s19 + $0x50] sm:$0xff] %vm590_vm0, %v2401_v46  ;;  %v1724_v49 = vadd.f32 %v1708_v48, %v1689_v47  ;;  %v2140_v56 = vpop.f32.mrf.mxu3 }
 0x209   : > { %v1934_v50 = vld [vmem:[%s4169_s19 + $0x68] sm:$0xff]  ;;  %2509 = vst [vmem:[%s2433_s20 + $0x80] sm:$0xff] (%p3790_p6), %v2508_v30 }
 0x20a   : > { %v1950_v51 = vadd.f32 %v1934_v50, %v1913_v45  ;;  %1740 = vst.msk [vmem:[%s4169_s19 + $0x70] sm:$0xff] %vm590_vm0, %v1724_v49  ;;  %v2370_v15 = vpop.f32.mrf.mxu0 }
 0x20b   : > { %v2160_v52 = vld [vmem:[%s4169_s19 + $0x60] sm:$0xff]  ;;  %2511 = vst [vmem:[%s2433_s20 + $0x90] sm:$0xff] (%p3790_p6), %v2510_v31 }
 0x20c   : > { %v2176_v53 = vadd.f32 %v2160_v52, %v2138_v42  ;;  %1966 = vst.msk [vmem:[%s4169_s19 + $0x68] sm:$0xff] %vm590_vm0, %v1950_v51 }
 0x20d   : > { %v2386_v54 = vld [vmem:[%s4169_s19 + $0x58] sm:$0xff]  ;;  %v1916_v58 = vpop.f32.mrf.mxu2 }
 0x20e   : > { %2192 = vst.msk [vmem:[%s4169_s19 + $0x60] sm:$0xff] %vm590_vm0, %v2176_v53  ;;  %v2402_v55 = vadd.f32 %v2386_v54, %v2362_v43 }
 0x20f   : > { %v1691_v59 = vpop.f32.mrf.mxu1  ;;  %v2512_v32 = vld [vmem:[%s4169_s19 + $0x50] sm:$0xff] (%p3790_p6) }
 0x210   : > { %2418 = vst.msk [vmem:[%s4169_s19 + $0x58] sm:$0xff] %vm590_vm0, %v2402_v55  ;;  %v1725_v61 = vadd.f32 %v1709_v60, %v1691_v59  ;;  %v2143_v5 = vpop.f32.mrf.mxu3 }
 0x211   : > { %v1935_v62 = vld [vmem:[%s4169_s19 + $0x70] sm:$0xff]  ;;  %2513 = vst [vmem:[%s2433_s20 + $0xa0] sm:$0xff] (%p3790_p6), %v2512_v32 }
 0x212   : > { %v1951_v63 = vadd.f32 %v1935_v62, %v1916_v58  ;;  %1741 = vst.msk [vmem:[%s4169_s19 + $0x78] sm:$0xff] %vm590_vm0, %v1725_v61  ;;  %v2372_v19 = vpop.f32.mrf.mxu0 }
 0x213   : > { %v2161_v0 = vld [vmem:[%s4169_s19 + $0x68] sm:$0xff] }
 0x214   : > { %v2177_v1 = vadd.f32 %v2161_v0, %v2140_v56  ;;  %1967 = vst.msk [vmem:[%s4169_s19 + $0x70] sm:$0xff] %vm590_vm0, %v1951_v63 }
 0x215   : > { %v2387_v2 = vld [vmem:[%s4169_s19 + $0x60] sm:$0xff]  ;;  %v1918_v6 = vpop.f32.mrf.mxu2 }
 0x216   : > { %2193 = vst.msk [vmem:[%s4169_s19 + $0x68] sm:$0xff] %vm590_vm0, %v2177_v1  ;;  %v2403_v3 = vadd.f32 %v2387_v2, %v2365_v57 }
 0x217   : > { %v2514_v33 = vld [vmem:[%s4169_s19 + $0x58] sm:$0xff] (%p3790_p6) }
 0x218   : > { %2419 = vst.msk [vmem:[%s4169_s19 + $0x60] sm:$0xff] %vm590_vm0, %v2403_v3  ;;  %v2145_v13 = vpop.f32.mrf.mxu3 }
 0x219   : > { %v1936_v7 = vld [vmem:[%s4169_s19 + $0x78] sm:$0xff]  ;;  %2515 = vst [vmem:[%s2433_s20 + $0xb0] sm:$0xff] (%p3790_p6), %v2514_v33 }
 0x21a   : > { %v1952_v8 = vadd.f32 %v1936_v7, %v1918_v6 }
 0x21b   : > { %v2162_v9 = vld [vmem:[%s4169_s19 + $0x70] sm:$0xff] }
 0x21c   : > { %v2178_v10 = vadd.f32 %v2162_v9, %v2143_v5  ;;  %1968 = vst.msk [vmem:[%s4169_s19 + $0x78] sm:$0xff] %vm590_vm0, %v1952_v8 }
 0x21d   : > { %v2388_v11 = vld [vmem:[%s4169_s19 + $0x68] sm:$0xff] }
 0x21e   : > { %2194 = vst.msk [vmem:[%s4169_s19 + $0x70] sm:$0xff] %vm590_vm0, %v2178_v10  ;;  %v2404_v12 = vadd.f32 %v2388_v11, %v2367_v4 }
 0x21f   : > { %v2516_v34 = vld [vmem:[%s4169_s19 + $0x60] sm:$0xff] (%p3790_p6) }
 0x220   : > { %2420 = vst.msk [vmem:[%s4169_s19 + $0x68] sm:$0xff] %vm590_vm0, %v2404_v12 }
 0x221   : > { %2517 = vst [vmem:[%s2433_s20 + $0xc0] sm:$0xff] (%p3790_p6), %v2516_v34 }
 0x223   : > { %v2163_v14 = vld [vmem:[%s4169_s19 + $0x78] sm:$0xff] }
 0x224   : > { %v2179_v16 = vadd.f32 %v2163_v14, %v2145_v13 }
 0x225   : > { %v2389_v17 = vld [vmem:[%s4169_s19 + $0x70] sm:$0xff] }
 0x226   : > { %2195 = vst.msk [vmem:[%s4169_s19 + $0x78] sm:$0xff] %vm590_vm0, %v2179_v16  ;;  %v2405_v18 = vadd.f32 %v2389_v17, %v2370_v15 }
 0x227   : > { %v2518_v35 = vld [vmem:[%s4169_s19 + $0x68] sm:$0xff] (%p3790_p6) }
 0x228   : > { %2421 = vst.msk [vmem:[%s4169_s19 + $0x70] sm:$0xff] %vm590_vm0, %v2405_v18 }
 0x229   : > { %2519 = vst [vmem:[%s2433_s20 + $0xd0] sm:$0xff] (%p3790_p6), %v2518_v35 }
 0x22c   : > { %2429 = sbr.rel (!%p3790_p6) target bundleno = 569 (0x239), region = 73 }
 0x22d   : > { %v2390_v20 = vld [vmem:[%s4169_s19 + $0x78] sm:$0xff] }
 0x22e   : > { %v2406_v21 = vadd.f32 %v2390_v20, %v2372_v19 }
 0x22f   : > { %v2520_v36 = vld [vmem:[%s4169_s19 + $0x70] sm:$0xff] (%p3790_p6) }
 0x230   : > { %2422 = vst.msk [vmem:[%s4169_s19 + $0x78] sm:$0xff] %vm590_vm0, %v2406_v21 }
 0x231   : > { %2521 = vst [vmem:[%s2433_s20 + $0xe0] sm:$0xff] %v2520_v36 }
 0x237   : > { %v2522_v37 = vld [vmem:[%s4169_s19 + $0x78] sm:$0xff] }
 0x238   : > { %2523 = vst [vmem:[%s2433_s20 + $0xf0] sm:$0xff] %v2522_v37 }
 0x239 PF: > { %s12_s15 = sadd.s32 1, %s3725_s15   ;;  %s4715_s9 = smov %s3705_s10 }
 0x23a   : > { %p9_p12 = scmp.ge.s32.totalorder %s12_s15, 6   ;;  %s4716_s10 = smov %s3798_s24 }
 0x23b   : > { %s4717_s11 = smov %s3717_s13  ;;  %s4718_s12 = smov %s3721_s14 }
 0x23c   : > { %s4719_s13 = smov %s4722_s16  ;;  %s4720_s14 = smov %s4726_s17 }
 0x23d   :  { %11 = sbr.rel (!%p9_p12) target bundleno = 4 (0x4), region = 158 }

// kernel: densenet_forward.24
= control target key start
LH: loop header
LB: loop body
LE: loop exit
PB: predicated region body
PF: predicated region fallthrough
CT: control target
= control target key end

     0   :  { %s928_s15 = smov 0   ;;  %s930_s16 = smov 0   ;;  %s1147_s0 = inlined_call_operand.vmem [shape: bf16[512,128], index: 0, kind: input, shape index: {}]   ;;  %s1148_s1 = inlined_call_operand.vmem [shape: f32[1,128], index: 1, kind: input, shape index: {}]   ;;  %s1149_s2 = inlined_call_operand.vmem [shape: f32[1,128], index: 2, kind: input, shape index: {}]   ;;  %s1150_s3 = inlined_call_operand.vmem [shape: bf16[128,36], index: 3, kind: input, shape index: {}]   ;;  %s1151_s4 = inlined_call_operand.vmem [shape: f32[512,36], index: 4, kind: output, shape index: {}]  }
   0x1   :  { %s932_s17 = smov 0  }
   0x2 LB: > { %s26_s18 = sadd.s32 1, %s897_s16  ;;  %p703_p0 = scmp.ge.s32.totalorder %s901_s17, 1  ;;  %s901_s17 = sphi %s932_s17, %s14_s17   ;;  %s897_s16 = sphi %s930_s16, %s1153_s16   ;;  %s893_s15 = sphi %s928_s15, %s1152_s15  }
   0x3   : > { %p28_p1 = scmp.ge.s32.totalorder %s26_s18, 2  ;;  %p186_p2 = scmp.lt.s32.totalorder %s901_s17, 3 }
   0x5   : > { %s1155_s18 = smov (%p28_p1, %s26_s18), 0  ;;  %p187_p3 = pnand %p703_p0, %p186_p2 }
   0x6   : > { %s704_s21 = sshll.u32 (!%p187_p3), %s893_s15, 5 }
   0x7   : > { %190 = sbr.rel (%p187_p3) target bundleno = 235 (0xeb), region = 36  ;;  %p220_p4 = scmp.lt.s32.totalorder (!%p187_p3), %s704_s21, 63 }
   0xc   : > { %v749_v0 = vld [vmem:[%s1150_s3 + $0x38] sm:$0xff]  ;;  %v748_v1 = vld [vmem:[%s1150_s3 + $0x30] sm:$0xff]  ;;  %s1157_s21 = smov (!%p220_p4, %s704_s21), 63  ;;  %v747_v2 = vld [vmem:[%s1150_s3 + $0x28] sm:$0xff]  ;;  %vm575_vm0 = vcmask 293888  }
   0xd   : > { %486 = vmatpush.bf16.msra.mxu0 %v749_v0  ;;  %829 = vmatpush.bf16.msra.mxu1 %v749_v0  ;;  %s705_s24 = sshll.u32 %s1157_s21, 2  ;;  %v746_v5 = vld [vmem:[%s1150_s3 + $0x20] sm:$0xff]  ;;  %v745_v15 = vld [vmem:[%s1150_s3 + $0x18] sm:$0xff]  ;;  %v744_v25 = vld [vmem:[%s1150_s3 + $0x10] sm:$0xff]  ;;  %s707_s22 = sshll.u32 %s1157_s21, 3 }
   0xe   : > { %830 = vmatpush.bf16.msra.mxu2 %v749_v0  ;;  %831 = vmatpush.bf16.msra.mxu3 %v749_v0  ;;  %s961_s29 = scalar_lea.vmem %s1147_s0, %s705_s24  ;;  %v973_v10 = vld [vmem:[%s1148_s1] ss:$0 sm:$0xff]  ;;  %v743_v34 = vld [vmem:[%s1150_s3 + $0x8] sm:$0xff]  ;;  %s1072_s25 = scalar_lea.vmem %s1151_s4, %s707_s22 }
   0xf   : > { %v751_v3 = vld [vmem:[%s961_s29] sm:$0xff]   ;;  %v814_v43 = vld [vmem:[%s961_s29 + $0x8] sm:$0xff]  }
  0x10   : > { %v817_v4 = vld [vmem:[%s961_s29 + $0x20] sm:$0xff]   ;;  %v752_v8 = vunpack.c.l.bf16 %v751_v3  ;;  %v753_v9 = vunpack.c.h.bf16 %v751_v3  ;;  %v818_v47 = vld [vmem:[%s961_s29 + $0x28] sm:$0xff]   ;;  %v756_v52 = vunpack.c.l.bf16 %v814_v43  ;;  %v757_v53 = vunpack.c.h.bf16 %v814_v43 }
  0x11   : > { %487 = vmatpush.bf16.msra.mxu0 %v748_v1  ;;  %832 = vmatpush.bf16.msra.mxu1 %v748_v1  ;;  %v821_v6 = vld [vmem:[%s961_s29 + $0x40] sm:$0xff]   ;;  %v768_v11 = vunpack.c.l.bf16 %v817_v4  ;;  %v769_v12 = vunpack.c.h.bf16 %v817_v4  ;;  %v822_v48 = vld [vmem:[%s961_s29 + $0x48] sm:$0xff]   ;;  %v772_v55 = vunpack.c.l.bf16 %v818_v47  ;;  %v773_v56 = vunpack.c.h.bf16 %v818_v47 }
  0x12   : > { %833 = vmatpush.bf16.msra.mxu2 %v748_v1  ;;  %834 = vmatpush.bf16.msra.mxu3 %v748_v1  ;;  %v825_v7 = vld [vmem:[%s961_s29 + $0x60] sm:$0xff]   ;;  %v784_v13 = vunpack.c.l.bf16 %v821_v6  ;;  %v785_v14 = vunpack.c.h.bf16 %v821_v6  ;;  %v306_v18 = vmul.f32 %v973_v10, %v752_v8  ;;  %v307_v19 = vmul.f32 %v973_v10, %v753_v9  ;;  %v826_v49 = vld [vmem:[%s961_s29 + $0x68] sm:$0xff]  }
  0x13   : > { %v800_v16 = vunpack.c.l.bf16 %v825_v7  ;;  %v801_v17 = vunpack.c.h.bf16 %v825_v7  ;;  %v983_v20 = vld [vmem:[%s1149_s2] ss:$0 sm:$0xff]  ;;  %v314_v21 = vmul.f32 %v973_v10, %v768_v11  ;;  %v315_v22 = vmul.f32 %v973_v10, %v769_v12 }
  0x14   : > { %v322_v23 = vmul.f32 %v973_v10, %v784_v13  ;;  %v323_v24 = vmul.f32 %v973_v10, %v785_v14  ;;  %v342_v28 = vadd.f32 %v983_v20, %v306_v18  ;;  %v343_v29 = vadd.f32 %v983_v20, %v307_v19  ;;  %v742_v44 = vld [vmem:[%s1150_s3] sm:$0xff]  ;;  %v815_v19 = vld [vmem:[%s961_s29 + $0x10] sm:$0xff]  }
  0x15   : > { %488 = vmatpush.bf16.msra.mxu0 %v747_v2  ;;  %835 = vmatpush.bf16.msra.mxu1 %v747_v2  ;;  %v330_v26 = vmul.f32 %v973_v10, %v800_v16  ;;  %v331_v27 = vmul.f32 %v973_v10, %v801_v17  ;;  %v350_v30 = vadd.f32 %v983_v20, %v314_v21  ;;  %v788_v57 = vunpack.c.l.bf16 %v822_v48  ;;  %v819_v21 = vld [vmem:[%s961_s29 + $0x30] sm:$0xff]  }
  0x16   : > { %836 = vmatpush.bf16.msra.mxu2 %v747_v2  ;;  %837 = vmatpush.bf16.msra.mxu3 %v747_v2  ;;  %v351_v31 = vadd.f32 %v983_v20, %v315_v22  ;;  %v358_v32 = vadd.f32 %v983_v20, %v322_v23  ;;  %v359_v33 = vadd.f32 %v983_v20, %v323_v24  ;;  %v374_v37 = vmax.f32 %v342_v28, 0.0 }
  0x17   : > { %v366_v35 = vadd.f32 %v983_v20, %v330_v26  ;;  %v367_v36 = vadd.f32 %v983_v20, %v331_v27  ;;  %v375_v38 = vmax.f32 %v343_v29, 0.0  ;;  %v382_v39 = vmax.f32 %v350_v30, 0.0  ;;  %v823_v26 = vld [vmem:[%s961_s29 + $0x50] sm:$0xff]  }
  0x18   : > { %v383_v40 = vmax.f32 %v351_v31, 0.0  ;;  %v390_v41 = vmax.f32 %v358_v32, 0.0  ;;  %v391_v42 = vmax.f32 %v359_v33, 0.0  ;;  %v789_v59 = vunpack.c.h.bf16 %v822_v48  ;;  %v827_v27 = vld [vmem:[%s961_s29 + $0x70] sm:$0xff]  }
  0x19   : > { %489 = vmatpush.bf16.msra.mxu0 %v746_v5  ;;  %838 = vmatpush.bf16.msra.mxu1 %v746_v5  ;;  %v398_v45 = vmax.f32 %v366_v35, 0.0  ;;  %v399_v46 = vmax.f32 %v367_v36, 0.0  ;;  %v406_v50 = vpack.c.bf16 %v375_v38, %v374_v37  ;;  %v804_v60 = vunpack.c.l.bf16 %v826_v49 }
  0x1a   : > { %839 = vmatpush.bf16.msra.mxu2 %v746_v5  ;;  %840 = vmatpush.bf16.msra.mxu3 %v746_v5  ;;  %v410_v51 = vpack.c.bf16 %v383_v40, %v382_v39  ;;  %v414_v54 = vpack.c.bf16 %v391_v42, %v390_v41  ;;  %v805_v61 = vunpack.c.h.bf16 %v826_v49  ;;  %v308_v62 = vmul.f32 %v973_v10, %v756_v52 }
  0x1b   : > { %v418_v58 = vpack.c.bf16 %v399_v46, %v398_v45  ;;  %v309_v63 = vmul.f32 %v973_v10, %v757_v53  ;;  %v316_v0 = vmul.f32 %v973_v10, %v772_v55  ;;  %v317_v1 = vmul.f32 %v973_v10, %v773_v56 }
  0x1c   : > { %v324_v2 = vmul.f32 %v973_v10, %v788_v57  ;;  %v325_v3 = vmul.f32 %v973_v10, %v789_v59  ;;  %v332_v4 = vmul.f32 %v973_v10, %v804_v60  ;;  %v333_v5 = vmul.f32 %v973_v10, %v805_v61 }
  0x1d   : > { %490 = vmatpush.bf16.msra.mxu0 %v745_v15  ;;  %841 = vmatpush.bf16.msra.mxu1 %v745_v15  ;;  %v344_v6 = vadd.f32 %v983_v20, %v308_v62  ;;  %v345_v7 = vadd.f32 %v983_v20, %v309_v63  ;;  %v352_v8 = vadd.f32 %v983_v20, %v316_v0  ;;  %v760_v28 = vunpack.c.l.bf16 %v815_v19  ;;  %v816_v62 = vld [vmem:[%s961_s29 + $0x18] sm:$0xff]  }
  0x1e   : > { %842 = vmatpush.bf16.msra.mxu2 %v745_v15  ;;  %843 = vmatpush.bf16.msra.mxu3 %v745_v15  ;;  %v353_v9 = vadd.f32 %v983_v20, %v317_v1  ;;  %v360_v11 = vadd.f32 %v983_v20, %v324_v2  ;;  %v361_v12 = vadd.f32 %v983_v20, %v325_v3  ;;  %v761_v29 = vunpack.c.h.bf16 %v815_v19  ;;  %v820_v1 = vld [vmem:[%s961_s29 + $0x38] sm:$0xff]  }
  0x1f   : > { %v368_v13 = vadd.f32 %v983_v20, %v332_v4  ;;  %v369_v14 = vadd.f32 %v983_v20, %v333_v5  ;;  %v376_v15 = vmax.f32 %v344_v6, 0.0  ;;  %v377_v16 = vmax.f32 %v345_v7, 0.0  ;;  %v824_v2 = vld [vmem:[%s961_s29 + $0x58] sm:$0xff]  }
  0x20   : > { %v384_v17 = vmax.f32 %v352_v8, 0.0  ;;  %v385_v18 = vmax.f32 %v353_v9, 0.0  ;;  %v392_v22 = vmax.f32 %v360_v11, 0.0  ;;  %v393_v23 = vmax.f32 %v361_v12, 0.0  ;;  %v828_v3 = vld [vmem:[%s961_s29 + $0x78] sm:$0xff]  }
  0x21   : > { %491 = vmatpush.bf16.msra.mxu0 %v744_v25  ;;  %844 = vmatpush.bf16.msra.mxu1 %v744_v25  ;;  %v400_v24 = vmax.f32 %v368_v13, 0.0  ;;  %v776_v30 = vunpack.c.l.bf16 %v819_v21  ;;  %v777_v31 = vunpack.c.h.bf16 %v819_v21  ;;  %v407_v32 = vpack.c.bf16 %v377_v16, %v376_v15 }
  0x22   : > { %845 = vmatpush.bf16.msra.mxu2 %v744_v25  ;;  %846 = vmatpush.bf16.msra.mxu3 %v744_v25  ;;  %v401_v25 = vmax.f32 %v369_v14, 0.0  ;;  %v411_v33 = vpack.c.bf16 %v385_v18, %v384_v17  ;;  %v793_v35 = vunpack.c.h.bf16 %v823_v26  ;;  %v415_v36 = vpack.c.bf16 %v393_v23, %v392_v22 }
  0x23   : > { %v808_v38 = vunpack.c.l.bf16 %v827_v27  ;;  %v809_v39 = vunpack.c.h.bf16 %v827_v27  ;;  %v310_v40 = vmul.f32 %v973_v10, %v760_v28  ;;  %v311_v41 = vmul.f32 %v973_v10, %v761_v29 }
  0x24   : > { %v419_v37 = vpack.c.bf16 %v401_v25, %v400_v24  ;;  %v318_v42 = vmul.f32 %v973_v10, %v776_v30  ;;  %v319_v43 = vmul.f32 %v973_v10, %v777_v31  ;;  %v327_v45 = vmul.f32 %v973_v10, %v793_v35 }
  0x25   : > { %492 = vmatpush.bf16.msra.mxu0 %v743_v34  ;;  %847 = vmatpush.bf16.msra.mxu1 %v743_v34  ;;  %v334_v46 = vmul.f32 %v973_v10, %v808_v38  ;;  %v335_v47 = vmul.f32 %v973_v10, %v809_v39  ;;  %v346_v48 = vadd.f32 %v983_v20, %v310_v40  ;;  %v764_v6 = vunpack.c.l.bf16 %v816_v62 }
  0x26   : > { %848 = vmatpush.bf16.msra.mxu2 %v743_v34  ;;  %849 = vmatpush.bf16.msra.mxu3 %v743_v34  ;;  %v792_v34 = vunpack.c.l.bf16 %v823_v26  ;;  %v347_v49 = vadd.f32 %v983_v20, %v311_v41  ;;  %v363_v53 = vadd.f32 %v983_v20, %v327_v45  ;;  %v765_v7 = vunpack.c.h.bf16 %v816_v62 }
  0x27   : > { %v371_v55 = vadd.f32 %v983_v20, %v335_v47  ;;  %v378_v56 = vmax.f32 %v346_v48, 0.0  ;;  %v780_v9 = vunpack.c.l.bf16 %v820_v1  ;;  %v781_v11 = vunpack.c.h.bf16 %v820_v1 }
  0x28   : > { %v379_v57 = vmax.f32 %v347_v49, 0.0  ;;  %v395_v61 = vmax.f32 %v363_v53, 0.0  ;;  %v796_v12 = vunpack.c.l.bf16 %v824_v2  ;;  %v797_v14 = vunpack.c.h.bf16 %v824_v2 }
  0x29   : > { %493 = vmatpush.bf16.msra.mxu0 %v742_v44  ;;  %850 = vmatpush.bf16.msra.mxu1 %v742_v44  ;;  %v403_v0 = vmax.f32 %v371_v55, 0.0  ;;  %v812_v15 = vunpack.c.l.bf16 %v828_v3  ;;  %v813_v16 = vunpack.c.h.bf16 %v828_v3  ;;  %v312_v17 = vmul.f32 %v973_v10, %v764_v6 }
  0x2a   : > { %851 = vmatpush.bf16.msra.mxu2 %v742_v44  ;;  %852 = vmatpush.bf16.msra.mxu3 %v742_v44  ;;  %v326_v44 = vmul.f32 %v973_v10, %v792_v34  ;;  %v408_v4 = vpack.c.bf16 %v379_v57, %v378_v56  ;;  %v313_v18 = vmul.f32 %v973_v10, %v765_v7 }
  0x2b   : > { %v320_v19 = vmul.f32 %v973_v10, %v780_v9  ;;  %v321_v21 = vmul.f32 %v973_v10, %v781_v11  ;;  %v328_v22 = vmul.f32 %v973_v10, %v796_v12  ;;  %v329_v23 = vmul.f32 %v973_v10, %v797_v14 }
  0x2c   : > { %494 = vmatmul.bf16.vlgmr.msra.gmra.mxu0 %v406_v50  ;;  %514 = vmatmul.bf16.vlgmr.msra.gmra.mxu1 %v410_v51  ;;  %v354_v50 = vadd.f32 %v983_v20, %v318_v42  ;;  %v355_v51 = vadd.f32 %v983_v20, %v319_v43  ;;  %v362_v52 = vadd.f32 %v983_v20, %v326_v44 }
  0x2d   : > { %534 = vmatmul.bf16.vlgmr.msra.gmra.mxu2 %v414_v54  ;;  %554 = vmatmul.bf16.vlgmr.msra.gmra.mxu3 %v418_v58  ;;  %v370_v54 = vadd.f32 %v983_v20, %v334_v46  ;;  %v336_v24 = vmul.f32 %v973_v10, %v812_v15  ;;  %v337_v25 = vmul.f32 %v973_v10, %v813_v16 }
  0x2e   : > { %v386_v58 = vmax.f32 %v354_v50, 0.0  ;;  %v387_v59 = vmax.f32 %v355_v51, 0.0  ;;  %v394_v60 = vmax.f32 %v362_v52, 0.0  ;;  %v348_v26 = vadd.f32 %v983_v20, %v312_v17 }
  0x2f   : > { %v402_v63 = vmax.f32 %v370_v54, 0.0  ;;  %v349_v27 = vadd.f32 %v983_v20, %v313_v18  ;;  %v356_v28 = vadd.f32 %v983_v20, %v320_v19  ;;  %v357_v29 = vadd.f32 %v983_v20, %v321_v21 }
  0x30   : > { %v412_v5 = vpack.c.bf16 %v387_v59, %v386_v58  ;;  %v416_v8 = vpack.c.bf16 %v395_v61, %v394_v60  ;;  %v364_v30 = vadd.f32 %v983_v20, %v328_v22  ;;  %v365_v31 = vadd.f32 %v983_v20, %v329_v23 }
  0x31   : > { %v420_v13 = vpack.c.bf16 %v403_v0, %v402_v63  ;;  %v380_v34 = vmax.f32 %v348_v26, 0.0  ;;  %v381_v35 = vmax.f32 %v349_v27, 0.0  ;;  %v388_v10 = vmax.f32 %v356_v28, 0.0 }
  0x32   : > { %v397_v38 = vmax.f32 %v365_v31, 0.0 }
  0x33   : > { %v409_v41 = vpack.c.bf16 %v381_v35, %v380_v34 }
  0x3c   : > { %499 = vmatmul.bf16.gmra.mxu0 %v407_v32  ;;  %519 = vmatmul.bf16.gmra.mxu1 %v411_v33  ;;  %v372_v32 = vadd.f32 %v983_v20, %v336_v24  ;;  %v373_v33 = vadd.f32 %v983_v20, %v337_v25 }
  0x3d   : > { %539 = vmatmul.bf16.gmra.mxu2 %v415_v36  ;;  %559 = vmatmul.bf16.gmra.mxu3 %v419_v37  ;;  %v389_v36 = vmax.f32 %v357_v29, 0.0  ;;  %v396_v37 = vmax.f32 %v364_v30, 0.0 }
  0x3e   : > { %v404_v39 = vmax.f32 %v372_v32, 0.0  ;;  %v405_v40 = vmax.f32 %v373_v33, 0.0 }
  0x3f   : > { %v413_v42 = vpack.c.bf16 %v389_v36, %v388_v10  ;;  %v417_v43 = vpack.c.bf16 %v397_v38, %v396_v37 }
  0x40   : > { %v421_v44 = vpack.c.bf16 %v405_v40, %v404_v39 }
  0x4c   : > { %504 = vmatmul.bf16.gmra.mxu0 %v408_v4  ;;  %524 = vmatmul.bf16.gmra.mxu1 %v412_v5 }
  0x4d   : > { %544 = vmatmul.bf16.gmra.mxu2 %v416_v8  ;;  %564 = vmatmul.bf16.gmra.mxu3 %v420_v13 }
  0x5c   : > { %509 = vmatmul.bf16.gmra.mxu0 %v409_v41  ;;  %529 = vmatmul.bf16.gmra.mxu1 %v413_v42 }
  0x5d   : > { %549 = vmatmul.bf16.gmra.mxu2 %v417_v43  ;;  %569 = vmatmul.bf16.gmra.mxu3 %v421_v44 }
  0xa9   : > { %v495_v20 = vpop.f32.mrf.mxu0  ;;  %v515_v45 = vpop.f32.mrf.mxu1 }
  0xaa   : > { %576 = vst.msk [vmem:[%s1072_s25] sm:$0xff] %vm575_vm0, %v495_v20 }
  0xab   : > { %584 = vst.msk [vmem:[%s1072_s25 + $0x40] sm:$0xff] %vm575_vm0, %v515_v45 }
  0xb0   : > { %v535_v46 = vpop.f32.mrf.mxu2  ;;  %v555_v47 = vpop.f32.mrf.mxu3 }
  0xb1   : > { %592 = vst.msk [vmem:[%s1072_s25 + $0x80] sm:$0xff] %vm575_vm0, %v535_v46  ;;  %v497_v48 = vpop.f32.mrf.mxu0  ;;  %v517_v49 = vpop.f32.mrf.mxu1 }
  0xb2   : > { %600 = vst.msk [vmem:[%s1072_s25 + $0xc0] sm:$0xff] %vm575_vm0, %v555_v47 }
  0xb3   : > { %577 = vst.msk [vmem:[%s1072_s25 + $0x8] sm:$0xff] %vm575_vm0, %v497_v48 }
  0xb4   : > { %585 = vst.msk [vmem:[%s1072_s25 + $0x48] sm:$0xff] %vm575_vm0, %v517_v49 }
  0xb8   : > { %v537_v50 = vpop.f32.mrf.mxu2  ;;  %v557_v51 = vpop.f32.mrf.mxu3 }
  0xb9   : > { %593 = vst.msk [vmem:[%s1072_s25 + $0x88] sm:$0xff] %vm575_vm0, %v537_v50  ;;  %v500_v52 = vpop.f32.mrf.mxu0  ;;  %v520_v53 = vpop.f32.mrf.mxu1 }
  0xba   : > { %601 = vst.msk [vmem:[%s1072_s25 + $0xc8] sm:$0xff] %vm575_vm0, %v557_v51 }
  0xbb   : > { %578 = vst.msk [vmem:[%s1072_s25 + $0x10] sm:$0xff] %vm575_vm0, %v500_v52 }
  0xbc   : > { %586 = vst.msk [vmem:[%s1072_s25 + $0x50] sm:$0xff] %vm575_vm0, %v520_v53 }
  0xc0   : > { %v540_v54 = vpop.f32.mrf.mxu2  ;;  %v560_v55 = vpop.f32.mrf.mxu3 }
  0xc1   : > { %594 = vst.msk [vmem:[%s1072_s25 + $0x90] sm:$0xff] %vm575_vm0, %v540_v54  ;;  %v502_v56 = vpop.f32.mrf.mxu0  ;;  %v522_v57 = vpop.f32.mrf.mxu1 }
  0xc2   : > { %602 = vst.msk [vmem:[%s1072_s25 + $0xd0] sm:$0xff] %vm575_vm0, %v560_v55 }
  0xc3   : > { %579 = vst.msk [vmem:[%s1072_s25 + $0x18] sm:$0xff] %vm575_vm0, %v502_v56 }
  0xc4   : > { %587 = vst.msk [vmem:[%s1072_s25 + $0x58] sm:$0xff] %vm575_vm0, %v522_v57 }
  0xc8   : > { %v542_v58 = vpop.f32.mrf.mxu2  ;;  %v562_v59 = vpop.f32.mrf.mxu3 }
  0xc9   : > { %595 = vst.msk [vmem:[%s1072_s25 + $0x98] sm:$0xff] %vm575_vm0, %v542_v58  ;;  %v505_v60 = vpop.f32.mrf.mxu0  ;;  %v525_v61 = vpop.f32.mrf.mxu1 }
  0xca   : > { %603 = vst.msk [vmem:[%s1072_s25 + $0xd8] sm:$0xff] %vm575_vm0, %v562_v59 }
  0xcb   : > { %580 = vst.msk [vmem:[%s1072_s25 + $0x20] sm:$0xff] %vm575_vm0, %v505_v60 }
  0xcc   : > { %588 = vst.msk [vmem:[%s1072_s25 + $0x60] sm:$0xff] %vm575_vm0, %v525_v61 }
  0xd0   : > { %v545_v62 = vpop.f32.mrf.mxu2  ;;  %v565_v63 = vpop.f32.mrf.mxu3 }
  0xd1   : > { %596 = vst.msk [vmem:[%s1072_s25 + $0xa0] sm:$0xff] %vm575_vm0, %v545_v62  ;;  %v507_v0 = vpop.f32.mrf.mxu0  ;;  %v527_v1 = vpop.f32.mrf.mxu1 }
  0xd2   : > { %604 = vst.msk [vmem:[%s1072_s25 + $0xe0] sm:$0xff] %vm575_vm0, %v565_v63 }
  0xd3   : > { %581 = vst.msk [vmem:[%s1072_s25 + $0x28] sm:$0xff] %vm575_vm0, %v507_v0 }
  0xd4   : > { %589 = vst.msk [vmem:[%s1072_s25 + $0x68] sm:$0xff] %vm575_vm0, %v527_v1 }
  0xd8   : > { %v547_v2 = vpop.f32.mrf.mxu2  ;;  %v567_v3 = vpop.f32.mrf.mxu3 }
  0xd9   : > { %597 = vst.msk [vmem:[%s1072_s25 + $0xa8] sm:$0xff] %vm575_vm0, %v547_v2  ;;  %v510_v4 = vpop.f32.mrf.mxu0  ;;  %v530_v5 = vpop.f32.mrf.mxu1 }
  0xda   : > { %605 = vst.msk [vmem:[%s1072_s25 + $0xe8] sm:$0xff] %vm575_vm0, %v567_v3 }
  0xdb   : > { %582 = vst.msk [vmem:[%s1072_s25 + $0x30] sm:$0xff] %vm575_vm0, %v510_v4 }
  0xdc   : > { %590 = vst.msk [vmem:[%s1072_s25 + $0x70] sm:$0xff] %vm575_vm0, %v530_v5 }
  0xe0   : > { %v550_v6 = vpop.f32.mrf.mxu2  ;;  %v570_v7 = vpop.f32.mrf.mxu3 }
  0xe1   : > { %598 = vst.msk [vmem:[%s1072_s25 + $0xb0] sm:$0xff] %vm575_vm0, %v550_v6  ;;  %v512_v8 = vpop.f32.mrf.mxu0  ;;  %v532_v9 = vpop.f32.mrf.mxu1 }
  0xe2   : > { %606 = vst.msk [vmem:[%s1072_s25 + $0xf0] sm:$0xff] %vm575_vm0, %v570_v7 }
  0xe3   : > { %583 = vst.msk [vmem:[%s1072_s25 + $0x38] sm:$0xff] %vm575_vm0, %v512_v8 }
  0xe4   : > { %591 = vst.msk [vmem:[%s1072_s25 + $0x78] sm:$0xff] %vm575_vm0, %v532_v9 }
  0xe8   : > { %v552_v11 = vpop.f32.mrf.mxu2  ;;  %v572_v12 = vpop.f32.mrf.mxu3 }
  0xe9   : > { %599 = vst.msk [vmem:[%s1072_s25 + $0xb8] sm:$0xff] %vm575_vm0, %v552_v11 }
  0xea   : > { %607 = vst.msk [vmem:[%s1072_s25 + $0xf8] sm:$0xff] %vm575_vm0, %v572_v12 }
  0xeb PF: > { %s14_s17 = sadd.s32 1, %s901_s17   ;;  %s1152_s15 = smov %s897_s16 }
  0xec   : > { %p11_p5 = scmp.ge.s32.totalorder %s14_s17, 4   ;;  %s1153_s16 = smov %s1155_s18 }
  0xee   :  { %13 = sbr.rel (!%p11_p5) target bundleno = 2 (0x2), region = 69 }

// kernel: densenet_forward.25
= control target key start
LH: loop header
LB: loop body
LE: loop exit
PB: predicated region body
PF: predicated region fallthrough
CT: control target
= control target key end

     0   :  { %s414_s9 = smov 0   ;;  %s416_s10 = smov 0   ;;  %s473_s0 = inlined_call_operand.vmem [shape: f32[2,16,16,36], index: 0, kind: input, shape index: {}]   ;;  %s474_s1 = inlined_call_operand.vmem [shape: f32[8,16], index: 1, kind: input, shape index: {}]   ;;  %s475_s2 = inlined_call_operand.vmem [shape: f32[2,8,8,36], index: 2, kind: output, shape index: {}]  }
   0x1   :  { %s418_s11 = smov 0   ;;  %s420_s12 = smov 0  }
   0x2   :  { %s422_s13 = smov 0  }
   0x3 LB: > { %s21_s14 = sadd.s32 1, %s389_s11  ;;  %s24_s15 = sadd.s32 1, %s393_s12  ;;  %s397_s13 = sphi %s422_s13, %s12_s13   ;;  %s393_s12 = sphi %s420_s12, %s479_s12   ;;  %s389_s11 = sphi %s418_s11, %s478_s11   ;;  %s385_s10 = sphi %s416_s10, %s477_s10   ;;  %s381_s9 = sphi %s414_s9, %s476_s9  }
   0x4   : > { %p22_p0 = scmp.ge.s32.totalorder %s21_s14, 8  ;;  %p309_p1 = scmp.ge.s32.totalorder %s397_s13, 1 }
   0x5   : > { %p134_p2 = scmp.lt.s32.totalorder %s397_s13, 17 }
   0x6   : > { %s481_s14 = smov (%p22_p0, %s21_s14), 0  ;;  %s483_s15 = smov (!%p22_p0, %s24_s15), %s393_s12 }
   0x7   : > { %p135_p3 = pnand %p309_p1, %p134_p2  ;;  %p26_p4 = scmp.ge.s32.totalorder %s483_s15, 2 }
   0x8   : > { %s310_s16 = sshll.u32 (!%p135_p3), %s381_s9, 1  ;;  %p165_p5 = scmp.lt.s32.totalorder (!%p135_p3), %s385_s10, 1 }
   0x9   : > { %s485_s15 = smov (%p26_p4, %s483_s15), 0  ;;  %138 = sbr.rel (%p135_p3) target bundleno = 152 (0x98), region = 28 }
   0xa   : > { %p167_p6 = scmp.lt.s32.totalorder (!%p135_p3), %s310_s16, 15  ;;  %p177_p7 = scmp.lt.s32.totalorder (!%p135_p3), %s381_s9, 7 }
   0xe   : > { %s487_s10 = smov (!%p165_p5, %s385_s10), 1  ;;  %s489_s16 = smov (!%p167_p6, %s310_s16), 15  ;;  %v189_v6 = vld [vmem:[%s474_s1] sm:$0xff]  ;;  %vm190_vm0 = vcmask 130048   ;;  %vm214_vm1 = vcmask 293888  }
   0xf   : > { %s312_s17 = sshll.u32 %s487_s10, 5  ;;  %s311_s18 = sshll.u32 %s489_s16, 1 }
  0x10   : > { %s171_s19 = sadd.s32 %s312_s17, %s311_s18  ;;  %s491_s9 = smov (!%p177_p7, %s381_s9), 7 }
  0x11   : > { %s313_s20 = sshll.u32 %s171_s19, 3  ;;  %s314_s26 = sshll.u32 %s487_s10, 3 }
  0x12   : > { %s173_s23 = scalar_lea.vmem %s473_s0, %s313_s20  ;;  %s180_s27 = sadd.s32 %s314_s26, %s491_s9 }
  0x13   : > { %v184_v0 = vld [vmem:[%s173_s23 + $0x8] sm:$0xff]  ;;  %v186_v1 = vld [vmem:[%s173_s23 + $0x18] sm:$0xff]  ;;  %v183_v2 = vld [vmem:[%s173_s23] sm:$0xff]  ;;  %s315_s28 = sshll.u32 %s180_s27, 3 }
  0x14   : > { %v188_v3 = vadd.f32 %v186_v1, %v184_v0  ;;  %v185_v4 = vld [vmem:[%s173_s23 + $0x10] sm:$0xff]  ;;  %s182_s3 = scalar_lea.vmem %s475_s2, %s315_s28 }
  0x15   : > { %v187_v5 = vadd.f32 %v185_v4, %v183_v2 }
  0x16   : > { %208 = vmatpush.msra.mxu0 %v188_v3 }
  0x18   : > { %209 = vmatpush.msra.mxu0 %v187_v5 }
  0x19   : > { %316 = vmatmul.msk.f32.vlgmr.msra.gmra.mxu0 %vm190_vm0, %v189_v6 }
  0x96   : > { %v211_v7 = vpop.f32.mrf.mxu0 }
  0x97   : > { %215 = vst.msk [vmem:[%s182_s3] sm:$0xff] %vm214_vm1, %v211_v7 }
  0x98 PF: > { %s12_s13 = sadd.s32 1, %s397_s13   ;;  %s476_s9 = smov %s389_s11 }
  0x99   : > { %p9_p8 = scmp.ge.s32.totalorder %s12_s13, 18   ;;  %s477_s10 = smov %s393_s12 }
  0x9a   : > { %s478_s11 = smov %s481_s14  ;;  %s479_s12 = smov %s485_s15 }
  0x9b   :  { %11 = sbr.rel (!%p9_p8) target bundleno = 3 (0x3), region = 58 }

// kernel: densenet_forward.31
= control target key start
LH: loop header
LB: loop body
LE: loop exit
PB: predicated region body
PF: predicated region fallthrough
CT: control target
= control target key end

     0   :  { %s404_s9 = smov 0   ;;  %s406_s10 = smov 0   ;;  %s463_s0 = inlined_call_operand.vmem [shape: f32[2,8,8,42], index: 0, kind: input, shape index: {}]   ;;  %s464_s1 = inlined_call_operand.vmem [shape: f32[4,8], index: 1, kind: input, shape index: {}]   ;;  %s465_s2 = inlined_call_operand.vmem [shape: f32[2,4,4,42], index: 2, kind: output, shape index: {}]  }
   0x1   :  { %s408_s11 = smov 0   ;;  %s410_s12 = smov 0  }
   0x2   :  { %s412_s13 = smov 0  }
   0x3 LB: > { %s21_s14 = sadd.s32 1, %s379_s11  ;;  %s24_s15 = sadd.s32 1, %s383_s12  ;;  %s387_s13 = sphi %s412_s13, %s12_s13   ;;  %s383_s12 = sphi %s410_s12, %s469_s12   ;;  %s379_s11 = sphi %s408_s11, %s468_s11   ;;  %s375_s10 = sphi %s406_s10, %s467_s10   ;;  %s371_s9 = sphi %s404_s9, %s466_s9  }
   0x4   : > { %p22_p0 = scmp.ge.s32.totalorder %s21_s14, 4  ;;  %p300_p1 = scmp.ge.s32.totalorder %s387_s13, 1 }
   0x5   : > { %p133_p2 = scmp.lt.s32.totalorder %s387_s13, 9 }
   0x6   : > { %s471_s14 = smov (%p22_p0, %s21_s14), 0  ;;  %s473_s15 = smov (!%p22_p0, %s24_s15), %s383_s12 }
   0x7   : > { %p134_p3 = pnand %p300_p1, %p133_p2  ;;  %p26_p4 = scmp.ge.s32.totalorder %s473_s15, 2 }
   0x8   : > { %s301_s16 = sshll.u32 (!%p134_p3), %s371_s9, 1  ;;  %p163_p5 = scmp.lt.s32.totalorder (!%p134_p3), %s375_s10, 1 }
   0x9   : > { %s475_s15 = smov (%p26_p4, %s473_s15), 0  ;;  %137 = sbr.rel (%p134_p3) target bundleno = 150 (0x96), region = 28 }
   0xa   : > { %p165_p6 = scmp.lt.s32.totalorder (!%p134_p3), %s301_s16, 7  ;;  %p174_p7 = scmp.lt.s32.totalorder (!%p134_p3), %s371_s9, 3 }
   0xe   : > { %s477_s10 = smov (!%p163_p5, %s375_s10), 1  ;;  %s479_s16 = smov (!%p165_p6, %s301_s16), 7  ;;  %v183_v3 = vld [vmem:[%s464_s1] sm:$0xf]  ;;  %vm184_vm0 = vcmask 64512   ;;  %vm208_vm1 = vcmask 338944  }
   0xf   : > { %s302_s17 = sshll.u32 %s477_s10, 3  ;;  %s481_s9 = smov (!%p174_p7, %s371_s9), 3 }
  0x10   : > { %s168_s18 = sadd.s32 %s302_s17, %s479_s16  ;;  %s304_s25 = sshll.u32 %s477_s10, 2 }
  0x11   : > { %s303_s19 = sshll.u32 %s168_s18, 3  ;;  %s177_s26 = sadd.s32 %s304_s25, %s481_s9 }
  0x12   : > { %s170_s22 = scalar_lea.vmem %s463_s0, %s303_s19  ;;  %s305_s27 = sshll.u32 %s177_s26, 2 }
  0x13   : > { %v180_v0 = vld [vmem:[%s170_s22] sm:$0xff]  ;;  %v181_v1 = vld [vmem:[%s170_s22 + $0x8] sm:$0xff]  ;;  %s179_s30 = scalar_lea.vmem %s465_s2, %s305_s27 }
  0x14   : > { %v182_v2 = vadd.f32 %v181_v1, %v180_v0 }
  0x16   : > { %203 = vmatpush.msra.mxu0 %v182_v2 }
  0x17   : > { %306 = vmatmul.msk.f32.vlgmr.msra.gmra.mxu0 %vm184_vm0, %v183_v3 }
  0x94   : > { %v205_v4 = vpop.f32.mrf.mxu0 }
  0x95   : > { %209 = vst.msk [vmem:[%s179_s30] sm:$0xf] %vm208_vm1, %v205_v4 }
  0x96 PF: > { %s12_s13 = sadd.s32 1, %s387_s13   ;;  %s466_s9 = smov %s379_s11 }
  0x97   : > { %p9_p8 = scmp.ge.s32.totalorder %s12_s13, 10   ;;  %s467_s10 = smov %s383_s12 }
  0x98   : > { %s468_s11 = smov %s471_s14  ;;  %s469_s12 = smov %s475_s15 }
  0x99   :  { %11 = sbr.rel (!%p9_p8) target bundleno = 3 (0x3), region = 58 }

// kernel: densenet_forward.26
= control target key start
LH: loop header
LB: loop body
LE: loop exit
PB: predicated region body
PF: predicated region fallthrough
CT: control target
= control target key end

     0   :  { %s2428_s9 = smov 0   ;;  %s2430_s10 = smov 0   ;;  %s2930_s0 = inlined_call_operand.vmem [shape: bf16[6,10,8,128], index: 0, kind: input, shape index: {}]   ;;  %s2931_s1 = inlined_call_operand.vmem [shape: bf16[3,3,128,12], index: 1, kind: input, shape index: {}]   ;;  %s2932_s2 = inlined_call_operand.vmem [shape: f32[2,8,8,12], index: 2, kind: output, shape index: {}]  }
   0x1   :  { %s2432_s11 = smov 0  }
   0x2 LB: > { %s24_s12 = sadd.s32 1, %s2407_s10  ;;  %p1609_p0 = scmp.ge.s32.totalorder %s2411_s11, 1  ;;  %s2411_s11 = sphi %s2432_s11, %s12_s11   ;;  %s2407_s10 = sphi %s2430_s10, %s2934_s10   ;;  %s2403_s9 = sphi %s2428_s9, %s2933_s9  }
   0x3   : > { %p26_p1 = scmp.ge.s32.totalorder %s24_s12, 2  ;;  %p133_p2 = scmp.lt.s32.totalorder %s2411_s11, 3 }
   0x5   : > { %s2936_s12 = smov (%p26_p1, %s24_s12), 0  ;;  %p134_p3 = pnand %p1609_p0, %p133_p2 }
   0x6   : > { %s162_s3 = smul.u32 (!%p134_p3), 3, %s2403_s9  ;;  %p172_p5 = scmp.lt.s32.totalorder (!%p134_p3), %s2403_s9, 1 }
   0x7   : > { %137 = sbr.rel (%p134_p3) target bundleno = 355 (0x163), region = 28 }
   0x8   : > { %p163_p4 = scmp.lt.s32.totalorder (!%p134_p3), %s162_s3, 5 }
   0xc   : > { %v2251_v0 = vld [vmem:[%s2931_s1 + $0x38] sm:$0xff]  ;;  %v2250_v1 = vld [vmem:[%s2931_s1 + $0x30] sm:$0xff]  ;;  %v2249_v5 = vld [vmem:[%s2931_s1 + $0x28] sm:$0xff]  ;;  %s2938_s3 = smov (!%p163_p4, %s162_s3), 5  ;;  %s2940_s9 = smov (!%p172_p5, %s2403_s9), 1  ;;  %vm305_vm0 = vcmask 97280  }
   0xd   : > { %2348 = vmatpush.bf16.msra.mxu1 %v2251_v0  ;;  %276 = vmatpush.bf16.msra.mxu0 %v2251_v0  ;;  %v2275_v2 = vld [vmem:[%s2931_s1 + $0xb8] sm:$0xff]  ;;  %v2274_v3 = vld [vmem:[%s2931_s1 + $0xb0] sm:$0xff]  ;;  %v2273_v7 = vld [vmem:[%s2931_s1 + $0xa8] sm:$0xff]  ;;  %s2364_s26 = smul.u32 40, %s2938_s3  ;;  %s2239_s22 = sshll.u32 %s2940_s9, 6 }
   0xe   : > { %563 = vmatpush.bf16.msra.mxu2 %v2275_v2  ;;  %v2287_v4 = vld [vmem:[%s2931_s1 + $0xf8] sm:$0xff]  ;;  %v2286_v6 = vld [vmem:[%s2931_s1 + $0xf0] sm:$0xff]  ;;  %v2248_v8 = vld [vmem:[%s2931_s1 + $0x20] sm:$0xff]  ;;  %s2707_s25 = scalar_lea.vmem %s2932_s2, %s2239_s22 }
   0xf   : > { %714 = vmatpush.bf16.msra.mxu3 %v2287_v4  ;;  %v2285_v9 = vld [vmem:[%s2931_s1 + $0xe8] sm:$0xff]  ;;  %v2272_v10 = vld [vmem:[%s2931_s1 + $0xa0] sm:$0xff]  ;;  %v2247_v11 = vld [vmem:[%s2931_s1 + $0x18] sm:$0xff]  ;;  %s2515_s3 = scalar_lea.vmem %s2930_s0, %s2364_s26 }
  0x10   : > { %v2271_v12 = vld [vmem:[%s2931_s1 + $0x98] sm:$0xff]  ;;  %v2284_v13 = vld [vmem:[%s2931_s1 + $0xe0] sm:$0xff]  ;;  %v2246_v14 = vld [vmem:[%s2931_s1 + $0x10] sm:$0xff] }
  0x11   : > { %2349 = vmatpush.bf16.msra.mxu1 %v2250_v1  ;;  %277 = vmatpush.bf16.msra.mxu0 %v2250_v1  ;;  %v2283_v15 = vld [vmem:[%s2931_s1 + $0xd8] sm:$0xff]  ;;  %v2270_v16 = vld [vmem:[%s2931_s1 + $0x90] sm:$0xff]  ;;  %v2245_v17 = vld [vmem:[%s2931_s1 + $0x8] sm:$0xff] }
  0x12   : > { %564 = vmatpush.bf16.msra.mxu2 %v2274_v3  ;;  %v2282_v18 = vld [vmem:[%s2931_s1 + $0xd0] sm:$0xff]  ;;  %v2269_v19 = vld [vmem:[%s2931_s1 + $0x88] sm:$0xff]  ;;  %v2244_v20 = vld [vmem:[%s2931_s1] sm:$0xff] }
  0x13   : > { %715 = vmatpush.bf16.msra.mxu3 %v2286_v6  ;;  %v2263_v21 = vld [vmem:[%s2931_s1 + $0x78] sm:$0xff]  ;;  %v2281_v22 = vld [vmem:[%s2931_s1 + $0xc8] sm:$0xff]  ;;  %v2268_v23 = vld [vmem:[%s2931_s1 + $0x80] sm:$0xff] }
  0x14   : > { %v2299_v24 = vld [vmem:[%s2931_s1 + $0x138] sm:$0xff]  ;;  %v2242_v25 = vld [vmem:[%s2515_s3 + $0x10] sm:$0xff]  ;;  %v2240_v26 = vld [vmem:[%s2515_s3] sm:$0xff] }
  0x15   : > { %2350 = vmatpush.bf16.msra.mxu1 %v2249_v5  ;;  %278 = vmatpush.bf16.msra.mxu0 %v2249_v5  ;;  %v2262_v27 = vld [vmem:[%s2931_s1 + $0x70] sm:$0xff]  ;;  %v2280_v29 = vld [vmem:[%s2931_s1 + $0xc0] sm:$0xff]  ;;  %v2323_v31 = vld [vmem:[%s2931_s1 + $0x1b8] sm:$0xff] }
  0x16   : > { %565 = vmatpush.bf16.msra.mxu2 %v2273_v7  ;;  %v2264_v28 = vld [vmem:[%s2515_s3 + $0x50] sm:$0xff]  ;;  %v2261_v32 = vld [vmem:[%s2931_s1 + $0x68] sm:$0xff]  ;;  %v2335_v35 = vld [vmem:[%s2931_s1 + $0x1f8] sm:$0xff] }
  0x17   : > { %716 = vmatpush.bf16.msra.mxu3 %v2285_v9  ;;  %v2298_v30 = vld [vmem:[%s2931_s1 + $0x130] sm:$0xff]  ;;  %v2276_v33 = vld [vmem:[%s2515_s3 + $0x4] sm:$0xff]  ;;  %v2259_v39 = vld [vmem:[%s2931_s1 + $0x58] sm:$0xff] }
  0x18   : > { %v2297_v34 = vld [vmem:[%s2931_s1 + $0x128] sm:$0xff]  ;;  %v2322_v36 = vld [vmem:[%s2931_s1 + $0x1b0] sm:$0xff]  ;;  %v2260_v37 = vld [vmem:[%s2931_s1 + $0x60] sm:$0xff] }
  0x19   : > { %2351 = vmatpush.bf16.msra.mxu1 %v2248_v8  ;;  %279 = vmatpush.bf16.msra.mxu0 %v2248_v8  ;;  %v2296_v38 = vld [vmem:[%s2931_s1 + $0x120] sm:$0xff]  ;;  %v2295_v40 = vld [vmem:[%s2931_s1 + $0x118] sm:$0xff]  ;;  %v2241_v42 = vld [vmem:[%s2515_s3 + $0x8] sm:$0xff] }
  0x1a   : > { %566 = vmatpush.bf16.msra.mxu2 %v2272_v10  ;;  %v2243_v41 = vld [vmem:[%s2515_s3 + $0x18] sm:$0xff]  ;;  %v2258_v43 = vld [vmem:[%s2931_s1 + $0x50] sm:$0xff]  ;;  %v2321_v46 = vld [vmem:[%s2931_s1 + $0x1a8] sm:$0xff] }
  0x1b   : > { %717 = vmatpush.bf16.msra.mxu3 %v2284_v13  ;;  %v2265_v44 = vld [vmem:[%s2515_s3 + $0x58] sm:$0xff]  ;;  %v2294_v45 = vld [vmem:[%s2931_s1 + $0x110] sm:$0xff]  ;;  %v2257_v48 = vld [vmem:[%s2931_s1 + $0x48] sm:$0xff] }
  0x1c   : > { %v2334_v47 = vld [vmem:[%s2931_s1 + $0x1f0] sm:$0xff]  ;;  %v2293_v50 = vld [vmem:[%s2931_s1 + $0x108] sm:$0xff]  ;;  %v2320_v51 = vld [vmem:[%s2931_s1 + $0x1a0] sm:$0xff] }
  0x1d   : > { %2352 = vmatpush.bf16.msra.mxu1 %v2247_v11  ;;  %280 = vmatpush.bf16.msra.mxu0 %v2247_v11  ;;  %v2277_v49 = vld [vmem:[%s2515_s3 + $0xc] sm:$0xff]  ;;  %v2256_v53 = vld [vmem:[%s2931_s1 + $0x40] sm:$0xff]  ;;  %v2311_v54 = vld [vmem:[%s2931_s1 + $0x178] sm:$0xff] }
  0x1e   : > { %567 = vmatpush.bf16.msra.mxu2 %v2271_v12  ;;  %v2333_v52 = vld [vmem:[%s2931_s1 + $0x1e8] sm:$0xff]  ;;  %v2292_v55 = vld [vmem:[%s2931_s1 + $0x100] sm:$0xff]  ;;  %v2310_v56 = vld [vmem:[%s2931_s1 + $0x170] sm:$0xff] }
  0x1f   : > { %718 = vmatpush.bf16.msra.mxu3 %v2283_v15  ;;  %v2252_v57 = vld [vmem:[%s2515_s3 + $0x28] sm:$0xff]  ;;  %v2266_v59 = vld [vmem:[%s2515_s3 + $0x60] sm:$0xff]  ;;  %v2319_v61 = vld [vmem:[%s2931_s1 + $0x198] sm:$0xff] }
  0x20   : > { %v2288_v58 = vld [vmem:[%s2515_s3 + $0x2c] sm:$0xff]  ;;  %v2332_v62 = vld [vmem:[%s2931_s1 + $0x1e0] sm:$0xff]  ;;  %v2278_v63 = vld [vmem:[%s2515_s3 + $0x14] sm:$0xff] }
  0x21   : > { %2353 = vmatpush.bf16.msra.mxu1 %v2246_v14  ;;  %281 = vmatpush.bf16.msra.mxu0 %v2246_v14  ;;  %v2309_v60 = vld [vmem:[%s2931_s1 + $0x168] sm:$0xff]  ;;  %v2308_v0 = vld [vmem:[%s2931_s1 + $0x160] sm:$0xff]  ;;  %v2318_v1 = vld [vmem:[%s2931_s1 + $0x190] sm:$0xff] }
  0x22   : > { %568 = vmatpush.bf16.msra.mxu2 %v2270_v16  ;;  %v2347_v2 = vld [vmem:[%s2931_s1 + $0x238] sm:$0xff]  ;;  %v2306_v5 = vld [vmem:[%s2931_s1 + $0x150] sm:$0xff]  ;;  %v2267_v8 = vld [vmem:[%s2515_s3 + $0x68] sm:$0xff] }
  0x23   : > { %719 = vmatpush.bf16.msra.mxu3 %v2282_v18  ;;  %v2331_v3 = vld [vmem:[%s2931_s1 + $0x1d8] sm:$0xff]  ;;  %v2253_v6 = vld [vmem:[%s2515_s3 + $0x30] sm:$0xff]  ;;  %v2305_v9 = vld [vmem:[%s2931_s1 + $0x148] sm:$0xff] }
  0x24   : > { %v2307_v4 = vld [vmem:[%s2931_s1 + $0x158] sm:$0xff]  ;;  %v2317_v10 = vld [vmem:[%s2931_s1 + $0x188] sm:$0xff]  ;;  %v2330_v11 = vld [vmem:[%s2931_s1 + $0x1d0] sm:$0xff] }
  0x25   : > { %2354 = vmatpush.bf16.msra.mxu1 %v2245_v17  ;;  %282 = vmatpush.bf16.msra.mxu0 %v2245_v17  ;;  %v2289_v7 = vld [vmem:[%s2515_s3 + $0x34] sm:$0xff]  ;;  %v2279_v13 = vld [vmem:[%s2515_s3 + $0x1c] sm:$0xff]  ;;  %v2329_v16 = vld [vmem:[%s2931_s1 + $0x1c8] sm:$0xff] }
  0x26   : > { %569 = vmatpush.bf16.msra.mxu2 %v2269_v19  ;;  %v2346_v12 = vld [vmem:[%s2931_s1 + $0x230] sm:$0xff]  ;;  %v2304_v14 = vld [vmem:[%s2931_s1 + $0x140] sm:$0xff]  ;;  %v2345_v17 = vld [vmem:[%s2931_s1 + $0x228] sm:$0xff] }
  0x27   : > { %720 = vmatpush.bf16.msra.mxu3 %v2281_v22  ;;  %v2316_v15 = vld [vmem:[%s2931_s1 + $0x180] sm:$0xff]  ;;  %v2254_v18 = vld [vmem:[%s2515_s3 + $0x38] sm:$0xff] }
  0x28   : > { %v2290_v19 = vld [vmem:[%s2515_s3 + $0x3c] sm:$0xff] }
  0x29   : > { %2355 = vmatpush.bf16.msra.mxu1 %v2244_v20  ;;  %283 = vmatpush.bf16.msra.mxu0 %v2244_v20  ;;  %v2312_v20 = vld [vmem:[%s2515_s3 + $0x8] sm:$0xff]  ;;  %v2344_v22 = vld [vmem:[%s2931_s1 + $0x220] sm:$0xff] }
  0x2a   : > { %570 = vmatpush.bf16.msra.mxu2 %v2268_v23  ;;  %v2324_v23 = vld [vmem:[%s2515_s3 + $0x30] sm:$0xff] }
  0x2b   : > { %721 = vmatpush.bf16.msra.mxu3 %v2280_v29  ;;  %v2325_v29 = vld [vmem:[%s2515_s3 + $0x38] sm:$0xff] }
  0x2c   : > { %294 = vmatmul.bf16.vlgmr.msra.gmra.mxu1 %v2242_v25  ;;  %284 = vmatmul.bf16.vlgmr.msra.gmra.mxu0 %v2240_v26  ;;  %v2255_v25 = vld [vmem:[%s2515_s3 + $0x40] sm:$0xff] }
  0x2d   : > { %412 = vmatpush.bf16.msrb.mxu1 %v2263_v21  ;;  %865 = vmatpush.bf16.msrb.mxu0 %v2299_v24  ;;  %v2328_v21 = vld [vmem:[%s2931_s1 + $0x1c0] sm:$0xff]  ;;  %v2343_v24 = vld [vmem:[%s2931_s1 + $0x218] sm:$0xff] }
  0x2e   : > { %571 = vmatmul.bf16.vlgmr.msra.gmra.mxu2 %v2264_v28  ;;  %722 = vmatmul.bf16.vlgmr.msra.gmra.mxu3 %v2276_v33  ;;  %v2291_v26 = vld [vmem:[%s2515_s3 + $0x44] sm:$0xff]  ;;  %v2342_v28 = vld [vmem:[%s2931_s1 + $0x210] sm:$0xff]  ;;  %v2336_v33 = vld [vmem:[%s2515_s3 + $0x58] sm:$0xff] }
  0x2f   : > { %1167 = vmatpush.bf16.msrb.mxu2 %v2323_v31  ;;  %1318 = vmatpush.bf16.msrb.mxu3 %v2335_v35  ;;  %v2340_v31 = vld [vmem:[%s2931_s1 + $0x200] sm:$0xff] }
  0x30   : > { %v2326_v35 = vld [vmem:[%s2515_s3 + $0x40] sm:$0xff] }
  0x31   : > { %413 = vmatpush.bf16.msrb.mxu1 %v2262_v27  ;;  %866 = vmatpush.bf16.msrb.mxu0 %v2298_v30  ;;  %v2313_v27 = vld [vmem:[%s2515_s3 + $0x10] sm:$0xff]  ;;  %v2341_v30 = vld [vmem:[%s2931_s1 + $0x208] sm:$0xff] }
  0x33   : > { %1168 = vmatpush.bf16.msrb.mxu2 %v2322_v36  ;;  %1319 = vmatpush.bf16.msrb.mxu3 %v2334_v47  ;;  %v2301_v36 = vld [vmem:[%s2515_s3 + $0x5c] sm:$0xff] }
  0x35   : > { %414 = vmatpush.bf16.msrb.mxu1 %v2261_v32  ;;  %867 = vmatpush.bf16.msrb.mxu0 %v2297_v34  ;;  %v2300_v32 = vld [vmem:[%s2515_s3 + $0x54] sm:$0xff] }
  0x36   : > { %v2314_v34 = vld [vmem:[%s2515_s3 + $0x18] sm:$0xff] }
  0x37   : > { %1169 = vmatpush.bf16.msrb.mxu2 %v2321_v46  ;;  %1320 = vmatpush.bf16.msrb.mxu3 %v2333_v52 }
  0x39   : > { %415 = vmatpush.bf16.msrb.mxu1 %v2260_v37  ;;  %868 = vmatpush.bf16.msrb.mxu0 %v2296_v38  ;;  %v2337_v37 = vld [vmem:[%s2515_s3 + $0x60] sm:$0xff] }
  0x3a   : > { %v2315_v38 = vld [vmem:[%s2515_s3 + $0x20] sm:$0xff] }
  0x3b   : > { %1170 = vmatpush.bf16.msrb.mxu2 %v2320_v51  ;;  %1321 = vmatpush.bf16.msrb.mxu3 %v2332_v62 }
  0x3c   : > { %299 = vmatmul.bf16.gmra.mxu1 %v2243_v41  ;;  %289 = vmatmul.bf16.gmra.mxu0 %v2241_v42  ;;  %v2338_v41 = vld [vmem:[%s2515_s3 + $0x68] sm:$0xff] }
  0x3d   : > { %416 = vmatpush.bf16.msrb.mxu1 %v2259_v39  ;;  %869 = vmatpush.bf16.msrb.mxu0 %v2295_v40  ;;  %v2327_v39 = vld [vmem:[%s2515_s3 + $0x48] sm:$0xff] }
  0x3e   : > { %576 = vmatmul.bf16.gmra.mxu2 %v2265_v44  ;;  %727 = vmatmul.bf16.gmra.mxu3 %v2277_v49  ;;  %v2302_v40 = vld [vmem:[%s2515_s3 + $0x64] sm:$0xff]  ;;  %v2339_v44 = vld [vmem:[%s2515_s3 + $0x70] sm:$0xff] }
  0x3f   : > { %1171 = vmatpush.bf16.msrb.mxu2 %v2319_v61  ;;  %1322 = vmatpush.bf16.msrb.mxu3 %v2331_v3 }
  0x41   : > { %417 = vmatpush.bf16.msrb.mxu1 %v2258_v43  ;;  %870 = vmatpush.bf16.msrb.mxu0 %v2294_v45 }
  0x43   : > { %1172 = vmatpush.bf16.msrb.mxu2 %v2318_v1  ;;  %1323 = vmatpush.bf16.msrb.mxu3 %v2330_v11 }
  0x45   : > { %418 = vmatpush.bf16.msrb.mxu1 %v2257_v48  ;;  %871 = vmatpush.bf16.msrb.mxu0 %v2293_v50  ;;  %v2303_v48 = vld [vmem:[%s2515_s3 + $0x6c] sm:$0xff] }
  0x47   : > { %1173 = vmatpush.bf16.msrb.mxu2 %v2317_v10  ;;  %1324 = vmatpush.bf16.msrb.mxu3 %v2329_v16 }
  0x49   : > { %419 = vmatpush.bf16.msrb.mxu1 %v2256_v53  ;;  %872 = vmatpush.bf16.msrb.mxu0 %v2292_v55 }
  0x4b   : > { %1174 = vmatpush.bf16.msrb.mxu2 %v2316_v15  ;;  %1325 = vmatpush.bf16.msrb.mxu3 %v2328_v21 }
  0x4c   : > { %420 = vmatmul.bf16.vlgmr.msrb.gmra.mxu1 %v2252_v57  ;;  %873 = vmatmul.bf16.vlgmr.msrb.gmra.mxu0 %v2288_v58 }
  0x4d   : > { %1016 = vmatpush.bf16.msra.mxu1 %v2311_v54  ;;  %1469 = vmatpush.bf16.msra.mxu0 %v2347_v2 }
  0x4e   : > { %581 = vmatmul.bf16.gmra.mxu2 %v2266_v59  ;;  %732 = vmatmul.bf16.gmra.mxu3 %v2278_v63 }
  0x4f   : > { %2356 = vmatpush.bf16.msra.mxu2 %v2347_v2 }
  0x51   : > { %1017 = vmatpush.bf16.msra.mxu1 %v2310_v56  ;;  %1470 = vmatpush.bf16.msra.mxu0 %v2346_v12 }
  0x53   : > { %2357 = vmatpush.bf16.msra.mxu2 %v2346_v12 }
  0x55   : > { %1018 = vmatpush.bf16.msra.mxu1 %v2309_v60  ;;  %1471 = vmatpush.bf16.msra.mxu0 %v2345_v17 }
  0x57   : > { %2358 = vmatpush.bf16.msra.mxu2 %v2345_v17 }
  0x59   : > { %1019 = vmatpush.bf16.msra.mxu1 %v2308_v0  ;;  %1472 = vmatpush.bf16.msra.mxu0 %v2344_v22 }
  0x5b   : > { %2359 = vmatpush.bf16.msra.mxu2 %v2344_v22 }
  0x5c   : > { %425 = vmatmul.bf16.gmra.mxu1 %v2253_v6  ;;  %878 = vmatmul.bf16.gmra.mxu0 %v2289_v7 }
  0x5d   : > { %1020 = vmatpush.bf16.msra.mxu1 %v2307_v4  ;;  %1473 = vmatpush.bf16.msra.mxu0 %v2343_v24 }
  0x5e   : > { %586 = vmatmul.bf16.gmra.mxu2 %v2267_v8  ;;  %737 = vmatmul.bf16.gmra.mxu3 %v2279_v13 }
  0x5f   : > { %2360 = vmatpush.bf16.msra.mxu2 %v2343_v24 }
  0x61   : > { %1021 = vmatpush.bf16.msra.mxu1 %v2306_v5  ;;  %1474 = vmatpush.bf16.msra.mxu0 %v2342_v28 }
  0x63   : > { %2361 = vmatpush.bf16.msra.mxu2 %v2342_v28 }
  0x65   : > { %1022 = vmatpush.bf16.msra.mxu1 %v2305_v9  ;;  %1475 = vmatpush.bf16.msra.mxu0 %v2341_v30 }
  0x67   : > { %2362 = vmatpush.bf16.msra.mxu2 %v2341_v30 }
  0x69   : > { %1023 = vmatpush.bf16.msra.mxu1 %v2304_v14  ;;  %1476 = vmatpush.bf16.msra.mxu0 %v2340_v31 }
  0x6b   : > { %2363 = vmatpush.bf16.msra.mxu2 %v2340_v31 }
  0x6c   : > { %430 = vmatmul.bf16.gmra.mxu1 %v2254_v18  ;;  %883 = vmatmul.bf16.gmra.mxu0 %v2290_v19 }
  0x6e   : > { %1175 = vmatmul.bf16.vlgmr.msrb.gmra.mxu2 %v2312_v20  ;;  %1326 = vmatmul.bf16.vlgmr.msrb.gmra.mxu3 %v2324_v23 }
  0x7c   : > { %435 = vmatmul.bf16.gmra.mxu1 %v2255_v25  ;;  %888 = vmatmul.bf16.gmra.mxu0 %v2291_v26 }
  0x7e   : > { %1180 = vmatmul.bf16.gmra.mxu2 %v2313_v27  ;;  %1331 = vmatmul.bf16.gmra.mxu3 %v2325_v29 }
  0x8c   : > { %1024 = vmatmul.bf16.vlgmr.msra.gmra.mxu1 %v2300_v32  ;;  %1477 = vmatmul.bf16.vlgmr.msra.gmra.mxu0 %v2336_v33 }
  0x8e   : > { %1185 = vmatmul.bf16.gmra.mxu2 %v2314_v34  ;;  %1336 = vmatmul.bf16.gmra.mxu3 %v2326_v35 }
  0x9c   : > { %1029 = vmatmul.bf16.gmra.mxu1 %v2301_v36  ;;  %1482 = vmatmul.bf16.gmra.mxu0 %v2337_v37 }
  0x9e   : > { %1190 = vmatmul.bf16.gmra.mxu2 %v2315_v38  ;;  %1341 = vmatmul.bf16.gmra.mxu3 %v2327_v39 }
  0xa9   : > { %v295_v42 = vpop.f32.mrf.mxu1  ;;  %v285_v43 = vpop.f32.mrf.mxu0 }
  0xaa   : > { %310 = vst.msk [vmem:[%s2707_s25 + $0x20] sm:$0xff] %vm305_vm0, %v295_v42 }
  0xab   : > { %306 = vst.msk [vmem:[%s2707_s25] sm:$0xff] %vm305_vm0, %v285_v43 }
  0xac   : > { %1034 = vmatmul.bf16.gmra.mxu1 %v2302_v40  ;;  %1487 = vmatmul.bf16.gmra.mxu0 %v2338_v41 }
  0xae   : > { %1492 = vmatmul.bf16.vlgmr.msra.gmra.mxu2 %v2339_v44 }
  0xb1   : > { %v297_v45 = vpop.f32.mrf.mxu1  ;;  %v287_v46 = vpop.f32.mrf.mxu0  ;;  %v445_v27 = vld [vmem:[%s2707_s25 + $0x20] sm:$0xff] }
  0xb2   : > { %311 = vst.msk [vmem:[%s2707_s25 + $0x28] sm:$0xff] %vm305_vm0, %v297_v45  ;;  %v572_v47 = vpop.f32.mrf.mxu2  ;;  %v723_v51 = vpop.f32.mrf.mxu3  ;;  %v441_v55 = vld [vmem:[%s2707_s25] sm:$0xff] }
  0xb3   : > { %307 = vst.msk [vmem:[%s2707_s25 + $0x8] sm:$0xff] %vm305_vm0, %v287_v46 }
  0xb9   : > { %v300_v49 = vpop.f32.mrf.mxu1  ;;  %v290_v50 = vpop.f32.mrf.mxu0  ;;  %v446_v38 = vld [vmem:[%s2707_s25 + $0x28] sm:$0xff] }
  0xba   : > { %312 = vst.msk [vmem:[%s2707_s25 + $0x30] sm:$0xff] %vm305_vm0, %v300_v49  ;;  %v574_v52 = vpop.f32.mrf.mxu2  ;;  %v725_v56 = vpop.f32.mrf.mxu3  ;;  %v442_v61 = vld [vmem:[%s2707_s25 + $0x8] sm:$0xff] }
  0xbb   : > { %308 = vst.msk [vmem:[%s2707_s25 + $0x10] sm:$0xff] %vm305_vm0, %v290_v50 }
  0xbc   : > { %1039 = vmatmul.bf16.gmra.mxu1 %v2303_v48 }
  0xc1   : > { %v302_v53 = vpop.f32.mrf.mxu1  ;;  %v292_v54 = vpop.f32.mrf.mxu0  ;;  %v447_v49 = vld [vmem:[%s2707_s25 + $0x30] sm:$0xff] }
  0xc2   : > { %313 = vst.msk [vmem:[%s2707_s25 + $0x38] sm:$0xff] %vm305_vm0, %v302_v53  ;;  %v577_v58 = vpop.f32.mrf.mxu2  ;;  %v728_v0 = vpop.f32.mrf.mxu3  ;;  %v443_v5 = vld [vmem:[%s2707_s25 + $0x10] sm:$0xff] }
  0xc3   : > { %309 = vst.msk [vmem:[%s2707_s25 + $0x18] sm:$0xff] %vm305_vm0, %v292_v54 }
  0xc9   : > { %v421_v57 = vpop.f32.mrf.mxu1  ;;  %v874_v60 = vpop.f32.mrf.mxu0 }
  0xca   : > { %v449_v59 = vadd.f32 %v441_v55, %v421_v57  ;;  %v579_v2 = vpop.f32.mrf.mxu2  ;;  %v730_v10 = vpop.f32.mrf.mxu3  ;;  %v444_v14 = vld [vmem:[%s2707_s25 + $0x18] sm:$0xff] }
  0xcc   : > { %457 = vst.msk [vmem:[%s2707_s25] sm:$0xff] %vm305_vm0, %v449_v59 }
  0xd1   : > { %v423_v62 = vpop.f32.mrf.mxu1  ;;  %v876_v4 = vpop.f32.mrf.mxu0 }
  0xd2   : > { %v450_v63 = vadd.f32 %v442_v61, %v423_v62  ;;  %v582_v12 = vpop.f32.mrf.mxu2  ;;  %v733_v22 = vpop.f32.mrf.mxu3  ;;  %v448_v61 = vld [vmem:[%s2707_s25 + $0x38] sm:$0xff] }
  0xd3   : > { %v592_v1 = vld [vmem:[%s2707_s25] sm:$0xff] }
  0xd4   : > { %v600_v3 = vadd.f32 %v592_v1, %v572_v47  ;;  %458 = vst.msk [vmem:[%s2707_s25 + $0x8] sm:$0xff] %vm305_vm0, %v450_v63 }
  0xd6   : > { %608 = vst.msk [vmem:[%s2707_s25] sm:$0xff] %vm305_vm0, %v600_v3 }
  0xd9   : > { %v426_v6 = vpop.f32.mrf.mxu1  ;;  %v879_v15 = vpop.f32.mrf.mxu0 }
  0xda   : > { %v451_v7 = vadd.f32 %v443_v5, %v426_v6  ;;  %v584_v24 = vpop.f32.mrf.mxu2  ;;  %v735_v36 = vpop.f32.mrf.mxu3 }
  0xdb   : > { %v593_v8 = vld [vmem:[%s2707_s25 + $0x8] sm:$0xff] }
  0xdc   : > { %v601_v9 = vadd.f32 %v593_v8, %v574_v52  ;;  %459 = vst.msk [vmem:[%s2707_s25 + $0x10] sm:$0xff] %vm305_vm0, %v451_v7 }
  0xdd   : > { %v743_v11 = vld [vmem:[%s2707_s25] sm:$0xff] }
  0xde   : > { %609 = vst.msk [vmem:[%s2707_s25 + $0x8] sm:$0xff] %vm305_vm0, %v601_v9  ;;  %v751_v13 = vadd.f32 %v743_v11, %v723_v51 }
  0xe0   : > { %759 = vst.msk [vmem:[%s2707_s25] sm:$0xff] %vm305_vm0, %v751_v13 }
  0xe1   : > { %v428_v16 = vpop.f32.mrf.mxu1  ;;  %v881_v28 = vpop.f32.mrf.mxu0 }
  0xe2   : > { %v452_v17 = vadd.f32 %v444_v14, %v428_v16  ;;  %v587_v39 = vpop.f32.mrf.mxu2  ;;  %v738_v51 = vpop.f32.mrf.mxu3 }
  0xe3   : > { %v594_v18 = vld [vmem:[%s2707_s25 + $0x10] sm:$0xff] }
  0xe4   : > { %v602_v19 = vadd.f32 %v594_v18, %v577_v58  ;;  %460 = vst.msk [vmem:[%s2707_s25 + $0x18] sm:$0xff] %vm305_vm0, %v452_v17 }
  0xe5   : > { %v744_v20 = vld [vmem:[%s2707_s25 + $0x8] sm:$0xff] }
  0xe6   : > { %610 = vst.msk [vmem:[%s2707_s25 + $0x10] sm:$0xff] %vm305_vm0, %v602_v19  ;;  %v752_v21 = vadd.f32 %v744_v20, %v725_v56 }
  0xe7   : > { %v894_v23 = vld [vmem:[%s2707_s25] sm:$0xff] }
  0xe8   : > { %760 = vst.msk [vmem:[%s2707_s25 + $0x8] sm:$0xff] %vm305_vm0, %v752_v21  ;;  %v902_v25 = vadd.f32 %v894_v23, %v874_v60 }
  0xe9   : > { %v431_v26 = vpop.f32.mrf.mxu1  ;;  %v884_v42 = vpop.f32.mrf.mxu0 }
  0xea   : > { %910 = vst.msk [vmem:[%s2707_s25] sm:$0xff] %vm305_vm0, %v902_v25  ;;  %v453_v29 = vadd.f32 %v445_v27, %v431_v26  ;;  %v589_v53 = vpop.f32.mrf.mxu2  ;;  %v740_v1 = vpop.f32.mrf.mxu3 }
  0xeb   : > { %v595_v30 = vld [vmem:[%s2707_s25 + $0x18] sm:$0xff] }
  0xec   : > { %v603_v31 = vadd.f32 %v595_v30, %v579_v2  ;;  %461 = vst.msk [vmem:[%s2707_s25 + $0x20] sm:$0xff] %vm305_vm0, %v453_v29 }
  0xed   : > { %v745_v32 = vld [vmem:[%s2707_s25 + $0x10] sm:$0xff] }
  0xee   : > { %611 = vst.msk [vmem:[%s2707_s25 + $0x18] sm:$0xff] %vm305_vm0, %v603_v31  ;;  %v753_v33 = vadd.f32 %v745_v32, %v728_v0 }
  0xef   : > { %v895_v34 = vld [vmem:[%s2707_s25 + $0x8] sm:$0xff] }
  0xf0   : > { %761 = vst.msk [vmem:[%s2707_s25 + $0x10] sm:$0xff] %vm305_vm0, %v753_v33  ;;  %v903_v35 = vadd.f32 %v895_v34, %v876_v4 }
  0xf1   : > { %v433_v37 = vpop.f32.mrf.mxu1  ;;  %v886_v56 = vpop.f32.mrf.mxu0  ;;  %v1045_v9 = vld [vmem:[%s2707_s25] sm:$0xff] }
  0xf2   : > { %911 = vst.msk [vmem:[%s2707_s25 + $0x8] sm:$0xff] %vm305_vm0, %v903_v35  ;;  %v454_v40 = vadd.f32 %v446_v38, %v433_v37  ;;  %v1176_v3 = vpop.f32.mrf.mxu2 }
  0xf3   : > { %v596_v41 = vld [vmem:[%s2707_s25 + $0x20] sm:$0xff] }
  0xf4   : > { %v604_v43 = vadd.f32 %v596_v41, %v582_v12  ;;  %462 = vst.msk [vmem:[%s2707_s25 + $0x28] sm:$0xff] %vm305_vm0, %v454_v40 }
  0xf5   : > { %v746_v44 = vld [vmem:[%s2707_s25 + $0x18] sm:$0xff] }
  0xf6   : > { %612 = vst.msk [vmem:[%s2707_s25 + $0x20] sm:$0xff] %vm305_vm0, %v604_v43  ;;  %v754_v45 = vadd.f32 %v746_v44, %v730_v10 }
  0xf7   : > { %v896_v46 = vld [vmem:[%s2707_s25 + $0x10] sm:$0xff] }
  0xf8   : > { %762 = vst.msk [vmem:[%s2707_s25 + $0x18] sm:$0xff] %vm305_vm0, %v754_v45  ;;  %v904_v47 = vadd.f32 %v896_v46, %v879_v15  ;;  %v1327_v15 = vpop.f32.mrf.mxu3 }
  0xf9   : > { %v436_v48 = vpop.f32.mrf.mxu1  ;;  %v889_v6 = vpop.f32.mrf.mxu0  ;;  %v1046_v20 = vld [vmem:[%s2707_s25 + $0x8] sm:$0xff] }
  0xfa   : > { %912 = vst.msk [vmem:[%s2707_s25 + $0x10] sm:$0xff] %vm305_vm0, %v904_v47  ;;  %v455_v50 = vadd.f32 %v447_v49, %v436_v48  ;;  %v1178_v17 = vpop.f32.mrf.mxu2 }
  0xfb   : > { %v597_v52 = vld [vmem:[%s2707_s25 + $0x28] sm:$0xff] }
  0xfc   : > { %v605_v54 = vadd.f32 %v597_v52, %v584_v24  ;;  %463 = vst.msk [vmem:[%s2707_s25 + $0x30] sm:$0xff] %vm305_vm0, %v455_v50 }
  0xfd   : > { %v747_v55 = vld [vmem:[%s2707_s25 + $0x20] sm:$0xff] }
  0xfe   : > { %613 = vst.msk [vmem:[%s2707_s25 + $0x28] sm:$0xff] %vm305_vm0, %v605_v54  ;;  %v755_v57 = vadd.f32 %v747_v55, %v733_v22 }
  0xff   : > { %v897_v58 = vld [vmem:[%s2707_s25 + $0x18] sm:$0xff] }
 0x100   : > { %763 = vst.msk [vmem:[%s2707_s25 + $0x20] sm:$0xff] %vm305_vm0, %v755_v57  ;;  %v905_v59 = vadd.f32 %v897_v58, %v881_v28  ;;  %v1329_v29 = vpop.f32.mrf.mxu3 }
 0x101   : > { %v438_v60 = vpop.f32.mrf.mxu1  ;;  %v891_v21 = vpop.f32.mrf.mxu0  ;;  %v1047_v31 = vld [vmem:[%s2707_s25 + $0x10] sm:$0xff] }
 0x102   : > { %913 = vst.msk [vmem:[%s2707_s25 + $0x18] sm:$0xff] %vm305_vm0, %v905_v59  ;;  %v456_v62 = vadd.f32 %v448_v61, %v438_v60  ;;  %v1181_v32 = vpop.f32.mrf.mxu2 }
 0x103   : > { %v598_v63 = vld [vmem:[%s2707_s25 + $0x30] sm:$0xff] }
 0x104   : > { %v606_v0 = vadd.f32 %v598_v63, %v587_v39  ;;  %464 = vst.msk [vmem:[%s2707_s25 + $0x38] sm:$0xff] %vm305_vm0, %v456_v62 }
 0x105   : > { %v748_v2 = vld [vmem:[%s2707_s25 + $0x28] sm:$0xff] }
 0x106   : > { %614 = vst.msk [vmem:[%s2707_s25 + $0x30] sm:$0xff] %vm305_vm0, %v606_v0  ;;  %v756_v4 = vadd.f32 %v748_v2, %v735_v36 }
 0x107   : > { %v898_v5 = vld [vmem:[%s2707_s25 + $0x20] sm:$0xff] }
 0x108   : > { %764 = vst.msk [vmem:[%s2707_s25 + $0x28] sm:$0xff] %vm305_vm0, %v756_v4  ;;  %v906_v7 = vadd.f32 %v898_v5, %v884_v42  ;;  %v1332_v44 = vpop.f32.mrf.mxu3 }
 0x109   : > { %v1025_v8 = vpop.f32.mrf.mxu1  ;;  %v1478_v35 = vpop.f32.mrf.mxu0  ;;  %v1048_v42 = vld [vmem:[%s2707_s25 + $0x18] sm:$0xff] }
 0x10a   : > { %914 = vst.msk [vmem:[%s2707_s25 + $0x20] sm:$0xff] %vm305_vm0, %v906_v7  ;;  %v1053_v10 = vadd.f32 %v1045_v9, %v1025_v8  ;;  %v1183_v46 = vpop.f32.mrf.mxu2 }
 0x10b   : > { %v599_v11 = vld [vmem:[%s2707_s25 + $0x38] sm:$0xff] }
 0x10c   : > { %v607_v12 = vadd.f32 %v599_v11, %v589_v53  ;;  %1061 = vst.msk [vmem:[%s2707_s25] sm:$0xff] %vm305_vm0, %v1053_v10 }
 0x10d   : > { %v749_v13 = vld [vmem:[%s2707_s25 + $0x30] sm:$0xff] }
 0x10e   : > { %615 = vst.msk [vmem:[%s2707_s25 + $0x38] sm:$0xff] %vm305_vm0, %v607_v12  ;;  %v757_v14 = vadd.f32 %v749_v13, %v738_v51 }
 0x10f   : > { %v899_v16 = vld [vmem:[%s2707_s25 + $0x28] sm:$0xff] }
 0x110   : > { %765 = vst.msk [vmem:[%s2707_s25 + $0x30] sm:$0xff] %vm305_vm0, %v757_v14  ;;  %v907_v18 = vadd.f32 %v899_v16, %v886_v56  ;;  %v1334_v58 = vpop.f32.mrf.mxu3 }
 0x111   : > { %v1027_v19 = vpop.f32.mrf.mxu1  ;;  %v1480_v49 = vpop.f32.mrf.mxu0  ;;  %v1049_v54 = vld [vmem:[%s2707_s25 + $0x20] sm:$0xff] }
 0x112   : > { %915 = vst.msk [vmem:[%s2707_s25 + $0x28] sm:$0xff] %vm305_vm0, %v907_v18  ;;  %v1054_v22 = vadd.f32 %v1046_v20, %v1027_v19  ;;  %v1186_v60 = vpop.f32.mrf.mxu2 }
 0x113   : > { %v1196_v23 = vld [vmem:[%s2707_s25] sm:$0xff] }
 0x114   : > { %v1204_v24 = vadd.f32 %v1196_v23, %v1176_v3  ;;  %1062 = vst.msk [vmem:[%s2707_s25 + $0x8] sm:$0xff] %vm305_vm0, %v1054_v22 }
 0x115   : > { %v750_v25 = vld [vmem:[%s2707_s25 + $0x38] sm:$0xff] }
 0x116   : > { %1212 = vst.msk [vmem:[%s2707_s25] sm:$0xff] %vm305_vm0, %v1204_v24  ;;  %v758_v26 = vadd.f32 %v750_v25, %v740_v1 }
 0x117   : > { %v900_v27 = vld [vmem:[%s2707_s25 + $0x30] sm:$0xff] }
 0x118   : > { %766 = vst.msk [vmem:[%s2707_s25 + $0x38] sm:$0xff] %vm305_vm0, %v758_v26  ;;  %v908_v28 = vadd.f32 %v900_v27, %v889_v6  ;;  %v1337_v8 = vpop.f32.mrf.mxu3 }
 0x119   : > { %v1030_v30 = vpop.f32.mrf.mxu1  ;;  %v1483_v63 = vpop.f32.mrf.mxu0  ;;  %v1050_v2 = vld [vmem:[%s2707_s25 + $0x28] sm:$0xff] }
 0x11a   : > { %916 = vst.msk [vmem:[%s2707_s25 + $0x30] sm:$0xff] %vm305_vm0, %v908_v28  ;;  %v1055_v33 = vadd.f32 %v1047_v31, %v1030_v30  ;;  %v1188_v9 = vpop.f32.mrf.mxu2 }
 0x11b   : > { %v1197_v34 = vld [vmem:[%s2707_s25 + $0x8] sm:$0xff] }
 0x11c   : > { %v1205_v36 = vadd.f32 %v1197_v34, %v1178_v17  ;;  %1063 = vst.msk [vmem:[%s2707_s25 + $0x10] sm:$0xff] %vm305_vm0, %v1055_v33 }
 0x11d   : > { %v1347_v37 = vld [vmem:[%s2707_s25] sm:$0xff] }
 0x11e   : > { %1213 = vst.msk [vmem:[%s2707_s25 + $0x8] sm:$0xff] %vm305_vm0, %v1205_v36  ;;  %v1355_v38 = vadd.f32 %v1347_v37, %v1327_v15 }
 0x11f   : > { %v901_v39 = vld [vmem:[%s2707_s25 + $0x38] sm:$0xff] }
 0x120   : > { %1363 = vst.msk [vmem:[%s2707_s25] sm:$0xff] %vm305_vm0, %v1355_v38  ;;  %v909_v40 = vadd.f32 %v901_v39, %v891_v21  ;;  %v1339_v21 = vpop.f32.mrf.mxu3 }
 0x121   : > { %v1032_v41 = vpop.f32.mrf.mxu1  ;;  %v1051_v13 = vld [vmem:[%s2707_s25 + $0x30] sm:$0xff]  ;;  %v1485_v14 = vpop.f32.mrf.mxu0 }
 0x122   : > { %917 = vst.msk [vmem:[%s2707_s25 + $0x38] sm:$0xff] %vm305_vm0, %v909_v40  ;;  %v1056_v43 = vadd.f32 %v1048_v42, %v1032_v41  ;;  %v1191_v23 = vpop.f32.mrf.mxu2 }
 0x123   : > { %v1198_v45 = vld [vmem:[%s2707_s25 + $0x10] sm:$0xff] }
 0x124   : > { %v1206_v47 = vadd.f32 %v1198_v45, %v1181_v32  ;;  %1064 = vst.msk [vmem:[%s2707_s25 + $0x18] sm:$0xff] %vm305_vm0, %v1056_v43 }
 0x125   : > { %v1348_v48 = vld [vmem:[%s2707_s25 + $0x8] sm:$0xff] }
 0x126   : > { %1214 = vst.msk [vmem:[%s2707_s25 + $0x10] sm:$0xff] %vm305_vm0, %v1206_v47  ;;  %v1356_v50 = vadd.f32 %v1348_v48, %v1329_v29 }
 0x127   : > { %v1498_v51 = vld [vmem:[%s2707_s25] sm:$0xff] }
 0x128   : > { %1364 = vst.msk [vmem:[%s2707_s25 + $0x8] sm:$0xff] %vm305_vm0, %v1356_v50  ;;  %v1506_v52 = vadd.f32 %v1498_v51, %v1478_v35  ;;  %v1342_v36 = vpop.f32.mrf.mxu3 }
 0x129   : > { %v1035_v53 = vpop.f32.mrf.mxu1  ;;  %v1052_v25 = vld [vmem:[%s2707_s25 + $0x38] sm:$0xff]  ;;  %v1488_v28 = vpop.f32.mrf.mxu0 }
 0x12a   : > { %1514 = vst.msk [vmem:[%s2707_s25] sm:$0xff] %vm305_vm0, %v1506_v52  ;;  %v1057_v55 = vadd.f32 %v1049_v54, %v1035_v53  ;;  %v1193_v34 = vpop.f32.mrf.mxu2 }
 0x12b   : > { %v1199_v56 = vld [vmem:[%s2707_s25 + $0x18] sm:$0xff] }
 0x12c   : > { %v1207_v57 = vadd.f32 %v1199_v56, %v1183_v46  ;;  %1065 = vst.msk [vmem:[%s2707_s25 + $0x20] sm:$0xff] %vm305_vm0, %v1057_v55 }
 0x12d   : > { %v1349_v59 = vld [vmem:[%s2707_s25 + $0x10] sm:$0xff] }
 0x12e   : > { %1215 = vst.msk [vmem:[%s2707_s25 + $0x18] sm:$0xff] %vm305_vm0, %v1207_v57  ;;  %v1357_v61 = vadd.f32 %v1349_v59, %v1332_v44 }
 0x12f   : > { %v1499_v62 = vld [vmem:[%s2707_s25 + $0x8] sm:$0xff] }
 0x130   : > { %1365 = vst.msk [vmem:[%s2707_s25 + $0x10] sm:$0xff] %vm305_vm0, %v1357_v61  ;;  %v1507_v0 = vadd.f32 %v1499_v62, %v1480_v49  ;;  %v1344_v43 = vpop.f32.mrf.mxu3 }
 0x131   : > { %v1037_v1 = vpop.f32.mrf.mxu1  ;;  %v1490_v39 = vpop.f32.mrf.mxu0 }
 0x132   : > { %1515 = vst.msk [vmem:[%s2707_s25 + $0x8] sm:$0xff] %vm305_vm0, %v1507_v0  ;;  %v1058_v3 = vadd.f32 %v1050_v2, %v1037_v1  ;;  %v1493_v45 = vpop.f32.mrf.mxu2 }
 0x133   : > { %v1200_v4 = vld [vmem:[%s2707_s25 + $0x20] sm:$0xff] }
 0x134   : > { %v1208_v5 = vadd.f32 %v1200_v4, %v1186_v60  ;;  %1066 = vst.msk [vmem:[%s2707_s25 + $0x28] sm:$0xff] %vm305_vm0, %v1058_v3 }
 0x135   : > { %v1350_v6 = vld [vmem:[%s2707_s25 + $0x18] sm:$0xff] }
 0x136   : > { %1216 = vst.msk [vmem:[%s2707_s25 + $0x20] sm:$0xff] %vm305_vm0, %v1208_v5  ;;  %v1358_v7 = vadd.f32 %v1350_v6, %v1334_v58 }
 0x137   : > { %v1500_v10 = vld [vmem:[%s2707_s25 + $0x10] sm:$0xff] }
 0x138   : > { %1366 = vst.msk [vmem:[%s2707_s25 + $0x18] sm:$0xff] %vm305_vm0, %v1358_v7  ;;  %v1508_v11 = vadd.f32 %v1500_v10, %v1483_v63 }
 0x139   : > { %v1040_v12 = vpop.f32.mrf.mxu1 }
 0x13a   : > { %1516 = vst.msk [vmem:[%s2707_s25 + $0x10] sm:$0xff] %vm305_vm0, %v1508_v11  ;;  %v1059_v15 = vadd.f32 %v1051_v13, %v1040_v12  ;;  %v1495_v49 = vpop.f32.mrf.mxu2 }
 0x13b   : > { %v1201_v16 = vld [vmem:[%s2707_s25 + $0x28] sm:$0xff] }
 0x13c   : > { %v1209_v17 = vadd.f32 %v1201_v16, %v1188_v9  ;;  %1067 = vst.msk [vmem:[%s2707_s25 + $0x30] sm:$0xff] %vm305_vm0, %v1059_v15 }
 0x13d   : > { %v1351_v18 = vld [vmem:[%s2707_s25 + $0x20] sm:$0xff] }
 0x13e   : > { %1217 = vst.msk [vmem:[%s2707_s25 + $0x28] sm:$0xff] %vm305_vm0, %v1209_v17  ;;  %v1359_v19 = vadd.f32 %v1351_v18, %v1337_v8 }
 0x13f   : > { %v1501_v20 = vld [vmem:[%s2707_s25 + $0x18] sm:$0xff] }
 0x140   : > { %1367 = vst.msk [vmem:[%s2707_s25 + $0x20] sm:$0xff] %vm305_vm0, %v1359_v19  ;;  %v1509_v22 = vadd.f32 %v1501_v20, %v1485_v14 }
 0x141   : > { %v1042_v24 = vpop.f32.mrf.mxu1 }
 0x142   : > { %1517 = vst.msk [vmem:[%s2707_s25 + $0x18] sm:$0xff] %vm305_vm0, %v1509_v22  ;;  %v1060_v26 = vadd.f32 %v1052_v25, %v1042_v24 }
 0x143   : > { %v1202_v27 = vld [vmem:[%s2707_s25 + $0x30] sm:$0xff] }
 0x144   : > { %v1210_v29 = vadd.f32 %v1202_v27, %v1191_v23  ;;  %1068 = vst.msk [vmem:[%s2707_s25 + $0x38] sm:$0xff] %vm305_vm0, %v1060_v26 }
 0x145   : > { %v1352_v30 = vld [vmem:[%s2707_s25 + $0x28] sm:$0xff] }
 0x146   : > { %1218 = vst.msk [vmem:[%s2707_s25 + $0x30] sm:$0xff] %vm305_vm0, %v1210_v29  ;;  %v1360_v31 = vadd.f32 %v1352_v30, %v1339_v21 }
 0x147   : > { %v1502_v32 = vld [vmem:[%s2707_s25 + $0x20] sm:$0xff] }
 0x148   : > { %1368 = vst.msk [vmem:[%s2707_s25 + $0x28] sm:$0xff] %vm305_vm0, %v1360_v31  ;;  %v1510_v33 = vadd.f32 %v1502_v32, %v1488_v28 }
 0x14a   : > { %1518 = vst.msk [vmem:[%s2707_s25 + $0x20] sm:$0xff] %vm305_vm0, %v1510_v33 }
 0x14b   : > { %v1203_v35 = vld [vmem:[%s2707_s25 + $0x38] sm:$0xff] }
 0x14c   : > { %v1211_v37 = vadd.f32 %v1203_v35, %v1193_v34 }
 0x14d   : > { %v1353_v38 = vld [vmem:[%s2707_s25 + $0x30] sm:$0xff] }
 0x14e   : > { %1219 = vst.msk [vmem:[%s2707_s25 + $0x38] sm:$0xff] %vm305_vm0, %v1211_v37  ;;  %v1361_v40 = vadd.f32 %v1353_v38, %v1342_v36 }
 0x14f   : > { %v1503_v41 = vld [vmem:[%s2707_s25 + $0x28] sm:$0xff] }
 0x150   : > { %1369 = vst.msk [vmem:[%s2707_s25 + $0x30] sm:$0xff] %vm305_vm0, %v1361_v40  ;;  %v1511_v42 = vadd.f32 %v1503_v41, %v1490_v39 }
 0x152   : > { %1519 = vst.msk [vmem:[%s2707_s25 + $0x28] sm:$0xff] %vm305_vm0, %v1511_v42 }
 0x155   : > { %v1354_v44 = vld [vmem:[%s2707_s25 + $0x38] sm:$0xff] }
 0x156   : > { %v1362_v46 = vadd.f32 %v1354_v44, %v1344_v43 }
 0x157   : > { %v1504_v47 = vld [vmem:[%s2707_s25 + $0x30] sm:$0xff] }
 0x158   : > { %1370 = vst.msk [vmem:[%s2707_s25 + $0x38] sm:$0xff] %vm305_vm0, %v1362_v46  ;;  %v1512_v48 = vadd.f32 %v1504_v47, %v1493_v45 }
 0x15a   : > { %1520 = vst.msk [vmem:[%s2707_s25 + $0x30] sm:$0xff] %vm305_vm0, %v1512_v48 }
 0x15f   : > { %v1505_v50 = vld [vmem:[%s2707_s25 + $0x38] sm:$0xff] }
 0x160   : > { %v1513_v51 = vadd.f32 %v1505_v50, %v1495_v49 }
 0x162   : > { %1521 = vst.msk [vmem:[%s2707_s25 + $0x38] sm:$0xff] %vm305_vm0, %v1513_v51 }
 0x163 PF: > { %s12_s11 = sadd.s32 1, %s2411_s11   ;;  %s2933_s9 = smov %s2407_s10 }
 0x164   : > { %p9_p6 = scmp.ge.s32.totalorder %s12_s11, 4   ;;  %s2934_s10 = smov %s2936_s12 }
 0x166   :  { %11 = sbr.rel (!%p9_p6) target bundleno = 2 (0x2), region = 74 }

// kernel: densenet_forward.30
= control target key start
LH: loop header
LB: loop body
LE: loop exit
PB: predicated region body
PF: predicated region fallthrough
CT: control target
= control target key end

     0   :  { %vm226_vm0 = vcmask 343040   ;;  %s531_s3 = inlined_call_operand.vmem [shape: bf16[128,42], index: 3, kind: input, shape index: {}]   ;;  %s532_s1 = inlined_call_operand.vmem [shape: f32[1,128], index: 1, kind: input, shape index: {}]   ;;  %s533_s2 = inlined_call_operand.vmem [shape: f32[1,128], index: 2, kind: input, shape index: {}]   ;;  %s534_s0 = inlined_call_operand.vmem [shape: bf16[128,128], index: 0, kind: input, shape index: {}]   ;;  %s535_s4 = inlined_call_operand.vmem [shape: f32[128,42], index: 4, kind: output, shape index: {}]  }
   0x1   :  { %v286_v0 = vld [vmem:[%s531_s3 + $0x38] sm:$0xff]  ;;  %v285_v1 = vld [vmem:[%s531_s3 + $0x30] sm:$0xff]  ;;  %v284_v2 = vld [vmem:[%s531_s3 + $0x28] sm:$0xff] }
   0x2   :  { %177 = vmatpush.bf16.msra.mxu0 %v286_v0  ;;  %326 = vmatpush.bf16.msra.mxu1 %v286_v0  ;;  %v288_v3 = vld [vmem:[%s534_s0] sm:$0xff]   ;;  %v320_v5 = vld [vmem:[%s534_s0 + $0x10] sm:$0xff]   ;;  %v282_v15 = vld [vmem:[%s531_s3 + $0x18] sm:$0xff] }
   0x3   :  { %327 = vmatpush.bf16.msra.mxu2 %v286_v0  ;;  %328 = vmatpush.bf16.msra.mxu3 %v286_v0  ;;  %v283_v4 = vld [vmem:[%s531_s3 + $0x20] sm:$0xff]  ;;  %v324_v7 = vld [vmem:[%s534_s0 + $0x30] sm:$0xff]   ;;  %v289_v8 = vunpack.c.l.bf16 %v288_v3  ;;  %v290_v9 = vunpack.c.h.bf16 %v288_v3  ;;  %v297_v11 = vunpack.c.l.bf16 %v320_v5  ;;  %v298_v12 = vunpack.c.h.bf16 %v320_v5  ;;  %v280_v34 = vld [vmem:[%s531_s3 + $0x8] sm:$0xff] }
   0x4   :  { %v322_v6 = vld [vmem:[%s534_s0 + $0x20] sm:$0xff]   ;;  %v313_v16 = vunpack.c.l.bf16 %v324_v7  ;;  %v314_v17 = vunpack.c.h.bf16 %v324_v7  ;;  %v281_v25 = vld [vmem:[%s531_s3 + $0x10] sm:$0xff]  ;;  %v319_v43 = vld [vmem:[%s534_s0 + $0x8] sm:$0xff]  }
   0x5   :  { %v404_v10 = vld [vmem:[%s532_s1] ss:$0 sm:$0xff]  ;;  %v305_v13 = vunpack.c.l.bf16 %v322_v6  ;;  %v306_v14 = vunpack.c.h.bf16 %v322_v6  ;;  %v321_v44 = vld [vmem:[%s534_s0 + $0x18] sm:$0xff]   ;;  %v323_v48 = vld [vmem:[%s534_s0 + $0x28] sm:$0xff]   ;;  %v293_v51 = vunpack.c.l.bf16 %v319_v43  ;;  %v294_v52 = vunpack.c.h.bf16 %v319_v43 }
   0x6   :  { %178 = vmatpush.bf16.msra.mxu0 %v285_v1  ;;  %329 = vmatpush.bf16.msra.mxu1 %v285_v1  ;;  %v53_v18 = vmul.f32 %v404_v10, %v289_v8  ;;  %v54_v19 = vmul.f32 %v404_v10, %v290_v9  ;;  %v414_v20 = vld [vmem:[%s533_s2] ss:$0 sm:$0xff]  ;;  %v57_v21 = vmul.f32 %v404_v10, %v297_v11  ;;  %v325_v49 = vld [vmem:[%s534_s0 + $0x38] sm:$0xff]   ;;  %v301_v53 = vunpack.c.l.bf16 %v321_v44 }
   0x7   :  { %330 = vmatpush.bf16.msra.mxu2 %v285_v1  ;;  %331 = vmatpush.bf16.msra.mxu3 %v285_v1  ;;  %v58_v22 = vmul.f32 %v404_v10, %v298_v12  ;;  %v61_v23 = vmul.f32 %v404_v10, %v305_v13  ;;  %v62_v24 = vmul.f32 %v404_v10, %v306_v14  ;;  %v279_v45 = vld [vmem:[%s531_s3] sm:$0xff]  ;;  %v302_v56 = vunpack.c.h.bf16 %v321_v44 }
   0x8   :  { %v65_v26 = vmul.f32 %v404_v10, %v313_v16  ;;  %v66_v27 = vmul.f32 %v404_v10, %v314_v17  ;;  %v73_v28 = vadd.f32 %v414_v20, %v53_v18  ;;  %v74_v29 = vadd.f32 %v414_v20, %v54_v19 }
   0x9   :  { %v77_v30 = vadd.f32 %v414_v20, %v57_v21  ;;  %v78_v31 = vadd.f32 %v414_v20, %v58_v22  ;;  %v81_v32 = vadd.f32 %v414_v20, %v61_v23  ;;  %v82_v33 = vadd.f32 %v414_v20, %v62_v24 }
   0xa   :  { %179 = vmatpush.bf16.msra.mxu0 %v284_v2  ;;  %332 = vmatpush.bf16.msra.mxu1 %v284_v2  ;;  %v85_v35 = vadd.f32 %v414_v20, %v65_v26  ;;  %v86_v36 = vadd.f32 %v414_v20, %v66_v27  ;;  %v89_v37 = vmax.f32 %v73_v28, 0.0  ;;  %v90_v38 = vmax.f32 %v74_v29, 0.0 }
   0xb   :  { %333 = vmatpush.bf16.msra.mxu2 %v284_v2  ;;  %334 = vmatpush.bf16.msra.mxu3 %v284_v2  ;;  %v93_v39 = vmax.f32 %v77_v30, 0.0  ;;  %v94_v40 = vmax.f32 %v78_v31, 0.0  ;;  %v97_v41 = vmax.f32 %v81_v32, 0.0  ;;  %v98_v42 = vmax.f32 %v82_v33, 0.0 }
   0xc   :  { %v101_v46 = vmax.f32 %v85_v35, 0.0  ;;  %v102_v47 = vmax.f32 %v86_v36, 0.0  ;;  %v105_v50 = vpack.c.bf16 %v90_v38, %v89_v37  ;;  %v309_v57 = vunpack.c.l.bf16 %v323_v48 }
   0xd   :  { %v107_v54 = vpack.c.bf16 %v94_v40, %v93_v39  ;;  %v109_v55 = vpack.c.bf16 %v98_v42, %v97_v41  ;;  %v310_v59 = vunpack.c.h.bf16 %v323_v48  ;;  %v317_v60 = vunpack.c.l.bf16 %v325_v49 }
   0xe   :  { %180 = vmatpush.bf16.msra.mxu0 %v283_v4  ;;  %335 = vmatpush.bf16.msra.mxu1 %v283_v4  ;;  %v111_v58 = vpack.c.bf16 %v102_v47, %v101_v46  ;;  %v318_v61 = vunpack.c.h.bf16 %v325_v49  ;;  %v55_v62 = vmul.f32 %v404_v10, %v293_v51  ;;  %v56_v63 = vmul.f32 %v404_v10, %v294_v52 }
   0xf   :  { %336 = vmatpush.bf16.msra.mxu2 %v283_v4  ;;  %337 = vmatpush.bf16.msra.mxu3 %v283_v4  ;;  %v59_v0 = vmul.f32 %v404_v10, %v301_v53  ;;  %v60_v1 = vmul.f32 %v404_v10, %v302_v56  ;;  %v63_v2 = vmul.f32 %v404_v10, %v309_v57 }
  0x10   :  { %v64_v3 = vmul.f32 %v404_v10, %v310_v59  ;;  %v67_v4 = vmul.f32 %v404_v10, %v317_v60  ;;  %v68_v5 = vmul.f32 %v404_v10, %v318_v61  ;;  %v75_v6 = vadd.f32 %v414_v20, %v55_v62 }
  0x11   :  { %v76_v7 = vadd.f32 %v414_v20, %v56_v63  ;;  %v79_v8 = vadd.f32 %v414_v20, %v59_v0  ;;  %v80_v9 = vadd.f32 %v414_v20, %v60_v1  ;;  %v83_v11 = vadd.f32 %v414_v20, %v63_v2 }
  0x12   :  { %181 = vmatpush.bf16.msra.mxu0 %v282_v15  ;;  %338 = vmatpush.bf16.msra.mxu1 %v282_v15  ;;  %v84_v12 = vadd.f32 %v414_v20, %v64_v3  ;;  %v87_v13 = vadd.f32 %v414_v20, %v67_v4  ;;  %v88_v14 = vadd.f32 %v414_v20, %v68_v5 }
  0x13   :  { %339 = vmatpush.bf16.msra.mxu2 %v282_v15  ;;  %340 = vmatpush.bf16.msra.mxu3 %v282_v15  ;;  %v91_v15 = vmax.f32 %v75_v6, 0.0  ;;  %v92_v16 = vmax.f32 %v76_v7, 0.0  ;;  %v95_v17 = vmax.f32 %v79_v8, 0.0  ;;  %v96_v10 = vmax.f32 %v80_v9, 0.0 }
  0x14   :  { %v99_v18 = vmax.f32 %v83_v11, 0.0  ;;  %v100_v19 = vmax.f32 %v84_v12, 0.0  ;;  %v103_v21 = vmax.f32 %v87_v13, 0.0  ;;  %v104_v22 = vmax.f32 %v88_v14, 0.0 }
  0x15   :  { %v106_v23 = vpack.c.bf16 %v92_v16, %v91_v15  ;;  %v108_v24 = vpack.c.bf16 %v96_v10, %v95_v17 }
  0x16   :  { %182 = vmatpush.bf16.msra.mxu0 %v281_v25  ;;  %341 = vmatpush.bf16.msra.mxu1 %v281_v25  ;;  %v112_v26 = vpack.c.bf16 %v104_v22, %v103_v21 }
  0x17   :  { %342 = vmatpush.bf16.msra.mxu2 %v281_v25  ;;  %343 = vmatpush.bf16.msra.mxu3 %v281_v25  ;;  %v110_v25 = vpack.c.bf16 %v100_v19, %v99_v18 }
  0x1a   :  { %183 = vmatpush.bf16.msra.mxu0 %v280_v34  ;;  %344 = vmatpush.bf16.msra.mxu1 %v280_v34 }
  0x1b   :  { %345 = vmatpush.bf16.msra.mxu2 %v280_v34  ;;  %346 = vmatpush.bf16.msra.mxu3 %v280_v34 }
  0x1e   :  { %184 = vmatpush.bf16.msra.mxu0 %v279_v45  ;;  %347 = vmatpush.bf16.msra.mxu1 %v279_v45 }
  0x1f   :  { %348 = vmatpush.bf16.msra.mxu2 %v279_v45  ;;  %349 = vmatpush.bf16.msra.mxu3 %v279_v45 }
  0x21   :  { %185 = vmatmul.bf16.vlgmr.msra.gmra.mxu0 %v105_v50  ;;  %195 = vmatmul.bf16.vlgmr.msra.gmra.mxu1 %v107_v54 }
  0x22   :  { %205 = vmatmul.bf16.vlgmr.msra.gmra.mxu2 %v109_v55  ;;  %215 = vmatmul.bf16.vlgmr.msra.gmra.mxu3 %v111_v58 }
  0x31   :  { %190 = vmatmul.bf16.gmra.mxu0 %v106_v23  ;;  %200 = vmatmul.bf16.gmra.mxu1 %v108_v24 }
  0x32   :  { %210 = vmatmul.bf16.gmra.mxu2 %v110_v25  ;;  %220 = vmatmul.bf16.gmra.mxu3 %v112_v26 }
  0x9e   :  { %v186_v27 = vpop.f32.mrf.mxu0  ;;  %v196_v28 = vpop.f32.mrf.mxu1 }
  0x9f   :  { %227 = vst.msk [vmem:[%s535_s4] sm:$0xff] %vm226_vm0, %v186_v27 }
  0xa0   :  { %231 = vst.msk [vmem:[%s535_s4 + $0x20] sm:$0xff] %vm226_vm0, %v196_v28 }
  0xa5   :  { %v206_v20 = vpop.f32.mrf.mxu2  ;;  %v216_v29 = vpop.f32.mrf.mxu3 }
  0xa6   :  { %235 = vst.msk [vmem:[%s535_s4 + $0x40] sm:$0xff] %vm226_vm0, %v206_v20  ;;  %v188_v30 = vpop.f32.mrf.mxu0  ;;  %v198_v31 = vpop.f32.mrf.mxu1 }
  0xa7   :  { %239 = vst.msk [vmem:[%s535_s4 + $0x60] sm:$0xff] %vm226_vm0, %v216_v29 }
  0xa8   :  { %228 = vst.msk [vmem:[%s535_s4 + $0x8] sm:$0xff] %vm226_vm0, %v188_v30 }
  0xa9   :  { %232 = vst.msk [vmem:[%s535_s4 + $0x28] sm:$0xff] %vm226_vm0, %v198_v31 }
  0xad   :  { %v208_v32 = vpop.f32.mrf.mxu2  ;;  %v218_v33 = vpop.f32.mrf.mxu3 }
  0xae   :  { %236 = vst.msk [vmem:[%s535_s4 + $0x48] sm:$0xff] %vm226_vm0, %v208_v32  ;;  %v191_v34 = vpop.f32.mrf.mxu0  ;;  %v201_v35 = vpop.f32.mrf.mxu1 }
  0xaf   :  { %240 = vst.msk [vmem:[%s535_s4 + $0x68] sm:$0xff] %vm226_vm0, %v218_v33 }
  0xb0   :  { %229 = vst.msk [vmem:[%s535_s4 + $0x10] sm:$0xff] %vm226_vm0, %v191_v34 }
  0xb1   :  { %233 = vst.msk [vmem:[%s535_s4 + $0x30] sm:$0xff] %vm226_vm0, %v201_v35 }
  0xb5   :  { %v211_v36 = vpop.f32.mrf.mxu2  ;;  %v221_v37 = vpop.f32.mrf.mxu3 }
  0xb6   :  { %237 = vst.msk [vmem:[%s535_s4 + $0x50] sm:$0xff] %vm226_vm0, %v211_v36  ;;  %v193_v38 = vpop.f32.mrf.mxu0  ;;  %v203_v39 = vpop.f32.mrf.mxu1 }
  0xb7   :  { %241 = vst.msk [vmem:[%s535_s4 + $0x70] sm:$0xff] %vm226_vm0, %v221_v37 }
  0xb8   :  { %230 = vst.msk [vmem:[%s535_s4 + $0x18] sm:$0xff] %vm226_vm0, %v193_v38 }
  0xb9   :  { %234 = vst.msk [vmem:[%s535_s4 + $0x38] sm:$0xff] %vm226_vm0, %v203_v39 }
  0xbd   :  { %v213_v40 = vpop.f32.mrf.mxu2  ;;  %v223_v41 = vpop.f32.mrf.mxu3 }
  0xbe   :  { %238 = vst.msk [vmem:[%s535_s4 + $0x58] sm:$0xff] %vm226_vm0, %v213_v40 }
  0xbf   :  { %242 = vst.msk [vmem:[%s535_s4 + $0x78] sm:$0xff] %vm226_vm0, %v223_v41 }

// kernel: densenet_forward.36
= control target key start
LH: loop header
LB: loop body
LE: loop exit
PB: predicated region body
PF: predicated region fallthrough
CT: control target
= control target key end

     0   :  { %s446_s15 = smov 0   ;;  %s448_s16 = smov 0   ;;  %s492_s0 = inlined_call_operand.vmem [shape: f32[2,4,4,90], index: 0, kind: input, shape index: {}]   ;;  %s493_s1 = inlined_call_operand.vmem [shape: f32[1,90], index: 1, kind: input, shape index: {}]   ;;  %s494_s2 = inlined_call_operand.vmem [shape: f32[1,90], index: 2, kind: input, shape index: {}]   ;;  %s495_s3 = inlined_call_operand.vmem [shape: f32[1,4], index: 3, kind: input, shape index: {}]   ;;  %s496_s4 = inlined_call_operand.vmem [shape: f32[2,1,1,90], index: 4, kind: output, shape index: {}]  }
   0x1   :  { %s450_s17 = smov 0  }
   0x2 LB: > { %s26_s18 = sadd.s32 1, %s415_s16  ;;  %p363_p0 = scmp.ge.s32.totalorder %s419_s17, 1  ;;  %s419_s17 = sphi %s450_s17, %s14_s17   ;;  %s415_s16 = sphi %s448_s16, %s498_s16   ;;  %s411_s15 = sphi %s446_s15, %s497_s15  }
   0x3   : > { %p28_p1 = scmp.ge.s32.totalorder %s26_s18, 2  ;;  %p183_p2 = scmp.lt.s32.totalorder %s419_s17, 3 }
   0x5   : > { %s500_s18 = smov (%p28_p1, %s26_s18), 0  ;;  %p184_p3 = pnand %p363_p0, %p183_p2 }
   0x6   : > { %p215_p4 = scmp.lt.s32.totalorder (!%p184_p3), %s411_s15, 1 }
   0x7   : > { %187 = sbr.rel (%p184_p3) target bundleno = 156 (0x9c), region = 36 }
   0xc   : > { %s502_s15 = smov (!%p215_p4, %s411_s15), 1  ;;  %v395_v0 = vld [vmem:[%s493_s1] ss:$0 sm:$0xff]  ;;  %vm262_vm0 = vcmask 1043456   ;;  %vm258_vm1 = vcmask 31744   ;;  %vm286_vm2 = vcmask 729088  }
   0xd   : > { %s370_s21 = sshll.u32 %s502_s15, 4  ;;  %v396_v1 = vld [vmem:[%s494_s2] ss:$0 sm:$0xff]  ;;  %s229_s5 = scalar_lea.vmem %s496_s4, %s502_s15 }
   0xe   : > { %s222_s24 = scalar_lea.vmem %s492_s0, %s370_s21  ;;  %v257_v21 = vld [vmem:[%s495_s3] sm:$0x1] }
   0xf   : > { %v230_v2 = vld [vmem:[%s222_s24] sm:$0xf]  ;;  %v231_v3 = vld [vmem:[%s222_s24 + $0x4] sm:$0xf]  ;;  %v232_v4 = vld [vmem:[%s222_s24 + $0x8] sm:$0xf] }
  0x10   : > { %v233_v5 = vld [vmem:[%s222_s24 + $0xc] sm:$0xf]  ;;  %v238_v6 = vmul.f32 %v395_v0, %v230_v2  ;;  %v239_v7 = vmul.f32 %v395_v0, %v231_v3  ;;  %v240_v8 = vmul.f32 %v395_v0, %v232_v4 }
  0x11   : > { %v241_v9 = vmul.f32 %v395_v0, %v233_v5 }
  0x12   : > { %v246_v10 = vadd.f32 %v396_v1, %v238_v6  ;;  %v247_v11 = vadd.f32 %v396_v1, %v239_v7  ;;  %v248_v12 = vadd.f32 %v396_v1, %v240_v8 }
  0x13   : > { %v249_v13 = vadd.f32 %v396_v1, %v241_v9 }
  0x14   : > { %v250_v14 = vmax.f32 %v246_v10, 0.0  ;;  %v251_v15 = vmax.f32 %v247_v11, 0.0  ;;  %v252_v16 = vmax.f32 %v248_v12, 0.0 }
  0x15   : > { %v253_v17 = vmax.f32 %v249_v13, 0.0 }
  0x16   : > { %v254_v18 = vadd.f32 %v251_v15, %v250_v14 }
  0x18   : > { %v255_v19 = vadd.f32 %v254_v18, %v252_v16 }
  0x1a   : > { %v256_v20 = vadd.f32 %v255_v19, %v253_v17 }
  0x1c   : > { %366 = vmatpush.msk.msra.mxu0 %vm262_vm0, %v256_v20 }
  0x1d   : > { %367 = vmatmul.msk.f32.vlgmr.msra.gmra.mxu0 %vm258_vm1, %v257_v21 }
  0x9a   : > { %v283_v22 = vpop.f32.mrf.mxu0 }
  0x9b   : > { %287 = vst.msk [vmem:[%s229_s5] sm:$0x1] %vm286_vm2, %v283_v22 }
  0x9c PF: > { %s14_s17 = sadd.s32 1, %s419_s17   ;;  %s497_s15 = smov %s415_s16 }
  0x9d   : > { %p11_p5 = scmp.ge.s32.totalorder %s14_s17, 4   ;;  %s498_s16 = smov %s500_s18 }
  0x9f   :  { %13 = sbr.rel (!%p11_p5) target bundleno = 2 (0x2), region = 66 }

// kernel: densenet_forward.37
= control target key start
LH: loop header
LB: loop body
LE: loop exit
PB: predicated region body
PF: predicated region fallthrough
CT: control target
= control target key end

     0   :  { %vm89_vm0 = vcmask 171008   ;;  %s180_s1 = inlined_call_operand.vmem [shape: bf16[128,21], index: 1, kind: input, shape index: {}]   ;;  %s181_s0 = inlined_call_operand.vmem [shape: bf16[8,128], index: 0, kind: input, shape index: {}]   ;;  %s182_s2 = inlined_call_operand.vmem [shape: f32[8,21], index: 2, kind: output, shape index: {}]  }
   0x1   :  { %v134_v0 = vld [vmem:[%s180_s1 + $0x38] sm:$0xff]  ;;  %v133_v1 = vld [vmem:[%s180_s1 + $0x30] sm:$0xff]  ;;  %v132_v2 = vld [vmem:[%s180_s1 + $0x28] sm:$0xff] }
   0x2   :  { %76 = vmatpush.bf16.msra.mxu0 %v134_v0  ;;  %v131_v3 = vld [vmem:[%s180_s1 + $0x20] sm:$0xff]  ;;  %v130_v4 = vld [vmem:[%s180_s1 + $0x18] sm:$0xff]  ;;  %v129_v5 = vld [vmem:[%s180_s1 + $0x10] sm:$0xff] }
   0x3   :  { %v128_v6 = vld [vmem:[%s180_s1 + $0x8] sm:$0xff]  ;;  %v127_v7 = vld [vmem:[%s180_s1] sm:$0xff] }
   0x4   :  { %v11_v8 = vld [vmem:[%s181_s0] sm:$0xf] }
   0x6   :  { %77 = vmatpush.bf16.msra.mxu0 %v133_v1 }
   0xa   :  { %78 = vmatpush.bf16.msra.mxu0 %v132_v2 }
   0xe   :  { %79 = vmatpush.bf16.msra.mxu0 %v131_v3 }
  0x12   :  { %80 = vmatpush.bf16.msra.mxu0 %v130_v4 }
  0x16   :  { %81 = vmatpush.bf16.msra.mxu0 %v129_v5 }
  0x1a   :  { %82 = vmatpush.bf16.msra.mxu0 %v128_v6 }
  0x1e   :  { %83 = vmatpush.bf16.msra.mxu0 %v127_v7 }
  0x21   :  { %84 = vmatmul.bf16.vlgmr.msra.gmra.mxu0 %v11_v8 }
  0x9e   :  { %v85_v9 = vpop.f32.mrf.mxu0 }
  0x9f   :  { %90 = vst.msk [vmem:[%s182_s2] sm:$0xff] %vm89_vm0, %v85_v9 }
  0xa6   :  { %v87_v10 = vpop.f32.mrf.mxu0 }

// kernel: densenet_forward.32
= control target key start
LH: loop header
LB: loop body
LE: loop exit
PB: predicated region body
PF: predicated region fallthrough
CT: control target
= control target key end

     0   :  { %s1884_s9 = smov 0   ;;  %s1886_s10 = smov 0   ;;  %s2282_s0 = inlined_call_operand.vmem [shape: bf16[6,6,4,128], index: 0, kind: input, shape index: {}]   ;;  %s2283_s1 = inlined_call_operand.vmem [shape: bf16[3,3,128,12], index: 1, kind: input, shape index: {}]   ;;  %s2284_s2 = inlined_call_operand.vmem [shape: f32[2,4,4,12], index: 2, kind: output, shape index: {}]  }
   0x1   :  { %s1888_s11 = smov 0  }
   0x2 LB: > { %s24_s12 = sadd.s32 1, %s1863_s10  ;;  %p1293_p0 = scmp.ge.s32.totalorder %s1867_s11, 1  ;;  %s1867_s11 = sphi %s1888_s11, %s12_s11   ;;  %s1863_s10 = sphi %s1886_s10, %s2286_s10   ;;  %s1859_s9 = sphi %s1884_s9, %s2285_s9  }
   0x3   : > { %p26_p1 = scmp.ge.s32.totalorder %s24_s12, 2  ;;  %p133_p2 = scmp.lt.s32.totalorder %s1867_s11, 3 }
   0x5   : > { %s2288_s12 = smov (%p26_p1, %s24_s12), 0  ;;  %p134_p3 = pnand %p1293_p0, %p133_p2 }
   0x6   : > { %s162_s17 = smul.u32 (!%p134_p3), 3, %s1859_s9  ;;  %p172_p5 = scmp.lt.s32.totalorder (!%p134_p3), %s1859_s9, 1 }
   0x7   : > { %137 = sbr.rel (%p134_p3) target bundleno = 262 (0x106), region = 28 }
   0x8   : > { %p163_p4 = scmp.lt.s32.totalorder (!%p134_p3), %s162_s17, 5 }
   0xc   : > { %v1755_v0 = vld [vmem:[%s2283_s1 + $0x38] sm:$0xff]  ;;  %v1754_v3 = vld [vmem:[%s2283_s1 + $0x30] sm:$0xff]  ;;  %s2290_s17 = smov (!%p163_p4, %s162_s17), 5  ;;  %v1753_v8 = vld [vmem:[%s2283_s1 + $0x28] sm:$0xff]  ;;  %s2292_s9 = smov (!%p172_p5, %s1859_s9), 1  ;;  %vm281_vm0 = vcmask 93184  }
   0xd   : > { %v1763_v1 = vld [vmem:[%s2283_s1 + $0x78] sm:$0xff]  ;;  %261 = vmatpush.bf16.msra.mxu0 %v1755_v0  ;;  %v1762_v4 = vld [vmem:[%s2283_s1 + $0x70] sm:$0xff]  ;;  %v1761_v9 = vld [vmem:[%s2283_s1 + $0x68] sm:$0xff]  ;;  %s1820_s6 = smul.u32 12, %s2290_s17  ;;  %s1747_s23 = sshll.u32 %s2292_s9, 4 }
   0xe   : > { %v1771_v2 = vld [vmem:[%s2283_s1 + $0xb8] sm:$0xff]  ;;  %369 = vmatpush.bf16.msra.mxu1 %v1763_v1  ;;  %v1770_v5 = vld [vmem:[%s2283_s1 + $0xb0] sm:$0xff]  ;;  %v1769_v10 = vld [vmem:[%s2283_s1 + $0xa8] sm:$0xff]  ;;  %s2167_s26 = scalar_lea.vmem %s2284_s2, %s1747_s23 }
   0xf   : > { %484 = vmatpush.bf16.msra.mxu2 %v1771_v2  ;;  %v1779_v6 = vld [vmem:[%s2283_s1 + $0xf8] sm:$0xff]  ;;  %v1778_v7 = vld [vmem:[%s2283_s1 + $0xf0] sm:$0xff]  ;;  %s1941_s15 = scalar_lea.vmem %s2282_s0, %s1820_s6  ;;  %v1752_v11 = vld [vmem:[%s2283_s1 + $0x20] sm:$0xff] }
  0x10   : > { %599 = vmatpush.bf16.msra.mxu3 %v1779_v6  ;;  %v1777_v12 = vld [vmem:[%s2283_s1 + $0xe8] sm:$0xff]  ;;  %v180_v13 = vld [vmem:[%s1941_s15] sm:$0x3]  ;;  %v181_v15 = vld [vmem:[%s1941_s15 + $0x2] sm:$0x3] }
  0x11   : > { %262 = vmatpush.bf16.msra.mxu0 %v1754_v3  ;;  %v1760_v14 = vld [vmem:[%s2283_s1 + $0x60] sm:$0xff]  ;;  %201 = vst [vmem:[#allocation1] ss:$4 sm:$0xff] %v180_v13  ;;  %v1751_v20 = vld [vmem:[%s2283_s1 + $0x18] sm:$0xff]  ;;  %v1750_v24 = vld [vmem:[%s2283_s1 + $0x10] sm:$0xff] }
  0x12   : > { %370 = vmatpush.bf16.msra.mxu1 %v1762_v4  ;;  %v182_v16 = vld [vmem:[%s1941_s15 + $0x4] sm:$0x3]  ;;  %v183_v18 = vld [vmem:[%s1941_s15 + $0x6] sm:$0x3]  ;;  %204 = vst [vmem:[#allocation1 + $0x1] ss:$4 sm:$0xff] %v181_v15 }
  0x13   : > { %485 = vmatpush.bf16.msra.mxu2 %v1770_v5  ;;  %v1768_v17 = vld [vmem:[%s2283_s1 + $0xa0] sm:$0xff]  ;;  %207 = vst [vmem:[#allocation1 + $0x2] ss:$4 sm:$0xff] %v182_v16  ;;  %v1759_v21 = vld [vmem:[%s2283_s1 + $0x58] sm:$0xff]  ;;  %v1758_v25 = vld [vmem:[%s2283_s1 + $0x50] sm:$0xff] }
  0x14   : > { %600 = vmatpush.bf16.msra.mxu3 %v1778_v7  ;;  %v1776_v19 = vld [vmem:[%s2283_s1 + $0xe0] sm:$0xff]  ;;  %210 = vst [vmem:[#allocation1 + $0x3] ss:$4 sm:$0xff] %v183_v18  ;;  %v1767_v22 = vld [vmem:[%s2283_s1 + $0x98] sm:$0xff]  ;;  %v1766_v26 = vld [vmem:[%s2283_s1 + $0x90] sm:$0xff] }
  0x15   : > { %263 = vmatpush.bf16.msra.mxu0 %v1753_v8  ;;  %v1775_v23 = vld [vmem:[%s2283_s1 + $0xd8] sm:$0xff]  ;;  %v1329_v27 = vld [vmem:[%s1941_s15 + $0xc] sm:$0x3]  ;;  %v1330_v28 = vld [vmem:[%s1941_s15 + $0xe] sm:$0x3] }
  0x16   : > { %371 = vmatpush.bf16.msra.mxu1 %v1761_v9  ;;  %v1331_v30 = vld [vmem:[%s1941_s15 + $0x10] sm:$0x3]  ;;  %v1749_v32 = vld [vmem:[%s2283_s1 + $0x8] sm:$0xff]  ;;  %v1332_v34 = vld [vmem:[%s1941_s15 + $0x12] sm:$0x3] }
  0x17   : > { %486 = vmatpush.bf16.msra.mxu2 %v1769_v10  ;;  %v1774_v31 = vld [vmem:[%s2283_s1 + $0xd0] sm:$0xff]  ;;  %v1757_v33 = vld [vmem:[%s2283_s1 + $0x48] sm:$0xff]  ;;  %v1748_v37 = vld [vmem:[%s2283_s1] sm:$0xff] }
  0x18   : > { %601 = vmatpush.bf16.msra.mxu3 %v1777_v12  ;;  %v1765_v35 = vld [vmem:[%s2283_s1 + $0x88] sm:$0xff]  ;;  %v1756_v38 = vld [vmem:[%s2283_s1 + $0x40] sm:$0xff]  ;;  %v1787_v39 = vld [vmem:[%s2283_s1 + $0x138] sm:$0xff] }
  0x19   : > { %264 = vmatpush.bf16.msra.mxu0 %v1752_v11  ;;  %v1773_v36 = vld [vmem:[%s2283_s1 + $0xc8] sm:$0xff]  ;;  %v1764_v40 = vld [vmem:[%s2283_s1 + $0x80] sm:$0xff]  ;;  %v1795_v41 = vld [vmem:[%s2283_s1 + $0x178] sm:$0xff] }
  0x1a   : > { %372 = vmatpush.bf16.msra.mxu1 %v1760_v14  ;;  %v1803_v42 = vld [vmem:[%s2283_s1 + $0x1b8] sm:$0xff]  ;;  %v1786_v43 = vld [vmem:[%s2283_s1 + $0x130] sm:$0xff]  ;;  %v1772_v45 = vld [vmem:[%s2283_s1 + $0xc0] sm:$0xff] }
  0x1b   : > { %487 = vmatpush.bf16.msra.mxu2 %v1768_v17  ;;  %v211_v29 = vld.sshfl [vmem:[#allocation1] sm:$0xff pattern:$0x73625140]  ;;  %v1381_v44 = vld [vmem:[%s1941_s15 + $0x18] sm:$0x3]  ;;  %v1794_v50 = vld [vmem:[%s2283_s1 + $0x170] sm:$0xff] }
  0x1c   : > { %602 = vmatpush.bf16.msra.mxu3 %v1776_v19  ;;  %309 = vst [vmem:[#allocation1] ss:$4 sm:$0xff] %v1329_v27  ;;  %v1382_v46 = vld [vmem:[%s1941_s15 + $0x1a] sm:$0x3]  ;;  %v1383_v47 = vld [vmem:[%s1941_s15 + $0x1c] sm:$0x3] }
  0x1d   : > { %265 = vmatpush.bf16.msra.mxu0 %v1751_v20  ;;  %312 = vst [vmem:[#allocation1 + $0x1] ss:$4 sm:$0xff] %v1330_v28  ;;  %v1811_v48 = vld [vmem:[%s2283_s1 + $0x1f8] sm:$0xff]  ;;  %v1802_v51 = vld [vmem:[%s2283_s1 + $0x1b0] sm:$0xff]  ;;  %v1785_v53 = vld [vmem:[%s2283_s1 + $0x128] sm:$0xff] }
  0x1e   : > { %373 = vmatpush.bf16.msra.mxu1 %v1759_v21  ;;  %315 = vst [vmem:[#allocation1 + $0x2] ss:$4 sm:$0xff] %v1331_v30  ;;  %v1384_v52 = vld [vmem:[%s1941_s15 + $0x1e] sm:$0x3]  ;;  %v1810_v54 = vld [vmem:[%s2283_s1 + $0x1f0] sm:$0xff]  ;;  %v1793_v55 = vld [vmem:[%s2283_s1 + $0x168] sm:$0xff] }
  0x1f   : > { %488 = vmatpush.bf16.msra.mxu2 %v1767_v22  ;;  %318 = vst [vmem:[#allocation1 + $0x3] ss:$4 sm:$0xff] %v1332_v34  ;;  %v1801_v56 = vld [vmem:[%s2283_s1 + $0x1a8] sm:$0xff]  ;;  %v1784_v57 = vld [vmem:[%s2283_s1 + $0x120] sm:$0xff]  ;;  %v1783_v1 = vld [vmem:[%s2283_s1 + $0x118] sm:$0xff] }
  0x20   : > { %603 = vmatpush.bf16.msra.mxu3 %v1775_v23  ;;  %v1809_v58 = vld [vmem:[%s2283_s1 + $0x1e8] sm:$0xff]  ;;  %v1792_v59 = vld [vmem:[%s2283_s1 + $0x160] sm:$0xff]  ;;  %v1791_v4 = vld [vmem:[%s2283_s1 + $0x158] sm:$0xff] }
  0x21   : > { %266 = vmatpush.bf16.msra.mxu0 %v1750_v24  ;;  %v1433_v60 = vld [vmem:[%s1941_s15 + $0x2] sm:$0x3]  ;;  %v1434_v62 = vld [vmem:[%s1941_s15 + $0x4] sm:$0x3]  ;;  %v1435_v63 = vld [vmem:[%s1941_s15 + $0x6] sm:$0x3] }
  0x22   : > { %374 = vmatpush.bf16.msra.mxu1 %v1758_v25  ;;  %v1800_v61 = vld [vmem:[%s2283_s1 + $0x1a0] sm:$0xff]  ;;  %v1436_v3 = vld [vmem:[%s1941_s15 + $0x8] sm:$0x3]  ;;  %v1799_v5 = vld [vmem:[%s2283_s1 + $0x198] sm:$0xff] }
  0x23   : > { %489 = vmatpush.bf16.msra.mxu2 %v1766_v26  ;;  %v1808_v2 = vld [vmem:[%s2283_s1 + $0x1e0] sm:$0xff]  ;;  %v1782_v6 = vld [vmem:[%s2283_s1 + $0x110] sm:$0xff]  ;;  %v1807_v7 = vld [vmem:[%s2283_s1 + $0x1d8] sm:$0xff] }
  0x24   : > { %604 = vmatpush.bf16.msra.mxu3 %v1774_v31  ;;  %v1790_v8 = vld [vmem:[%s2283_s1 + $0x150] sm:$0xff]  ;;  %v1781_v10 = vld [vmem:[%s2283_s1 + $0x108] sm:$0xff]  ;;  %v1780_v18 = vld [vmem:[%s2283_s1 + $0x100] sm:$0xff] }
  0x25   : > { %267 = vmatpush.bf16.msra.mxu0 %v1749_v32  ;;  %v1798_v9 = vld [vmem:[%s2283_s1 + $0x190] sm:$0xff]  ;;  %v1485_v11 = vld [vmem:[%s1941_s15 + $0xe] sm:$0x3]  ;;  %v1788_v20 = vld [vmem:[%s2283_s1 + $0x140] sm:$0xff] }
  0x26   : > { %375 = vmatpush.bf16.msra.mxu1 %v1757_v33  ;;  %v319_v49 = vld.sshfl [vmem:[#allocation1] sm:$0xff pattern:$0x73625140]  ;;  %v1789_v12 = vld [vmem:[%s2283_s1 + $0x148] sm:$0xff]  ;;  %v1806_v13 = vld [vmem:[%s2283_s1 + $0x1d0] sm:$0xff] }
  0x27   : > { %490 = vmatpush.bf16.msra.mxu2 %v1765_v35  ;;  %424 = vst [vmem:[#allocation1] ss:$4 sm:$0xff] %v1381_v44  ;;  %v1486_v14 = vld [vmem:[%s1941_s15 + $0x10] sm:$0x3]  ;;  %v1797_v15 = vld [vmem:[%s2283_s1 + $0x188] sm:$0xff]  ;;  %v1819_v21 = vld [vmem:[%s2283_s1 + $0x238] sm:$0xff] }
  0x28   : > { %605 = vmatpush.bf16.msra.mxu3 %v1773_v36  ;;  %427 = vst [vmem:[#allocation1 + $0x1] ss:$4 sm:$0xff] %v1382_v46  ;;  %v1487_v17 = vld [vmem:[%s1941_s15 + $0x12] sm:$0x3]  ;;  %v1488_v19 = vld [vmem:[%s1941_s15 + $0x14] sm:$0x3] }
  0x29   : > { %268 = vmatpush.bf16.msra.mxu0 %v1748_v37  ;;  %430 = vst [vmem:[#allocation1 + $0x2] ss:$4 sm:$0xff] %v1383_v47  ;;  %v1796_v22 = vld [vmem:[%s2283_s1 + $0x180] sm:$0xff]  ;;  %v1805_v23 = vld [vmem:[%s2283_s1 + $0x1c8] sm:$0xff]  ;;  %v1818_v24 = vld [vmem:[%s2283_s1 + $0x230] sm:$0xff] }
  0x2a   : > { %376 = vmatpush.bf16.msra.mxu1 %v1756_v38  ;;  %433 = vst [vmem:[#allocation1 + $0x3] ss:$4 sm:$0xff] %v1384_v52  ;;  %v1804_v25 = vld [vmem:[%s2283_s1 + $0x1c0] sm:$0xff]  ;;  %v1537_v26 = vld [vmem:[%s1941_s15 + $0x1a] sm:$0x3]  ;;  %v1817_v28 = vld [vmem:[%s2283_s1 + $0x228] sm:$0xff] }
  0x2b   : > { %491 = vmatpush.bf16.msra.mxu2 %v1764_v40  ;;  %v1538_v27 = vld [vmem:[%s1941_s15 + $0x1c] sm:$0x3]  ;;  %v1539_v30 = vld [vmem:[%s1941_s15 + $0x1e] sm:$0x3]  ;;  %v1540_v31 = vld [vmem:[%s1941_s15 + $0x20] sm:$0x3] }
  0x2c   : > { %269 = vmatmul.bf16.vlgmr.msra.gmra.mxu0 %v211_v29  ;;  %606 = vmatpush.bf16.msra.mxu3 %v1772_v45  ;;  %v1816_v32 = vld [vmem:[%s2283_s1 + $0x220] sm:$0xff]  ;;  %v1815_v33 = vld [vmem:[%s2283_s1 + $0x218] sm:$0xff]  ;;  %v1591_v37 = vld [vmem:[%s1941_s15 + $0x8] sm:$0x3] }
  0x2d   : > { %714 = vmatpush.bf16.msrb.mxu0 %v1787_v39  ;;  %377 = vmatmul.bf16.vlgmr.msra.gmra.mxu1 %v319_v49  ;;  %v1589_v34 = vld [vmem:[%s1941_s15 + $0x4] sm:$0x3]  ;;  %v1590_v35 = vld [vmem:[%s1941_s15 + $0x6] sm:$0x3]  ;;  %v1814_v38 = vld [vmem:[%s2283_s1 + $0x210] sm:$0xff] }
  0x2e   : > { %829 = vmatpush.bf16.msrb.mxu1 %v1795_v41  ;;  %v1592_v39 = vld [vmem:[%s1941_s15 + $0xa] sm:$0x3]  ;;  %v1812_v41 = vld [vmem:[%s2283_s1 + $0x200] sm:$0xff]  ;;  %v1643_v45 = vld [vmem:[%s1941_s15 + $0x14] sm:$0x3] }
  0x2f   : > { %944 = vmatpush.bf16.msrb.mxu2 %v1803_v42  ;;  %v1813_v40 = vld [vmem:[%s2283_s1 + $0x208] sm:$0xff]  ;;  %v1641_v42 = vld [vmem:[%s1941_s15 + $0x10] sm:$0x3]  ;;  %v1644_v46 = vld [vmem:[%s1941_s15 + $0x16] sm:$0x3] }
  0x30   : > { %1059 = vmatpush.bf16.msrb.mxu3 %v1811_v48  ;;  %v1693_v47 = vld [vmem:[%s1941_s15 + $0x1c] sm:$0x3]  ;;  %v1694_v48 = vld [vmem:[%s1941_s15 + $0x1e] sm:$0x3] }
  0x31   : > { %715 = vmatpush.bf16.msrb.mxu0 %v1786_v43  ;;  %v434_v0 = vld.sshfl [vmem:[#allocation1] sm:$0xff pattern:$0x73625140]  ;;  %v1642_v43 = vld [vmem:[%s1941_s15 + $0x12] sm:$0x3] }
  0x32   : > { %830 = vmatpush.bf16.msrb.mxu1 %v1794_v50  ;;  %492 = vmatmul.bf16.vlgmr.msra.gmra.mxu2 %v434_v0  ;;  %539 = vst [vmem:[#allocation1] ss:$4 sm:$0xff] %v1433_v60  ;;  %v1695_v50 = vld [vmem:[%s1941_s15 + $0x20] sm:$0x3] }
  0x33   : > { %945 = vmatpush.bf16.msrb.mxu2 %v1802_v51  ;;  %542 = vst [vmem:[#allocation1 + $0x1] ss:$4 sm:$0xff] %v1434_v62  ;;  %v1696_v51 = vld [vmem:[%s1941_s15 + $0x22] sm:$0x3] }
  0x34   : > { %1060 = vmatpush.bf16.msrb.mxu3 %v1810_v54  ;;  %545 = vst [vmem:[#allocation1 + $0x2] ss:$4 sm:$0xff] %v1435_v63 }
  0x35   : > { %716 = vmatpush.bf16.msrb.mxu0 %v1785_v53  ;;  %548 = vst [vmem:[#allocation1 + $0x3] ss:$4 sm:$0xff] %v1436_v3 }
  0x36   : > { %831 = vmatpush.bf16.msrb.mxu1 %v1793_v55 }
  0x37   : > { %946 = vmatpush.bf16.msrb.mxu2 %v1801_v56 }
  0x38   : > { %1061 = vmatpush.bf16.msrb.mxu3 %v1809_v58 }
  0x39   : > { %717 = vmatpush.bf16.msrb.mxu0 %v1784_v57 }
  0x3a   : > { %832 = vmatpush.bf16.msrb.mxu1 %v1792_v59 }
  0x3b   : > { %947 = vmatpush.bf16.msrb.mxu2 %v1800_v61 }
  0x3c   : > { %1062 = vmatpush.bf16.msrb.mxu3 %v1808_v2  ;;  %v549_v16 = vld.sshfl [vmem:[#allocation1] sm:$0xff pattern:$0x73625140] }
  0x3d   : > { %718 = vmatpush.bf16.msrb.mxu0 %v1783_v1  ;;  %607 = vmatmul.bf16.vlgmr.msra.gmra.mxu3 %v549_v16  ;;  %654 = vst [vmem:[#allocation1] ss:$4 sm:$0xff] %v1485_v11 }
  0x3e   : > { %833 = vmatpush.bf16.msrb.mxu1 %v1791_v4  ;;  %657 = vst [vmem:[#allocation1 + $0x1] ss:$4 sm:$0xff] %v1486_v14 }
  0x3f   : > { %948 = vmatpush.bf16.msrb.mxu2 %v1799_v5  ;;  %660 = vst [vmem:[#allocation1 + $0x2] ss:$4 sm:$0xff] %v1487_v17 }
  0x40   : > { %1063 = vmatpush.bf16.msrb.mxu3 %v1807_v7  ;;  %663 = vst [vmem:[#allocation1 + $0x3] ss:$4 sm:$0xff] %v1488_v19 }
  0x41   : > { %719 = vmatpush.bf16.msrb.mxu0 %v1782_v6 }
  0x42   : > { %834 = vmatpush.bf16.msrb.mxu1 %v1790_v8 }
  0x43   : > { %949 = vmatpush.bf16.msrb.mxu2 %v1798_v9 }
  0x44   : > { %1064 = vmatpush.bf16.msrb.mxu3 %v1806_v13 }
  0x45   : > { %720 = vmatpush.bf16.msrb.mxu0 %v1781_v10 }
  0x46   : > { %835 = vmatpush.bf16.msrb.mxu1 %v1789_v12 }
  0x47   : > { %950 = vmatpush.bf16.msrb.mxu2 %v1797_v15  ;;  %v664_v29 = vld.sshfl [vmem:[#allocation1] sm:$0xff pattern:$0x73625140] }
  0x48   : > { %1065 = vmatpush.bf16.msrb.mxu3 %v1805_v23  ;;  %769 = vst [vmem:[#allocation1] ss:$4 sm:$0xff] %v1537_v26 }
  0x49   : > { %721 = vmatpush.bf16.msrb.mxu0 %v1780_v18  ;;  %772 = vst [vmem:[#allocation1 + $0x1] ss:$4 sm:$0xff] %v1538_v27 }
  0x4a   : > { %836 = vmatpush.bf16.msrb.mxu1 %v1788_v20  ;;  %775 = vst [vmem:[#allocation1 + $0x2] ss:$4 sm:$0xff] %v1539_v30 }
  0x4b   : > { %951 = vmatpush.bf16.msrb.mxu2 %v1796_v22  ;;  %778 = vst [vmem:[#allocation1 + $0x3] ss:$4 sm:$0xff] %v1540_v31 }
  0x4c   : > { %1066 = vmatpush.bf16.msrb.mxu3 %v1804_v25  ;;  %722 = vmatmul.bf16.vlgmr.msrb.gmra.mxu0 %v664_v29 }
  0x4d   : > { %1174 = vmatpush.bf16.msra.mxu0 %v1819_v21 }
  0x51   : > { %1175 = vmatpush.bf16.msra.mxu0 %v1818_v24 }
  0x52   : > { %v779_v36 = vld.sshfl [vmem:[#allocation1] sm:$0xff pattern:$0x73625140] }
  0x53   : > { %837 = vmatmul.bf16.vlgmr.msrb.gmra.mxu1 %v779_v36  ;;  %884 = vst [vmem:[#allocation1] ss:$4 sm:$0xff] %v1589_v34 }
  0x54   : > { %887 = vst [vmem:[#allocation1 + $0x1] ss:$4 sm:$0xff] %v1590_v35 }
  0x55   : > { %1176 = vmatpush.bf16.msra.mxu0 %v1817_v28  ;;  %890 = vst [vmem:[#allocation1 + $0x2] ss:$4 sm:$0xff] %v1591_v37 }
  0x56   : > { %893 = vst [vmem:[#allocation1 + $0x3] ss:$4 sm:$0xff] %v1592_v39 }
  0x59   : > { %1177 = vmatpush.bf16.msra.mxu0 %v1816_v32 }
  0x5d   : > { %1178 = vmatpush.bf16.msra.mxu0 %v1815_v33  ;;  %v894_v44 = vld.sshfl [vmem:[#allocation1] sm:$0xff pattern:$0x73625140] }
  0x5e   : > { %952 = vmatmul.bf16.vlgmr.msrb.gmra.mxu2 %v894_v44  ;;  %999 = vst [vmem:[#allocation1] ss:$4 sm:$0xff] %v1641_v42 }
  0x5f   : > { %1002 = vst [vmem:[#allocation1 + $0x1] ss:$4 sm:$0xff] %v1642_v43 }
  0x60   : > { %1005 = vst [vmem:[#allocation1 + $0x2] ss:$4 sm:$0xff] %v1643_v45 }
  0x61   : > { %1179 = vmatpush.bf16.msra.mxu0 %v1814_v38  ;;  %1008 = vst [vmem:[#allocation1 + $0x3] ss:$4 sm:$0xff] %v1644_v46 }
  0x65   : > { %1180 = vmatpush.bf16.msra.mxu0 %v1813_v40 }
  0x68   : > { %v1009_v49 = vld.sshfl [vmem:[#allocation1] sm:$0xff pattern:$0x73625140] }
  0x69   : > { %1181 = vmatpush.bf16.msra.mxu0 %v1812_v41  ;;  %1067 = vmatmul.bf16.vlgmr.msrb.gmra.mxu3 %v1009_v49  ;;  %1114 = vst [vmem:[#allocation1] ss:$4 sm:$0xff] %v1693_v47 }
  0x6a   : > { %1117 = vst [vmem:[#allocation1 + $0x1] ss:$4 sm:$0xff] %v1694_v48 }
  0x6b   : > { %1120 = vst [vmem:[#allocation1 + $0x2] ss:$4 sm:$0xff] %v1695_v50 }
  0x6c   : > { %1123 = vst [vmem:[#allocation1 + $0x3] ss:$4 sm:$0xff] %v1696_v51 }
  0x73   : > { %v1124_v52 = vld.sshfl [vmem:[#allocation1] sm:$0xff pattern:$0x73625140] }
  0x74   : > { %1182 = vmatmul.bf16.vlgmr.msra.gmra.mxu0 %v1124_v52 }
  0xa9   : > { %v270_v53 = vpop.f32.mrf.mxu0 }
  0xaa   : > { %v277_v54 = vrot.slane %v270_v53, 4  ;;  %282 = vst.msk [vmem:[%s2167_s26] sm:$0xf] %vm281_vm0, %v270_v53  ;;  %v378_v55 = vpop.f32.mrf.mxu1 }
  0xab   : > { %v385_v56 = vrot.slane %v378_v55, 4 }
  0xac   : > { %283 = vst.msk [vmem:[%s2167_s26 + $0x4] sm:$0xf] %vm281_vm0, %v277_v54 }
  0xb1   : > { %v389_v57 = vld [vmem:[%s2167_s26] sm:$0xf]  ;;  %v272_v58 = vpop.f32.mrf.mxu0 }
  0xb2   : > { %v393_v59 = vadd.f32 %v389_v57, %v378_v55  ;;  %v278_v60 = vrot.slane %v272_v58, 4  ;;  %284 = vst.msk [vmem:[%s2167_s26 + $0x8] sm:$0xf] %vm281_vm0, %v272_v58  ;;  %v380_v63 = vpop.f32.mrf.mxu1 }
  0xb3   : > { %v390_v61 = vld [vmem:[%s2167_s26 + $0x4] sm:$0xf]  ;;  %v386_v3 = vrot.slane %v380_v63, 4 }
  0xb4   : > { %v394_v62 = vadd.f32 %v390_v61, %v385_v56  ;;  %397 = vst.msk [vmem:[%s2167_s26] sm:$0xf] %vm281_vm0, %v393_v59 }
  0xb5   : > { %285 = vst.msk [vmem:[%s2167_s26 + $0xc] sm:$0xf] %vm281_vm0, %v278_v60  ;;  %v493_v2 = vpop.f32.mrf.mxu2 }
  0xb6   : > { %398 = vst.msk [vmem:[%s2167_s26 + $0x4] sm:$0xf] %vm281_vm0, %v394_v62  ;;  %v500_v4 = vrot.slane %v493_v2, 4 }
  0xb9   : > { %v391_v0 = vld [vmem:[%s2167_s26 + $0x8] sm:$0xf] }
  0xba   : > { %v395_v1 = vadd.f32 %v391_v0, %v380_v63 }
  0xbb   : > { %v504_v5 = vld [vmem:[%s2167_s26] sm:$0xf] }
  0xbc   : > { %v392_v6 = vld [vmem:[%s2167_s26 + $0xc] sm:$0xf]  ;;  %399 = vst.msk [vmem:[%s2167_s26 + $0x8] sm:$0xf] %vm281_vm0, %v395_v1  ;;  %v508_v7 = vadd.f32 %v504_v5, %v493_v2 }
  0xbd   : > { %v396_v8 = vadd.f32 %v392_v6, %v386_v3  ;;  %v505_v9 = vld [vmem:[%s2167_s26 + $0x4] sm:$0xf]  ;;  %v495_v11 = vpop.f32.mrf.mxu2 }
  0xbe   : > { %v509_v10 = vadd.f32 %v505_v9, %v500_v4  ;;  %512 = vst.msk [vmem:[%s2167_s26] sm:$0xf] %vm281_vm0, %v508_v7  ;;  %v501_v14 = vrot.slane %v495_v11, 4 }
  0xbf   : > { %400 = vst.msk [vmem:[%s2167_s26 + $0xc] sm:$0xf] %vm281_vm0, %v396_v8 }
  0xc0   : > { %513 = vst.msk [vmem:[%s2167_s26 + $0x4] sm:$0xf] %vm281_vm0, %v509_v10  ;;  %v608_v15 = vpop.f32.mrf.mxu3 }
  0xc1   : > { %v615_v18 = vrot.slane %v608_v15, 4 }
  0xc3   : > { %v506_v12 = vld [vmem:[%s2167_s26 + $0x8] sm:$0xf] }
  0xc4   : > { %v510_v13 = vadd.f32 %v506_v12, %v495_v11 }
  0xc5   : > { %v619_v16 = vld [vmem:[%s2167_s26] sm:$0xf] }
  0xc6   : > { %v507_v17 = vld [vmem:[%s2167_s26 + $0xc] sm:$0xf]  ;;  %514 = vst.msk [vmem:[%s2167_s26 + $0x8] sm:$0xf] %vm281_vm0, %v510_v13  ;;  %v623_v19 = vadd.f32 %v619_v16, %v608_v15 }
  0xc7   : > { %v511_v20 = vadd.f32 %v507_v17, %v501_v14  ;;  %v620_v21 = vld [vmem:[%s2167_s26 + $0x4] sm:$0xf] }
  0xc8   : > { %v624_v22 = vadd.f32 %v620_v21, %v615_v18  ;;  %627 = vst.msk [vmem:[%s2167_s26] sm:$0xf] %vm281_vm0, %v623_v19  ;;  %v610_v24 = vpop.f32.mrf.mxu3 }
  0xc9   : > { %515 = vst.msk [vmem:[%s2167_s26 + $0xc] sm:$0xf] %vm281_vm0, %v511_v20  ;;  %v723_v23 = vpop.f32.mrf.mxu0  ;;  %v616_v28 = vrot.slane %v610_v24, 4 }
  0xca   : > { %628 = vst.msk [vmem:[%s2167_s26 + $0x4] sm:$0xf] %vm281_vm0, %v624_v22  ;;  %v730_v27 = vrot.slane %v723_v23, 4 }
  0xcd   : > { %v621_v25 = vld [vmem:[%s2167_s26 + $0x8] sm:$0xf] }
  0xce   : > { %v625_v26 = vadd.f32 %v621_v25, %v610_v24 }
  0xcf   : > { %v734_v29 = vld [vmem:[%s2167_s26] sm:$0xf] }
  0xd0   : > { %v622_v30 = vld [vmem:[%s2167_s26 + $0xc] sm:$0xf]  ;;  %629 = vst.msk [vmem:[%s2167_s26 + $0x8] sm:$0xf] %vm281_vm0, %v625_v26  ;;  %v738_v31 = vadd.f32 %v734_v29, %v723_v23  ;;  %v838_v36 = vpop.f32.mrf.mxu1 }
  0xd1   : > { %v626_v32 = vadd.f32 %v622_v30, %v616_v28  ;;  %v735_v33 = vld [vmem:[%s2167_s26 + $0x4] sm:$0xf]  ;;  %v725_v35 = vpop.f32.mrf.mxu0  ;;  %v845_v39 = vrot.slane %v838_v36, 4 }
  0xd2   : > { %v739_v34 = vadd.f32 %v735_v33, %v730_v27  ;;  %742 = vst.msk [vmem:[%s2167_s26] sm:$0xf] %vm281_vm0, %v738_v31  ;;  %v731_v40 = vrot.slane %v725_v35, 4 }
  0xd3   : > { %630 = vst.msk [vmem:[%s2167_s26 + $0xc] sm:$0xf] %vm281_vm0, %v626_v32 }
  0xd4   : > { %743 = vst.msk [vmem:[%s2167_s26 + $0x4] sm:$0xf] %vm281_vm0, %v739_v34 }
  0xd7   : > { %v736_v37 = vld [vmem:[%s2167_s26 + $0x8] sm:$0xf] }
  0xd8   : > { %v740_v38 = vadd.f32 %v736_v37, %v725_v35  ;;  %v840_v47 = vpop.f32.mrf.mxu1 }
  0xd9   : > { %v849_v41 = vld [vmem:[%s2167_s26] sm:$0xf]  ;;  %v846_v50 = vrot.slane %v840_v47, 4 }
  0xda   : > { %v737_v42 = vld [vmem:[%s2167_s26 + $0xc] sm:$0xf]  ;;  %744 = vst.msk [vmem:[%s2167_s26 + $0x8] sm:$0xf] %vm281_vm0, %v740_v38  ;;  %v853_v43 = vadd.f32 %v849_v41, %v838_v36 }
  0xdb   : > { %v741_v44 = vadd.f32 %v737_v42, %v731_v40  ;;  %v850_v45 = vld [vmem:[%s2167_s26 + $0x4] sm:$0xf] }
  0xdc   : > { %v854_v46 = vadd.f32 %v850_v45, %v845_v39  ;;  %857 = vst.msk [vmem:[%s2167_s26] sm:$0xf] %vm281_vm0, %v853_v43 }
  0xdd   : > { %745 = vst.msk [vmem:[%s2167_s26 + $0xc] sm:$0xf] %vm281_vm0, %v741_v44 }
  0xde   : > { %858 = vst.msk [vmem:[%s2167_s26 + $0x4] sm:$0xf] %vm281_vm0, %v854_v46 }
  0xe1   : > { %v851_v48 = vld [vmem:[%s2167_s26 + $0x8] sm:$0xf]  ;;  %v953_v54 = vpop.f32.mrf.mxu2 }
  0xe2   : > { %v855_v49 = vadd.f32 %v851_v48, %v840_v47  ;;  %v960_v56 = vrot.slane %v953_v54, 4 }
  0xe3   : > { %v964_v52 = vld [vmem:[%s2167_s26] sm:$0xf] }
  0xe4   : > { %v852_v51 = vld [vmem:[%s2167_s26 + $0xc] sm:$0xf]  ;;  %859 = vst.msk [vmem:[%s2167_s26 + $0x8] sm:$0xf] %vm281_vm0, %v855_v49  ;;  %v968_v57 = vadd.f32 %v964_v52, %v953_v54 }
  0xe5   : > { %v856_v53 = vadd.f32 %v852_v51, %v846_v50  ;;  %v965_v55 = vld [vmem:[%s2167_s26 + $0x4] sm:$0xf] }
  0xe6   : > { %v969_v58 = vadd.f32 %v965_v55, %v960_v56  ;;  %972 = vst.msk [vmem:[%s2167_s26] sm:$0xf] %vm281_vm0, %v968_v57 }
  0xe7   : > { %860 = vst.msk [vmem:[%s2167_s26 + $0xc] sm:$0xf] %vm281_vm0, %v856_v53 }
  0xe8   : > { %973 = vst.msk [vmem:[%s2167_s26 + $0x4] sm:$0xf] %vm281_vm0, %v969_v58 }
  0xe9   : > { %v955_v60 = vpop.f32.mrf.mxu2 }
  0xea   : > { %v961_v62 = vrot.slane %v955_v60, 4 }
  0xeb   : > { %v966_v59 = vld [vmem:[%s2167_s26 + $0x8] sm:$0xf] }
  0xec   : > { %v970_v63 = vadd.f32 %v966_v59, %v955_v60  ;;  %v1068_v2 = vpop.f32.mrf.mxu3 }
  0xed   : > { %v1079_v0 = vld [vmem:[%s2167_s26] sm:$0xf]  ;;  %v1075_v3 = vrot.slane %v1068_v2, 4 }
  0xee   : > { %v967_v61 = vld [vmem:[%s2167_s26 + $0xc] sm:$0xf]  ;;  %974 = vst.msk [vmem:[%s2167_s26 + $0x8] sm:$0xf] %vm281_vm0, %v970_v63  ;;  %v1083_v5 = vadd.f32 %v1079_v0, %v1068_v2 }
  0xef   : > { %v971_v1 = vadd.f32 %v967_v61, %v961_v62  ;;  %v1080_v4 = vld [vmem:[%s2167_s26 + $0x4] sm:$0xf] }
  0xf0   : > { %v1084_v6 = vadd.f32 %v1080_v4, %v1075_v3  ;;  %1087 = vst.msk [vmem:[%s2167_s26] sm:$0xf] %vm281_vm0, %v1083_v5 }
  0xf1   : > { %975 = vst.msk [vmem:[%s2167_s26 + $0xc] sm:$0xf] %vm281_vm0, %v971_v1  ;;  %v1183_v7 = vpop.f32.mrf.mxu0 }
  0xf2   : > { %1088 = vst.msk [vmem:[%s2167_s26 + $0x4] sm:$0xf] %vm281_vm0, %v1084_v6  ;;  %v1190_v13 = vrot.slane %v1183_v7, 4 }
  0xf4   : > { %v1070_v9 = vpop.f32.mrf.mxu3 }
  0xf5   : > { %v1081_v8 = vld [vmem:[%s2167_s26 + $0x8] sm:$0xf]  ;;  %v1076_v10 = vrot.slane %v1070_v9, 4 }
  0xf6   : > { %v1085_v12 = vadd.f32 %v1081_v8, %v1070_v9 }
  0xf7   : > { %v1194_v14 = vld [vmem:[%s2167_s26] sm:$0xf] }
  0xf8   : > { %v1082_v11 = vld [vmem:[%s2167_s26 + $0xc] sm:$0xf]  ;;  %1089 = vst.msk [vmem:[%s2167_s26 + $0x8] sm:$0xf] %vm281_vm0, %v1085_v12  ;;  %v1198_v16 = vadd.f32 %v1194_v14, %v1183_v7 }
  0xf9   : > { %v1086_v15 = vadd.f32 %v1082_v11, %v1076_v10  ;;  %v1195_v17 = vld [vmem:[%s2167_s26 + $0x4] sm:$0xf]  ;;  %v1185_v19 = vpop.f32.mrf.mxu0 }
  0xfa   : > { %v1199_v18 = vadd.f32 %v1195_v17, %v1190_v13  ;;  %1202 = vst.msk [vmem:[%s2167_s26] sm:$0xf] %vm281_vm0, %v1198_v16  ;;  %v1191_v21 = vrot.slane %v1185_v19, 4 }
  0xfb   : > { %1090 = vst.msk [vmem:[%s2167_s26 + $0xc] sm:$0xf] %vm281_vm0, %v1086_v15 }
  0xfc   : > { %1203 = vst.msk [vmem:[%s2167_s26 + $0x4] sm:$0xf] %vm281_vm0, %v1199_v18 }
  0xff   : > { %v1196_v20 = vld [vmem:[%s2167_s26 + $0x8] sm:$0xf] }
 0x100   : > { %v1200_v22 = vadd.f32 %v1196_v20, %v1185_v19 }
 0x102   : > { %v1197_v23 = vld [vmem:[%s2167_s26 + $0xc] sm:$0xf]  ;;  %1204 = vst.msk [vmem:[%s2167_s26 + $0x8] sm:$0xf] %vm281_vm0, %v1200_v22 }
 0x103   : > { %v1201_v24 = vadd.f32 %v1197_v23, %v1191_v21 }
 0x105   : > { %1205 = vst.msk [vmem:[%s2167_s26 + $0xc] sm:$0xf] %vm281_vm0, %v1201_v24 }
 0x106 PF: > { %s12_s11 = sadd.s32 1, %s1867_s11   ;;  %s2285_s9 = smov %s1863_s10 }
 0x107   : > { %p9_p6 = scmp.ge.s32.totalorder %s12_s11, 4   ;;  %s2286_s10 = smov %s2288_s12 }
 0x109   :  { %11 = sbr.rel (!%p9_p6) target bundleno = 2 (0x2), region = 101 }

</bundles_post_ra>
